<compile_context>
chip_gen: v5e
topology: v5e:2x2
jax: 0.10.0
libtpu: 0.0.40
codegen_flags: <defaults>
</compile_context>

<pallas_src>
import math

import jax
import jax.numpy as jnp
from jax import lax
from jax.experimental import pallas as pl
from jax.experimental.pallas import tpu as pltpu


def _round_up(x: int, m: int) -> int:
    return ((x + m - 1) // m) * m


def _layernorm(x, gamma, beta, eps):
    mu = jnp.mean(x, axis=-1, keepdims=True)
    xc = x - mu
    var = jnp.mean(xc * xc, axis=-1, keepdims=True)
    return xc * lax.rsqrt(var + eps) * gamma + beta


def _gelu_exact(x):
    # matches torch.nn.GELU() default (exact, erf-based)
    return 0.5 * x * (1.0 + lax.erf(x * (1.0 / math.sqrt(2.0))))


def _chip_config():
    """Per-generation tiling defaults (point-tile size, scoped-VMEM cap, MLP chunking)."""
    kind = ""
    try:
        kind = jax.devices()[0].device_kind.lower()
    except Exception:
        pass
    if "v5 lite" in kind or "v5e" in kind or "v5lite" in kind:
        # 128 MiB VMEM, 197 TF/s: tall tiles keep the kernel MXU-bound.
        return dict(tile_n=1024, vmem_limit_bytes=100 * 1024 * 1024, mlp_chunks=1)
    if "v6" in kind:
        # 128 MiB VMEM: don't cap at an artificial 56 MB, use tall tiles.
        return dict(tile_n=1024, vmem_limit_bytes=100 * 1024 * 1024, mlp_chunks=1)
    if "7" in kind:
        # v7x: 64 MiB physical VMEM -> smaller point tiles + chunked MLP hidden dim.
        return dict(tile_n=256, vmem_limit_bytes=56 * 1024 * 1024, mlp_chunks=4)
    return dict(tile_n=512, vmem_limit_bytes=64 * 1024 * 1024, mlp_chunks=2)


def _decoder_kernel(
    fq_ref, kt_ref, v_ref,
    wqp_ref, bqp_ref,
    ln1g_ref, ln1b_ref,
    wq_ref, bq_ref,
    wpr_ref, bpr_ref,
    ln3g_ref, ln3b_ref,
    wfc_ref, bfc_ref, wmp_ref, bmp_ref,
    lnpg_ref, lnpb_ref,
    woutt_ref, boutc_ref,
    out_ref,
    acc_ref,
):
    f32, bf16 = jnp.float32, jnp.bfloat16
    heads = wq_ref.shape[0]
    n_mlp_chunks = wfc_ref.shape[0]

    # query_proj on zero-padded fourier features (128-lane padded, unmasked loads)
    qe = jnp.dot(fq_ref[...], wqp_ref[...],
                 preferred_element_type=f32) + bqp_ref[...]            # (TN, W) f32

    # ---- ResidualCrossAttentionBlock: cross-attention branch ----
    # ln_2 + c_kv of the latents are hoisted to the wrapper (grid-invariant);
    # K arrives pre-transposed / head-major as kt_ref (H, d, M), V as (H, M, d).
    xq = _layernorm(qe, ln1g_ref[...], ln1b_ref[...], 1e-6).astype(bf16)

    acc_ref[...] = jnp.zeros_like(acc_ref)

    def head_body(h, carry):
        # per-head Q projection (SDPA 1/sqrt(d) scale folded into wq/bq)
        qh = (jnp.dot(xq, wq_ref[h], preferred_element_type=f32)
              + bq_ref[h]).astype(bf16)                                # (TN, d)
        # scores: last-with-first contraction, M lane-dense (K already transposed)
        s = jnp.dot(qh, kt_ref[h], preferred_element_type=f32)         # (TN, M)
        s = s - jnp.max(s, axis=-1, keepdims=True)
        # NOTE: exp could be computed in bf16 on v6e/v7x if the EUP slot binds.
        p = jnp.exp(s)
        p = p * pl.reciprocal(jnp.sum(p, axis=-1, keepdims=True), approx=True)
        oh = jnp.dot(p.astype(bf16), v_ref[h], preferred_element_type=f32)   # (TN, d)
        # per-head slice of c_proj, accumulated over heads
        acc_ref[...] += jnp.dot(oh.astype(bf16), wpr_ref[h],
                                preferred_element_type=f32)
        return carry

    lax.fori_loop(0, heads, head_body, 0)

    x = qe + acc_ref[...] + bpr_ref[...]                               # residual 1

    # ---- ResidualCrossAttentionBlock: MLP branch (hidden dim chunked) ----
    h3 = _layernorm(x, ln3g_ref[...], ln3b_ref[...], 1e-6).astype(bf16)
    acc_ref[...] = x                                                   # residual stream

    def mlp_body(c, carry):
        hid = jnp.dot(h3, wfc_ref[c], preferred_element_type=f32) + bfc_ref[c]
        hid = _gelu_exact(hid).astype(bf16)
        acc_ref[...] += jnp.dot(hid, wmp_ref[c], preferred_element_type=f32)
        return carry

    lax.fori_loop(0, n_mlp_chunks, mlp_body, 0)

    x = acc_ref[...] + bmp_ref[...]                                    # residual 2

    # ln_post (torch default eps=1e-5) + output_proj, emitted transposed
    # (out_ch on sublanes, points on lanes) so the writeback is lane-dense.
    xl = _layernorm(x, lnpg_ref[...], lnpb_ref[...], 1e-5).astype(bf16)
    occ_t = lax.dot_general(woutt_ref[...], xl, (((1,), (1,)), ((), ())),
                            preferred_element_type=f32) + boutc_ref[...]   # (out_ch, TN)
    out_ref[...] = occ_t.astype(out_ref.dtype)


def fourier_embed(x, num_freqs=6, logspace=True, include_input=True, include_pi=True):
    # plain-JAX glue: sin/cos feature expansion of the 3-D query points
    if num_freqs <= 0:
        return x
    if logspace:
        freqs = 2.0 ** jnp.arange(num_freqs, dtype=x.dtype)
    else:
        freqs = jnp.linspace(1.0, 2.0 ** (num_freqs - 1), num_freqs, dtype=x.dtype)
    if include_pi:
        freqs = freqs * jnp.pi
    emb = (x[..., None] * freqs).reshape(*x.shape[:-1], -1)
    if include_input:
        return jnp.concatenate([x, jnp.sin(emb), jnp.cos(emb)], axis=-1)
    return jnp.concatenate([jnp.sin(emb), jnp.cos(emb)], axis=-1)


def prepare_decoder_params(params, *, heads, fourier_dim, mlp_chunks=None):
    """One-time weight re-layout, hoisted out of the forward path:
    pad query_proj rows to 128 lanes, split c_kv into per-head K/V halves,
    fold the SDPA 1/sqrt(d) scale into c_q, re-lay c_q / c_proj head-major,
    chunk the MLP weights along the hidden dim, pre-transpose output_proj,
    and cast all in-kernel matmul weights to bf16 (biases / LN params f32).
    K/V projection weights stay f32 for the wrapper-side (hoisted) matmuls."""
    f32, bf16 = jnp.float32, jnp.bfloat16
    W = params["w_q"].shape[0]
    d = W // heads
    hidden = params["w_fc"].shape[1]
    scale = 1.0 / math.sqrt(d)

    if mlp_chunks is None:
        mlp_chunks = _chip_config()["mlp_chunks"]
    mlp_chunks = max(1, min(int(mlp_chunks), hidden))
    while hidden % mlp_chunks != 0:
        mlp_chunks -= 1
    hc = hidden // mlp_chunks

    f_pad = _round_up(fourier_dim, 128)
    wqp = jnp.zeros((f_pad, W), f32).at[:fourier_dim].set(params["w_query_proj"])

    # c_kv columns are per-head grouped [k_h | v_h]; split into K / V.
    # (Assumes JAX-style (in, out) weights; a torch checkpoint needs a .T first.)
    wkv = params["w_kv"].reshape(W, heads, 2 * d)
    w_k = wkv[:, :, :d].reshape(W, W)
    w_v = wkv[:, :, d:].reshape(W, W)
    bkv = params["b_kv"].reshape(heads, 2 * d)
    b_k = bkv[:, :d].reshape(1, W)
    b_v = bkv[:, d:].reshape(1, W)

    # c_q head-major (heads, W, d) with the SDPA scale folded in.
    w_q = (params["w_q"] * scale).reshape(W, heads, d).transpose(1, 0, 2)
    b_q = (params["b_q"] * scale).reshape(heads, 1, d)

    # c_proj head-major (heads, d, W): rows of the fused projection, per head.
    w_pr = params["w_attn_proj"].reshape(heads, d, W)

    # MLP weights chunked along the hidden dim (leading-axis chunk index).
    w_fc = params["w_fc"].reshape(W, mlp_chunks, hc).transpose(1, 0, 2)   # (C, W, hc)
    b_fc = params["b_fc"].reshape(mlp_chunks, 1, hc)
    w_mp = params["w_mlp_proj"].reshape(mlp_chunks, hc, W)                # (C, hc, W)

    row = lambda v: v.reshape(1, -1).astype(f32)

    return {
        "heads": heads,
        "head_dim": d,
        "fourier_dim": fourier_dim,
        "f_pad": f_pad,
        "mlp_chunks": mlp_chunks,
        # --- kernel-side (bf16 matmul weights, f32 biases / LN params) ---
        "w_query_proj": wqp.astype(bf16),
        "b_query_proj": row(params["b_query_proj"]),
        "ln1_g": row(params["ln1_g"]), "ln1_b": row(params["ln1_b"]),
        "w_q": w_q.astype(bf16), "b_q": b_q.astype(f32),
        "w_attn_proj": w_pr.astype(bf16),
        "b_attn_proj": row(params["b_attn_proj"]),
        "ln3_g": row(params["ln3_g"]), "ln3_b": row(params["ln3_b"]),
        "w_fc": w_fc.astype(bf16), "b_fc": b_fc.astype(f32),
        "w_mlp_proj": w_mp.astype(bf16),
        "b_mlp_proj": row(params["b_mlp_proj"]),
        "lnpost_g": row(params["lnpost_g"]), "lnpost_b": row(params["lnpost_b"]),
        "w_out_t": params["w_out"].T.astype(bf16),        # (out_ch, W)
        "b_out_col": params["b_out"].reshape(-1, 1).astype(f32),
        # --- wrapper-side (hoisted K/V projection, done once per call in XLA) ---
        "ln2_g": row(params["ln2_g"]), "ln2_b": row(params["ln2_b"]),
        "w_k": w_k.astype(f32), "b_k": b_k.astype(f32),
        "w_v": w_v.astype(f32), "b_v": b_v.astype(f32),
    }


def cross_attention_decoder(queries, latents, prepped, *, num_freqs=6,
                            tile_n=None, vmem_limit_bytes=None):
    cfg = _chip_config()
    tile_n = cfg["tile_n"] if tile_n is None else tile_n
    vmem_limit_bytes = cfg["vmem_limit_bytes"] if vmem_limit_bytes is None else vmem_limit_bytes

    heads, d = prepped["heads"], prepped["head_dim"]
    B, N, _ = queries.shape
    _, M, W = latents.shape
    f_dim, f_pad = prepped["fourier_dim"], prepped["f_pad"]
    out_ch = prepped["w_out_t"].shape[0]
    bf16 = jnp.bfloat16

    # --- Hoisted grid-invariant work (plain XLA, once per call):
    # ln_2(latents) and the K/V projections do not depend on the query tile,
    # so they are computed here instead of being redone every grid step.
    lat = latents.astype(jnp.float32)
    xd = _layernorm(lat, prepped["ln2_g"], prepped["ln2_b"], 1e-6)
    k = xd @ prepped["w_k"] + prepped["b_k"]                           # (B, M, W)
    v = xd @ prepped["w_v"] + prepped["b_v"]                           # (B, M, W)
    # head-major, K pre-transposed so the per-head score matmul is a pure MXU
    # last-with-first contraction with M on the lanes; cast to bf16 to halve
    # the HBM->VMEM DMA and VMEM residency.
    k_t = jnp.transpose(k.reshape(B, M, heads, d), (0, 2, 3, 1)).astype(bf16)  # (B,H,d,M)
    v_h = jnp.transpose(v.reshape(B, M, heads, d), (0, 2, 1, 3)).astype(bf16)  # (B,H,M,d)

    # fourier features, zero-padded to 128 lanes and a multiple of tile_n points
    fq = fourier_embed(queries.astype(jnp.float32), num_freqs=num_freqs)
    tile_n = _round_up(tile_n, 128)
    tile_n = min(tile_n, _round_up(N, 128))
    n_pad = _round_up(N, tile_n)
    fq = jnp.pad(fq, ((0, 0), (0, n_pad - N), (0, f_pad - f_dim))).astype(bf16)

    inputs = [
        fq, k_t, v_h,
        prepped["w_query_proj"], prepped["b_query_proj"],
        prepped["ln1_g"], prepped["ln1_b"],
        prepped["w_q"], prepped["b_q"],
        prepped["w_attn_proj"], prepped["b_attn_proj"],
        prepped["ln3_g"], prepped["ln3_b"],
        prepped["w_fc"], prepped["b_fc"],
        prepped["w_mlp_proj"], prepped["b_mlp_proj"],
        prepped["lnpost_g"], prepped["lnpost_b"],
        prepped["w_out_t"], prepped["b_out_col"],
    ]

    def run(single_buffer_invariants):
        def inv_spec(shape, index_map):
            # Grid-invariant operand: single-buffer it so the second copy of
            # ~all weights + K/V doesn't eat VMEM (required to fit v7x 64 MiB
            # at production sizes).
            if single_buffer_invariants:
                return pl.BlockSpec(shape, index_map, pipeline_mode=pl.Buffered(1))
            return pl.BlockSpec(shape, index_map)

        def const_spec(a):
            nd = a.ndim
            return inv_spec(a.shape, lambda b, n, nd=nd: (0,) * nd)

        in_specs = [
            # fq streams along the point-tile axis -> keep default double buffering
            pl.BlockSpec((None, tile_n, f_pad), lambda b, n: (b, n, 0)),
            inv_spec((None, heads, d, M), lambda b, n: (b, 0, 0, 0)),   # K^T per batch
            inv_spec((None, heads, M, d), lambda b, n: (b, 0, 0, 0)),   # V   per batch
        ] + [const_spec(a) for a in inputs[3:]]

        return pl.pallas_call(
            _decoder_kernel,
            out_shape=jax.ShapeDtypeStruct((B, out_ch, n_pad), latents.dtype),
            grid_spec=pltpu.PrefetchScalarGridSpec(
                num_scalar_prefetch=0,
                grid=(B, n_pad // tile_n),
                in_specs=in_specs,
                # transposed output: out_ch on sublanes, points on lanes -> lane-dense stores
                out_specs=pl.BlockSpec((None, out_ch, tile_n), lambda b, n: (b, 0, n)),
                scratch_shapes=[pltpu.VMEM((tile_n, W), jnp.float32)],   # attn/MLP accumulator
            ),
            compiler_params=pltpu.CompilerParams(
                # K/V are hoisted outside the kernel and the scratch is re-initialized
                # every step, so both grid axes are independent -> 2-TC sharding on v7x.
                dimension_semantics=("parallel", "parallel"),
                vmem_limit_bytes=vmem_limit_bytes,
            ),
        )(*inputs)

    try:
        occ_t = run(True)
    except Exception:
        # pl.Buffered(1) single-buffering not supported by this JAX build;
        # fall back to default double buffering (correctness identical).
        occ_t = run(False)

    # back to (B, N, out_ch); for out_ch == 1 this transpose is a free reshape.
    # TODO(synk): for out_ch > 1 fuse this transpose into the consumer instead
    # of paying an extra HBM read+write pass here.
    return jnp.swapaxes(occ_t, 1, 2)[:, :N, :]


def init_params(key, *, width, heads, out_channels, fourier_dim, expand_ratio=4):
    ks = iter(jax.random.split(key, 32))

    def lin(din, dout):
        w = jax.random.normal(next(ks), (din, dout), jnp.float32) / jnp.sqrt(din)
        b = jax.random.normal(next(ks), (dout,), jnp.float32) * 0.02
        return w, b

    def ln(dim):
        g = 1.0 + 0.05 * jax.random.normal(next(ks), (dim,), jnp.float32)
        b = 0.05 * jax.random.normal(next(ks), (dim,), jnp.float32)
        return g, b

    p = {}
    p["w_query_proj"], p["b_query_proj"] = lin(fourier_dim, width)
    p["ln1_g"], p["ln1_b"] = ln(width)
    p["ln2_g"], p["ln2_b"] = ln(width)          # data_width == width (downsample_ratio=1)
    p["w_q"], p["b_q"] = lin(width, width)
    p["w_kv"], p["b_kv"] = lin(width, 2 * width)
    p["w_attn_proj"], p["b_attn_proj"] = lin(width, width)
    p["ln3_g"], p["ln3_b"] = ln(width)
    p["w_fc"], p["b_fc"] = lin(width, width * expand_ratio)
    p["w_mlp_proj"], p["b_mlp_proj"] = lin(width * expand_ratio, width)
    p["lnpost_g"], p["lnpost_b"] = ln(width)
    p["w_out"], p["b_out"] = lin(width, out_channels)
    return p


if __name__ == "__main__":
    key = jax.random.PRNGKey(0)
    kq, kl, kp = jax.random.split(key, 3)

    B, N_points, N_latents = 2, 8, 8
    width, heads, out_channels = 32, 4, 4
    num_freqs = 6
    fourier_dim = 3 * (2 * num_freqs + 1)    # 39

    queries = jax.random.uniform(kq, (B, N_points, 3), jnp.float32, minval=-1.0, maxval=1.0)
    latents = jax.random.normal(kl, (B, N_latents, width), jnp.float32)
    params = init_params(kp, width=width, heads=heads, out_channels=out_channels,
                         fourier_dim=fourier_dim)
    prepped = prepare_decoder_params(params, heads=heads, fourier_dim=fourier_dim)

    occ = cross_attention_decoder(queries, latents, prepped, num_freqs=num_freqs)
    occ = jax.block_until_ready(occ)
    assert occ.shape == (B, N_points, out_channels)
    assert bool(jnp.all(jnp.isfinite(occ)))
    print("KERNEL_OK")
</pallas_src>

<mosaic_0001>
module attributes {stable_mosaic.version = 11 : i64} {
  func.func @_decoder_kernel(%arg0: i32, %arg1: i32, %arg2: memref<1x128x128xbf16, #tpu.memory_space<vmem>>, %arg3: memref<1x4x8x8xbf16, #tpu.memory_space<vmem>>, %arg4: memref<1x4x8x8xbf16, #tpu.memory_space<vmem>>, %arg5: memref<128x32xbf16, #tpu.memory_space<vmem>>, %arg6: memref<1x32xf32, #tpu.memory_space<vmem>>, %arg7: memref<1x32xf32, #tpu.memory_space<vmem>>, %arg8: memref<1x32xf32, #tpu.memory_space<vmem>>, %arg9: memref<4x32x8xbf16, #tpu.memory_space<vmem>>, %arg10: memref<4x1x8xf32, #tpu.memory_space<vmem>>, %arg11: memref<4x8x32xbf16, #tpu.memory_space<vmem>>, %arg12: memref<1x32xf32, #tpu.memory_space<vmem>>, %arg13: memref<1x32xf32, #tpu.memory_space<vmem>>, %arg14: memref<1x32xf32, #tpu.memory_space<vmem>>, %arg15: memref<2x32x64xbf16, #tpu.memory_space<vmem>>, %arg16: memref<2x1x64xf32, #tpu.memory_space<vmem>>, %arg17: memref<2x64x32xbf16, #tpu.memory_space<vmem>>, %arg18: memref<1x32xf32, #tpu.memory_space<vmem>>, %arg19: memref<1x32xf32, #tpu.memory_space<vmem>>, %arg20: memref<1x32xf32, #tpu.memory_space<vmem>>, %arg21: memref<4x32xbf16, #tpu.memory_space<vmem>>, %arg22: memref<4x1xf32, #tpu.memory_space<vmem>>, %arg23: memref<1x4x128xf32, #tpu.memory_space<vmem>>, %arg24: memref<128x32xf32, #tpu.memory_space<vmem>>) attributes {dimension_semantics = [#tpu.dimension_semantics<parallel>, #tpu.dimension_semantics<parallel>], iteration_bounds = array<i64: 2, 1>, scalar_prefetch = 0 : i64, scratch_operands = 1 : i64, tpu.core_type = #tpu.core_type<tc>, window_params = [{transform_indices = @transform_0, window_bounds = array<i64: 1, 128, 128>}, {pipeline_mode = #tpu.pipeline_mode<synchronous>, transform_indices = @transform_1, window_bounds = array<i64: 1, 4, 8, 8>}, {pipeline_mode = #tpu.pipeline_mode<synchronous>, transform_indices = @transform_2, window_bounds = array<i64: 1, 4, 8, 8>}, {pipeline_mode = #tpu.pipeline_mode<synchronous>, transform_indices = @transform_3, window_bounds = array<i64: 128, 32>}, {pipeline_mode = #tpu.pipeline_mode<synchronous>, transform_indices = @transform_4, window_bounds = array<i64: 1, 32>}, {pipeline_mode = #tpu.pipeline_mode<synchronous>, transform_indices = @transform_5, window_bounds = array<i64: 1, 32>}, {pipeline_mode = #tpu.pipeline_mode<synchronous>, transform_indices = @transform_6, window_bounds = array<i64: 1, 32>}, {pipeline_mode = #tpu.pipeline_mode<synchronous>, transform_indices = @transform_7, window_bounds = array<i64: 4, 32, 8>}, {pipeline_mode = #tpu.pipeline_mode<synchronous>, transform_indices = @transform_8, window_bounds = array<i64: 4, 1, 8>}, {pipeline_mode = #tpu.pipeline_mode<synchronous>, transform_indices = @transform_9, window_bounds = array<i64: 4, 8, 32>}, {pipeline_mode = #tpu.pipeline_mode<synchronous>, transform_indices = @transform_10, window_bounds = array<i64: 1, 32>}, {pipeline_mode = #tpu.pipeline_mode<synchronous>, transform_indices = @transform_11, window_bounds = array<i64: 1, 32>}, {pipeline_mode = #tpu.pipeline_mode<synchronous>, transform_indices = @transform_12, window_bounds = array<i64: 1, 32>}, {pipeline_mode = #tpu.pipeline_mode<synchronous>, transform_indices = @transform_13, window_bounds = array<i64: 2, 32, 64>}, {pipeline_mode = #tpu.pipeline_mode<synchronous>, transform_indices = @transform_14, window_bounds = array<i64: 2, 1, 64>}, {pipeline_mode = #tpu.pipeline_mode<synchronous>, transform_indices = @transform_15, window_bounds = array<i64: 2, 64, 32>}, {pipeline_mode = #tpu.pipeline_mode<synchronous>, transform_indices = @transform_16, window_bounds = array<i64: 1, 32>}, {pipeline_mode = #tpu.pipeline_mode<synchronous>, transform_indices = @transform_17, window_bounds = array<i64: 1, 32>}, {pipeline_mode = #tpu.pipeline_mode<synchronous>, transform_indices = @transform_18, window_bounds = array<i64: 1, 32>}, {pipeline_mode = #tpu.pipeline_mode<synchronous>, transform_indices = @transform_19, window_bounds = array<i64: 4, 32>}, {pipeline_mode = #tpu.pipeline_mode<synchronous>, transform_indices = @transform_20, window_bounds = array<i64: 4, 1>}, {transform_indices = @transform_21, window_bounds = array<i64: 1, 4, 128>}]} {
    %c0 = arith.constant 0 : index
    %c0_0 = arith.constant 0 : index
    %c0_1 = arith.constant 0 : index
    %0 = vector.load %arg2[%c0, %c0_0, %c0_1] : memref<1x128x128xbf16, #tpu.memory_space<vmem>>, vector<1x128x128xbf16>
    %1 = vector.shape_cast %0 : vector<1x128x128xbf16> to vector<128x128xbf16>
    %c0_2 = arith.constant 0 : index
    %c0_3 = arith.constant 0 : index
    %2 = vector.load %arg5[%c0_2, %c0_3] : memref<128x32xbf16, #tpu.memory_space<vmem>>, vector<128x32xbf16>
    %cst = arith.constant dense<0.000000e+00> : vector<128x32xf32>
    %3 = tpu.matmul %1, %2, %cst {dimension_numbers = #tpu.dot_dimension_numbers<[1], [0], [0], [1], [0, 0, 1, 1], [], []>} : vector<128x128xbf16>, vector<128x32xbf16>, vector<128x32xf32> -> vector<128x32xf32>
    %c0_4 = arith.constant 0 : index
    %c0_5 = arith.constant 0 : index
    %4 = vector.load %arg6[%c0_4, %c0_5] : memref<1x32xf32, #tpu.memory_space<vmem>>, vector<1x32xf32>
    %5 = vector.broadcast %4 : vector<1x32xf32> to vector<128x32xf32>
    %6 = arith.addf %3, %5 : vector<128x32xf32>
    %c0_6 = arith.constant 0 : index
    %c0_7 = arith.constant 0 : index
    %7 = vector.load %arg7[%c0_6, %c0_7] : memref<1x32xf32, #tpu.memory_space<vmem>>, vector<1x32xf32>
    %c0_8 = arith.constant 0 : index
    %c0_9 = arith.constant 0 : index
    %8 = vector.load %arg8[%c0_8, %c0_9] : memref<1x32xf32, #tpu.memory_space<vmem>>, vector<1x32xf32>
    %cst_10 = arith.constant dense<0.000000e+00> : vector<128xf32>
    %9 = vector.multi_reduction <add>, %6, %cst_10 [1] : vector<128x32xf32> to vector<128xf32>
    %10 = vector.shape_cast %9 : vector<128xf32> to vector<128x1xf32>
    %cst_11 = arith.constant 3.200000e+01 : f32
    %11 = vector.broadcast %cst_11 : f32 to vector<128x1xf32>
    %12 = arith.divf %10, %11 : vector<128x1xf32>
    %13 = vector.broadcast %12 : vector<128x1xf32> to vector<128x32xf32>
    %14 = arith.subf %6, %13 : vector<128x32xf32>
    %15 = arith.mulf %14, %14 : vector<128x32xf32>
    %cst_12 = arith.constant dense<0.000000e+00> : vector<128xf32>
    %16 = vector.multi_reduction <add>, %15, %cst_12 [1] : vector<128x32xf32> to vector<128xf32>
    %17 = vector.shape_cast %16 : vector<128xf32> to vector<128x1xf32>
    %cst_13 = arith.constant 3.200000e+01 : f32
    %18 = vector.broadcast %cst_13 : f32 to vector<128x1xf32>
    %19 = arith.divf %17, %18 : vector<128x1xf32>
    %cst_14 = arith.constant 9.99999997E-7 : f32
    %20 = vector.broadcast %cst_14 : f32 to vector<128x1xf32>
    %21 = arith.addf %19, %20 : vector<128x1xf32>
    %22 = math.rsqrt %21 : vector<128x1xf32>
    %23 = vector.broadcast %22 : vector<128x1xf32> to vector<128x32xf32>
    %24 = arith.mulf %14, %23 : vector<128x32xf32>
    %25 = vector.broadcast %7 : vector<1x32xf32> to vector<128x32xf32>
    %26 = arith.mulf %24, %25 : vector<128x32xf32>
    %27 = vector.broadcast %8 : vector<1x32xf32> to vector<128x32xf32>
    %28 = arith.addf %26, %27 : vector<128x32xf32>
    %29 = arith.truncf %28 : vector<128x32xf32> to vector<128x32xbf16>
    %cst_15 = arith.constant 0.000000e+00 : f32
    %30 = vector.broadcast %cst_15 : f32 to vector<128x32xf32>
    %c0_16 = arith.constant 0 : index
    %c0_17 = arith.constant 0 : index
    %31 = vector.load %arg24[%c0_16, %c0_17] : memref<128x32xf32, #tpu.memory_space<vmem>>, vector<128x32xf32>
    tpu.vector_store %arg24[%c0_16, %c0_17], %30 {strides = array<i32>} : memref<128x32xf32, #tpu.memory_space<vmem>>, vector<128x32xf32>,
    %c0_i32 = arith.constant 0 : i32
    %c4_i32 = arith.constant 4 : i32
    %32 = arith.addi %c0_i32, %c4_i32 : i32
    %c1_i32 = arith.constant 1 : i32
    scf.for %arg25 = %c0_i32 to %32 step %c1_i32  : i32 {
      %98 = arith.index_cast %arg25 : i32 to index
      %c0_58 = arith.constant 0 : index
      %c0_59 = arith.constant 0 : index
      %99 = vector.load %arg9[%98, %c0_58, %c0_59] : memref<4x32x8xbf16, #tpu.memory_space<vmem>>, vector<1x32x8xbf16>
      %100 = vector.shape_cast %99 : vector<1x32x8xbf16> to vector<32x8xbf16>
      %cst_60 = arith.constant dense<0.000000e+00> : vector<128x8xf32>
      %101 = tpu.matmul %29, %100, %cst_60 {dimension_numbers = #tpu.dot_dimension_numbers<[1], [0], [0], [1], [0, 0, 1, 1], [], []>} : vector<128x32xbf16>, vector<32x8xbf16>, vector<128x8xf32> -> vector<128x8xf32>
      %102 = arith.index_cast %arg25 : i32 to index
      %c0_61 = arith.constant 0 : index
      %c0_62 = arith.constant 0 : index
      %103 = vector.load %arg10[%102, %c0_61, %c0_62] : memref<4x1x8xf32, #tpu.memory_space<vmem>>, vector<1x1x8xf32>
      %104 = vector.shape_cast %103 : vector<1x1x8xf32> to vector<1x8xf32>
      %105 = vector.broadcast %104 : vector<1x8xf32> to vector<128x8xf32>
      %106 = arith.addf %101, %105 : vector<128x8xf32>
      %107 = arith.truncf %106 : vector<128x8xf32> to vector<128x8xbf16>
      %c0_63 = arith.constant 0 : index
      %108 = arith.index_cast %arg25 : i32 to index
      %c0_64 = arith.constant 0 : index
      %c0_65 = arith.constant 0 : index
      %109 = vector.load %arg3[%c0_63, %108, %c0_64, %c0_65] : memref<1x4x8x8xbf16, #tpu.memory_space<vmem>>, vector<1x1x8x8xbf16>
      %110 = vector.shape_cast %109 : vector<1x1x8x8xbf16> to vector<8x8xbf16>
      %cst_66 = arith.constant dense<0.000000e+00> : vector<128x8xf32>
      %111 = tpu.matmul %107, %110, %cst_66 {dimension_numbers = #tpu.dot_dimension_numbers<[1], [0], [0], [1], [0, 0, 1, 1], [], []>} : vector<128x8xbf16>, vector<8x8xbf16>, vector<128x8xf32> -> vector<128x8xf32>
      %cst_67 = arith.constant dense<0xFF800000> : vector<128xf32>
      %112 = vector.multi_reduction <maximumf>, %111, %cst_67 [1] : vector<128x8xf32> to vector<128xf32>
      %113 = vector.shape_cast %112 : vector<128xf32> to vector<128x1xf32>
      %114 = vector.broadcast %113 : vector<128x1xf32> to vector<128x8xf32>
      %115 = arith.subf %111, %114 : vector<128x8xf32>
      %116 = math.exp %115 : vector<128x8xf32>
      %cst_68 = arith.constant dense<0.000000e+00> : vector<128xf32>
      %117 = vector.multi_reduction <add>, %116, %cst_68 [1] : vector<128x8xf32> to vector<128xf32>
      %118 = vector.shape_cast %117 : vector<128xf32> to vector<128x1xf32>
      %119 = tpu.reciprocal %118 {approx = true} : vector<128x1xf32> -> vector<128x1xf32>
      %120 = vector.broadcast %119 : vector<128x1xf32> to vector<128x8xf32>
      %121 = arith.mulf %116, %120 : vector<128x8xf32>
      %122 = arith.truncf %121 : vector<128x8xf32> to vector<128x8xbf16>
      %c0_69 = arith.constant 0 : index
      %123 = arith.index_cast %arg25 : i32 to index
      %c0_70 = arith.constant 0 : index
      %c0_71 = arith.constant 0 : index
      %124 = vector.load %arg4[%c0_69, %123, %c0_70, %c0_71] : memref<1x4x8x8xbf16, #tpu.memory_space<vmem>>, vector<1x1x8x8xbf16>
      %125 = vector.shape_cast %124 : vector<1x1x8x8xbf16> to vector<8x8xbf16>
      %cst_72 = arith.constant dense<0.000000e+00> : vector<128x8xf32>
      %126 = tpu.matmul %122, %125, %cst_72 {dimension_numbers = #tpu.dot_dimension_numbers<[1], [0], [0], [1], [0, 0, 1, 1], [], []>} : vector<128x8xbf16>, vector<8x8xbf16>, vector<128x8xf32> -> vector<128x8xf32>
      %c0_73 = arith.constant 0 : index
      %c0_74 = arith.constant 0 : index
      %127 = vector.load %arg24[%c0_73, %c0_74] : memref<128x32xf32, #tpu.memory_space<vmem>>, vector<128x32xf32>
      %128 = arith.truncf %126 : vector<128x8xf32> to vector<128x8xbf16>
      %129 = arith.index_cast %arg25 : i32 to index
      %c0_75 = arith.constant 0 : index
      %c0_76 = arith.constant 0 : index
      %130 = vector.load %arg11[%129, %c0_75, %c0_76] : memref<4x8x32xbf16, #tpu.memory_space<vmem>>, vector<1x8x32xbf16>
      %131 = vector.shape_cast %130 : vector<1x8x32xbf16> to vector<8x32xbf16>
      %cst_77 = arith.constant dense<0.000000e+00> : vector<128x32xf32>
      %132 = tpu.matmul %128, %131, %cst_77 {dimension_numbers = #tpu.dot_dimension_numbers<[1], [0], [0], [1], [0, 0, 1, 1], [], []>} : vector<128x8xbf16>, vector<8x32xbf16>, vector<128x32xf32> -> vector<128x32xf32>
      %133 = arith.addf %127, %132 : vector<128x32xf32>
      %c0_78 = arith.constant 0 : index
      %c0_79 = arith.constant 0 : index
      %134 = vector.load %arg24[%c0_78, %c0_79] : memref<128x32xf32, #tpu.memory_space<vmem>>, vector<128x32xf32>
      tpu.vector_store %arg24[%c0_78, %c0_79], %133 {strides = array<i32>} : memref<128x32xf32, #tpu.memory_space<vmem>>, vector<128x32xf32>,
    }
    %c4_i32_18 = arith.constant 4 : i32
    %c0_19 = arith.constant 0 : index
    %c0_20 = arith.constant 0 : index
    %33 = vector.load %arg24[%c0_19, %c0_20] : memref<128x32xf32, #tpu.memory_space<vmem>>, vector<128x32xf32>
    %34 = arith.addf %6, %33 : vector<128x32xf32>
    %c0_21 = arith.constant 0 : index
    %c0_22 = arith.constant 0 : index
    %35 = vector.load %arg12[%c0_21, %c0_22] : memref<1x32xf32, #tpu.memory_space<vmem>>, vector<1x32xf32>
    %36 = vector.broadcast %35 : vector<1x32xf32> to vector<128x32xf32>
    %37 = arith.addf %34, %36 : vector<128x32xf32>
    %c0_23 = arith.constant 0 : index
    %c0_24 = arith.constant 0 : index
    %38 = vector.load %arg13[%c0_23, %c0_24] : memref<1x32xf32, #tpu.memory_space<vmem>>, vector<1x32xf32>
    %c0_25 = arith.constant 0 : index
    %c0_26 = arith.constant 0 : index
    %39 = vector.load %arg14[%c0_25, %c0_26] : memref<1x32xf32, #tpu.memory_space<vmem>>, vector<1x32xf32>
    %cst_27 = arith.constant dense<0.000000e+00> : vector<128xf32>
    %40 = vector.multi_reduction <add>, %37, %cst_27 [1] : vector<128x32xf32> to vector<128xf32>
    %41 = vector.shape_cast %40 : vector<128xf32> to vector<128x1xf32>
    %cst_28 = arith.constant 3.200000e+01 : f32
    %42 = vector.broadcast %cst_28 : f32 to vector<128x1xf32>
    %43 = arith.divf %41, %42 : vector<128x1xf32>
    %44 = vector.broadcast %43 : vector<128x1xf32> to vector<128x32xf32>
    %45 = arith.subf %37, %44 : vector<128x32xf32>
    %46 = arith.mulf %45, %45 : vector<128x32xf32>
    %cst_29 = arith.constant dense<0.000000e+00> : vector<128xf32>
    %47 = vector.multi_reduction <add>, %46, %cst_29 [1] : vector<128x32xf32> to vector<128xf32>
    %48 = vector.shape_cast %47 : vector<128xf32> to vector<128x1xf32>
    %cst_30 = arith.constant 3.200000e+01 : f32
    %49 = vector.broadcast %cst_30 : f32 to vector<128x1xf32>
    %50 = arith.divf %48, %49 : vector<128x1xf32>
    %cst_31 = arith.constant 9.99999997E-7 : f32
    %51 = vector.broadcast %cst_31 : f32 to vector<128x1xf32>
    %52 = arith.addf %50, %51 : vector<128x1xf32>
    %53 = math.rsqrt %52 : vector<128x1xf32>
    %54 = vector.broadcast %53 : vector<128x1xf32> to vector<128x32xf32>
    %55 = arith.mulf %45, %54 : vector<128x32xf32>
    %56 = vector.broadcast %38 : vector<1x32xf32> to vector<128x32xf32>
    %57 = arith.mulf %55, %56 : vector<128x32xf32>
    %58 = vector.broadcast %39 : vector<1x32xf32> to vector<128x32xf32>
    %59 = arith.addf %57, %58 : vector<128x32xf32>
    %60 = arith.truncf %59 : vector<128x32xf32> to vector<128x32xbf16>
    %c0_32 = arith.constant 0 : index
    %c0_33 = arith.constant 0 : index
    %61 = vector.load %arg24[%c0_32, %c0_33] : memref<128x32xf32, #tpu.memory_space<vmem>>, vector<128x32xf32>
    tpu.vector_store %arg24[%c0_32, %c0_33], %37 {strides = array<i32>} : memref<128x32xf32, #tpu.memory_space<vmem>>, vector<128x32xf32>,
    %c0_i32_34 = arith.constant 0 : i32
    %c2_i32 = arith.constant 2 : i32
    %62 = arith.addi %c0_i32_34, %c2_i32 : i32
    %c1_i32_35 = arith.constant 1 : i32
    scf.for %arg25 = %c0_i32_34 to %62 step %c1_i32_35  : i32 {
      %98 = arith.index_cast %arg25 : i32 to index
      %c0_58 = arith.constant 0 : index
      %c0_59 = arith.constant 0 : index
      %99 = vector.load %arg15[%98, %c0_58, %c0_59] : memref<2x32x64xbf16, #tpu.memory_space<vmem>>, vector<1x32x64xbf16>
      %100 = vector.shape_cast %99 : vector<1x32x64xbf16> to vector<32x64xbf16>
      %cst_60 = arith.constant dense<0.000000e+00> : vector<128x64xf32>
      %101 = tpu.matmul %60, %100, %cst_60 {dimension_numbers = #tpu.dot_dimension_numbers<[1], [0], [0], [1], [0, 0, 1, 1], [], []>} : vector<128x32xbf16>, vector<32x64xbf16>, vector<128x64xf32> -> vector<128x64xf32>
      %102 = arith.index_cast %arg25 : i32 to index
      %c0_61 = arith.constant 0 : index
      %c0_62 = arith.constant 0 : index
      %103 = vector.load %arg16[%102, %c0_61, %c0_62] : memref<2x1x64xf32, #tpu.memory_space<vmem>>, vector<1x1x64xf32>
      %104 = vector.shape_cast %103 : vector<1x1x64xf32> to vector<1x64xf32>
      %105 = vector.broadcast %104 : vector<1x64xf32> to vector<128x64xf32>
      %106 = arith.addf %101, %105 : vector<128x64xf32>
      %cst_63 = arith.constant 5.000000e-01 : f32
      %107 = vector.broadcast %cst_63 : f32 to vector<128x64xf32>
      %108 = arith.mulf %107, %106 : vector<128x64xf32>
      %cst_64 = arith.constant 0.707106769 : f32
      %109 = vector.broadcast %cst_64 : f32 to vector<128x64xf32>
      %110 = arith.mulf %106, %109 : vector<128x64xf32>
      %111 = math.erf %110 : vector<128x64xf32>
      %cst_65 = arith.constant 1.000000e+00 : f32
      %112 = vector.broadcast %cst_65 : f32 to vector<128x64xf32>
      %113 = arith.addf %112, %111 : vector<128x64xf32>
      %114 = arith.mulf %108, %113 : vector<128x64xf32>
      %115 = arith.truncf %114 : vector<128x64xf32> to vector<128x64xbf16>
      %c0_66 = arith.constant 0 : index
      %c0_67 = arith.constant 0 : index
      %116 = vector.load %arg24[%c0_66, %c0_67] : memref<128x32xf32, #tpu.memory_space<vmem>>, vector<128x32xf32>
      %117 = arith.index_cast %arg25 : i32 to index
      %c0_68 = arith.constant 0 : index
      %c0_69 = arith.constant 0 : index
      %118 = vector.load %arg17[%117, %c0_68, %c0_69] : memref<2x64x32xbf16, #tpu.memory_space<vmem>>, vector<1x64x32xbf16>
      %119 = vector.shape_cast %118 : vector<1x64x32xbf16> to vector<64x32xbf16>
      %cst_70 = arith.constant dense<0.000000e+00> : vector<128x32xf32>
      %120 = tpu.matmul %115, %119, %cst_70 {dimension_numbers = #tpu.dot_dimension_numbers<[1], [0], [0], [1], [0, 0, 1, 1], [], []>} : vector<128x64xbf16>, vector<64x32xbf16>, vector<128x32xf32> -> vector<128x32xf32>
      %121 = arith.addf %116, %120 : vector<128x32xf32>
      %c0_71 = arith.constant 0 : index
      %c0_72 = arith.constant 0 : index
      %122 = vector.load %arg24[%c0_71, %c0_72] : memref<128x32xf32, #tpu.memory_space<vmem>>, vector<128x32xf32>
      tpu.vector_store %arg24[%c0_71, %c0_72], %121 {strides = array<i32>} : memref<128x32xf32, #tpu.memory_space<vmem>>, vector<128x32xf32>,
    }
    %c2_i32_36 = arith.constant 2 : i32
    %c0_37 = arith.constant 0 : index
    %c0_38 = arith.constant 0 : index
    %63 = vector.load %arg24[%c0_37, %c0_38] : memref<128x32xf32, #tpu.memory_space<vmem>>, vector<128x32xf32>
    %c0_39 = arith.constant 0 : index
    %c0_40 = arith.constant 0 : index
    %64 = vector.load %arg18[%c0_39, %c0_40] : memref<1x32xf32, #tpu.memory_space<vmem>>, vector<1x32xf32>
    %65 = vector.broadcast %64 : vector<1x32xf32> to vector<128x32xf32>
    %66 = arith.addf %63, %65 : vector<128x32xf32>
    %c0_41 = arith.constant 0 : index
    %c0_42 = arith.constant 0 : index
    %67 = vector.load %arg19[%c0_41, %c0_42] : memref<1x32xf32, #tpu.memory_space<vmem>>, vector<1x32xf32>
    %c0_43 = arith.constant 0 : index
    %c0_44 = arith.constant 0 : index
    %68 = vector.load %arg20[%c0_43, %c0_44] : memref<1x32xf32, #tpu.memory_space<vmem>>, vector<1x32xf32>
    %cst_45 = arith.constant dense<0.000000e+00> : vector<128xf32>
    %69 = vector.multi_reduction <add>, %66, %cst_45 [1] : vector<128x32xf32> to vector<128xf32>
    %70 = vector.shape_cast %69 : vector<128xf32> to vector<128x1xf32>
    %cst_46 = arith.constant 3.200000e+01 : f32
    %71 = vector.broadcast %cst_46 : f32 to vector<128x1xf32>
    %72 = arith.divf %70, %71 : vector<128x1xf32>
    %73 = vector.broadcast %72 : vector<128x1xf32> to vector<128x32xf32>
    %74 = arith.subf %66, %73 : vector<128x32xf32>
    %75 = arith.mulf %74, %74 : vector<128x32xf32>
    %cst_47 = arith.constant dense<0.000000e+00> : vector<128xf32>
    %76 = vector.multi_reduction <add>, %75, %cst_47 [1] : vector<128x32xf32> to vector<128xf32>
    %77 = vector.shape_cast %76 : vector<128xf32> to vector<128x1xf32>
    %cst_48 = arith.constant 3.200000e+01 : f32
    %78 = vector.broadcast %cst_48 : f32 to vector<128x1xf32>
    %79 = arith.divf %77, %78 : vector<128x1xf32>
    %cst_49 = arith.constant 9.99999974E-6 : f32
    %80 = vector.broadcast %cst_49 : f32 to vector<128x1xf32>
    %81 = arith.addf %79, %80 : vector<128x1xf32>
    %82 = math.rsqrt %81 : vector<128x1xf32>
    %83 = vector.broadcast %82 : vector<128x1xf32> to vector<128x32xf32>
    %84 = arith.mulf %74, %83 : vector<128x32xf32>
    %85 = vector.broadcast %67 : vector<1x32xf32> to vector<128x32xf32>
    %86 = arith.mulf %84, %85 : vector<128x32xf32>
    %87 = vector.broadcast %68 : vector<1x32xf32> to vector<128x32xf32>
    %88 = arith.addf %86, %87 : vector<128x32xf32>
    %89 = arith.truncf %88 : vector<128x32xf32> to vector<128x32xbf16>
    %c0_50 = arith.constant 0 : index
    %c0_51 = arith.constant 0 : index
    %90 = vector.load %arg21[%c0_50, %c0_51] : memref<4x32xbf16, #tpu.memory_space<vmem>>, vector<4x32xbf16>
    %cst_52 = arith.constant dense<0.000000e+00> : vector<4x128xf32>
    %91 = tpu.matmul %90, %89, %cst_52 {dimension_numbers = #tpu.dot_dimension_numbers<[1], [1], [0], [0], [0, 0, 1, 0], [], []>} : vector<4x32xbf16>, vector<128x32xbf16>, vector<4x128xf32> -> vector<4x128xf32>
    %c0_53 = arith.constant 0 : index
    %c0_54 = arith.constant 0 : index
    %92 = vector.load %arg22[%c0_53, %c0_54] : memref<4x1xf32, #tpu.memory_space<vmem>>, vector<4x1xf32>
    %93 = vector.broadcast %92 : vector<4x1xf32> to vector<4x128xf32>
    %94 = arith.addf %91, %93 : vector<4x128xf32>
    %c0_55 = arith.constant 0 : index
    %c0_56 = arith.constant 0 : index
    %c0_57 = arith.constant 0 : index
    %95 = vector.load %arg23[%c0_55, %c0_56, %c0_57] : memref<1x4x128xf32, #tpu.memory_space<vmem>>, vector<1x4x128xf32>
    %96 = vector.shape_cast %95 : vector<1x4x128xf32> to vector<4x128xf32>
    %97 = vector.shape_cast %94 : vector<4x128xf32> to vector<1x4x128xf32>
    tpu.vector_store %arg23[%c0_55, %c0_56, %c0_57], %97 {strides = array<i32>} : memref<1x4x128xf32, #tpu.memory_space<vmem>>, vector<1x4x128xf32>,
    return
  }
  func.func @transform_0(%arg0: i32, %arg1: i32) -> (i32, i32, i32) {
    %c0_i32 = arith.constant 0 : i32
    %c0_i32_0 = arith.constant 0 : i32
    return %arg0, %arg1, %c0_i32 : i32, i32, i32
  }
  func.func @transform_1(%arg0: i32, %arg1: i32) -> (i32, i32, i32, i32) {
    %c0_i32 = arith.constant 0 : i32
    %c0_i32_0 = arith.constant 0 : i32
    %c0_i32_1 = arith.constant 0 : i32
    %c0_i32_2 = arith.constant 0 : i32
    return %arg0, %c0_i32, %c0_i32_0, %c0_i32_1 : i32, i32, i32, i32
  }
  func.func @transform_2(%arg0: i32, %arg1: i32) -> (i32, i32, i32, i32) {
    %c0_i32 = arith.constant 0 : i32
    %c0_i32_0 = arith.constant 0 : i32
    %c0_i32_1 = arith.constant 0 : i32
    %c0_i32_2 = arith.constant 0 : i32
    return %arg0, %c0_i32, %c0_i32_0, %c0_i32_1 : i32, i32, i32, i32
  }
  func.func @transform_3(%arg0: i32, %arg1: i32) -> (i32, i32) {
    %c0_i32 = arith.constant 0 : i32
    %c0_i32_0 = arith.constant 0 : i32
    %c0_i32_1 = arith.constant 0 : i32
    return %c0_i32, %c0_i32_0 : i32, i32
  }
  func.func @transform_4(%arg0: i32, %arg1: i32) -> (i32, i32) {
    %c0_i32 = arith.constant 0 : i32
    %c0_i32_0 = arith.constant 0 : i32
    %c0_i32_1 = arith.constant 0 : i32
    return %c0_i32, %c0_i32_0 : i32, i32
  }
  func.func @transform_5(%arg0: i32, %arg1: i32) -> (i32, i32) {
    %c0_i32 = arith.constant 0 : i32
    %c0_i32_0 = arith.constant 0 : i32
    %c0_i32_1 = arith.constant 0 : i32
    return %c0_i32, %c0_i32_0 : i32, i32
  }
  func.func @transform_6(%arg0: i32, %arg1: i32) -> (i32, i32) {
    %c0_i32 = arith.constant 0 : i32
    %c0_i32_0 = arith.constant 0 : i32
    %c0_i32_1 = arith.constant 0 : i32
    return %c0_i32, %c0_i32_0 : i32, i32
  }
  func.func @transform_7(%arg0: i32, %arg1: i32) -> (i32, i32, i32) {
    %c0_i32 = arith.constant 0 : i32
    %c0_i32_0 = arith.constant 0 : i32
    %c0_i32_1 = arith.constant 0 : i32
    %c0_i32_2 = arith.constant 0 : i32
    return %c0_i32, %c0_i32_0, %c0_i32_1 : i32, i32, i32
  }
  func.func @transform_8(%arg0: i32, %arg1: i32) -> (i32, i32, i32) {
    %c0_i32 = arith.constant 0 : i32
    %c0_i32_0 = arith.constant 0 : i32
    %c0_i32_1 = arith.constant 0 : i32
    %c0_i32_2 = arith.constant 0 : i32
    return %c0_i32, %c0_i32_0, %c0_i32_1 : i32, i32, i32
  }
  func.func @transform_9(%arg0: i32, %arg1: i32) -> (i32, i32, i32) {
    %c0_i32 = arith.constant 0 : i32
    %c0_i32_0 = arith.constant 0 : i32
    %c0_i32_1 = arith.constant 0 : i32
    %c0_i32_2 = arith.constant 0 : i32
    return %c0_i32, %c0_i32_0, %c0_i32_1 : i32, i32, i32
  }
  func.func @transform_10(%arg0: i32, %arg1: i32) -> (i32, i32) {
    %c0_i32 = arith.constant 0 : i32
    %c0_i32_0 = arith.constant 0 : i32
    %c0_i32_1 = arith.constant 0 : i32
    return %c0_i32, %c0_i32_0 : i32, i32
  }
  func.func @transform_11(%arg0: i32, %arg1: i32) -> (i32, i32) {
    %c0_i32 = arith.constant 0 : i32
    %c0_i32_0 = arith.constant 0 : i32
    %c0_i32_1 = arith.constant 0 : i32
    return %c0_i32, %c0_i32_0 : i32, i32
  }
  func.func @transform_12(%arg0: i32, %arg1: i32) -> (i32, i32) {
    %c0_i32 = arith.constant 0 : i32
    %c0_i32_0 = arith.constant 0 : i32
    %c0_i32_1 = arith.constant 0 : i32
    return %c0_i32, %c0_i32_0 : i32, i32
  }
  func.func @transform_13(%arg0: i32, %arg1: i32) -> (i32, i32, i32) {
    %c0_i32 = arith.constant 0 : i32
    %c0_i32_0 = arith.constant 0 : i32
    %c0_i32_1 = arith.constant 0 : i32
    %c0_i32_2 = arith.constant 0 : i32
    return %c0_i32, %c0_i32_0, %c0_i32_1 : i32, i32, i32
  }
  func.func @transform_14(%arg0: i32, %arg1: i32) -> (i32, i32, i32) {
    %c0_i32 = arith.constant 0 : i32
    %c0_i32_0 = arith.constant 0 : i32
    %c0_i32_1 = arith.constant 0 : i32
    %c0_i32_2 = arith.constant 0 : i32
    return %c0_i32, %c0_i32_0, %c0_i32_1 : i32, i32, i32
  }
  func.func @transform_15(%arg0: i32, %arg1: i32) -> (i32, i32, i32) {
    %c0_i32 = arith.constant 0 : i32
    %c0_i32_0 = arith.constant 0 : i32
    %c0_i32_1 = arith.constant 0 : i32
    %c0_i32_2 = arith.constant 0 : i32
    return %c0_i32, %c0_i32_0, %c0_i32_1 : i32, i32, i32
  }
  func.func @transform_16(%arg0: i32, %arg1: i32) -> (i32, i32) {
    %c0_i32 = arith.constant 0 : i32
    %c0_i32_0 = arith.constant 0 : i32
    %c0_i32_1 = arith.constant 0 : i32
    return %c0_i32, %c0_i32_0 : i32, i32
  }
  func.func @transform_17(%arg0: i32, %arg1: i32) -> (i32, i32) {
    %c0_i32 = arith.constant 0 : i32
    %c0_i32_0 = arith.constant 0 : i32
    %c0_i32_1 = arith.constant 0 : i32
    return %c0_i32, %c0_i32_0 : i32, i32
  }
  func.func @transform_18(%arg0: i32, %arg1: i32) -> (i32, i32) {
    %c0_i32 = arith.constant 0 : i32
    %c0_i32_0 = arith.constant 0 : i32
    %c0_i32_1 = arith.constant 0 : i32
    return %c0_i32, %c0_i32_0 : i32, i32
  }
  func.func @transform_19(%arg0: i32, %arg1: i32) -> (i32, i32) {
    %c0_i32 = arith.constant 0 : i32
    %c0_i32_0 = arith.constant 0 : i32
    %c0_i32_1 = arith.constant 0 : i32
    return %c0_i32, %c0_i32_0 : i32, i32
  }
  func.func @transform_20(%arg0: i32, %arg1: i32) -> (i32, i32) {
    %c0_i32 = arith.constant 0 : i32
    %c0_i32_0 = arith.constant 0 : i32
    %c0_i32_1 = arith.constant 0 : i32
    return %c0_i32, %c0_i32_0 : i32, i32
  }
  func.func @transform_21(%arg0: i32, %arg1: i32) -> (i32, i32, i32) {
    %c0_i32 = arith.constant 0 : i32
    %c0_i32_0 = arith.constant 0 : i32
    return %arg0, %c0_i32, %arg1 : i32, i32, i32
  }
}

module attributes {stable_mosaic.version = 11 : i64} {
  func.func @_decoder_kernel(%arg0: i32, %arg1: i32, %arg2: memref<1x128x128xbf16, #tpu.memory_space<vmem>>, %arg3: memref<1x4x8x8xbf16, #tpu.memory_space<vmem>>, %arg4: memref<1x4x8x8xbf16, #tpu.memory_space<vmem>>, %arg5: memref<128x32xbf16, #tpu.memory_space<vmem>>, %arg6: memref<1x32xf32, #tpu.memory_space<vmem>>, %arg7: memref<1x32xf32, #tpu.memory_space<vmem>>, %arg8: memref<1x32xf32, #tpu.memory_space<vmem>>, %arg9: memref<4x32x8xbf16, #tpu.memory_space<vmem>>, %arg10: memref<4x1x8xf32, #tpu.memory_space<vmem>>, %arg11: memref<4x8x32xbf16, #tpu.memory_space<vmem>>, %arg12: memref<1x32xf32, #tpu.memory_space<vmem>>, %arg13: memref<1x32xf32, #tpu.memory_space<vmem>>, %arg14: memref<1x32xf32, #tpu.memory_space<vmem>>, %arg15: memref<2x32x64xbf16, #tpu.memory_space<vmem>>, %arg16: memref<2x1x64xf32, #tpu.memory_space<vmem>>, %arg17: memref<2x64x32xbf16, #tpu.memory_space<vmem>>, %arg18: memref<1x32xf32, #tpu.memory_space<vmem>>, %arg19: memref<1x32xf32, #tpu.memory_space<vmem>>, %arg20: memref<1x32xf32, #tpu.memory_space<vmem>>, %arg21: memref<4x32xbf16, #tpu.memory_space<vmem>>, %arg22: memref<4x1xf32, #tpu.memory_space<vmem>>, %arg23: memref<1x4x128xf32, #tpu.memory_space<vmem>>, %arg24: memref<128x32xf32, #tpu.memory_space<vmem>>) attributes {dimension_semantics = [#tpu.dimension_semantics<parallel>, #tpu.dimension_semantics<parallel>], iteration_bounds = array<i64: 2, 1>, scalar_prefetch = 0 : i64, scratch_operands = 1 : i64, tpu.core_type = #tpu.core_type<tc>, window_params = [{transform_indices = @transform_0, window_bounds = array<i64: 1, 128, 128>}, {transform_indices = @transform_1, window_bounds = array<i64: 1, 4, 8, 8>}, {transform_indices = @transform_2, window_bounds = array<i64: 1, 4, 8, 8>}, {pipeline_mode = #tpu.pipeline_mode<synchronous>, transform_indices = @transform_3, window_bounds = array<i64: 128, 32>}, {pipeline_mode = #tpu.pipeline_mode<synchronous>, transform_indices = @transform_4, window_bounds = array<i64: 1, 32>}, {pipeline_mode = #tpu.pipeline_mode<synchronous>, transform_indices = @transform_5, window_bounds = array<i64: 1, 32>}, {pipeline_mode = #tpu.pipeline_mode<synchronous>, transform_indices = @transform_6, window_bounds = array<i64: 1, 32>}, {pipeline_mode = #tpu.pipeline_mode<synchronous>, transform_indices = @transform_7, window_bounds = array<i64: 4, 32, 8>}, {pipeline_mode = #tpu.pipeline_mode<synchronous>, transform_indices = @transform_8, window_bounds = array<i64: 4, 1, 8>}, {pipeline_mode = #tpu.pipeline_mode<synchronous>, transform_indices = @transform_9, window_bounds = array<i64: 4, 8, 32>}, {pipeline_mode = #tpu.pipeline_mode<synchronous>, transform_indices = @transform_10, window_bounds = array<i64: 1, 32>}, {pipeline_mode = #tpu.pipeline_mode<synchronous>, transform_indices = @transform_11, window_bounds = array<i64: 1, 32>}, {pipeline_mode = #tpu.pipeline_mode<synchronous>, transform_indices = @transform_12, window_bounds = array<i64: 1, 32>}, {pipeline_mode = #tpu.pipeline_mode<synchronous>, transform_indices = @transform_13, window_bounds = array<i64: 2, 32, 64>}, {pipeline_mode = #tpu.pipeline_mode<synchronous>, transform_indices = @transform_14, window_bounds = array<i64: 2, 1, 64>}, {pipeline_mode = #tpu.pipeline_mode<synchronous>, transform_indices = @transform_15, window_bounds = array<i64: 2, 64, 32>}, {pipeline_mode = #tpu.pipeline_mode<synchronous>, transform_indices = @transform_16, window_bounds = array<i64: 1, 32>}, {pipeline_mode = #tpu.pipeline_mode<synchronous>, transform_indices = @transform_17, window_bounds = array<i64: 1, 32>}, {pipeline_mode = #tpu.pipeline_mode<synchronous>, transform_indices = @transform_18, window_bounds = array<i64: 1, 32>}, {pipeline_mode = #tpu.pipeline_mode<synchronous>, transform_indices = @transform_19, window_bounds = array<i64: 4, 32>}, {pipeline_mode = #tpu.pipeline_mode<synchronous>, transform_indices = @transform_20, window_bounds = array<i64: 4, 1>}, {transform_indices = @transform_21, window_bounds = array<i64: 1, 4, 128>}]} {
    %c0 = arith.constant 0 : index
    %c0_0 = arith.constant 0 : index
    %c0_1 = arith.constant 0 : index
    %0 = vector.load %arg2[%c0, %c0_0, %c0_1] : memref<1x128x128xbf16, #tpu.memory_space<vmem>>, vector<1x128x128xbf16>
    %1 = vector.shape_cast %0 : vector<1x128x128xbf16> to vector<128x128xbf16>
    %c0_2 = arith.constant 0 : index
    %c0_3 = arith.constant 0 : index
    %2 = vector.load %arg5[%c0_2, %c0_3] : memref<128x32xbf16, #tpu.memory_space<vmem>>, vector<128x32xbf16>
    %cst = arith.constant dense<0.000000e+00> : vector<128x32xf32>
    %3 = tpu.matmul %1, %2, %cst {dimension_numbers = #tpu.dot_dimension_numbers<[1], [0], [0], [1], [0, 0, 1, 1], [], []>} : vector<128x128xbf16>, vector<128x32xbf16>, vector<128x32xf32> -> vector<128x32xf32>
    %c0_4 = arith.constant 0 : index
    %c0_5 = arith.constant 0 : index
    %4 = vector.load %arg6[%c0_4, %c0_5] : memref<1x32xf32, #tpu.memory_space<vmem>>, vector<1x32xf32>
    %5 = vector.broadcast %4 : vector<1x32xf32> to vector<128x32xf32>
    %6 = arith.addf %3, %5 : vector<128x32xf32>
    %c0_6 = arith.constant 0 : index
    %c0_7 = arith.constant 0 : index
    %7 = vector.load %arg7[%c0_6, %c0_7] : memref<1x32xf32, #tpu.memory_space<vmem>>, vector<1x32xf32>
    %c0_8 = arith.constant 0 : index
    %c0_9 = arith.constant 0 : index
    %8 = vector.load %arg8[%c0_8, %c0_9] : memref<1x32xf32, #tpu.memory_space<vmem>>, vector<1x32xf32>
    %cst_10 = arith.constant dense<0.000000e+00> : vector<128xf32>
    %9 = vector.multi_reduction <add>, %6, %cst_10 [1] : vector<128x32xf32> to vector<128xf32>
    %10 = vector.shape_cast %9 : vector<128xf32> to vector<128x1xf32>
    %cst_11 = arith.constant 3.200000e+01 : f32
    %11 = vector.broadcast %cst_11 : f32 to vector<128x1xf32>
    %12 = arith.divf %10, %11 : vector<128x1xf32>
    %13 = vector.broadcast %12 : vector<128x1xf32> to vector<128x32xf32>
    %14 = arith.subf %6, %13 : vector<128x32xf32>
    %15 = arith.mulf %14, %14 : vector<128x32xf32>
    %cst_12 = arith.constant dense<0.000000e+00> : vector<128xf32>
    %16 = vector.multi_reduction <add>, %15, %cst_12 [1] : vector<128x32xf32> to vector<128xf32>
    %17 = vector.shape_cast %16 : vector<128xf32> to vector<128x1xf32>
    %cst_13 = arith.constant 3.200000e+01 : f32
    %18 = vector.broadcast %cst_13 : f32 to vector<128x1xf32>
    %19 = arith.divf %17, %18 : vector<128x1xf32>
    %cst_14 = arith.constant 9.99999997E-7 : f32
    %20 = vector.broadcast %cst_14 : f32 to vector<128x1xf32>
    %21 = arith.addf %19, %20 : vector<128x1xf32>
    %22 = math.rsqrt %21 : vector<128x1xf32>
    %23 = vector.broadcast %22 : vector<128x1xf32> to vector<128x32xf32>
    %24 = arith.mulf %14, %23 : vector<128x32xf32>
    %25 = vector.broadcast %7 : vector<1x32xf32> to vector<128x32xf32>
    %26 = arith.mulf %24, %25 : vector<128x32xf32>
    %27 = vector.broadcast %8 : vector<1x32xf32> to vector<128x32xf32>
    %28 = arith.addf %26, %27 : vector<128x32xf32>
    %29 = arith.truncf %28 : vector<128x32xf32> to vector<128x32xbf16>
    %cst_15 = arith.constant 0.000000e+00 : f32
    %30 = vector.broadcast %cst_15 : f32 to vector<128x32xf32>
    %c0_16 = arith.constant 0 : index
    %c0_17 = arith.constant 0 : index
    %31 = vector.load %arg24[%c0_16, %c0_17] : memref<128x32xf32, #tpu.memory_space<vmem>>, vector<128x32xf32>
    tpu.vector_store %arg24[%c0_16, %c0_17], %30 {strides = array<i32>} : memref<128x32xf32, #tpu.memory_space<vmem>>, vector<128x32xf32>,
    %c0_i32 = arith.constant 0 : i32
    %c4_i32 = arith.constant 4 : i32
    %32 = arith.addi %c0_i32, %c4_i32 : i32
    %c1_i32 = arith.constant 1 : i32
    scf.for %arg25 = %c0_i32 to %32 step %c1_i32  : i32 {
      %98 = arith.index_cast %arg25 : i32 to index
      %c0_58 = arith.constant 0 : index
      %c0_59 = arith.constant 0 : index
      %99 = vector.load %arg9[%98, %c0_58, %c0_59] : memref<4x32x8xbf16, #tpu.memory_space<vmem>>, vector<1x32x8xbf16>
      %100 = vector.shape_cast %99 : vector<1x32x8xbf16> to vector<32x8xbf16>
      %cst_60 = arith.constant dense<0.000000e+00> : vector<128x8xf32>
      %101 = tpu.matmul %29, %100, %cst_60 {dimension_numbers = #tpu.dot_dimension_numbers<[1], [0], [0], [1], [0, 0, 1, 1], [], []>} : vector<128x32xbf16>, vector<32x8xbf16>, vector<128x8xf32> -> vector<128x8xf32>
      %102 = arith.index_cast %arg25 : i32 to index
      %c0_61 = arith.constant 0 : index
      %c0_62 = arith.constant 0 : index
      %103 = vector.load %arg10[%102, %c0_61, %c0_62] : memref<4x1x8xf32, #tpu.memory_space<vmem>>, vector<1x1x8xf32>
      %104 = vector.shape_cast %103 : vector<1x1x8xf32> to vector<1x8xf32>
      %105 = vector.broadcast %104 : vector<1x8xf32> to vector<128x8xf32>
      %106 = arith.addf %101, %105 : vector<128x8xf32>
      %107 = arith.truncf %106 : vector<128x8xf32> to vector<128x8xbf16>
      %c0_63 = arith.constant 0 : index
      %108 = arith.index_cast %arg25 : i32 to index
      %c0_64 = arith.constant 0 : index
      %c0_65 = arith.constant 0 : index
      %109 = vector.load %arg3[%c0_63, %108, %c0_64, %c0_65] : memref<1x4x8x8xbf16, #tpu.memory_space<vmem>>, vector<1x1x8x8xbf16>
      %110 = vector.shape_cast %109 : vector<1x1x8x8xbf16> to vector<8x8xbf16>
      %cst_66 = arith.constant dense<0.000000e+00> : vector<128x8xf32>
      %111 = tpu.matmul %107, %110, %cst_66 {dimension_numbers = #tpu.dot_dimension_numbers<[1], [0], [0], [1], [0, 0, 1, 1], [], []>} : vector<128x8xbf16>, vector<8x8xbf16>, vector<128x8xf32> -> vector<128x8xf32>
      %cst_67 = arith.constant dense<0xFF800000> : vector<128xf32>
      %112 = vector.multi_reduction <maximumf>, %111, %cst_67 [1] : vector<128x8xf32> to vector<128xf32>
      %113 = vector.shape_cast %112 : vector<128xf32> to vector<128x1xf32>
      %114 = vector.broadcast %113 : vector<128x1xf32> to vector<128x8xf32>
      %115 = arith.subf %111, %114 : vector<128x8xf32>
      %116 = math.exp %115 : vector<128x8xf32>
      %cst_68 = arith.constant dense<0.000000e+00> : vector<128xf32>
      %117 = vector.multi_reduction <add>, %116, %cst_68 [1] : vector<128x8xf32> to vector<128xf32>
      %118 = vector.shape_cast %117 : vector<128xf32> to vector<128x1xf32>
      %119 = tpu.reciprocal %118 {approx = true} : vector<128x1xf32> -> vector<128x1xf32>
      %120 = vector.broadcast %119 : vector<128x1xf32> to vector<128x8xf32>
      %121 = arith.mulf %116, %120 : vector<128x8xf32>
      %122 = arith.truncf %121 : vector<128x8xf32> to vector<128x8xbf16>
      %c0_69 = arith.constant 0 : index
      %123 = arith.index_cast %arg25 : i32 to index
      %c0_70 = arith.constant 0 : index
      %c0_71 = arith.constant 0 : index
      %124 = vector.load %arg4[%c0_69, %123, %c0_70, %c0_71] : memref<1x4x8x8xbf16, #tpu.memory_space<vmem>>, vector<1x1x8x8xbf16>
      %125 = vector.shape_cast %124 : vector<1x1x8x8xbf16> to vector<8x8xbf16>
      %cst_72 = arith.constant dense<0.000000e+00> : vector<128x8xf32>
      %126 = tpu.matmul %122, %125, %cst_72 {dimension_numbers = #tpu.dot_dimension_numbers<[1], [0], [0], [1], [0, 0, 1, 1], [], []>} : vector<128x8xbf16>, vector<8x8xbf16>, vector<128x8xf32> -> vector<128x8xf32>
      %c0_73 = arith.constant 0 : index
      %c0_74 = arith.constant 0 : index
      %127 = vector.load %arg24[%c0_73, %c0_74] : memref<128x32xf32, #tpu.memory_space<vmem>>, vector<128x32xf32>
      %128 = arith.truncf %126 : vector<128x8xf32> to vector<128x8xbf16>
      %129 = arith.index_cast %arg25 : i32 to index
      %c0_75 = arith.constant 0 : index
      %c0_76 = arith.constant 0 : index
      %130 = vector.load %arg11[%129, %c0_75, %c0_76] : memref<4x8x32xbf16, #tpu.memory_space<vmem>>, vector<1x8x32xbf16>
      %131 = vector.shape_cast %130 : vector<1x8x32xbf16> to vector<8x32xbf16>
      %cst_77 = arith.constant dense<0.000000e+00> : vector<128x32xf32>
      %132 = tpu.matmul %128, %131, %cst_77 {dimension_numbers = #tpu.dot_dimension_numbers<[1], [0], [0], [1], [0, 0, 1, 1], [], []>} : vector<128x8xbf16>, vector<8x32xbf16>, vector<128x32xf32> -> vector<128x32xf32>
      %133 = arith.addf %127, %132 : vector<128x32xf32>
      %c0_78 = arith.constant 0 : index
      %c0_79 = arith.constant 0 : index
      %134 = vector.load %arg24[%c0_78, %c0_79] : memref<128x32xf32, #tpu.memory_space<vmem>>, vector<128x32xf32>
      tpu.vector_store %arg24[%c0_78, %c0_79], %133 {strides = array<i32>} : memref<128x32xf32, #tpu.memory_space<vmem>>, vector<128x32xf32>,
    }
    %c4_i32_18 = arith.constant 4 : i32
    %c0_19 = arith.constant 0 : index
    %c0_20 = arith.constant 0 : index
    %33 = vector.load %arg24[%c0_19, %c0_20] : memref<128x32xf32, #tpu.memory_space<vmem>>, vector<128x32xf32>
    %34 = arith.addf %6, %33 : vector<128x32xf32>
    %c0_21 = arith.constant 0 : index
    %c0_22 = arith.constant 0 : index
    %35 = vector.load %arg12[%c0_21, %c0_22] : memref<1x32xf32, #tpu.memory_space<vmem>>, vector<1x32xf32>
    %36 = vector.broadcast %35 : vector<1x32xf32> to vector<128x32xf32>
    %37 = arith.addf %34, %36 : vector<128x32xf32>
    %c0_23 = arith.constant 0 : index
    %c0_24 = arith.constant 0 : index
    %38 = vector.load %arg13[%c0_23, %c0_24] : memref<1x32xf32, #tpu.memory_space<vmem>>, vector<1x32xf32>
    %c0_25 = arith.constant 0 : index
    %c0_26 = arith.constant 0 : index
    %39 = vector.load %arg14[%c0_25, %c0_26] : memref<1x32xf32, #tpu.memory_space<vmem>>, vector<1x32xf32>
    %cst_27 = arith.constant dense<0.000000e+00> : vector<128xf32>
    %40 = vector.multi_reduction <add>, %37, %cst_27 [1] : vector<128x32xf32> to vector<128xf32>
    %41 = vector.shape_cast %40 : vector<128xf32> to vector<128x1xf32>
    %cst_28 = arith.constant 3.200000e+01 : f32
    %42 = vector.broadcast %cst_28 : f32 to vector<128x1xf32>
    %43 = arith.divf %41, %42 : vector<128x1xf32>
    %44 = vector.broadcast %43 : vector<128x1xf32> to vector<128x32xf32>
    %45 = arith.subf %37, %44 : vector<128x32xf32>
    %46 = arith.mulf %45, %45 : vector<128x32xf32>
    %cst_29 = arith.constant dense<0.000000e+00> : vector<128xf32>
    %47 = vector.multi_reduction <add>, %46, %cst_29 [1] : vector<128x32xf32> to vector<128xf32>
    %48 = vector.shape_cast %47 : vector<128xf32> to vector<128x1xf32>
    %cst_30 = arith.constant 3.200000e+01 : f32
    %49 = vector.broadcast %cst_30 : f32 to vector<128x1xf32>
    %50 = arith.divf %48, %49 : vector<128x1xf32>
    %cst_31 = arith.constant 9.99999997E-7 : f32
    %51 = vector.broadcast %cst_31 : f32 to vector<128x1xf32>
    %52 = arith.addf %50, %51 : vector<128x1xf32>
    %53 = math.rsqrt %52 : vector<128x1xf32>
    %54 = vector.broadcast %53 : vector<128x1xf32> to vector<128x32xf32>
    %55 = arith.mulf %45, %54 : vector<128x32xf32>
    %56 = vector.broadcast %38 : vector<1x32xf32> to vector<128x32xf32>
    %57 = arith.mulf %55, %56 : vector<128x32xf32>
    %58 = vector.broadcast %39 : vector<1x32xf32> to vector<128x32xf32>
    %59 = arith.addf %57, %58 : vector<128x32xf32>
    %60 = arith.truncf %59 : vector<128x32xf32> to vector<128x32xbf16>
    %c0_32 = arith.constant 0 : index
    %c0_33 = arith.constant 0 : index
    %61 = vector.load %arg24[%c0_32, %c0_33] : memref<128x32xf32, #tpu.memory_space<vmem>>, vector<128x32xf32>
    tpu.vector_store %arg24[%c0_32, %c0_33], %37 {strides = array<i32>} : memref<128x32xf32, #tpu.memory_space<vmem>>, vector<128x32xf32>,
    %c0_i32_34 = arith.constant 0 : i32
    %c2_i32 = arith.constant 2 : i32
    %62 = arith.addi %c0_i32_34, %c2_i32 : i32
    %c1_i32_35 = arith.constant 1 : i32
    scf.for %arg25 = %c0_i32_34 to %62 step %c1_i32_35  : i32 {
      %98 = arith.index_cast %arg25 : i32 to index
      %c0_58 = arith.constant 0 : index
      %c0_59 = arith.constant 0 : index
      %99 = vector.load %arg15[%98, %c0_58, %c0_59] : memref<2x32x64xbf16, #tpu.memory_space<vmem>>, vector<1x32x64xbf16>
      %100 = vector.shape_cast %99 : vector<1x32x64xbf16> to vector<32x64xbf16>
      %cst_60 = arith.constant dense<0.000000e+00> : vector<128x64xf32>
      %101 = tpu.matmul %60, %100, %cst_60 {dimension_numbers = #tpu.dot_dimension_numbers<[1], [0], [0], [1], [0, 0, 1, 1], [], []>} : vector<128x32xbf16>, vector<32x64xbf16>, vector<128x64xf32> -> vector<128x64xf32>
      %102 = arith.index_cast %arg25 : i32 to index
      %c0_61 = arith.constant 0 : index
      %c0_62 = arith.constant 0 : index
      %103 = vector.load %arg16[%102, %c0_61, %c0_62] : memref<2x1x64xf32, #tpu.memory_space<vmem>>, vector<1x1x64xf32>
      %104 = vector.shape_cast %103 : vector<1x1x64xf32> to vector<1x64xf32>
      %105 = vector.broadcast %104 : vector<1x64xf32> to vector<128x64xf32>
      %106 = arith.addf %101, %105 : vector<128x64xf32>
      %cst_63 = arith.constant 5.000000e-01 : f32
      %107 = vector.broadcast %cst_63 : f32 to vector<128x64xf32>
      %108 = arith.mulf %107, %106 : vector<128x64xf32>
      %cst_64 = arith.constant 0.707106769 : f32
      %109 = vector.broadcast %cst_64 : f32 to vector<128x64xf32>
      %110 = arith.mulf %106, %109 : vector<128x64xf32>
      %111 = math.erf %110 : vector<128x64xf32>
      %cst_65 = arith.constant 1.000000e+00 : f32
      %112 = vector.broadcast %cst_65 : f32 to vector<128x64xf32>
      %113 = arith.addf %112, %111 : vector<128x64xf32>
      %114 = arith.mulf %108, %113 : vector<128x64xf32>
      %115 = arith.truncf %114 : vector<128x64xf32> to vector<128x64xbf16>
      %c0_66 = arith.constant 0 : index
      %c0_67 = arith.constant 0 : index
      %116 = vector.load %arg24[%c0_66, %c0_67] : memref<128x32xf32, #tpu.memory_space<vmem>>, vector<128x32xf32>
      %117 = arith.index_cast %arg25 : i32 to index
      %c0_68 = arith.constant 0 : index
      %c0_69 = arith.constant 0 : index
      %118 = vector.load %arg17[%117, %c0_68, %c0_69] : memref<2x64x32xbf16, #tpu.memory_space<vmem>>, vector<1x64x32xbf16>
      %119 = vector.shape_cast %118 : vector<1x64x32xbf16> to vector<64x32xbf16>
      %cst_70 = arith.constant dense<0.000000e+00> : vector<128x32xf32>
      %120 = tpu.matmul %115, %119, %cst_70 {dimension_numbers = #tpu.dot_dimension_numbers<[1], [0], [0], [1], [0, 0, 1, 1], [], []>} : vector<128x64xbf16>, vector<64x32xbf16>, vector<128x32xf32> -> vector<128x32xf32>
      %121 = arith.addf %116, %120 : vector<128x32xf32>
      %c0_71 = arith.constant 0 : index
      %c0_72 = arith.constant 0 : index
      %122 = vector.load %arg24[%c0_71, %c0_72] : memref<128x32xf32, #tpu.memory_space<vmem>>, vector<128x32xf32>
      tpu.vector_store %arg24[%c0_71, %c0_72], %121 {strides = array<i32>} : memref<128x32xf32, #tpu.memory_space<vmem>>, vector<128x32xf32>,
    }
    %c2_i32_36 = arith.constant 2 : i32
    %c0_37 = arith.constant 0 : index
    %c0_38 = arith.constant 0 : index
    %63 = vector.load %arg24[%c0_37, %c0_38] : memref<128x32xf32, #tpu.memory_space<vmem>>, vector<128x32xf32>
    %c0_39 = arith.constant 0 : index
    %c0_40 = arith.constant 0 : index
    %64 = vector.load %arg18[%c0_39, %c0_40] : memref<1x32xf32, #tpu.memory_space<vmem>>, vector<1x32xf32>
    %65 = vector.broadcast %64 : vector<1x32xf32> to vector<128x32xf32>
    %66 = arith.addf %63, %65 : vector<128x32xf32>
    %c0_41 = arith.constant 0 : index
    %c0_42 = arith.constant 0 : index
    %67 = vector.load %arg19[%c0_41, %c0_42] : memref<1x32xf32, #tpu.memory_space<vmem>>, vector<1x32xf32>
    %c0_43 = arith.constant 0 : index
    %c0_44 = arith.constant 0 : index
    %68 = vector.load %arg20[%c0_43, %c0_44] : memref<1x32xf32, #tpu.memory_space<vmem>>, vector<1x32xf32>
    %cst_45 = arith.constant dense<0.000000e+00> : vector<128xf32>
    %69 = vector.multi_reduction <add>, %66, %cst_45 [1] : vector<128x32xf32> to vector<128xf32>
    %70 = vector.shape_cast %69 : vector<128xf32> to vector<128x1xf32>
    %cst_46 = arith.constant 3.200000e+01 : f32
    %71 = vector.broadcast %cst_46 : f32 to vector<128x1xf32>
    %72 = arith.divf %70, %71 : vector<128x1xf32>
    %73 = vector.broadcast %72 : vector<128x1xf32> to vector<128x32xf32>
    %74 = arith.subf %66, %73 : vector<128x32xf32>
    %75 = arith.mulf %74, %74 : vector<128x32xf32>
    %cst_47 = arith.constant dense<0.000000e+00> : vector<128xf32>
    %76 = vector.multi_reduction <add>, %75, %cst_47 [1] : vector<128x32xf32> to vector<128xf32>
    %77 = vector.shape_cast %76 : vector<128xf32> to vector<128x1xf32>
    %cst_48 = arith.constant 3.200000e+01 : f32
    %78 = vector.broadcast %cst_48 : f32 to vector<128x1xf32>
    %79 = arith.divf %77, %78 : vector<128x1xf32>
    %cst_49 = arith.constant 9.99999974E-6 : f32
    %80 = vector.broadcast %cst_49 : f32 to vector<128x1xf32>
    %81 = arith.addf %79, %80 : vector<128x1xf32>
    %82 = math.rsqrt %81 : vector<128x1xf32>
    %83 = vector.broadcast %82 : vector<128x1xf32> to vector<128x32xf32>
    %84 = arith.mulf %74, %83 : vector<128x32xf32>
    %85 = vector.broadcast %67 : vector<1x32xf32> to vector<128x32xf32>
    %86 = arith.mulf %84, %85 : vector<128x32xf32>
    %87 = vector.broadcast %68 : vector<1x32xf32> to vector<128x32xf32>
    %88 = arith.addf %86, %87 : vector<128x32xf32>
    %89 = arith.truncf %88 : vector<128x32xf32> to vector<128x32xbf16>
    %c0_50 = arith.constant 0 : index
    %c0_51 = arith.constant 0 : index
    %90 = vector.load %arg21[%c0_50, %c0_51] : memref<4x32xbf16, #tpu.memory_space<vmem>>, vector<4x32xbf16>
    %cst_52 = arith.constant dense<0.000000e+00> : vector<4x128xf32>
    %91 = tpu.matmul %90, %89, %cst_52 {dimension_numbers = #tpu.dot_dimension_numbers<[1], [1], [0], [0], [0, 0, 1, 0], [], []>} : vector<4x32xbf16>, vector<128x32xbf16>, vector<4x128xf32> -> vector<4x128xf32>
    %c0_53 = arith.constant 0 : index
    %c0_54 = arith.constant 0 : index
    %92 = vector.load %arg22[%c0_53, %c0_54] : memref<4x1xf32, #tpu.memory_space<vmem>>, vector<4x1xf32>
    %93 = vector.broadcast %92 : vector<4x1xf32> to vector<4x128xf32>
    %94 = arith.addf %91, %93 : vector<4x128xf32>
    %c0_55 = arith.constant 0 : index
    %c0_56 = arith.constant 0 : index
    %c0_57 = arith.constant 0 : index
    %95 = vector.load %arg23[%c0_55, %c0_56, %c0_57] : memref<1x4x128xf32, #tpu.memory_space<vmem>>, vector<1x4x128xf32>
    %96 = vector.shape_cast %95 : vector<1x4x128xf32> to vector<4x128xf32>
    %97 = vector.shape_cast %94 : vector<4x128xf32> to vector<1x4x128xf32>
    tpu.vector_store %arg23[%c0_55, %c0_56, %c0_57], %97 {strides = array<i32>} : memref<1x4x128xf32, #tpu.memory_space<vmem>>, vector<1x4x128xf32>,
    return
  }
  func.func @transform_0(%arg0: i32, %arg1: i32) -> (i32, i32, i32) {
    %c0_i32 = arith.constant 0 : i32
    %c0_i32_0 = arith.constant 0 : i32
    return %arg0, %arg1, %c0_i32 : i32, i32, i32
  }
  func.func @transform_1(%arg0: i32, %arg1: i32) -> (i32, i32, i32, i32) {
    %c0_i32 = arith.constant 0 : i32
    %c0_i32_0 = arith.constant 0 : i32
    %c0_i32_1 = arith.constant 0 : i32
    %c0_i32_2 = arith.constant 0 : i32
    return %arg0, %c0_i32, %c0_i32_0, %c0_i32_1 : i32, i32, i32, i32
  }
  func.func @transform_2(%arg0: i32, %arg1: i32) -> (i32, i32, i32, i32) {
    %c0_i32 = arith.constant 0 : i32
    %c0_i32_0 = arith.constant 0 : i32
    %c0_i32_1 = arith.constant 0 : i32
    %c0_i32_2 = arith.constant 0 : i32
    return %arg0, %c0_i32, %c0_i32_0, %c0_i32_1 : i32, i32, i32, i32
  }
  func.func @transform_3(%arg0: i32, %arg1: i32) -> (i32, i32) {
    %c0_i32 = arith.constant 0 : i32
    %c0_i32_0 = arith.constant 0 : i32
    %c0_i32_1 = arith.constant 0 : i32
    return %c0_i32, %c0_i32_0 : i32, i32
  }
  func.func @transform_4(%arg0: i32, %arg1: i32) -> (i32, i32) {
    %c0_i32 = arith.constant 0 : i32
    %c0_i32_0 = arith.constant 0 : i32
    %c0_i32_1 = arith.constant 0 : i32
    return %c0_i32, %c0_i32_0 : i32, i32
  }
  func.func @transform_5(%arg0: i32, %arg1: i32) -> (i32, i32) {
    %c0_i32 = arith.constant 0 : i32
    %c0_i32_0 = arith.constant 0 : i32
    %c0_i32_1 = arith.constant 0 : i32
    return %c0_i32, %c0_i32_0 : i32, i32
  }
  func.func @transform_6(%arg0: i32, %arg1: i32) -> (i32, i32) {
    %c0_i32 = arith.constant 0 : i32
    %c0_i32_0 = arith.constant 0 : i32
    %c0_i32_1 = arith.constant 0 : i32
    return %c0_i32, %c0_i32_0 : i32, i32
  }
  func.func @transform_7(%arg0: i32, %arg1: i32) -> (i32, i32, i32) {
    %c0_i32 = arith.constant 0 : i32
    %c0_i32_0 = arith.constant 0 : i32
    %c0_i32_1 = arith.constant 0 : i32
    %c0_i32_2 = arith.constant 0 : i32
    return %c0_i32, %c0_i32_0, %c0_i32_1 : i32, i32, i32
  }
  func.func @transform_8(%arg0: i32, %arg1: i32) -> (i32, i32, i32) {
    %c0_i32 = arith.constant 0 : i32
    %c0_i32_0 = arith.constant 0 : i32
    %c0_i32_1 = arith.constant 0 : i32
    %c0_i32_2 = arith.constant 0 : i32
    return %c0_i32, %c0_i32_0, %c0_i32_1 : i32, i32, i32
  }
  func.func @transform_9(%arg0: i32, %arg1: i32) -> (i32, i32, i32) {
    %c0_i32 = arith.constant 0 : i32
    %c0_i32_0 = arith.constant 0 : i32
    %c0_i32_1 = arith.constant 0 : i32
    %c0_i32_2 = arith.constant 0 : i32
    return %c0_i32, %c0_i32_0, %c0_i32_1 : i32, i32, i32
  }
  func.func @transform_10(%arg0: i32, %arg1: i32) -> (i32, i32) {
    %c0_i32 = arith.constant 0 : i32
    %c0_i32_0 = arith.constant 0 : i32
    %c0_i32_1 = arith.constant 0 : i32
    return %c0_i32, %c0_i32_0 : i32, i32
  }
  func.func @transform_11(%arg0: i32, %arg1: i32) -> (i32, i32) {
    %c0_i32 = arith.constant 0 : i32
    %c0_i32_0 = arith.constant 0 : i32
    %c0_i32_1 = arith.constant 0 : i32
    return %c0_i32, %c0_i32_0 : i32, i32
  }
  func.func @transform_12(%arg0: i32, %arg1: i32) -> (i32, i32) {
    %c0_i32 = arith.constant 0 : i32
    %c0_i32_0 = arith.constant 0 : i32
    %c0_i32_1 = arith.constant 0 : i32
    return %c0_i32, %c0_i32_0 : i32, i32
  }
  func.func @transform_13(%arg0: i32, %arg1: i32) -> (i32, i32, i32) {
    %c0_i32 = arith.constant 0 : i32
    %c0_i32_0 = arith.constant 0 : i32
    %c0_i32_1 = arith.constant 0 : i32
    %c0_i32_2 = arith.constant 0 : i32
    return %c0_i32, %c0_i32_0, %c0_i32_1 : i32, i32, i32
  }
  func.func @transform_14(%arg0: i32, %arg1: i32) -> (i32, i32, i32) {
    %c0_i32 = arith.constant 0 : i32
    %c0_i32_0 = arith.constant 0 : i32
    %c0_i32_1 = arith.constant 0 : i32
    %c0_i32_2 = arith.constant 0 : i32
    return %c0_i32, %c0_i32_0, %c0_i32_1 : i32, i32, i32
  }
  func.func @transform_15(%arg0: i32, %arg1: i32) -> (i32, i32, i32) {
    %c0_i32 = arith.constant 0 : i32
    %c0_i32_0 = arith.constant 0 : i32
    %c0_i32_1 = arith.constant 0 : i32
    %c0_i32_2 = arith.constant 0 : i32
    return %c0_i32, %c0_i32_0, %c0_i32_1 : i32, i32, i32
  }
  func.func @transform_16(%arg0: i32, %arg1: i32) -> (i32, i32) {
    %c0_i32 = arith.constant 0 : i32
    %c0_i32_0 = arith.constant 0 : i32
    %c0_i32_1 = arith.constant 0 : i32
    return %c0_i32, %c0_i32_0 : i32, i32
  }
  func.func @transform_17(%arg0: i32, %arg1: i32) -> (i32, i32) {
    %c0_i32 = arith.constant 0 : i32
    %c0_i32_0 = arith.constant 0 : i32
    %c0_i32_1 = arith.constant 0 : i32
    return %c0_i32, %c0_i32_0 : i32, i32
  }
  func.func @transform_18(%arg0: i32, %arg1: i32) -> (i32, i32) {
    %c0_i32 = arith.constant 0 : i32
    %c0_i32_0 = arith.constant 0 : i32
    %c0_i32_1 = arith.constant 0 : i32
    return %c0_i32, %c0_i32_0 : i32, i32
  }
  func.func @transform_19(%arg0: i32, %arg1: i32) -> (i32, i32) {
    %c0_i32 = arith.constant 0 : i32
    %c0_i32_0 = arith.constant 0 : i32
    %c0_i32_1 = arith.constant 0 : i32
    return %c0_i32, %c0_i32_0 : i32, i32
  }
  func.func @transform_20(%arg0: i32, %arg1: i32) -> (i32, i32) {
    %c0_i32 = arith.constant 0 : i32
    %c0_i32_0 = arith.constant 0 : i32
    %c0_i32_1 = arith.constant 0 : i32
    return %c0_i32, %c0_i32_0 : i32, i32
  }
  func.func @transform_21(%arg0: i32, %arg1: i32) -> (i32, i32, i32) {
    %c0_i32 = arith.constant 0 : i32
    %c0_i32_0 = arith.constant 0 : i32
    return %arg0, %c0_i32, %arg1 : i32, i32, i32
  }
}

</mosaic_0001>

<bundles_post_ra>
// kernel: tpu_custom_call.1
= control target key start
LH: loop header
LB: loop body
LE: loop exit
PB: predicated region body
PF: predicated region fallthrough
CT: control target
= control target key end

     0   :  { %s7720_s0 = inlined_call_operand.vmem [shape: bf16[2,128,128], index: 0, kind: input, shape index: {}]   ;;  %s7721_s1 = inlined_call_operand.vmem [shape: bf16[2,4,8,8], index: 1, kind: input, shape index: {}]   ;;  %s7722_s2 = inlined_call_operand.vmem [shape: bf16[2,4,8,8], index: 2, kind: input, shape index: {}]   ;;  %s7723_s3 = inlined_call_operand.vmem [shape: bf16[128,32], index: 3, kind: input, shape index: {}]   ;;  %s7724_s4 = inlined_call_operand.vmem [shape: f32[1,32], index: 4, kind: input, shape index: {}]   ;;  %s7725_s5 = inlined_call_operand.hbm [shape: f32[1,32], index: 5, kind: input, shape index: {}]   ;;  %s7726_s6 = inlined_call_operand.hbm [shape: f32[1,32], index: 6, kind: input, shape index: {}]   ;;  %s7727_s7 = inlined_call_operand.vmem [shape: bf16[4,32,8], index: 7, kind: input, shape index: {}]   ;;  %s7728_s8 = inlined_call_operand.vmem [shape: f32[4,1,8], index: 8, kind: input, shape index: {}]   ;;  %s7729_s9 = inlined_call_operand.vmem [shape: bf16[4,8,32], index: 9, kind: input, shape index: {}]   ;;  %s7730_s10 = inlined_call_operand.vmem [shape: f32[1,32], index: 10, kind: input, shape index: {}]   ;;  %s7731_s11 = inlined_call_operand.vmem [shape: f32[1,32], index: 11, kind: input, shape index: {}]   ;;  %s7732_s12 = inlined_call_operand.vmem [shape: f32[1,32], index: 12, kind: input, shape index: {}]   ;;  %s7733_s13 = inlined_call_operand.hbm [shape: bf16[2,32,64], index: 13, kind: input, shape index: {}]   ;;  %s7734_s14 = inlined_call_operand.vmem [shape: f32[2,1,64], index: 14, kind: input, shape index: {}]   ;;  %s7735_s15 = inlined_call_operand.vmem [shape: bf16[2,64,32], index: 15, kind: input, shape index: {}]   ;;  %s7736_s16 = inlined_call_operand.vmem [shape: f32[1,32], index: 16, kind: input, shape index: {}]   ;;  %s7737_s17 = inlined_call_operand.vmem [shape: f32[1,32], index: 17, kind: input, shape index: {}]   ;;  %s7738_s18 = inlined_call_operand.vmem [shape: f32[1,32], index: 18, kind: input, shape index: {}]   ;;  %s7739_s19 = inlined_call_operand.vmem [shape: bf16[4,32], index: 19, kind: input, shape index: {}]   ;;  %s7740_s20 = inlined_call_operand.vmem [shape: f32[4,1], index: 20, kind: input, shape index: {}]   ;;  %s7741_s21 = inlined_call_operand.hbm [shape: f32[2,4,128], index: 21, kind: output, shape index: {}]  }
   0x1   :  { %7770 = sst [smem:[#allocation36_spill]] %s7720_s0 }
   0x2   :  { %7771 = sst [smem:[#allocation37_spill]] %s7721_s1 }
   0x3   :  { %7772 = sst [smem:[#allocation38_spill]] %s7722_s2 }
   0x4   :  { %7773 = sst [smem:[#allocation39_spill]] %s7723_s3 }
   0x5   :  { %7774 = sst [smem:[#allocation40_spill]] %s7724_s4 }
   0x6   :  { %7775 = sst [smem:[#allocation41_spill]] %s7725_s5 }
   0x7   :  { %7776 = sst [smem:[#allocation42_spill]] %s7726_s6 }
   0x8   :  { %7777 = sst [smem:[#allocation43_spill]] %s7738_s18 }
   0x9   :  { %7778 = sst [smem:[#allocation44_spill]] %s7739_s19 }
   0xa   :  { %7779 = sst [smem:[#allocation45_spill]] %s7740_s20 }
   0xb   :  { %7780 = sst [smem:[#allocation46_spill]] %s7741_s21 }
   0xc   :  { %26 = vsyncpa [#allocation4], 0 }
   0xd   :  { %27 = vsyncpa [#allocation7], 0 }
   0xe   :  { %28 = vsyncpa [#allocation5], 0 }
   0xf   :  { %30 = vsyncpa [#allocation5 + $0x1], 0  ;;  %s4945_s2 = smov 0   ;;  %s4947_s25 = smov 0  }
  0x10   :  { %s4949_s26 = smov 0   ;;  %s4951_s27 = smov 0  }
  0x11   :  { %s4953_s3 = smov 0   ;;  %s4955_s28 = smov 0  }
  0x12 LB: > { %7781 = sst [smem:[#allocation13_spill]] %s4797_s2  ;;  %s4067_s29 = sadd.s32 4294967295, %s4817_s28   ;;  %s4817_s28 = sphi %s4955_s28, %s36_s28   ;;  %s4813_s3 = sphi %s4953_s3, %s7937_s3   ;;  %s4809_s27 = sphi %s4951_s27, %s7936_s27   ;;  %s4805_s26 = sphi %s4949_s26, %s7935_s26   ;;  %s4801_s25 = sphi %s4947_s25, %s7939_s25   ;;  %s4797_s2 = sphi %s4945_s2, %s7938_s2  }
  0x13   : > { %7782 = sst [smem:[#allocation14_spill]] %s4805_s26  ;;  %s4068_s0 = sadd.s32 4294967294, %s4817_s28  }
  0x14   : > { %7783 = sst [smem:[#allocation15_spill]] %s4813_s3  ;;  %s48_s4 = sadd.s32 1, %s4813_s3 }
  0x15   : > { %7784 = sst [smem:[#allocation16_spill]] %s4817_s28  ;;  %s515_s30 = sadd.s32 1, %s4805_s26 }
  0x16   : > { %p50_p0 = scmp.ge.s32.totalorder %s48_s4, 2  ;;  %p525_p1 = scmp.ne.s32.totalorder %s4805_s26, %s4801_s25 }
  0x17   : > { %p526_p2 = scmp.eq.s32.totalorder %s4067_s29, 1  ;;  %p531_p3 = scmp.ne.s32.totalorder %s4801_s25, %s4797_s2 }
  0x18   : > { %s7941_s4 = smov (%p50_p0, %s48_s4), 0  ;;  %p532_p5 = scmp.eq.s32.totalorder %s4068_s0, 1 }
  0x19   : > { %7785 = sst [smem:[#allocation17_spill]] %s7941_s4  ;;  %p4985_p4 = por %p526_p2, %p525_p1 }
  0x1a   : > { %s510_s22 = ssub.s32 %s4813_s3, %s7941_s4  ;;  %p4069_p6 = scmp.ge.s32.totalorder %s4817_s28, 1 }
  0x1b   : > { %s7786_s5 = scalar_select %p4985_p4, 1, 0 }
  0x1c   : > { %p513_p7 = scmp.eq.s32.totalorder %s510_s22, 0  ;;  %p4992_p8 = por %p532_p5, %p531_p3 }
  0x1d   : > { %7787 = sst [smem:[#allocation18_spill]] %s7786_s5  ;;  %p539_p9 = scmp.lt.s32.totalorder %s4817_s28, 3 }
  0x1e   : > { %s7788_s23 = scalar_select %p4992_p8, 1, 0 }
  0x1f   : > { %s4998_s1 = scalar_select %p513_p7, %s4805_s26, %s515_s30  }
  0x20   : > { %7789 = sst [smem:[#allocation19_spill]] %s7788_s23  ;;  %p5000_p10 = pnand %p4069_p6, %p539_p9 }
  0x21   : > { %7790 = sst [smem:[#allocation20_spill]] %s4998_s1  ;;  %p5004_p11 = scmp.eq.s32.totalorder %s4067_s29, 0 }
  0x22   : > { %s7793_s6 = sld [smem:[#allocation42_spill]]  ;;  %p4333_p12 = pneg %p5000_p10 }
  0x23   : > { %s4827_s3 = smov [#allocation6]   ;;  %s7795_s23 = sld [smem:[#allocation41_spill]] }
  0x24   : > { %s587_s30 = sshll.u32 %s4827_s3, 4  ;;  %p5015_p13 = pnand %p5004_p11, %p4333_p12  ;;  %s588_s30 = int_to_ptr.vmem [resolvable:$true] %s587_s30 }
  0x25   : > { %s614_s3 = sshll.u32 %s7733_s13, 4  ;;  %s4828_s28 = smov [#allocation3]   ;;  %s615_s3 = int_to_ptr.hbm [resolvable:$true] %s614_s3 }
  0x26   : > { %s575_s21 = sshll.u32 %s4828_s28, 4  ;;  %s4829_s5 = smov [#allocation8]   ;;  %s576_s21 = int_to_ptr.vmem [resolvable:$true] %s575_s21 }
  0x27   : > { %s616_s19 = sshll.u32 %s4829_s5, 4  ;;  %s4830_s20 = smov 64   ;;  %s617_s19 = int_to_ptr.vmem [resolvable:$true] %s616_s19 }
  0x28   : > { %s585_s22 = sshll.u32 %s7793_s6, 4  ;;  %s4831_s18 = smov 4   ;;  %s586_s22 = int_to_ptr.hbm [resolvable:$true] %s585_s22 }
  0x29   : > { %s573_s4 = sshll.u32 %s7795_s23, 4  ;;  %666 = sbr.rel (%p5000_p10) target bundleno = 2889 (0xb49), region = 104  ;;  %s574_s4 = int_to_ptr.hbm [resolvable:$true] %s573_s4 }
  0x2a   : > { %4339 = dma.hbm_to_vmem [thread:$0]  (!%p5015_p13), %s586_s22, 16, %s588_s30, [#allocation7]  }
  0x2b   : > { %4336 = dma.hbm_to_vmem [thread:$0]  (!%p5015_p13), %s574_s4, 16, %s576_s21, [#allocation4]  }
  0x2c   : > { %4342 = dma.hbm_to_vmem [thread:$0]  (!%p5015_p13), %s615_s3, 512, %s617_s19, [#allocation7], %s4830_s20, %s4830_s20, %s4831_s18  }
  0x2e   : > { %4784 = dma.done.wait (%p5004_p11), [#allocation4], 16  }
  0x2f   : > { %4786 = vsyncadd (%p5004_p11), [#allocation4], 4294967280 }
  0x30   : > { %4788 = dma.done.wait (%p5004_p11), [#allocation7], 528  }
  0x31   : > { %4790 = vsyncadd (%p5004_p11), [#allocation7], 4294966768  ;;  %vm955_vm0 = vcmask 261120   ;;  %s748_s6 = sand.u32 1, %s4801_s25   ;;  %p752_p0 = scmp.lt.s32.totalorder %s4809_s27, 1  ;;  %v4832_v0 = vmov 0.0  }
  0x32   : > { %1361 = vst.msk [vmem:[#allocation2] sm:$0xff] %vm955_vm0, %v4832_v0  ;;  %s5046_s18 = sshll.u32 %s748_s6, 2  ;;  %s7796_s26 = sld [smem:[#allocation37_spill]] }
  0x33   : > { %1362 = vst.msk [vmem:[#allocation2 + $0x8] sm:$0xff] %vm955_vm0, %v4832_v0  ;;  %s5051_s19 = scalar_select %p752_p0, %s4809_s27, 1 }
  0x34   : > { %1363 = vst.msk [vmem:[#allocation2 + $0x10] sm:$0xff] %vm955_vm0, %v4832_v0  ;;  %s7797_s1 = sld [smem:[#allocation39_spill]]  ;;  %s750_s24 = scalar_lea.vmem [#allocation9], %s5046_s18 }
  0x35   : > { %1364 = vst.msk [vmem:[#allocation2 + $0x18] sm:$0xff] %vm955_vm0, %v4832_v0  ;;  %s4260_s20 = sshll.u32 %s5051_s19, 4  ;;  %s7798_s30 = sld [smem:[#allocation38_spill]] }
  0x36   : > { %1365 = vst.msk [vmem:[#allocation2 + $0x20] sm:$0xff] %vm955_vm0, %v4832_v0  ;;  %s4259_s4 = sshll.u32 %s5051_s19, 6  ;;  %s7799_s2 = sld [smem:[#allocation36_spill]] }
  0x37   : > { %1366 = vst.msk [vmem:[#allocation2 + $0x28] sm:$0xff] %vm955_vm0, %v4832_v0  ;;  %s7800_s23 = sld [smem:[#allocation40_spill]]  ;;  %s5591_s22 = smov 0  }
  0x38   : > { %s5060_s28 = scalar_lea.vmem %s7796_s26, %s4260_s20  ;;  %1367 = vst.msk [vmem:[#allocation2 + $0x30] sm:$0xff] %vm955_vm0, %v4832_v0 }
  0x39   : > { %1368 = vst.msk [vmem:[#allocation2 + $0x38] sm:$0xff] %vm955_vm0, %v4832_v0 }
  0x3a   : > { %v4277_v1 = vld [vmem:[%s7797_s1 + $0x38] sm:$0xff]  ;;  %1369 = vst.msk [vmem:[#allocation2 + $0x40] sm:$0xff] %vm955_vm0, %v4832_v0  ;;  %v4276_v2 = vld [vmem:[%s7797_s1 + $0x30] sm:$0xff]  ;;  %v4275_v3 = vld [vmem:[%s7797_s1 + $0x28] sm:$0xff] }
  0x3b   : > { %s5069_s29 = scalar_lea.vmem %s7798_s30, %s4260_s20  ;;  %904 = vmatpush.bf16.msra.mxu0 %v4277_v1  ;;  %4289 = vmatpush.bf16.msra.mxu1 %v4277_v1  ;;  %1370 = vst.msk [vmem:[#allocation2 + $0x48] sm:$0xff] %vm955_vm0, %v4832_v0  ;;  %v4274_v4 = vld [vmem:[%s7797_s1 + $0x20] sm:$0xff]  ;;  %v4273_v5 = vld [vmem:[%s7797_s1 + $0x18] sm:$0xff]  ;;  %v4272_v6 = vld [vmem:[%s7797_s1 + $0x10] sm:$0xff] }
  0x3c   : > { %4290 = vmatpush.bf16.msra.mxu2 %v4277_v1  ;;  %4291 = vmatpush.bf16.msra.mxu3 %v4277_v1  ;;  %1371 = vst.msk [vmem:[#allocation2 + $0x50] sm:$0xff] %vm955_vm0, %v4832_v0  ;;  %v4271_v7 = vld [vmem:[%s7797_s1 + $0x8] sm:$0xff]  ;;  %v4270_v8 = vld [vmem:[%s7797_s1] sm:$0xff]  ;;  %s759_s26 = scalar_lea.vmem %s7799_s2, %s4259_s4 }
  0x3d   : > { %1372 = vst.msk [vmem:[#allocation2 + $0x58] sm:$0xff] %vm955_vm0, %v4832_v0  ;;  %v4262_v9 = vld [vmem:[%s759_s26] sm:$0xff]  ;;  %v4264_v10 = vld [vmem:[%s759_s26 + $0x10] sm:$0xff]  ;;  %v4263_v13 = vld [vmem:[%s759_s26 + $0x8] sm:$0xff] }
  0x3e   : > { %1373 = vst.msk [vmem:[#allocation2 + $0x60] sm:$0xff] %vm955_vm0, %v4832_v0  ;;  %v4266_v11 = vld [vmem:[%s759_s26 + $0x20] sm:$0xff]  ;;  %v4268_v12 = vld [vmem:[%s759_s26 + $0x30] sm:$0xff]  ;;  %v4265_v14 = vld [vmem:[%s759_s26 + $0x18] sm:$0xff] }
  0x3f   : > { %905 = vmatpush.bf16.msra.mxu0 %v4276_v2  ;;  %4292 = vmatpush.bf16.msra.mxu1 %v4276_v2  ;;  %1374 = vst.msk [vmem:[#allocation2 + $0x68] sm:$0xff] %vm955_vm0, %v4832_v0  ;;  %v4267_v15 = vld [vmem:[%s759_s26 + $0x28] sm:$0xff]  ;;  %v4269_v16 = vld [vmem:[%s759_s26 + $0x38] sm:$0xff]  ;;  %v4426_v17 = vld [vmem:[%s7800_s23] ss:$0 sm:$0xff] }
  0x40   : > { %4293 = vmatpush.bf16.msra.mxu2 %v4276_v2  ;;  %4294 = vmatpush.bf16.msra.mxu3 %v4276_v2  ;;  %1375 = vst.msk [vmem:[#allocation2 + $0x70] sm:$0xff] %vm955_vm0, %v4832_v0  ;;  %v4833_v2 = vmov 32.0  }
  0x41   : > { %1376 = vst.msk [vmem:[#allocation2 + $0x78] sm:$0xff] %vm955_vm0, %v4832_v0  ;;  %4429 = vrcp.f32 %v4833_v2 }
  0x43   : > { %906 = vmatpush.bf16.msra.mxu0 %v4275_v3  ;;  %4295 = vmatpush.bf16.msra.mxu1 %v4275_v3 }
  0x44   : > { %4296 = vmatpush.bf16.msra.mxu2 %v4275_v3  ;;  %4297 = vmatpush.bf16.msra.mxu3 %v4275_v3 }
  0x47   : > { %907 = vmatpush.bf16.msra.mxu0 %v4274_v4  ;;  %4298 = vmatpush.bf16.msra.mxu1 %v4274_v4  ;;  %v4430_v3 = vpop.eup %4429 }
  0x48   : > { %4299 = vmatpush.bf16.msra.mxu2 %v4274_v4  ;;  %4300 = vmatpush.bf16.msra.mxu3 %v4274_v4  ;;  %v1005_v4 = vmul.f32 32.0, %v4430_v3  ;;  %vm1009_vm1 = vweird.f32 %v4430_v3 }
  0x4b   : > { %908 = vmatpush.bf16.msra.mxu0 %v4273_v5  ;;  %4301 = vmatpush.bf16.msra.mxu1 %v4273_v5 }
  0x4c   : > { %4302 = vmatpush.bf16.msra.mxu2 %v4273_v5  ;;  %4303 = vmatpush.bf16.msra.mxu3 %v4273_v5  ;;  %v1006_v5 = vsub.f32 1.0, %v1005_v4 }
  0x4f   : > { %909 = vmatpush.bf16.msra.mxu0 %v4272_v6  ;;  %4304 = vmatpush.bf16.msra.mxu1 %v4272_v6 }
  0x50   : > { %4305 = vmatpush.bf16.msra.mxu2 %v4272_v6  ;;  %4306 = vmatpush.bf16.msra.mxu3 %v4272_v6  ;;  %v1007_v6 = vmul.f32 %v4430_v3, %v1006_v5 }
  0x53   : > { %910 = vmatpush.bf16.msra.mxu0 %v4271_v7  ;;  %4307 = vmatpush.bf16.msra.mxu1 %v4271_v7 }
  0x54   : > { %4308 = vmatpush.bf16.msra.mxu2 %v4271_v7  ;;  %4309 = vmatpush.bf16.msra.mxu3 %v4271_v7  ;;  %v1008_v7 = vadd.f32 %v4430_v3, %v1007_v6 }
  0x57   : > { %911 = vmatpush.bf16.msra.mxu0 %v4270_v8  ;;  %4310 = vmatpush.bf16.msra.mxu1 %v4270_v8 }
  0x58   : > { %4311 = vmatpush.bf16.msra.mxu2 %v4270_v8  ;;  %4312 = vmatpush.bf16.msra.mxu3 %v4270_v8  ;;  %v5172_v8 = vsel %vm1009_vm1, %v4430_v3, %v1008_v7 }
  0x5a   : > { %912 = vmatmul.bf16.vlgmr.msra.gmra.mxu0 %v4262_v9  ;;  %922 = vmatmul.bf16.vlgmr.msra.gmra.mxu1 %v4264_v10 }
  0x5b   : > { %932 = vmatmul.bf16.vlgmr.msra.gmra.mxu2 %v4266_v11  ;;  %942 = vmatmul.bf16.vlgmr.msra.gmra.mxu3 %v4268_v12 }
  0x6a   : > { %917 = vmatmul.bf16.gmra.mxu0 %v4263_v13  ;;  %927 = vmatmul.bf16.gmra.mxu1 %v4265_v14 }
  0x6b   : > { %937 = vmatmul.bf16.gmra.mxu2 %v4267_v15  ;;  %947 = vmatmul.bf16.gmra.mxu3 %v4269_v16 }
  0xd7   : > { %v913_v18 = vpop.f32.mrf.mxu0  ;;  %v923_v19 = vpop.f32.mrf.mxu1 }
  0xd8   : > { %v5108_v20 = vadd.f32 %v4426_v17, %v913_v18  ;;  %v5110_v21 = vadd.f32 %v4426_v17, %v923_v19 }
  0xda   : > { %v968_v22 = vsel %vm955_vm0, %v5110_v21, 0.0  ;;  %v956_v23 = vsel %vm955_vm0, %v5108_v20, 0.0 }
  0xdb   : > { %969 = vadd.xlane.f32.xlu2 %v968_v22  ;;  %957 = vadd.xlane.f32.xlu0 %v956_v23 }
  0xde   : > { %v933_v24 = vpop.f32.mrf.mxu2  ;;  %v943_v25 = vpop.f32.mrf.mxu3 }
  0xdf   : > { %v5116_v26 = vadd.f32 %v4426_v17, %v933_v24  ;;  %v5118_v27 = vadd.f32 %v4426_v17, %v943_v25  ;;  %v915_v28 = vpop.f32.mrf.mxu0  ;;  %v925_v31 = vpop.f32.mrf.mxu1 }
  0xe0   : > { %v5124_v32 = vadd.f32 %v4426_v17, %v915_v28  ;;  %v5126_v33 = vadd.f32 %v4426_v17, %v925_v31 }
  0xe1   : > { %v980_v29 = vsel %vm955_vm0, %v5116_v26, 0.0  ;;  %v992_v30 = vsel %vm955_vm0, %v5118_v27, 0.0 }
  0xe2   : > { %v971_v39 = vsel %vm955_vm0, %v5126_v33, 0.0  ;;  %v959_v40 = vsel %vm955_vm0, %v5124_v32, 0.0 }
  0xe3   : > { %981 = vadd.xlane.f32.xlu2 %v980_v29  ;;  %993 = vadd.xlane.f32.xlu0 %v992_v30 }
  0xe6   : > { %v935_v34 = vpop.f32.mrf.mxu2  ;;  %v945_v35 = vpop.f32.mrf.mxu3 }
  0xe7   : > { %v5128_v36 = vadd.f32 %v4426_v17, %v945_v35  ;;  %v918_v38 = vpop.f32.mrf.mxu0  ;;  %v5138_v42 = vadd.f32 %v4426_v17, %v935_v34  ;;  %v928_v48 = vpop.f32.mrf.mxu1 }
  0xe8   : > { %v5136_v41 = vadd.f32 %v4426_v17, %v918_v38  ;;  %v5146_v49 = vadd.f32 %v4426_v17, %v928_v48 }
  0xe9   : > { %7801 = vst [vmem:[#allocation21_spill] sm:$0xff] %v5128_v36  ;;  %v995_v37 = vsel %vm955_vm0, %v5128_v36, 0.0  ;;  %v983_v46 = vsel %vm955_vm0, %v5138_v42, 0.0 }
  0xea   : > { %996 = vadd.xlane.f32.xlu1 %v995_v37  ;;  %v962_v44 = vsel %vm955_vm0, %v5136_v41, 0.0  ;;  %v974_v53 = vsel %vm955_vm0, %v5146_v49, 0.0 }
  0xeb   : > { %972 = vadd.xlane.f32.xlu2 %v971_v39  ;;  %960 = vadd.xlane.f32.xlu0 %v959_v40 }
  0xee   : > { %v938_v43 = vpop.f32.mrf.mxu2  ;;  %v948_v45 = vpop.f32.mrf.mxu3 }
  0xef   : > { %v5144_v47 = vadd.f32 %v4426_v17, %v938_v43  ;;  %v920_v56 = vpop.f32.mrf.mxu0  ;;  %v5156_v57 = vadd.f32 %v4426_v17, %v948_v45  ;;  %v930_v63 = vpop.f32.mrf.mxu1 }
  0xf0   : > { %v5160_v59 = vadd.f32 %v4426_v17, %v920_v56  ;;  %v5168_v0 = vadd.f32 %v4426_v17, %v930_v63 }
  0xf1   : > { %v986_v52 = vsel %vm955_vm0, %v5144_v47, 0.0  ;;  %v998_v60 = vsel %vm955_vm0, %v5156_v57, 0.0 }
  0xf2   : > { %963 = vadd.xlane.f32.xlu1 %v962_v44  ;;  %v965_v62 = vsel %vm955_vm0, %v5160_v59, 0.0  ;;  %v977_v1 = vsel %vm955_vm0, %v5168_v0, 0.0 }
  0xf3   : > { %984 = vadd.xlane.f32.xlu0 %v983_v46 }
  0xf6   : > { %v940_v50 = vpop.f32.mrf.mxu2  ;;  %v950_v55 = vpop.f32.mrf.mxu3 }
  0xf7   : > { %v5148_v51 = vadd.f32 %v4426_v17, %v940_v50  ;;  %v5158_v58 = vadd.f32 %v4426_v17, %v950_v55 }
  0xf9   : > { %v989_v54 = vsel %vm955_vm0, %v5148_v51, 0.0  ;;  %7802 = vst [vmem:[#allocation22_spill] sm:$0xff] %v5158_v58  ;;  %v1001_v61 = vsel %vm955_vm0, %v5158_v58, 0.0 }
  0xfa   : > { %990 = vadd.xlane.f32.xlu2 %v989_v54  ;;  %987 = vadd.xlane.f32.xlu1 %v986_v52 }
  0xfb   : > { %975 = vadd.xlane.f32.xlu0 %v974_v53 }
 0x102   : > { %999 = vadd.xlane.f32.xlu2 %v998_v60  ;;  %966 = vadd.xlane.f32.xlu1 %v965_v62 }
 0x103   : > { %1002 = vadd.xlane.f32.xlu0 %v1001_v61 }
 0x10a   : > { %978 = vadd.xlane.f32.xlu1 %v977_v1 }
 0x14e   : > { %v970_v9 = vpop.xlane.xlu2 %969  ;;  %v958_v10 = vpop.xlane.xlu0 %957 }
 0x14f   : > { %v1015_v11 = vmul.f32 %v5172_v8, %v970_v9  ;;  %v1011_v12 = vmul.f32 %v5172_v8, %v958_v10 }
 0x151   : > { %v5177_v13 = vsub.f32 %v5110_v21, %v1015_v11  ;;  %v5180_v14 = vsub.f32 %v5108_v20, %v1011_v12 }
 0x153   : > { %v1047_v15 = vmul.f32 %v5177_v13, %v5177_v13  ;;  %v1043_v16 = vmul.f32 %v5180_v14, %v5180_v14 }
 0x155   : > { %v1071_v17 = vsel %vm955_vm0, %v1047_v15, 0.0  ;;  %v1059_v18 = vsel %vm955_vm0, %v1043_v16, 0.0 }
 0x156   : > { %1072 = vadd.xlane.f32.xlu2 %v1071_v17  ;;  %v982_v19 = vpop.xlane.xlu2 %981  ;;  %1060 = vadd.xlane.f32.xlu1 %v1059_v18  ;;  %v994_v22 = vpop.xlane.xlu0 %993 }
 0x157   : > { %v1019_v23 = vmul.f32 %v5172_v8, %v982_v19  ;;  %v1023_v24 = vmul.f32 %v5172_v8, %v994_v22 }
 0x159   : > { %v5191_v25 = vsub.f32 %v5116_v26, %v1019_v23  ;;  %v5194_v28 = vsub.f32 %v5118_v27, %v1023_v24 }
 0x15b   : > { %v1051_v29 = vmul.f32 %v5191_v25, %v5191_v25  ;;  %v1055_v30 = vmul.f32 %v5194_v28, %v5194_v28 }
 0x15d   : > { %v5200_v31 = vpop.xlane.xlu1 %996  ;;  %v1083_v34 = vsel %vm955_vm0, %v1051_v29, 0.0  ;;  %v1095_v35 = vsel %vm955_vm0, %v1055_v30, 0.0 }
 0x15e   : > { %v973_v37 = vpop.xlane.xlu2 %972  ;;  %1084 = vadd.xlane.f32.xlu0 %v1083_v34  ;;  %1096 = vadd.xlane.f32.xlu1 %v1095_v35  ;;  %v961_v38 = vpop.xlane.xlu0 %960 }
 0x15f   : > { %v1016_v39 = vmul.f32 %v5172_v8, %v973_v37  ;;  %v1012_v40 = vmul.f32 %v5172_v8, %v961_v38 }
 0x161   : > { %v5207_v43 = vsub.f32 %v5126_v33, %v1016_v39  ;;  %v5210_v44 = vsub.f32 %v5124_v32, %v1012_v40 }
 0x163   : > { %v1048_v45 = vmul.f32 %v5207_v43, %v5207_v43  ;;  %v1044_v46 = vmul.f32 %v5210_v44, %v5210_v44 }
 0x165   : > { %v964_v48 = vpop.xlane.xlu1 %963  ;;  %v1074_v50 = vsel %vm955_vm0, %v1048_v45, 0.0  ;;  %v1062_v52 = vsel %vm955_vm0, %v1044_v46, 0.0 }
 0x166   : > { %v1013_v53 = vmul.f32 %v5172_v8, %v964_v48  ;;  %1075 = vadd.xlane.f32.xlu0 %v1074_v50  ;;  %1063 = vadd.xlane.f32.xlu2 %v1062_v52  ;;  %v985_v54 = vpop.xlane.xlu0 %984  ;;  %v1024_v52 = vmul.f32 %v5172_v8, %v5200_v31 }
 0x167   : > { %v1020_v55 = vmul.f32 %v5172_v8, %v985_v54 }
 0x168   : > { %v5221_v56 = vsub.f32 %v5136_v41, %v1013_v53 }
 0x169   : > { %v5224_v60 = vsub.f32 %v5138_v42, %v1020_v55 }
 0x16a   : > { %v1045_v61 = vmul.f32 %v5221_v56, %v5221_v56 }
 0x16b   : > { %v1052_v62 = vmul.f32 %v5224_v60, %v5224_v60 }
 0x16c   : > { %v1065_v2 = vsel %vm955_vm0, %v1045_v61, 0.0  ;;  %v5282_v61 = vsub.f32 %v5128_v36, %v1024_v52 }
 0x16d   : > { %v991_v63 = vpop.xlane.xlu2 %990  ;;  %v988_v1 = vpop.xlane.xlu1 %987  ;;  %v1086_v3 = vsel %vm955_vm0, %v1052_v62, 0.0 }
 0x16e   : > { %v1022_v4 = vmul.f32 %v5172_v8, %v991_v63  ;;  %v1021_v5 = vmul.f32 %v5172_v8, %v988_v1  ;;  %1066 = vadd.xlane.f32.xlu0 %v1065_v2  ;;  %1087 = vadd.xlane.f32.xlu1 %v1086_v3  ;;  %v976_v6 = vpop.xlane.xlu0 %975  ;;  %v1056_v31 = vmul.f32 %v5282_v61, %v5282_v61 }
 0x16f   : > { %v1017_v7 = vmul.f32 %v5172_v8, %v976_v6 }
 0x170   : > { %v5236_v9 = vsub.f32 %v5148_v51, %v1022_v4  ;;  %v5239_v10 = vsub.f32 %v5144_v47, %v1021_v5  ;;  %v1098_v1 = vsel %vm955_vm0, %v1056_v31, 0.0 }
 0x171   : > { %v5242_v11 = vsub.f32 %v5146_v49, %v1017_v7 }
 0x172   : > { %v1053_v12 = vmul.f32 %v5239_v10, %v5239_v10  ;;  %v1054_v15 = vmul.f32 %v5236_v9, %v5236_v9 }
 0x173   : > { %v1049_v16 = vmul.f32 %v5242_v11, %v5242_v11 }
 0x174   : > { %v1089_v17 = vsel %vm955_vm0, %v1053_v12, 0.0  ;;  %v1092_v22 = vsel %vm955_vm0, %v1054_v15, 0.0 }
 0x175   : > { %v1000_v18 = vpop.xlane.xlu2 %999  ;;  %v967_v19 = vpop.xlane.xlu1 %966  ;;  %1090 = vadd.xlane.f32.xlu2 %v1089_v17  ;;  %v1077_v23 = vsel %vm955_vm0, %v1049_v16, 0.0 }
 0x176   : > { %v1025_v24 = vmul.f32 %v5172_v8, %v1000_v18  ;;  %v1014_v29 = vmul.f32 %v5172_v8, %v967_v19  ;;  %1093 = vadd.xlane.f32.xlu0 %v1092_v22  ;;  %1078 = vadd.xlane.f32.xlu1 %v1077_v23  ;;  %v1003_v30 = vpop.xlane.xlu0 %1002 }
 0x177   : > { %v1026_v37 = vmul.f32 %v5172_v8, %v1003_v30 }
 0x178   : > { %v5256_v34 = vsub.f32 %v5156_v57, %v1025_v24  ;;  %v5259_v35 = vsub.f32 %v5160_v59, %v1014_v29 }
 0x179   : > { %v5267_v40 = vsub.f32 %v5158_v58, %v1026_v37 }
 0x17a   : > { %v1057_v38 = vmul.f32 %v5256_v34, %v5256_v34  ;;  %v1046_v39 = vmul.f32 %v5259_v35, %v5259_v35 }
 0x17b   : > { %v1058_v54 = vmul.f32 %v5267_v40, %v5267_v40 }
 0x17c   : > { %v1101_v46 = vsel %vm955_vm0, %v1057_v38, 0.0  ;;  %v1068_v48 = vsel %vm955_vm0, %v1046_v39, 0.0 }
 0x17d   : > { %v979_v45 = vpop.xlane.xlu1 %978  ;;  %v1104_v63 = vsel %vm955_vm0, %v1058_v54, 0.0 }
 0x17e   : > { %v1018_v50 = vmul.f32 %v5172_v8, %v979_v45  ;;  %1102 = vadd.xlane.f32.xlu0 %v1101_v46  ;;  %1069 = vadd.xlane.f32.xlu1 %v1068_v48 }
 0x180   : > { %v5275_v53 = vsub.f32 %v5168_v0, %v1018_v50 }
 0x182   : > { %v1050_v55 = vmul.f32 %v5275_v53, %v5275_v53 }
 0x184   : > { %v1080_v62 = vsel %vm955_vm0, %v1050_v55, 0.0 }
 0x185   : > { %1081 = vadd.xlane.f32.xlu2 %v1080_v62 }
 0x186   : > { %1105 = vadd.xlane.f32.xlu1 %v1104_v63 }
 0x18d   : > { %1099 = vadd.xlane.f32.xlu2 %v1098_v1 }
 0x1c9   : > { %v1073_v2 = vpop.xlane.xlu2 %1072  ;;  %v1061_v3 = vpop.xlane.xlu1 %1060 }
 0x1ca   : > { %v1111_v4 = vmul.f32 %v1073_v2, %v5172_v8  ;;  %v1107_v5 = vmul.f32 %v1061_v3, %v5172_v8 }
 0x1cc   : > { %v1127_v6 = vadd.f32 1e-06, %v1111_v4  ;;  %v1123_v7 = vadd.f32 1e-06, %v1107_v5 }
 0x1ce   : > { %4431 = vrsqrt.f32 %v1127_v6  ;;  %vm1185_vm3 = vweird.f32 %v1127_v6  ;;  %vm1145_vm6 = vweird.f32 %v1123_v7 }
 0x1cf   : > { %4433 = vrsqrt.f32 %v1123_v7 }
 0x1d1   : > { %v1085_v12 = vpop.xlane.xlu0 %1084  ;;  %v1097_v24 = vpop.xlane.xlu1 %1096 }
 0x1d2   : > { %v1115_v15 = vmul.f32 %v1085_v12, %v5172_v8  ;;  %v1119_v62 = vmul.f32 %v1097_v24, %v5172_v8 }
 0x1d4   : > { %v5292_v16 = vpop.eup %4431  ;;  %v5294_v17 = vadd.f32 1e-06, %v1115_v15 }
 0x1d5   : > { %v5296_v18 = vpop.eup %4433  ;;  %v1180_v19 = vmul.f32 %v5292_v16, %v1127_v6  ;;  %vm1186_vm2 = vweird.f32 %v5292_v16 }
 0x1d6   : > { %v1140_v22 = vmul.f32 %v5296_v18, %v1123_v7  ;;  %4435 = vrsqrt.f32 %v5294_v17  ;;  %vm1146_vm4 = vweird.f32 %v5296_v18  ;;  %vm5335_vm5 = vmor %vm1185_vm3, %vm1186_vm2  ;;  %vm1225_vm8 = vweird.f32 %v5294_v17 }
 0x1d7   : > { %v1181_v23 = vmul.f32 %v5292_v16, %v1180_v19  ;;  %v5323_v19 = vadd.f32 1e-06, %v1119_v62  ;;  %vm5347_vm7 = vmor %vm1145_vm6, %vm1146_vm4 }
 0x1d8   : > { %v1141_v29 = vmul.f32 %v5296_v18, %v1140_v22 }
 0x1d9   : > { %v1064_v30 = vpop.xlane.xlu2 %1063  ;;  %v1076_v37 = vpop.xlane.xlu0 %1075  ;;  %v1182_v45 = vmul.f32 0.5, %v1181_v23 }
 0x1da   : > { %v1108_v38 = vmul.f32 %v1064_v30, %v5172_v8  ;;  %v1112_v39 = vmul.f32 %v1076_v37, %v5172_v8  ;;  %v1142_v52 = vmul.f32 0.5, %v1141_v29 }
 0x1db   : > { %v1183_v55 = vsub.f32 1.5, %v1182_v45 }
 0x1dc   : > { %v5305_v46 = vadd.f32 1e-06, %v1108_v38  ;;  %v5307_v48 = vadd.f32 1e-06, %v1112_v39  ;;  %v5309_v50 = vpop.eup %4435  ;;  %v1143_v31 = vsub.f32 1.5, %v1142_v52 }
 0x1dd   : > { %v1220_v54 = vmul.f32 %v5309_v50, %v5294_v17  ;;  %v1184_v5 = vmul.f32 %v5292_v16, %v1183_v55  ;;  %vm1226_vm9 = vweird.f32 %v5309_v50 }
 0x1de   : > { %4437 = vrsqrt.f32 %v5305_v46  ;;  %v1144_v29 = vmul.f32 %v5296_v18, %v1143_v31  ;;  %vm1155_vm10 = vweird.f32 %v5305_v46  ;;  %vm5379_vm13 = vmor %vm1225_vm8, %vm1226_vm9  ;;  %vm1195_vm14 = vweird.f32 %v5307_v48 }
 0x1df   : > { %4439 = vrsqrt.f32 %v5307_v48  ;;  %v1221_v63 = vmul.f32 %v5309_v50, %v1220_v54  ;;  %v1188_v6 = vsel %vm5335_vm5, %v5292_v16, %v1184_v5 }
 0x1e0   : > { %v1148_v16 = vsel %vm5347_vm7, %v5296_v18, %v1144_v29 }
 0x1e1   : > { %v1088_v1 = vpop.xlane.xlu1 %1087  ;;  %v1067_v2 = vpop.xlane.xlu0 %1066  ;;  %v1222_v12 = vmul.f32 0.5, %v1221_v63  ;;  %v1299_v37 = vmul.f32 %v1148_v16, %v5180_v14 }
 0x1e2   : > { %v1116_v3 = vmul.f32 %v1088_v1, %v5172_v8  ;;  %v1109_v4 = vmul.f32 %v1067_v2, %v5172_v8  ;;  %v5360_v1 = vld [vmem:[#allocation3] ss:$0 sm:$0xff]  ;;  %v1303_v2 = vmul.f32 %v1188_v6, %v5177_v13 }
 0x1e3   : > { %v1223_v39 = vsub.f32 1.5, %v1222_v12 }
 0x1e4   : > { %v5321_v15 = vpop.eup %4437  ;;  %v5325_v22 = vadd.f32 1e-06, %v1116_v3  ;;  %v5327_v23 = vadd.f32 1e-06, %v1109_v4 }
 0x1e5   : > { %v5329_v24 = vpop.eup %4439  ;;  %v1150_v30 = vmul.f32 %v5321_v15, %v5305_v46  ;;  %v1224_v12 = vmul.f32 %v5309_v50, %v1223_v39  ;;  %vm1156_vm11 = vweird.f32 %v5321_v15 }
 0x1e6   : > { %v1190_v38 = vmul.f32 %v5329_v24, %v5307_v48  ;;  %4441 = vrsqrt.f32 %v5325_v22  ;;  %vm1196_vm12 = vweird.f32 %v5329_v24  ;;  %vm1157_vm15 = vmor %vm1155_vm10, %vm1156_vm11  ;;  %v5399_v48 = vld [vmem:[#allocation6] ss:$0 sm:$0xff]  ;;  %vm1235_vm3 = vweird.f32 %v5325_v22 }
 0x1e7   : > { %v1151_v45 = vmul.f32 %v5321_v15, %v1150_v30  ;;  %4443 = vrsqrt.f32 %v5327_v23  ;;  %vm1197_vm1 = vmor %vm1195_vm14, %vm1196_vm12  ;;  %vm1165_vm10 = vweird.f32 %v5327_v23 }
 0x1e8   : > { %4445 = vrsqrt.f32 %v5323_v19  ;;  %v1191_v7 = vmul.f32 %v5329_v24, %v1190_v38  ;;  %v1091_v54 = vpop.xlane.xlu2 %1090 }
 0x1e9   : > { %v1152_v55 = vmul.f32 0.5, %v1151_v45  ;;  %v1117_v62 = vmul.f32 %v1091_v54, %v5172_v8  ;;  %v1079_v63 = vpop.xlane.xlu1 %1078  ;;  %v1094_v31 = vpop.xlane.xlu0 %1093  ;;  %v1322_v54 = vmul.f32 %v5360_v1, %v1303_v2 }
 0x1ea   : > { %v1192_v3 = vmul.f32 0.5, %v1191_v7  ;;  %v1113_v4 = vmul.f32 %v1079_v63, %v5172_v8  ;;  %v1118_v5 = vmul.f32 %v1094_v31, %v5172_v8  ;;  %v1318_v63 = vmul.f32 %v5360_v1, %v1299_v37 }
 0x1eb   : > { %v1153_v30 = vsub.f32 1.5, %v1152_v55  ;;  %v5367_v18 = vadd.f32 1e-06, %v1117_v62  ;;  %v1228_v55 = vsel %vm5379_vm13, %v5309_v50, %v1224_v12 }
 0x1ec   : > { %v4442_v29 = vpop.eup %4441  ;;  %v1193_v38 = vsub.f32 1.5, %v1192_v3  ;;  %v5371_v45 = vadd.f32 1e-06, %v1113_v4  ;;  %v5386_v52 = vadd.f32 1e-06, %v1118_v5 }
 0x1ed   : > { %v5373_v13 = vpop.eup %4443  ;;  %v1154_v39 = vmul.f32 %v5321_v15, %v1153_v30  ;;  %v1230_v14 = vmul.f32 %v4442_v29, %v5325_v22  ;;  %4447 = vrsqrt.f32 %v5367_v18  ;;  %v1307_v30 = vmul.f32 %v1228_v55, %v5191_v25 }
 0x1ee   : > { %v5388_v7 = vpop.eup %4445  ;;  %v1194_v17 = vmul.f32 %v5329_v24, %v1193_v38  ;;  %v1160_v16 = vmul.f32 %v5373_v13, %v5327_v23  ;;  %4449 = vrsqrt.f32 %v5371_v45  ;;  %v5421_v38 = vadd.f32 %v5399_v48, %v1322_v54 }
 0x1ef   : > { %v1158_v62 = vsel %vm1157_vm15, %v5321_v15, %v1154_v39  ;;  %v1231_v46 = vmul.f32 %v4442_v29, %v1230_v14  ;;  %v1260_v4 = vmul.f32 %v5388_v7, %v5323_v19  ;;  %4451 = vrsqrt.f32 %v5386_v52 }
 0x1f0   : > { %v1300_v31 = vmul.f32 %v1158_v62, %v5210_v44  ;;  %v1198_v2 = vsel %vm1197_vm1, %v5329_v24, %v1194_v17  ;;  %v1161_v3 = vmul.f32 %v5373_v13, %v1160_v16  ;;  %vm1236_vm2 = vweird.f32 %v4442_v29 }
 0x1f1   : > { %v1304_v50 = vmul.f32 %v1198_v2, %v5207_v43  ;;  %v1232_v15 = vmul.f32 0.5, %v1231_v46  ;;  %v1070_v5 = vpop.xlane.xlu1 %1069  ;;  %v1103_v12 = vpop.xlane.xlu0 %1102  ;;  %v5425_v14 = vadd.f32 %v5399_v48, %v1318_v63  ;;  %vm1237_vm4 = vmor %vm1235_vm3, %vm1236_vm2  ;;  %vm1166_vm5 = vweird.f32 %v5373_v13 }
 0x1f2   : > { %v1319_v37 = vmul.f32 %v5360_v1, %v1300_v31  ;;  %v1110_v44 = vmul.f32 %v1070_v5, %v5172_v8  ;;  %v1121_v24 = vmul.f32 %v1103_v12, %v5172_v8  ;;  %v1162_v25 = vmul.f32 0.5, %v1161_v3  ;;  %vm5477_vm11 = vmor %vm1165_vm10, %vm1166_vm5 }
 0x1f3   : > { %v1323_v6 = vmul.f32 %v5360_v1, %v1304_v50  ;;  %v1233_v39 = vsub.f32 1.5, %v1232_v15  ;;  %v4448_v43 = vpop.eup %4447  ;;  %v1326_v31 = vmul.f32 %v5360_v1, %v1307_v30  ;;  %vm1245_vm7 = vweird.f32 %v5367_v18 }
 0x1f4   : > { %v5428_v17 = vadd.f32 %v5399_v48, %v1319_v37  ;;  %v5430_v16 = vadd.f32 1e-06, %v1110_v44  ;;  %v5432_v55 = vpop.eup %4449  ;;  %v1240_v46 = vmul.f32 %v4448_v43, %v5367_v18  ;;  %v5444_v3 = vadd.f32 1e-06, %v1121_v24 }
 0x1f5   : > { %v5435_v62 = vadd.f32 %v5399_v48, %v1323_v6  ;;  %v1234_v54 = vmul.f32 %v4442_v29, %v1233_v39  ;;  %v1200_v2 = vmul.f32 %v5432_v55, %v5371_v45  ;;  %v4452_v50 = vpop.eup %4451  ;;  %v1163_v30 = vsub.f32 1.5, %v1162_v25 }
 0x1f6   : > { %v1241_v12 = vmul.f32 %v4448_v43, %v1240_v46  ;;  %4453 = vrsqrt.f32 %v5430_v16  ;;  %v1250_v37 = vmul.f32 %v4452_v50, %v5386_v52  ;;  %v1261_v6 = vmul.f32 %v5388_v7, %v1260_v4 }
 0x1f7   : > { %v1238_v5 = vsel %vm1237_vm4, %v4442_v29, %v1234_v54  ;;  %v1201_v24 = vmul.f32 %v5432_v55, %v1200_v2  ;;  %v5454_v63 = vadd.f32 %v5399_v48, %v1326_v31  ;;  %4455 = vrsqrt.f32 %v5444_v3 }
 0x1f8   : > { %v1308_v22 = vmul.f32 %v1238_v5, %v5224_v60  ;;  %v1082_v44 = vpop.xlane.xlu2 %1081  ;;  %v1242_v39 = vmul.f32 0.5, %v1241_v12  ;;  %v1251_v29 = vmul.f32 %v4452_v50, %v1250_v37  ;;  %vm1246_vm6 = vweird.f32 %v4448_v43 }
 0x1f9   : > { %v1106_v54 = vpop.xlane.xlu1 %1105  ;;  %v1114_v25 = vmul.f32 %v1082_v44, %v5172_v8  ;;  %v1164_v46 = vmul.f32 %v5373_v13, %v1163_v30  ;;  %v1202_v12 = vmul.f32 0.5, %v1201_v24  ;;  %vm1247_vm8 = vmor %vm1245_vm7, %vm1246_vm6  ;;  %vm1256_vm9 = vweird.f32 %v4452_v50 }
 0x1fa   : > { %v1327_v15 = vmul.f32 %v5360_v1, %v1308_v22  ;;  %v1243_v60 = vsub.f32 1.5, %v1242_v39  ;;  %v1252_v31 = vmul.f32 0.5, %v1251_v29  ;;  %v1122_v37 = vmul.f32 %v1106_v54, %v5172_v8 }
 0x1fb   : > { %v5465_v22 = vadd.f32 1e-06, %v1114_v25  ;;  %vm1255_vm12 = vweird.f32 %v5386_v52  ;;  %v1203_v23 = vsub.f32 1.5, %v1202_v12  ;;  %v1168_v39 = vsel %vm5477_vm11, %v5373_v13, %v1164_v46 }
 0x1fc   : > { %v5461_v4 = vadd.f32 %v5399_v48, %v1327_v15  ;;  %v4454_v2 = vpop.eup %4453  ;;  %v1244_v5 = vmul.f32 %v4448_v43, %v1243_v60  ;;  %v1253_v44 = vsub.f32 1.5, %v1252_v31  ;;  %v1262_v31 = vmul.f32 0.5, %v1261_v6  ;;  %vm1257_vm13 = vmor %vm1255_vm12, %vm1256_vm9 }
 0x1fd   : > { %v1170_v15 = vmul.f32 %v4454_v2, %v5430_v16  ;;  %4457 = vrsqrt.f32 %v5465_v22  ;;  %v5473_v18 = vpop.eup %4455  ;;  %vm1206_vm14 = vweird.f32 %v5432_v55  ;;  %vm1176_vm15 = vweird.f32 %v4454_v2 }
 0x1fe   : > { %v1248_v30 = vsel %vm1247_vm8, %v4448_v43, %v1244_v5  ;;  %v1254_v54 = vmul.f32 %v4452_v50, %v1253_v44  ;;  %v1280_v43 = vmul.f32 %v5473_v18, %v5444_v3  ;;  %v5485_v5 = vadd.f32 1e-06, %v1122_v37 }
 0x1ff   : > { %v1309_v29 = vmul.f32 %v1248_v30, %v5239_v10  ;;  %v1171_v60 = vmul.f32 %v4454_v2, %v1170_v15  ;;  %v1301_v13 = vmul.f32 %v1168_v39, %v5221_v56  ;;  %vm1175_vm1 = vweird.f32 %v5430_v16 }
 0x200   : > { %v1100_v25 = vpop.xlane.xlu2 %1099  ;;  %v1258_v58 = vsel %vm1257_vm13, %v4452_v50, %v1254_v54  ;;  %v1281_v6 = vmul.f32 %v5473_v18, %v1280_v43  ;;  %4459 = vrsqrt.f32 %v5485_v5  ;;  %v1204_v50 = vmul.f32 %v5432_v55, %v1203_v23  ;;  %vm1177_vm3 = vmor %vm1175_vm1, %vm1176_vm15 }
 0x201   : > { %v1172_v36 = vmul.f32 0.5, %v1171_v60  ;;  %v1120_v10 = vmul.f32 %v1100_v25, %v5172_v8  ;;  %v1328_v52 = vmul.f32 %v5360_v1, %v1309_v29  ;;  %v1310_v44 = vmul.f32 %v1258_v58, %v5236_v9 }
 0x202   : > { %v1282_v30 = vmul.f32 0.5, %v1281_v6  ;;  %vm1205_vm2 = vweird.f32 %v5371_v45  ;;  %v1263_v39 = vsub.f32 1.5, %v1262_v31  ;;  %v1320_v25 = vmul.f32 %v5360_v1, %v1301_v13 }
 0x203   : > { %v1173_v12 = vsub.f32 1.5, %v1172_v36  ;;  %v5496_v37 = vadd.f32 1e-06, %v1120_v10  ;;  %v4458_v15 = vpop.eup %4457  ;;  %v1329_v46 = vmul.f32 %v5360_v1, %v1310_v44  ;;  %v5505_v36 = vadd.f32 %v5399_v48, %v1328_v52  ;;  %vm5513_vm4 = vmor %vm1205_vm2, %vm1206_vm14 }
 0x204   : > { %v1210_v58 = vmul.f32 %v4458_v15, %v5465_v22  ;;  %v1283_v56 = vsub.f32 1.5, %v1282_v30  ;;  %v1208_v45 = vsel %vm5513_vm4, %v5432_v55, %v1204_v50  ;;  %vm1286_vm5 = vweird.f32 %v5473_v18 }
 0x205   : > { %v1174_v24 = vmul.f32 %v4454_v2, %v1173_v12  ;;  %4461 = vrsqrt.f32 %v5496_v37  ;;  %v5509_v9 = vadd.f32 %v5399_v48, %v1329_v46  ;;  %vm1266_vm6 = vweird.f32 %v5388_v7 }
 0x206   : > { %v1211_v54 = vmul.f32 %v4458_v15, %v1210_v58  ;;  %v4460_v60 = vpop.eup %4459  ;;  %v1284_v43 = vmul.f32 %v5473_v18, %v1283_v56  ;;  %vm1285_vm7 = vweird.f32 %v5444_v3  ;;  %v1305_v55 = vmul.f32 %v1208_v45, %v5242_v11 }
 0x207   : > { %v1178_v16 = vsel %vm1177_vm3, %v4454_v2, %v1174_v24  ;;  %v1358_v23 = vpack.c.bf16 %v5509_v9, %v5505_v36  ;;  %v1290_v2 = vmul.f32 %v4460_v60, %v5485_v5  ;;  %vm1216_vm8 = vweird.f32 %v4458_v15  ;;  %vm5538_vm9 = vmor %vm1285_vm7, %vm1286_vm5 }
 0x208   : > { %v1302_v31 = vmul.f32 %v1178_v16, %v5259_v35  ;;  %v1212_v10 = vmul.f32 0.5, %v1211_v54  ;;  %v1264_v35 = vmul.f32 %v5388_v7, %v1263_v39  ;;  %v5533_v13 = vadd.f32 %v5399_v48, %v1320_v25 }
 0x209   : > { %v1291_v12 = vmul.f32 %v4460_v60, %v1290_v2  ;;  %v1288_v11 = vsel %vm5538_vm9, %v5473_v18, %v1284_v43  ;;  %vm1215_vm10 = vweird.f32 %v5465_v22  ;;  %vm1265_vm11 = vweird.f32 %v5323_v19 }
 0x20a   : > { %v1321_v52 = vmul.f32 %v5360_v1, %v1302_v31  ;;  %v1213_v6 = vsub.f32 1.5, %v1212_v10  ;;  %vm1217_vm12 = vmor %vm1215_vm10, %vm1216_vm8  ;;  %v1324_v39 = vmul.f32 %v5360_v1, %v1305_v55  ;;  %vm1296_vm14 = vweird.f32 %v4460_v60 }
 0x20b   : > { %v4462_v44 = vpop.eup %4461  ;;  %v1292_v24 = vmul.f32 0.5, %v1291_v12  ;;  %vm1267_vm13 = vmor %vm1265_vm11, %vm1266_vm6  ;;  %v1313_v22 = vmul.f32 %v1288_v11, %v5256_v34  ;;  %vm1295_vm15 = vweird.f32 %v5485_v5  ;;  %vm1275_vm3 = vweird.f32 %v5496_v37 }
 0x20c   : > { %v5536_v50 = vadd.f32 %v5399_v48, %v1321_v52  ;;  %v1270_v3 = vmul.f32 %v4462_v44, %v5496_v37  ;;  %v1214_v30 = vmul.f32 %v4458_v15, %v1213_v6  ;;  %v1268_v18 = vsel %vm1267_vm13, %v5388_v7, %v1264_v35  ;;  %vm1297_vm1 = vmor %vm1295_vm15, %vm1296_vm14 }
 0x20d   : > { %v1293_v16 = vsub.f32 1.5, %v1292_v24  ;;  %vm1276_vm2 = vweird.f32 %v4462_v44  ;;  %v1311_v43 = vmul.f32 %v1268_v18, %v5194_v28  ;;  %v1332_v34 = vmul.f32 %v5360_v1, %v1313_v22 }
 0x20e   : > { %v1354_v58 = vpack.c.bf16 %v5536_v50, %v5533_v13  ;;  %v1271_v56 = vmul.f32 %v4462_v44, %v1270_v3  ;;  %v1218_v29 = vsel %vm1217_vm12, %v4458_v15, %v1214_v30  ;;  %v5560_v15 = vadd.f32 %v5399_v48, %v1324_v39  ;;  %vm1277_vm4 = vmor %vm1275_vm3, %vm1276_vm2 }
 0x20f   : > { %v1306_v54 = vmul.f32 %v1218_v29, %v5275_v53  ;;  %v1294_v25 = vmul.f32 %v4460_v60, %v1293_v16  ;;  %v5574_v55 = vadd.f32 %v5399_v48, %v1332_v34 }
 0x210   : > { %v1272_v19 = vmul.f32 0.5, %v1271_v56 }
 0x211   : > { %v1325_v45 = vmul.f32 %v5360_v1, %v1306_v54  ;;  %v1298_v10 = vsel %vm1297_vm1, %v4460_v60, %v1294_v25  ;;  %v1330_v60 = vmul.f32 %v5360_v1, %v1311_v43 }
 0x212   : > { %v1273_v31 = vsub.f32 1.5, %v1272_v19  ;;  %v1314_v7 = vmul.f32 %v1298_v10, %v5267_v40 }
 0x213   : > { %v5565_v53 = vadd.f32 %v5399_v48, %v1325_v45  ;;  %v5583_v35 = vadd.f32 %v5399_v48, %v1330_v60 }
 0x214   : > { %v1274_v5 = vmul.f32 %v4462_v44, %v1273_v31  ;;  %v1333_v28 = vmul.f32 %v5360_v1, %v1314_v7 }
 0x216   : > { %v1278_v52 = vsel %vm1277_vm4, %v4462_v44, %v1274_v5  ;;  %v5577_v6 = vadd.f32 %v5399_v48, %v1333_v28 }
 0x217   : > { %v1312_v37 = vmul.f32 %v1278_v52, %v5282_v61 }
 0x219   : > { %v1331_v40 = vmul.f32 %v5360_v1, %v1312_v37 }
 0x21b   : > { %v5586_v44 = vadd.f32 %v5399_v48, %v1331_v40 }
 0x21d   : > { %v1359_v61 = vpack.c.bf16 %v5586_v44, %v5583_v35 }
 0x21e LB: >> { %s4278_s30 = sshll.u32 %s4821_s22, 4  ;;  %s1390_s3 = scalar_lea.vmem %s7728_s8, %s4821_s22  ;;  %v7815_v46 = vpack.c.bf16 %v5428_v17, %v5425_v14  ;;  %v7816_v3 = vpack.c.bf16 %v5435_v62, %v5421_v38  ;;  %v7817_v2 = vpack.c.bf16 %v5565_v53, %v5560_v15  ;;  %v7818_v11 = vpack.c.bf16 %v5461_v4, %v5454_v63  ;;  %s4821_s22 = sphi %s5591_s22, %s1382_s22  }
 0x21f   : >> { %s1385_s2 = scalar_lea.vmem %s7727_s7, %s4278_s30  ;;  %s5629_s26 = sshll.u32 %s4821_s22, 2  ;;  %vm1516_vm5 = vcmask 1043456   ;;  %v7819_v12 = vpack.c.bf16 %v5577_v6, %v5574_v55  ;;  %v4463_v39 = vld [vmem:[%s1390_s3] ss:$0 sm:$0xff]  ;;  %vm1491_vm6 = vcmask 64512  }
 0x220   : >> { %v4280_v1 = vld [vmem:[%s1385_s2 + $0x8] sm:$0xff]  ;;  %v4279_v48 = vld [vmem:[%s1385_s2] sm:$0xff]  ;;  %s1489_s19 = scalar_lea.vmem %s5060_s28, %s5629_s26  ;;  %s1754_s5 = scalar_lea.vmem %s5069_s29, %s5629_s26 }
 0x221   : >> { %1437 = vmatpush.bf16.msra.mxu0 %v4280_v1  ;;  %v1490_v30 = vld [vmem:[%s1489_s19] sm:$0xf]  ;;  %s1857_s4 = scalar_lea.vmem %s7729_s9, %s5629_s26  ;;  %s1382_s22 = sadd.s32 1, %s4821_s22  }
 0x222   : >> { %v1518_v24 = vsel %vm1516_vm5, %v1490_v30, 0  ;;  %p1379_p1 = scmp.ge.s32.totalorder %s1382_s22, 4  }
 0x223   : >> { %1527 = vmatpush.bf16.msra.mxu1 %v1518_v24  ;;  %s6320_s21 = smov (%p1379_p1), 0  }
 0x225   : >> { %1438 = vmatpush.bf16.msra.mxu0 %v4279_v48 }
 0x228   : >> { %4159 = vmatmul.msk.bf16.vlgmr.msra.gmra.mxu0 %vm955_vm0, %v7815_v46 }
 0x238   : >> { %4160 = vmatmul.msk.bf16.gmra.mxu0 %vm955_vm0, %v1354_v58 }
 0x248   : >> { %4161 = vmatmul.msk.bf16.gmra.mxu0 %vm955_vm0, %v7816_v3 }
 0x258   : >> { %4162 = vmatmul.msk.bf16.gmra.mxu0 %vm955_vm0, %v7817_v2 }
 0x268   : >> { %4163 = vmatmul.msk.bf16.gmra.mxu0 %vm955_vm0, %v7818_v11 }
 0x278   : >> { %4164 = vmatmul.msk.bf16.gmra.mxu0 %vm955_vm0, %v1358_v23 }
 0x288   : >> { %4165 = vmatmul.msk.bf16.gmra.mxu0 %vm955_vm0, %v1359_v61 }
 0x298   : >> { %4166 = vmatmul.msk.bf16.gmra.mxu0 %vm955_vm0, %v7819_v12 }
 0x2a5   : >> { %v1440_v56 = vpop.f32.mrf.mxu0 }
 0x2a6   : >> { %v1441_v16 = vadd.f32 %v4463_v39, %v1440_v56 }
 0x2ad   : >> { %v1442_v29 = vpop.f32.mrf.mxu0 }
 0x2ae   : >> { %v1443_v18 = vadd.f32 %v4463_v39, %v1442_v29 }
 0x2b0   : >> { %v1480_v22 = vpack.c.bf16 %v1443_v18, %v1441_v16 }
 0x2b2   : >> { %4168 = vmatmul.msk.bf16.vlgmr.msra.gmra.mxu1 %vm1491_vm6, %v1480_v22 }
 0x2b5   : >> { %v1445_v54 = vpop.f32.mrf.mxu0 }
 0x2b6   : >> { %v1446_v25 = vadd.f32 %v4463_v39, %v1445_v54 }
 0x2bd   : >> { %v1447_v19 = vpop.f32.mrf.mxu0 }
 0x2be   : >> { %v1448_v45 = vadd.f32 %v4463_v39, %v1447_v19 }
 0x2c0   : >> { %v1481_v31 = vpack.c.bf16 %v1448_v45, %v1446_v25 }
 0x2c2   : >> { %4169 = vmatmul.msk.bf16.gmra.mxu1 %vm1491_vm6, %v1481_v31 }
 0x2c5   : >> { %v1450_v43 = vpop.f32.mrf.mxu0 }
 0x2c6   : >> { %v1451_v34 = vadd.f32 %v4463_v39, %v1450_v43 }
 0x2cd   : >> { %v1452_v10 = vpop.f32.mrf.mxu0 }
 0x2ce   : >> { %v1453_v7 = vadd.f32 %v4463_v39, %v1452_v10 }
 0x2d0   : >> { %v1482_v5 = vpack.c.bf16 %v1453_v7, %v1451_v34 }
 0x2d2   : >> { %4170 = vmatmul.msk.bf16.gmra.mxu1 %vm1491_vm6, %v1482_v5 }
 0x2d5   : >> { %v1455_v28 = vpop.f32.mrf.mxu0 }
 0x2d6   : >> { %v1456_v60 = vadd.f32 %v4463_v39, %v1455_v28 }
 0x2dd   : >> { %v1457_v52 = vpop.f32.mrf.mxu0 }
 0x2de   : >> { %v1458_v37 = vadd.f32 %v4463_v39, %v1457_v52 }
 0x2e0   : >> { %v1483_v40 = vpack.c.bf16 %v1458_v37, %v1456_v60 }
 0x2e2   : >> { %4171 = vmatmul.msk.bf16.gmra.mxu1 %vm1491_vm6, %v1483_v40 }
 0x2e5   : >> { %v1460_v1 = vpop.f32.mrf.mxu0 }
 0x2e6   : >> { %v1461_v48 = vadd.f32 %v4463_v39, %v1460_v1 }
 0x2ed   : >> { %v1462_v46 = vpop.f32.mrf.mxu0 }
 0x2ee   : >> { %v1463_v3 = vadd.f32 %v4463_v39, %v1462_v46 }
 0x2f0   : >> { %v1484_v11 = vpack.c.bf16 %v1463_v3, %v1461_v48 }
 0x2f2   : >> { %4172 = vmatmul.msk.bf16.gmra.mxu1 %vm1491_vm6, %v1484_v11 }
 0x2f5   : >> { %v1465_v30 = vpop.f32.mrf.mxu0 }
 0x2f6   : >> { %v1466_v24 = vadd.f32 %v4463_v39, %v1465_v30 }
 0x2fd   : >> { %v1467_v56 = vpop.f32.mrf.mxu0 }
 0x2fe   : >> { %v1468_v29 = vadd.f32 %v4463_v39, %v1467_v56 }
 0x300   : >> { %v1485_v16 = vpack.c.bf16 %v1468_v29, %v1466_v24 }
 0x302   : >> { %4173 = vmatmul.msk.bf16.gmra.mxu1 %vm1491_vm6, %v1485_v16 }
 0x305   : >> { %v1470_v18 = vpop.f32.mrf.mxu0 }
 0x306   : >> { %v1471_v22 = vadd.f32 %v4463_v39, %v1470_v18 }
 0x30d   : >> { %v1472_v54 = vpop.f32.mrf.mxu0 }
 0x30e   : >> { %v1473_v19 = vadd.f32 %v4463_v39, %v1472_v54 }
 0x310   : >> { %v1486_v25 = vpack.c.bf16 %v1473_v19, %v1471_v22 }
 0x312   : >> { %4174 = vmatmul.msk.bf16.gmra.mxu1 %vm1491_vm6, %v1486_v25 }
 0x315   : >> { %v1475_v45 = vpop.f32.mrf.mxu0 }
 0x316   : >> { %v1476_v31 = vadd.f32 %v4463_v39, %v1475_v45 }
 0x31d   : >> { %v1477_v43 = vpop.f32.mrf.mxu0 }
 0x31e   : >> { %v1478_v10 = vadd.f32 %v4463_v39, %v1477_v43 }
 0x320   : >> { %v1487_v34 = vpack.c.bf16 %v1478_v10, %v1476_v31 }
 0x322   : >> { %4175 = vmatmul.msk.bf16.gmra.mxu1 %vm1491_vm6, %v1487_v34 }
 0x32f   : >> { %v1529_v7 = vpop.f32.mrf.mxu1 }
 0x330   : >> { %v1569_v5 = vsel %vm1491_vm6, %v1529_v7, -inf }
 0x331   : >> { %1570 = vmax.xlane.f32.xlu0 %v1569_v5 }
 0x337   : >> { %v1531_v28 = vpop.f32.mrf.mxu1 }
 0x338   : >> { %v1572_v52 = vsel %vm1491_vm6, %v1531_v28, -inf }
 0x339   : >> { %1573 = vmax.xlane.f32.xlu0 %v1572_v52 }
 0x33f   : >> { %v1534_v60 = vpop.f32.mrf.mxu1 }
 0x340   : >> { %v1575_v37 = vsel %vm1491_vm6, %v1534_v60, -inf }
 0x341   : >> { %1576 = vmax.xlane.f32.xlu1 %v1575_v37 }
 0x347   : >> { %v1536_v40 = vpop.f32.mrf.mxu1 }
 0x348   : >> { %v1578_v1 = vsel %vm1491_vm6, %v1536_v40, -inf }
 0x349   : >> { %1579 = vmax.xlane.f32.xlu1 %v1578_v1 }
 0x34f   : >> { %v1539_v39 = vpop.f32.mrf.mxu1 }
 0x350   : >> { %v1581_v48 = vsel %vm1491_vm6, %v1539_v39, -inf }
 0x351   : >> { %1582 = vmax.xlane.f32.xlu2 %v1581_v48 }
 0x357   : >> { %v1541_v46 = vpop.f32.mrf.mxu1 }
 0x358   : >> { %v1584_v3 = vsel %vm1491_vm6, %v1541_v46, -inf }
 0x359   : >> { %1585 = vmax.xlane.f32.xlu2 %v1584_v3 }
 0x35f   : >> { %v5656_v11 = vpop.f32.mrf.mxu1 }
 0x360   : >> { %v1587_v30 = vsel %vm1491_vm6, %v5656_v11, -inf }
 0x361   : >> { %1588 = vmax.xlane.f32.xlu0 %v1587_v30 }
 0x367   : >> { %v5660_v24 = vpop.f32.mrf.mxu1 }
 0x368   : >> { %v1590_v56 = vsel %vm1491_vm6, %v5660_v24, -inf }
 0x369   : >> { %1591 = vmax.xlane.f32.xlu1 %v1590_v56 }
 0x36f   : >> { %v5664_v29 = vpop.f32.mrf.mxu1 }
 0x370   : >> { %v1593_v16 = vsel %vm1491_vm6, %v5664_v29, -inf }
 0x371   : >> { %1594 = vmax.xlane.f32.xlu1 %v1593_v16 }
 0x377   : >> { %v5668_v19 = vpop.f32.mrf.mxu1 }
 0x37f   : >> { %v5674_v34 = vpop.f32.mrf.mxu1 }
 0x387   : >> { %v5682_v3 = vpop.f32.mrf.mxu1 }
 0x3a4   : >> { %v1571_v18 = vpop.xlane.xlu0 %1570 }
 0x3a5   : >> { %v1617_v22 = vsub.f32 %v1529_v7, %v1571_v18  ;;  %v1599_v18 = vsel %vm1491_vm6, %v5674_v34, -inf }
 0x3a7   : >> { %v1633_v54 = vmul.f32 1.442695, %v1617_v22 }
 0x3a9   : >> { %4464 = vpow2.f32 %v1633_v54 }
 0x3ac   : >> { %v1574_v25 = vpop.xlane.xlu0 %1573 }
 0x3ad   : >> { %v1618_v45 = vsub.f32 %v1531_v28, %v1574_v25  ;;  %v1596_v28 = vsel %vm1491_vm6, %v5668_v19, -inf }
 0x3af   : >> { %v5670_v31 = vpop.eup %4464  ;;  %v1635_v43 = vmul.f32 1.442695, %v1618_v45  ;;  %v5692_v45 = vpop.f32.mrf.mxu1 }
 0x3b0   : >> { %v1665_v10 = vsel %vm1491_vm6, %v5670_v31, 0.0 }
 0x3b1   : >> { %4466 = vpow2.f32 %v1635_v43  ;;  %1666 = vadd.xlane.f32.xlu2 %v1665_v10  ;;  %v1602_v10 = vsel %vm1491_vm6, %v5682_v3, -inf }
 0x3b4   : >> { %v1577_v5 = vpop.xlane.xlu1 %1576 }
 0x3b5   : >> { %v1619_v52 = vsub.f32 %v1534_v60, %v1577_v5 }
 0x3b7   : >> { %v5676_v37 = vpop.eup %4466  ;;  %v1637_v7 = vmul.f32 1.442695, %v1619_v52 }
 0x3b8   : >> { %v1668_v1 = vsel %vm1491_vm6, %v5676_v37, 0.0 }
 0x3b9   : >> { %4468 = vpow2.f32 %v1637_v7  ;;  %1669 = vadd.xlane.f32.xlu0 %v1668_v1  ;;  %1597 = vmax.xlane.f32.xlu2 %v1596_v28  ;;  %v1605_v28 = vsel %vm1491_vm6, %v5692_v45, -inf }
 0x3bc   : >> { %v1580_v48 = vpop.xlane.xlu1 %1579 }
 0x3bd   : >> { %v1620_v30 = vsub.f32 %v1536_v40, %v1580_v48  ;;  %v5704_v48 = vpop.f32.mrf.mxu1 }
 0x3bf   : >> { %v5684_v56 = vpop.eup %4468  ;;  %v1639_v16 = vmul.f32 1.442695, %v1620_v30 }
 0x3c0   : >> { %v1671_v60 = vsel %vm1491_vm6, %v5684_v56, 0.0 }
 0x3c1   : >> { %4470 = vpow2.f32 %v1639_v16  ;;  %1672 = vadd.xlane.f32.xlu0 %v1671_v60  ;;  %1600 = vmax.xlane.f32.xlu2 %v1599_v18 }
 0x3c4   : >> { %v1583_v22 = vpop.xlane.xlu2 %1582 }
 0x3c5   : >> { %v1621_v54 = vsub.f32 %v1539_v39, %v1583_v22  ;;  %v1608_v22 = vsel %vm1491_vm6, %v5704_v48, -inf }
 0x3c7   : >> { %v5690_v25 = vpop.eup %4470  ;;  %v1641_v43 = vmul.f32 1.442695, %v1621_v54  ;;  %v5713_v54 = vpop.f32.mrf.mxu1 }
 0x3c8   : >> { %v1674_v40 = vsel %vm1491_vm6, %v5690_v25, 0.0 }
 0x3c9   : >> { %4472 = vpow2.f32 %v1641_v43  ;;  %1675 = vadd.xlane.f32.xlu1 %v1674_v40  ;;  %1603 = vmax.xlane.f32.xlu0 %v1602_v10 }
 0x3cc   : >> { %v1586_v5 = vpop.xlane.xlu2 %1585 }
 0x3cd   : >> { %v1622_v52 = vsub.f32 %v1541_v46, %v1586_v5 }
 0x3cf   : >> { %v5698_v7 = vpop.eup %4472  ;;  %v1643_v1 = vmul.f32 1.442695, %v1622_v52  ;;  %v1611_v52 = vsel %vm1491_vm6, %v5713_v54, -inf }
 0x3d0   : >> { %v1677_v39 = vsel %vm1491_vm6, %v5698_v7, 0.0 }
 0x3d1   : >> { %4474 = vpow2.f32 %v1643_v1  ;;  %1678 = vadd.xlane.f32.xlu1 %v1677_v39  ;;  %1606 = vmax.xlane.f32.xlu0 %v1605_v28  ;;  %v5722_v39 = vpop.f32.mrf.mxu1 }
 0x3d4   : >> { %v1589_v30 = vpop.xlane.xlu0 %1588 }
 0x3d5   : >> { %v1623_v16 = vsub.f32 %v5656_v11, %v1589_v30 }
 0x3d7   : >> { %v5707_v60 = vpop.eup %4474  ;;  %v1645_v46 = vmul.f32 1.442695, %v1623_v16 }
 0x3d8   : >> { %v1680_v18 = vsel %vm1491_vm6, %v5707_v60, 0.0 }
 0x3d9   : >> { %4476 = vpow2.f32 %v1645_v46  ;;  %1681 = vadd.xlane.f32.xlu2 %v1680_v18  ;;  %1609 = vmax.xlane.f32.xlu1 %v1608_v22  ;;  %v1614_v46 = vsel %vm1491_vm6, %v5722_v39, -inf }
 0x3dc   : >> { %v1592_v43 = vpop.xlane.xlu1 %1591 }
 0x3dd   : >> { %v1624_v40 = vsub.f32 %v5660_v24, %v1592_v43 }
 0x3df   : >> { %v5716_v10 = vpop.eup %4476  ;;  %v1647_v11 = vmul.f32 1.442695, %v1624_v40 }
 0x3e0   : >> { %v1683_v5 = vsel %vm1491_vm6, %v5716_v10, 0.0 }
 0x3e1   : >> { %4478 = vpow2.f32 %v1647_v11  ;;  %1684 = vadd.xlane.f32.xlu2 %v1683_v5  ;;  %1612 = vmax.xlane.f32.xlu1 %v1611_v52 }
 0x3e4   : >> { %v1595_v1 = vpop.xlane.xlu1 %1594 }
 0x3e5   : >> { %v1625_v28 = vsub.f32 %v5664_v29, %v1595_v1  ;;  %v1755_v29 = vld [vmem:[%s1754_s5] sm:$0xf] }
 0x3e6   : >> { %v1781_v43 = vsel %vm1516_vm5, %v1755_v29, 0 }
 0x3e7   : >> { %v5725_v24 = vpop.eup %4478  ;;  %v1649_v30 = vmul.f32 1.442695, %v1625_v28  ;;  %1790 = vmatpush.bf16.msra.mxu2 %v1781_v43 }
 0x3e8   : >> { %v1686_v16 = vsel %vm1491_vm6, %v5725_v24, 0.0 }
 0x3e9   : >> { %4480 = vpow2.f32 %v1649_v30  ;;  %1687 = vadd.xlane.f32.xlu0 %v1686_v16  ;;  %1615 = vmax.xlane.f32.xlu2 %v1614_v46 }
 0x3ef   : >> { %v5731_v18 = vpop.eup %4480 }
 0x3f0   : >> { %v1689_v22 = vsel %vm1491_vm6, %v5731_v18, 0.0 }
 0x3f1   : >> { %1690 = vadd.xlane.f32.xlu0 %v1689_v22 }
 0x424   : >> { %v1667_v40 = vpop.xlane.xlu2 %1666 }
 0x425   : >> { %4482 = vrcp.f32 %v1667_v40 }
 0x42b   : >> { %v4483_v28 = vpop.eup %4482 }
 0x42c   : >> { %v1670_v11 = vpop.xlane.xlu0 %1669  ;;  %v1598_v5 = vpop.xlane.xlu2 %1597  ;;  %v1729_v22 = vmul.f32 %v4483_v28, %v5670_v31 }
 0x42d   : >> { %4484 = vrcp.f32 %v1670_v11  ;;  %v1626_v52 = vsub.f32 %v5668_v19, %v1598_v5 }
 0x42f   : >> { %v1651_v1 = vmul.f32 1.442695, %v1626_v52 }
 0x431   : >> { %4486 = vpow2.f32 %v1651_v1 }
 0x433   : >> { %v4485_v30 = vpop.eup %4484 }
 0x434   : >> { %v1673_v16 = vpop.xlane.xlu0 %1672  ;;  %v1601_v46 = vpop.xlane.xlu2 %1600  ;;  %v1730_v2 = vmul.f32 %v4485_v30, %v5676_v37 }
 0x435   : >> { %v1627_v29 = vsub.f32 %v5674_v34, %v1601_v46 }
 0x436   : >> { %v1745_v43 = vpack.c.bf16 %v1730_v2, %v1729_v22 }
 0x437   : >> { %v5742_v12 = vpop.eup %4486  ;;  %v1653_v40 = vmul.f32 1.442695, %v1627_v29 }
 0x438   : >> { %4177 = vmatmul.msk.bf16.vlgmr.msra.gmra.mxu2 %vm1491_vm6, %v1745_v43  ;;  %v1692_v19 = vsel %vm1491_vm6, %v5742_v12, 0.0 }
 0x439   : >> { %4488 = vpow2.f32 %v1653_v40  ;;  %1693 = vadd.xlane.f32.xlu1 %v1692_v19 }
 0x43a   : >> { %4490 = vrcp.f32 %v1673_v16 }
 0x43c   : >> { %v1676_v11 = vpop.xlane.xlu1 %1675  ;;  %v1604_v5 = vpop.xlane.xlu0 %1603 }
 0x43d   : >> { %4492 = vrcp.f32 %v1676_v11  ;;  %v1628_v31 = vsub.f32 %v5682_v3, %v1604_v5 }
 0x43f   : >> { %v5748_v37 = vpop.eup %4488  ;;  %v1655_v34 = vmul.f32 1.442695, %v1628_v31 }
 0x440   : >> { %v1695_v2 = vsel %vm1491_vm6, %v5748_v37, 0.0  ;;  %v4491_v52 = vpop.eup %4490 }
 0x441   : >> { %4494 = vpow2.f32 %v1655_v34  ;;  %1696 = vadd.xlane.f32.xlu2 %v1695_v2  ;;  %v1731_v46 = vmul.f32 %v4491_v52, %v5684_v56 }
 0x443   : >> { %v4493_v1 = vpop.eup %4492 }
 0x444   : >> { %v1679_v28 = vpop.xlane.xlu1 %1678  ;;  %v1607_v30 = vpop.xlane.xlu0 %1606  ;;  %v1732_v16 = vmul.f32 %v4493_v1, %v5690_v25 }
 0x445   : >> { %v1629_v22 = vsub.f32 %v5692_v45, %v1607_v30 }
 0x446   : >> { %v1746_v29 = vpack.c.bf16 %v1732_v16, %v1731_v46 }
 0x447   : >> { %v5755_v3 = vpop.eup %4494  ;;  %v1657_v43 = vmul.f32 1.442695, %v1629_v22 }
 0x448   : >> { %4178 = vmatmul.msk.bf16.gmra.mxu2 %vm1491_vm6, %v1746_v29  ;;  %v1698_v40 = vsel %vm1491_vm6, %v5755_v3, 0.0 }
 0x449   : >> { %4496 = vpow2.f32 %v1657_v43  ;;  %1699 = vadd.xlane.f32.xlu0 %v1698_v40 }
 0x44a   : >> { %4498 = vrcp.f32 %v1679_v28 }
 0x44c   : >> { %v1682_v19 = vpop.xlane.xlu2 %1681  ;;  %v1610_v11 = vpop.xlane.xlu1 %1609 }
 0x44d   : >> { %4500 = vrcp.f32 %v1682_v19  ;;  %v1630_v56 = vsub.f32 %v5704_v48, %v1610_v11 }
 0x44f   : >> { %v5761_v25 = vpop.eup %4496  ;;  %v1659_v45 = vmul.f32 1.442695, %v1630_v56 }
 0x450   : >> { %v1701_v5 = vsel %vm1491_vm6, %v5761_v25, 0.0  ;;  %v4499_v31 = vpop.eup %4498 }
 0x451   : >> { %4502 = vpow2.f32 %v1659_v45  ;;  %1702 = vadd.xlane.f32.xlu1 %v1701_v5  ;;  %v1733_v1 = vmul.f32 %v4499_v31, %v5698_v7 }
 0x453   : >> { %v4501_v34 = vpop.eup %4500 }
 0x454   : >> { %v1685_v2 = vpop.xlane.xlu2 %1684  ;;  %v1613_v52 = vpop.xlane.xlu1 %1612  ;;  %v1734_v28 = vmul.f32 %v4501_v34, %v5707_v60  ;;  %v1858_v34 = vld [vmem:[%s1857_s4] sm:$0xf] }
 0x455   : >> { %v1631_v30 = vsub.f32 %v5713_v54, %v1613_v52 }
 0x456   : >> { %v1747_v46 = vpack.c.bf16 %v1734_v28, %v1733_v1 }
 0x457   : >> { %v5768_v48 = vpop.eup %4502  ;;  %v1661_v16 = vmul.f32 1.442695, %v1631_v30 }
 0x458   : >> { %4179 = vmatmul.msk.bf16.gmra.mxu2 %vm1491_vm6, %v1747_v46  ;;  %v1704_v22 = vsel %vm1491_vm6, %v5768_v48, 0.0 }
 0x459   : >> { %4504 = vpow2.f32 %v1661_v16  ;;  %1705 = vadd.xlane.f32.xlu2 %v1704_v22 }
 0x45a   : >> { %4506 = vrcp.f32 %v1685_v2  ;;  %v1884_v2 = vsel %vm1516_vm5, %v1858_v34, 0 }
 0x45b   : >> { %1893 = vmatpush.bf16.msra.mxu3 %v1884_v2 }
 0x45c   : >> { %v1688_v29 = vpop.xlane.xlu0 %1687  ;;  %v1616_v43 = vpop.xlane.xlu2 %1615 }
 0x45d   : >> { %4508 = vrcp.f32 %v1688_v29  ;;  %v1632_v7 = vsub.f32 %v5722_v39, %v1616_v43 }
 0x45f   : >> { %v5774_v60 = vpop.eup %4504  ;;  %v1663_v54 = vmul.f32 1.442695, %v1632_v7 }
 0x460   : >> { %v1707_v40 = vsel %vm1491_vm6, %v5774_v60, 0.0  ;;  %v4507_v19 = vpop.eup %4506 }
 0x461   : >> { %4510 = vpow2.f32 %v1663_v54  ;;  %1708 = vadd.xlane.f32.xlu0 %v1707_v40  ;;  %v1735_v56 = vmul.f32 %v4507_v19, %v5716_v10 }
 0x463   : >> { %v4509_v11 = vpop.eup %4508 }
 0x464   : >> { %v1736_v45 = vmul.f32 %v4509_v11, %v5725_v24  ;;  %v1691_v52 = vpop.xlane.xlu0 %1690 }
 0x465   : >> { %4512 = vrcp.f32 %v1691_v52 }
 0x466   : >> { %v1748_v5 = vpack.c.bf16 %v1736_v45, %v1735_v56 }
 0x467   : >> { %v4511_v31 = vpop.eup %4510 }
 0x468   : >> { %4180 = vmatmul.msk.bf16.gmra.mxu2 %vm1491_vm6, %v1748_v5  ;;  %v1710_v39 = vsel %vm1491_vm6, %v4511_v31, 0.0 }
 0x469   : >> { %1711 = vadd.xlane.f32.xlu1 %v1710_v39 }
 0x46b   : >> { %v4513_v24 = vpop.eup %4512 }
 0x46c   : >> { %v1737_v28 = vmul.f32 %v4513_v24, %v5731_v18 }
 0x4ac   : >> { %v1694_v10 = vpop.xlane.xlu1 %1693 }
 0x4ad   : >> { %4514 = vrcp.f32 %v1694_v10 }
 0x4b3   : >> { %v4515_v1 = vpop.eup %4514 }
 0x4b4   : >> { %v1738_v30 = vmul.f32 %v4515_v1, %v5742_v12  ;;  %v1697_v16 = vpop.xlane.xlu2 %1696 }
 0x4b5   : >> { %4516 = vrcp.f32 %v1697_v16 }
 0x4b6   : >> { %v1749_v46 = vpack.c.bf16 %v1738_v30, %v1737_v28 }
 0x4b8   : >> { %4181 = vmatmul.msk.bf16.gmra.mxu2 %vm1491_vm6, %v1749_v46 }
 0x4bb   : >> { %v1792_v22 = vpop.f32.mrf.mxu2  ;;  %v4517_v43 = vpop.eup %4516 }
 0x4bc   : >> { %v1700_v29 = vpop.xlane.xlu0 %1699  ;;  %v1739_v19 = vmul.f32 %v4517_v43, %v5748_v37 }
 0x4bd   : >> { %4518 = vrcp.f32 %v1700_v29 }
 0x4c3   : >> { %v4519_v7 = vpop.eup %4518  ;;  %v1794_v54 = vpop.f32.mrf.mxu2 }
 0x4c4   : >> { %v1848_v40 = vpack.c.bf16 %v1794_v54, %v1792_v22  ;;  %v1740_v11 = vmul.f32 %v4519_v7, %v5755_v3  ;;  %v1703_v12 = vpop.xlane.xlu1 %1702 }
 0x4c5   : >> { %4520 = vrcp.f32 %v1703_v12 }
 0x4c6   : >> { %4186 = vmatmul.msk.bf16.vlgmr.msra.gmra.mxu3 %vm1491_vm6, %v1848_v40  ;;  %v1750_v18 = vpack.c.bf16 %v1740_v11, %v1739_v19  ;;  %v1832_v11 = vld [vmem:[#allocation2] sm:$0xff] }
 0x4c8   : >> { %4182 = vmatmul.msk.bf16.gmra.mxu2 %vm1491_vm6, %v1750_v18 }
 0x4cb   : >> { %v1797_v56 = vpop.f32.mrf.mxu2  ;;  %v4521_v5 = vpop.eup %4520 }
 0x4cc   : >> { %v1706_v45 = vpop.xlane.xlu2 %1705  ;;  %v1741_v52 = vmul.f32 %v4521_v5, %v5761_v25 }
 0x4cd   : >> { %4522 = vrcp.f32 %v1706_v45 }
 0x4d3   : >> { %v4523_v39 = vpop.eup %4522  ;;  %v1799_v34 = vpop.f32.mrf.mxu2 }
 0x4d4   : >> { %v1849_v2 = vpack.c.bf16 %v1799_v34, %v1797_v56  ;;  %v1742_v37 = vmul.f32 %v4523_v39, %v5768_v48  ;;  %v1709_v10 = vpop.xlane.xlu0 %1708  ;;  %v1834_v34 = vld [vmem:[#allocation2 + $0x10] sm:$0xff] }
 0x4d5   : >> { %4524 = vrcp.f32 %v1709_v10 }
 0x4d6   : >> { %4187 = vmatmul.msk.bf16.gmra.mxu3 %vm1491_vm6, %v1849_v2  ;;  %v1751_v3 = vpack.c.bf16 %v1742_v37, %v1741_v52 }
 0x4d8   : >> { %4183 = vmatmul.msk.bf16.gmra.mxu2 %vm1491_vm6, %v1751_v3  ;;  %v1835_v3 = vld [vmem:[#allocation2 + $0x18] sm:$0xff] }
 0x4db   : >> { %v1802_v24 = vpop.f32.mrf.mxu2  ;;  %v4525_v28 = vpop.eup %4524 }
 0x4dc   : >> { %v1712_v1 = vpop.xlane.xlu1 %1711  ;;  %v1743_v22 = vmul.f32 %v4525_v28, %v5774_v60 }
 0x4dd   : >> { %4526 = vrcp.f32 %v1712_v1 }
 0x4e3   : >> { %v4527_v30 = vpop.eup %4526  ;;  %v1804_v46 = vpop.f32.mrf.mxu2 }
 0x4e4   : >> { %v1850_v16 = vpack.c.bf16 %v1804_v46, %v1802_v24  ;;  %v1744_v29 = vmul.f32 %v4527_v30, %v4511_v31  ;;  %v1833_v31 = vld [vmem:[#allocation2 + $0x8] sm:$0xff]  ;;  %v1836_v30 = vld [vmem:[#allocation2 + $0x20] sm:$0xff] }
 0x4e6   : >> { %4188 = vmatmul.msk.bf16.gmra.mxu3 %vm1491_vm6, %v1850_v16  ;;  %v1752_v25 = vpack.c.bf16 %v1744_v29, %v1743_v22  ;;  %v1837_v29 = vld [vmem:[#allocation2 + $0x28] sm:$0xff] }
 0x4e8   : >> { %4184 = vmatmul.msk.bf16.gmra.mxu2 %vm1491_vm6, %v1752_v25 }
 0x4eb   : >> { %v1807_v48 = vpop.f32.mrf.mxu2 }
 0x4f3   : >> { %v1809_v43 = vpop.f32.mrf.mxu2 }
 0x4f4   : >> { %v1851_v7 = vpack.c.bf16 %v1809_v43, %v1807_v48 }
 0x4f6   : >> { %4189 = vmatmul.msk.bf16.gmra.mxu3 %vm1491_vm6, %v1851_v7 }
 0x53b   : >> { %v1812_v54 = vpop.f32.mrf.mxu2 }
 0x543   : >> { %v1814_v40 = vpop.f32.mrf.mxu2 }
 0x544   : >> { %v1852_v19 = vpack.c.bf16 %v1814_v40, %v1812_v54  ;;  %v1838_v54 = vld [vmem:[#allocation2 + $0x30] sm:$0xff] }
 0x546   : >> { %4190 = vmatmul.msk.bf16.gmra.mxu3 %vm1491_vm6, %v1852_v19 }
 0x549   : >> { %v1895_v18 = vpop.f32.mrf.mxu3 }
 0x54a   : >> { %v1935_v12 = vadd.f32 %v1895_v18, %v1832_v11  ;;  %v1839_v11 = vld [vmem:[#allocation2 + $0x38] sm:$0xff] }
 0x54b   : >> { %v1817_v60 = vpop.f32.mrf.mxu2 }
 0x54c   : >> { %1951 = vst.msk [vmem:[#allocation2] sm:$0xff] %vm955_vm0, %v1935_v12 }
 0x551   : >> { %v1897_v56 = vpop.f32.mrf.mxu3 }
 0x552   : >> { %v1936_v45 = vadd.f32 %v1897_v56, %v1833_v31 }
 0x553   : >> { %v1819_v5 = vpop.f32.mrf.mxu2 }
 0x554   : >> { %1952 = vst.msk [vmem:[#allocation2 + $0x8] sm:$0xff] %vm955_vm0, %v1936_v45  ;;  %v1853_v39 = vpack.c.bf16 %v1819_v5, %v1817_v60  ;;  %v1840_v60 = vld [vmem:[#allocation2 + $0x40] sm:$0xff]  ;;  %v1841_v45 = vld [vmem:[#allocation2 + $0x48] sm:$0xff] }
 0x556   : >> { %4191 = vmatmul.msk.bf16.gmra.mxu3 %vm1491_vm6, %v1853_v39 }
 0x559   : >> { %v1900_v2 = vpop.f32.mrf.mxu3 }
 0x55a   : >> { %v1937_v52 = vadd.f32 %v1900_v2, %v1834_v34  ;;  %v1842_v34 = vld [vmem:[#allocation2 + $0x50] sm:$0xff] }
 0x55b   : >> { %v1822_v37 = vpop.f32.mrf.mxu2 }
 0x55c   : >> { %1953 = vst.msk [vmem:[#allocation2 + $0x10] sm:$0xff] %vm955_vm0, %v1937_v52 }
 0x561   : >> { %v1902_v10 = vpop.f32.mrf.mxu3 }
 0x562   : >> { %v1938_v24 = vadd.f32 %v1902_v10, %v1835_v3 }
 0x563   : >> { %v1824_v1 = vpop.f32.mrf.mxu2 }
 0x564   : >> { %1954 = vst.msk [vmem:[#allocation2 + $0x18] sm:$0xff] %vm955_vm0, %v1938_v24  ;;  %v1854_v28 = vpack.c.bf16 %v1824_v1, %v1822_v37  ;;  %v1843_v37 = vld [vmem:[#allocation2 + $0x58] sm:$0xff]  ;;  %v1844_v24 = vld [vmem:[#allocation2 + $0x60] sm:$0xff] }
 0x566   : >> { %4192 = vmatmul.msk.bf16.gmra.mxu3 %vm1491_vm6, %v1854_v28 }
 0x569   : >> { %v1905_v46 = vpop.f32.mrf.mxu3 }
 0x56a   : >> { %v1939_v16 = vadd.f32 %v1905_v46, %v1836_v30  ;;  %v1845_v30 = vld [vmem:[#allocation2 + $0x68] sm:$0xff] }
 0x56b   : >> { %v1827_v22 = vpop.f32.mrf.mxu2 }
 0x56c   : >> { %1955 = vst.msk [vmem:[#allocation2 + $0x20] sm:$0xff] %vm955_vm0, %v1939_v16 }
 0x571   : >> { %v1907_v25 = vpop.f32.mrf.mxu3 }
 0x572   : >> { %v1940_v48 = vadd.f32 %v1907_v25, %v1837_v29 }
 0x573   : >> { %v1829_v43 = vpop.f32.mrf.mxu2 }
 0x574   : >> { %1956 = vst.msk [vmem:[#allocation2 + $0x28] sm:$0xff] %vm955_vm0, %v1940_v48  ;;  %v1855_v7 = vpack.c.bf16 %v1829_v43, %v1827_v22  ;;  %v1846_v22 = vld [vmem:[#allocation2 + $0x70] sm:$0xff]  ;;  %v1847_v48 = vld [vmem:[#allocation2 + $0x78] sm:$0xff] }
 0x576   : >> { %4193 = vmatmul.msk.bf16.gmra.mxu3 %vm1491_vm6, %v1855_v7 }
 0x579   : >> { %v1910_v40 = vpop.f32.mrf.mxu3 }
 0x57a   : >> { %v1941_v19 = vadd.f32 %v1910_v40, %v1838_v54  ;;  %v1971_v54 = vld [vmem:[#allocation2 + $0x20] sm:$0xff] (%p1379_p1) }
 0x57b   : > { %v5828_v40 = vld [vmem:[%s7730_s10] ss:$0 sm:$0xff] (%p1379_p1) }
 0x57c   : >> { %1957 = vst.msk [vmem:[#allocation2 + $0x30] sm:$0xff] %vm955_vm0, %v1941_v19  ;;  %v1987_v19 = vadd.f32 (%p1379_p1), %v1971_v54, %v5110_v21 }
 0x57e   : > { %v5835_v38 = vadd.f32 (%p1379_p1), %v5828_v40, %v1987_v19 }
 0x580   : > { %2423 = vst.msk [vmem:[#allocation2 + $0x20] sm:$0xff] (%p1379_p1), %vm955_vm0, %v5835_v38 }
 0x581   : >> { %v1912_v18 = vpop.f32.mrf.mxu3 }
 0x582   : >> { %v1942_v12 = vadd.f32 %v1912_v18, %v1839_v11  ;;  %v1969_v11 = vld [vmem:[#allocation2 + $0x10] sm:$0xff] (%p1379_p1)  ;;  %v1967_v18 = vld [vmem:[#allocation2] sm:$0xff] (%p1379_p1) }
 0x583   : > { %v1973_v17 = vld [vmem:[#allocation2 + $0x30] sm:$0xff] (%p1379_p1) }
 0x584   : >> { %1958 = vst.msk [vmem:[#allocation2 + $0x38] sm:$0xff] %vm955_vm0, %v1942_v12  ;;  %v1972_v12 = vld [vmem:[#allocation2 + $0x28] sm:$0xff] (%p1379_p1)  ;;  %v1989_v9 = vadd.f32 (%p1379_p1), %v1973_v17, %v5146_v49 }
 0x58b   : > { %v1974_v4 = vld [vmem:[#allocation2 + $0x38] sm:$0xff] (%p1379_p1) }
 0x58c   : > { %v1990_v49 = vadd.f32 (%p1379_p1), %v1974_v4, %v5168_v0 }
 0x5c9   : >> { %v1915_v31 = vpop.f32.mrf.mxu3 }
 0x5ca   : >> { %v1943_v56 = vadd.f32 %v1915_v31, %v1840_v60  ;;  %v1985_v60 = vadd.f32 (%p1379_p1), %v1969_v11, %v5136_v41  ;;  %v1983_v31 = vadd.f32 (%p1379_p1), %v1967_v18, %v5108_v20 }
 0x5cc   : >> { %1959 = vst.msk [vmem:[#allocation2 + $0x40] sm:$0xff] %vm955_vm0, %v1943_v56  ;;  %v1988_v56 = vadd.f32 (%p1379_p1), %v1972_v12, %v5126_v33  ;;  %v5839_v21 = vadd.f32 (%p1379_p1), %v5828_v40, %v1985_v60  ;;  %v5842_v62 = vadd.f32 (%p1379_p1), %v5828_v40, %v1983_v31  ;;  %v2033_v33 = vsel (%p1379_p1), %vm955_vm0, %v5835_v38, 0.0 }
 0x5cd   : > { %2034 = vadd.xlane.f32.xlu2 (%p1379_p1), %v2033_v33 }
 0x5ce   : > { %2421 = vst.msk [vmem:[#allocation2 + $0x10] sm:$0xff] (%p1379_p1), %vm955_vm0, %v5839_v21  ;;  %v5857_v36 = vadd.f32 (%p1379_p1), %v5828_v40, %v1988_v56 }
 0x5cf   : > { %2419 = vst.msk [vmem:[#allocation2] sm:$0xff] (%p1379_p1), %vm955_vm0, %v5842_v62 }
 0x5d0   : > { %2424 = vst.msk [vmem:[#allocation2 + $0x28] sm:$0xff] (%p1379_p1), %vm955_vm0, %v5857_v36  ;;  %v2036_v0 = vsel (%p1379_p1), %vm955_vm0, %v5857_v36, 0.0 }
 0x5d1   : >> { %v1917_v5 = vpop.f32.mrf.mxu3 }
 0x5d2   : >> { %v1944_v39 = vadd.f32 %v1917_v5, %v1841_v45  ;;  %v1970_v45 = vld [vmem:[#allocation2 + $0x18] sm:$0xff] (%p1379_p1)  ;;  %v1968_v5 = vld [vmem:[#allocation2 + $0x8] sm:$0xff] (%p1379_p1) }
 0x5d3   : > { %v1986_v14 = vadd.f32 (%p1379_p1), %v1970_v45, %v5160_v59  ;;  %v1984_v41 = vadd.f32 (%p1379_p1), %v1968_v5, %v5124_v32  ;;  %v2027_v59 = vsel (%p1379_p1), %vm955_vm0, %v5839_v21, 0.0  ;;  %v2021_v32 = vsel (%p1379_p1), %vm955_vm0, %v5842_v62, 0.0 }
 0x5d4   : >> { %1960 = vst.msk [vmem:[#allocation2 + $0x48] sm:$0xff] %vm955_vm0, %v1944_v39  ;;  %v1975_v39 = vld [vmem:[#allocation2 + $0x40] sm:$0xff] (%p1379_p1)  ;;  %2028 = vadd.xlane.f32.xlu1 (%p1379_p1), %v2027_v59  ;;  %2022 = vadd.xlane.f32.xlu0 (%p1379_p1), %v2021_v32 }
 0x5d5   : > { %v1991_v63 = vadd.f32 (%p1379_p1), %v1975_v39, %v5116_v26  ;;  %v5863_v26 = vadd.f32 (%p1379_p1), %v5828_v40, %v1986_v14  ;;  %v5869_v58 = vadd.f32 (%p1379_p1), %v5828_v40, %v1984_v41  ;;  %2037 = vadd.xlane.f32.xlu2 (%p1379_p1), %v2036_v0 }
 0x5d7   : > { %2422 = vst.msk [vmem:[#allocation2 + $0x18] sm:$0xff] (%p1379_p1), %vm955_vm0, %v5863_v26  ;;  %v5875_v53 = vadd.f32 (%p1379_p1), %v5828_v40, %v1991_v63 }
 0x5d8   : > { %2420 = vst.msk [vmem:[#allocation2 + $0x8] sm:$0xff] (%p1379_p1), %vm955_vm0, %v5869_v58 }
 0x5d9   : >> { %v1920_v2 = vpop.f32.mrf.mxu3  ;;  %2427 = vst.msk [vmem:[#allocation2 + $0x40] sm:$0xff] (%p1379_p1), %vm955_vm0, %v5875_v53 }
 0x5da   : >> { %v1945_v52 = vadd.f32 %v1920_v2, %v1842_v34  ;;  %v2030_v2 = vsel (%p1379_p1), %vm955_vm0, %v5863_v26, 0.0 }
 0x5db   : > { %v1976_v23 = vld [vmem:[#allocation2 + $0x48] sm:$0xff] (%p1379_p1) }
 0x5dc   : >> { %1961 = vst.msk [vmem:[#allocation2 + $0x50] sm:$0xff] %vm955_vm0, %v1945_v52  ;;  %v1992_v55 = vadd.f32 (%p1379_p1), %v1976_v23, %v5138_v42  ;;  %v2024_v52 = vsel (%p1379_p1), %vm955_vm0, %v5869_v58, 0.0  ;;  %2031 = vadd.xlane.f32.xlu1 (%p1379_p1), %v2030_v2 }
 0x5dd   : > { %2025 = vadd.xlane.f32.xlu0 (%p1379_p1), %v2024_v52 }
 0x5e1   : >> { %v1922_v3 = vpop.f32.mrf.mxu3 }
 0x5e2   : >> { %v1946_v10 = vadd.f32 %v1922_v3, %v1843_v37  ;;  %v7820_v3 = vld [vmem:[#allocation21_spill] sm:$0xff] (%p1379_p1) }
 0x5e3   : > { %v1977_v15 = vld [vmem:[#allocation2 + $0x50] sm:$0xff] (%p1379_p1) }
 0x5e4   : >> { %1962 = vst.msk [vmem:[#allocation2 + $0x58] sm:$0xff] %vm955_vm0, %v1946_v10  ;;  %v1993_v42 = vadd.f32 (%p1379_p1), %v1977_v15, %v5144_v47  ;;  %v5905_v47 = vadd.f32 (%p1379_p1), %v5828_v40, %v1992_v55 }
 0x5e6   : > { %2428 = vst.msk [vmem:[#allocation2 + $0x48] sm:$0xff] (%p1379_p1), %vm955_vm0, %v5905_v47 }
 0x5e9   : >> { %v1925_v1 = vpop.f32.mrf.mxu3 }
 0x5ea   : >> { %v1947_v28 = vadd.f32 %v1925_v1, %v1844_v24  ;;  %v7821_v1 = vld [vmem:[#allocation22_spill] sm:$0xff] (%p1379_p1) }
 0x5eb   : > { %v1978_v20 = vld [vmem:[#allocation2 + $0x58] sm:$0xff] (%p1379_p1) }
 0x5ec   : >> { %1963 = vst.msk [vmem:[#allocation2 + $0x60] sm:$0xff] %vm955_vm0, %v1947_v28  ;;  %v1994_v13 = vadd.f32 (%p1379_p1), %v1978_v20, %v5148_v51  ;;  %v5881_v51 = vadd.f32 (%p1379_p1), %v5828_v40, %v1989_v9 }
 0x5ee   : > { %v5889_v61 = vadd.f32 (%p1379_p1), %v5828_v40, %v1994_v13  ;;  %2425 = vst.msk [vmem:[#allocation2 + $0x30] sm:$0xff] (%p1379_p1), %vm955_vm0, %v5881_v51 }
 0x5f0   : > { %2430 = vst.msk [vmem:[#allocation2 + $0x58] sm:$0xff] (%p1379_p1), %vm955_vm0, %v5889_v61 }
 0x5f1   : >> { %v1927_v46 = vpop.f32.mrf.mxu3 }
 0x5f2   : >> { %v1948_v16 = vadd.f32 %v1927_v46, %v1845_v30 }
 0x5f3   : > { %v1979_v6 = vld [vmem:[#allocation2 + $0x60] sm:$0xff] (%p1379_p1) }
 0x5f4   : >> { %1964 = vst.msk [vmem:[#allocation2 + $0x68] sm:$0xff] %vm955_vm0, %v1948_v16  ;;  %v1995_v37 = vadd.f32 (%p1379_p1), %v1979_v6, %v5118_v27  ;;  %v5917_v27 = vadd.f32 (%p1379_p1), %v5828_v40, %v1993_v42 }
 0x5f6   : > { %v5922_v30 = vadd.f32 (%p1379_p1), %v5828_v40, %v1995_v37  ;;  %2429 = vst.msk [vmem:[#allocation2 + $0x50] sm:$0xff] (%p1379_p1), %vm955_vm0, %v5917_v27 }
 0x5f8   : > { %2431 = vst.msk [vmem:[#allocation2 + $0x60] sm:$0xff] (%p1379_p1), %vm955_vm0, %v5922_v30 }
 0x5f9   : >> { %v1930_v29 = vpop.f32.mrf.mxu3 }
 0x5fa   : >> { %v1949_v25 = vadd.f32 %v1930_v29, %v1846_v22  ;;  %v2045_v22 = vsel (%p1379_p1), %vm955_vm0, %v5875_v53, 0.0  ;;  %v2039_v29 = vsel (%p1379_p1), %vm955_vm0, %v5881_v51, 0.0 }
 0x5fb   : > { %v1980_v44 = vld [vmem:[#allocation2 + $0x68] sm:$0xff] (%p1379_p1)  ;;  %2046 = vadd.xlane.f32.xlu2 (%p1379_p1), %v2045_v22  ;;  %2040 = vadd.xlane.f32.xlu0 (%p1379_p1), %v2039_v29 }
 0x5fc   : >> { %1965 = vst.msk [vmem:[#allocation2 + $0x70] sm:$0xff] %vm955_vm0, %v1949_v25  ;;  %v1996_v10 = vadd.f32 (%p1379_p1), %v1980_v44, %v7820_v3 }
 0x5fe   : > { %v5927_v46 = vadd.f32 (%p1379_p1), %v5828_v40, %v1996_v10 }
 0x600   : > { %1381 = sbr.rel (!%p1379_p1) target bundleno = 542 (0x21e), region = 180  ;;  %2432 = vst.msk [vmem:[#allocation2 + $0x68] sm:$0xff] (%p1379_p1), %vm955_vm0, %v5927_v46  ;;  %v2060_v19 = vsel (%p1379_p1), %vm955_vm0, %v5927_v46, 0.0 }
 0x601   : >> { %v1932_v43 = vpop.f32.mrf.mxu3 }
 0x602   : >> { %v1950_v7 = vadd.f32 %v1932_v43, %v1847_v48  ;;  %v2054_v48 = vsel (%p1379_p1), %vm955_vm0, %v5889_v61, 0.0  ;;  %v2048_v43 = vsel (%p1379_p1), %vm955_vm0, %v5905_v47, 0.0 }
 0x603   : > { %v1981_v50 = vld [vmem:[#allocation2 + $0x70] sm:$0xff] (%p1379_p1)  ;;  %2055 = vadd.xlane.f32.xlu2 (%p1379_p1), %v2054_v48  ;;  %2049 = vadd.xlane.f32.xlu0 (%p1379_p1), %v2048_v43 }
 0x604   : >> { %1966 = vst.msk [vmem:[#allocation2 + $0x78] sm:$0xff] %vm955_vm0, %v1950_v7  ;;  %v1997_v35 = vadd.f32 (%p1379_p1), %v1981_v50, %v5156_v57  ;;  %v5899_v57 = vadd.f32 (%p1379_p1), %v5828_v40, %v1990_v49  ;;  %v2051_v7 = vsel (%p1379_p1), %vm955_vm0, %v5917_v27, 0.0 }
 0x606   : > { %2426 = vst.msk [vmem:[#allocation2 + $0x38] sm:$0xff] %vm955_vm0, %v5899_v57  ;;  %v5911_v24 = vadd.f32 %v5828_v40, %v1997_v35  ;;  %v2042_v25 = vsel %vm955_vm0, %v5899_v57, 0.0 }
 0x607   : > { %2043 = vadd.xlane.f32.xlu1 %v2042_v25 }
 0x608   : > { %2433 = vst.msk [vmem:[#allocation2 + $0x70] sm:$0xff] %vm955_vm0, %v5911_v24  ;;  %v2063_v54 = vsel %vm955_vm0, %v5911_v24, 0.0 }
 0x60b   : > { %v1982_v34 = vld [vmem:[#allocation2 + $0x78] sm:$0xff]  ;;  %2064 = vadd.xlane.f32.xlu2 %v2063_v54 }
 0x60c   : > { %v1998_v28 = vadd.f32 %v1982_v34, %v7821_v1 }
 0x60e   : > { %v5932_v16 = vadd.f32 %v5828_v40, %v1998_v28  ;;  %v2057_v40 = vsel %vm955_vm0, %v5922_v30, 0.0 }
 0x60f   : > { %2052 = vadd.xlane.f32.xlu1 %v2051_v7  ;;  %2058 = vadd.xlane.f32.xlu0 %v2057_v40 }
 0x610   : > { %2434 = vst.msk [vmem:[#allocation2 + $0x78] sm:$0xff] %vm955_vm0, %v5932_v16  ;;  %v2066_v11 = vsel %vm955_vm0, %v5932_v16, 0.0 }
 0x617   : > { %2061 = vadd.xlane.f32.xlu1 %v2060_v19  ;;  %2067 = vadd.xlane.f32.xlu0 %v2066_v11 }
 0x640   : > { %v2035_v18 = vpop.xlane.xlu2 %2034 }
 0x641   : > { %v2073_v23 = vmul.f32 %v2035_v18, %v5172_v8 }
 0x647   : > { %v2029_v12 = vpop.xlane.xlu1 %2028  ;;  %v2023_v60 = vpop.xlane.xlu0 %2022 }
 0x648   : > { %v2071_v31 = vmul.f32 %v2029_v12, %v5172_v8  ;;  %v2069_v56 = vmul.f32 %v2023_v60, %v5172_v8  ;;  %v2038_v17 = vpop.xlane.xlu2 %2037 }
 0x649   : > { %v2074_v33 = vmul.f32 %v2038_v17, %v5172_v8 }
 0x64a   : > { %v5961_v45 = vsub.f32 %v5839_v21, %v2071_v31  ;;  %v5964_v5 = vsub.f32 %v5842_v62, %v2069_v56 }
 0x64b   : > { %v5976_v59 = vsub.f32 %v5857_v36, %v2074_v33 }
 0x64c   : > { %v2103_v39 = vmul.f32 %v5961_v45, %v5961_v45  ;;  %v2101_v14 = vmul.f32 %v5964_v5, %v5964_v5 }
 0x64d   : > { %v2106_v13 = vmul.f32 %v5976_v59, %v5976_v59 }
 0x64e   : > { %v2123_v41 = vsel %vm955_vm0, %v2103_v39, 0.0  ;;  %v2117_v20 = vsel %vm955_vm0, %v2101_v14, 0.0 }
 0x64f   : > { %v2032_v63 = vpop.xlane.xlu1 %2031  ;;  %2124 = vadd.xlane.f32.xlu0 %v2123_v41  ;;  %2118 = vadd.xlane.f32.xlu1 %v2117_v20  ;;  %v2132_v36 = vsel %vm955_vm0, %v2106_v13, 0.0 }
 0x650   : > { %v2026_v21 = vpop.xlane.xlu0 %2025  ;;  %v2072_v62 = vmul.f32 %v2032_v63, %v5172_v8 }
 0x651   : > { %v2070_v4 = vmul.f32 %v2026_v21, %v5172_v8 }
 0x652   : > { %v5979_v32 = vsub.f32 %v5863_v26, %v2072_v62 }
 0x653   : > { %v5982_v9 = vsub.f32 %v5869_v58, %v2070_v4  ;;  %v5995_v58 = vsub.f32 %v5835_v38, %v2073_v23 }
 0x654   : > { %v2104_v50 = vmul.f32 %v5979_v32, %v5979_v32 }
 0x655   : > { %v2102_v49 = vmul.f32 %v5982_v9, %v5982_v9  ;;  %v2105_v52 = vmul.f32 %v5995_v58, %v5995_v58 }
 0x656   : > { %v2126_v26 = vsel %vm955_vm0, %v2104_v50, 0.0 }
 0x657   : > { %v2120_v55 = vsel %vm955_vm0, %v2102_v49, 0.0  ;;  %2133 = vadd.xlane.f32.xlu0 %v2132_v36  ;;  %2127 = vadd.xlane.f32.xlu1 %v2126_v26  ;;  %v2129_v28 = vsel %vm955_vm0, %v2105_v52, 0.0 }
 0x658   : > { %2121 = vadd.xlane.f32.xlu2 %v2120_v55 }
 0x660   : > { %2130 = vadd.xlane.f32.xlu2 %v2129_v28 }
 0x66e   : > { %v2047_v15 = vpop.xlane.xlu2 %2046  ;;  %v2041_v35 = vpop.xlane.xlu0 %2040 }
 0x66f   : > { %v2077_v6 = vmul.f32 %v2047_v15, %v5172_v8  ;;  %v2075_v0 = vmul.f32 %v2041_v35, %v5172_v8 }
 0x671   : > { %v6000_v42 = vsub.f32 %v5875_v53, %v2077_v6  ;;  %v6004_v2 = vsub.f32 %v5881_v51, %v2075_v0 }
 0x673   : > { %v2109_v38 = vmul.f32 %v6000_v42, %v6000_v42  ;;  %v2107_v37 = vmul.f32 %v6004_v2, %v6004_v2 }
 0x675   : > { %v2141_v53 = vsel %vm955_vm0, %v2109_v38, 0.0  ;;  %v2135_v1 = vsel %vm955_vm0, %v2107_v37, 0.0 }
 0x676   : > { %v2056_v10 = vpop.xlane.xlu2 %2055  ;;  %2142 = vadd.xlane.f32.xlu0 %v2141_v53  ;;  %2136 = vadd.xlane.f32.xlu1 %v2135_v1  ;;  %v2050_v22 = vpop.xlane.xlu0 %2049 }
 0x677   : > { %v2080_v51 = vmul.f32 %v2056_v10, %v5172_v8  ;;  %v2078_v25 = vmul.f32 %v2050_v22, %v5172_v8 }
 0x679   : > { %v6021_v48 = vsub.f32 %v5889_v61, %v2080_v51  ;;  %v6027_v7 = vsub.f32 %v5905_v47, %v2078_v25 }
 0x67a   : > { %v2044_v44 = vpop.xlane.xlu1 %2043 }
 0x67b   : > { %v2076_v34 = vmul.f32 %v2044_v44, %v5172_v8  ;;  %v2112_v54 = vmul.f32 %v6021_v48, %v6021_v48  ;;  %v2110_v40 = vmul.f32 %v6027_v7, %v6027_v7 }
 0x67d   : > { %v6013_v3 = vsub.f32 %v5899_v57, %v2076_v34  ;;  %v2150_v61 = vsel %vm955_vm0, %v2112_v54, 0.0  ;;  %v2144_v12 = vsel %vm955_vm0, %v2110_v40, 0.0 }
 0x67e   : > { %v2065_v18 = vpop.xlane.xlu2 %2064  ;;  %2151 = vadd.xlane.f32.xlu0 %v2150_v61  ;;  %2145 = vadd.xlane.f32.xlu1 %v2144_v12 }
 0x67f   : > { %v2108_v43 = vmul.f32 %v6013_v3, %v6013_v3  ;;  %v2083_v60 = vmul.f32 %v2065_v18, %v5172_v8 }
 0x681   : > { %v2138_v11 = vsel %vm955_vm0, %v2108_v43, 0.0  ;;  %v6042_v39 = vsub.f32 %v5911_v24, %v2083_v60 }
 0x682   : > { %v2053_v29 = vpop.xlane.xlu1 %2052  ;;  %v2059_v47 = vpop.xlane.xlu0 %2058  ;;  %2139 = vadd.xlane.f32.xlu2 %v2138_v11 }
 0x683   : > { %v2079_v57 = vmul.f32 %v2053_v29, %v5172_v8  ;;  %v2081_v56 = vmul.f32 %v2059_v47, %v5172_v8  ;;  %v2115_v41 = vmul.f32 %v6042_v39, %v6042_v39 }
 0x685   : > { %v6034_v19 = vsub.f32 %v5917_v27, %v2079_v57  ;;  %v6048_v17 = vsub.f32 %v5922_v30, %v2081_v56  ;;  %v2159_v24 = vsel %vm955_vm0, %v2115_v41, 0.0 }
 0x686   : > { %2160 = vadd.xlane.f32.xlu0 %v2159_v24 }
 0x687   : > { %v2111_v14 = vmul.f32 %v6034_v19, %v6034_v19  ;;  %v2113_v20 = vmul.f32 %v6048_v17, %v6048_v17 }
 0x689   : > { %v2147_v63 = vsel %vm955_vm0, %v2111_v14, 0.0  ;;  %v2153_v21 = vsel %vm955_vm0, %v2113_v20, 0.0 }
 0x68a   : > { %v2062_v31 = vpop.xlane.xlu1 %2061  ;;  %2154 = vadd.xlane.f32.xlu1 %v2153_v21  ;;  %v2068_v62 = vpop.xlane.xlu0 %2067  ;;  %2148 = vadd.xlane.f32.xlu2 %v2147_v63 }
 0x68b   : > { %v2082_v27 = vmul.f32 %v2062_v31, %v5172_v8  ;;  %v2084_v30 = vmul.f32 %v2068_v62, %v5172_v8 }
 0x68d   : > { %v6055_v33 = vsub.f32 %v5927_v46, %v2082_v27  ;;  %v6064_v23 = vsub.f32 %v5932_v16, %v2084_v30 }
 0x68f   : > { %v2114_v4 = vmul.f32 %v6055_v33, %v6055_v33  ;;  %v2116_v46 = vmul.f32 %v6064_v23, %v6064_v23 }
 0x691   : > { %v2156_v13 = vsel %vm955_vm0, %v2114_v4, 0.0  ;;  %v2162_v50 = vsel %vm955_vm0, %v2116_v46, 0.0 }
 0x692   : > { %2163 = vadd.xlane.f32.xlu1 %v2162_v50  ;;  %2157 = vadd.xlane.f32.xlu2 %v2156_v13  ;;  %v6104_v50 = vld [vmem:[%s7731_s11] ss:$0 sm:$0xff] }
 0x6c2   : > { %v2119_v49 = vpop.xlane.xlu1 %2118  ;;  %v2125_v36 = vpop.xlane.xlu0 %2124 }
 0x6c3   : > { %v2165_v15 = vmul.f32 %v2119_v49, %v5172_v8  ;;  %v2167_v26 = vmul.f32 %v2125_v36, %v5172_v8 }
 0x6c5   : > { %v2181_v55 = vadd.f32 1e-06, %v2165_v15  ;;  %v2183_v6 = vadd.f32 1e-06, %v2167_v26 }
 0x6c7   : > { %4531 = vrsqrt.f32 %v2181_v55  ;;  %vm2203_vm8 = vweird.f32 %v2181_v55  ;;  %vm2223_vm10 = vweird.f32 %v2183_v6 }
 0x6c8   : > { %4533 = vrsqrt.f32 %v2183_v6 }
 0x6ca   : > { %v2128_v16 = vpop.xlane.xlu1 %2127  ;;  %v2134_v35 = vpop.xlane.xlu0 %2133 }
 0x6cb   : > { %v2168_v44 = vmul.f32 %v2128_v16, %v5172_v8  ;;  %v2122_v0 = vpop.xlane.xlu2 %2121  ;;  %v2170_v34 = vmul.f32 %v2134_v35, %v5172_v8 }
 0x6cc   : > { %v2166_v38 = vmul.f32 %v2122_v0, %v5172_v8 }
 0x6cd   : > { %v4532_v52 = vpop.eup %4531  ;;  %v6075_v37 = vadd.f32 1e-06, %v2168_v44  ;;  %v6077_v53 = vadd.f32 1e-06, %v2170_v34 }
 0x6ce   : > { %v4534_v10 = vpop.eup %4533  ;;  %v2198_v1 = vmul.f32 %v4532_v52, %v2181_v55  ;;  %v6079_v51 = vadd.f32 1e-06, %v2166_v38  ;;  %vm2204_vm7 = vweird.f32 %v4532_v52 }
 0x6cf   : > { %v2218_v28 = vmul.f32 %v4534_v10, %v2183_v6  ;;  %4535 = vrsqrt.f32 %v6075_v37  ;;  %vm2224_vm9 = vweird.f32 %v4534_v10  ;;  %vm2205_vm11 = vmor %vm2203_vm8, %vm2204_vm7  ;;  %vm2233_vm13 = vweird.f32 %v6075_v37 }
 0x6d0   : > { %v2199_v22 = vmul.f32 %v4532_v52, %v2198_v1  ;;  %4537 = vrsqrt.f32 %v6079_v51  ;;  %vm2225_vm12 = vmor %vm2223_vm10, %vm2224_vm9  ;;  %vm2213_vm14 = vweird.f32 %v6079_v51  ;;  %vm2253_vm1 = vweird.f32 %v6077_v53 }
 0x6d1   : > { %v2219_v29 = vmul.f32 %v4534_v10, %v2218_v28  ;;  %4539 = vrsqrt.f32 %v6077_v53 }
 0x6d2   : > { %v2200_v25 = vmul.f32 0.5, %v2199_v22 }
 0x6d3   : > { %v2220_v54 = vmul.f32 0.5, %v2219_v29  ;;  %v2131_v40 = vpop.xlane.xlu2 %2130 }
 0x6d4   : > { %v2201_v18 = vsub.f32 1.5, %v2200_v25  ;;  %v2169_v12 = vmul.f32 %v2131_v40, %v5172_v8 }
 0x6d5   : > { %v4536_v60 = vpop.eup %4535  ;;  %v2221_v47 = vsub.f32 1.5, %v2220_v54 }
 0x6d6   : > { %v4538_v56 = vpop.eup %4537  ;;  %v2202_v27 = vmul.f32 %v4532_v52, %v2201_v18  ;;  %v2228_v14 = vmul.f32 %v4536_v60, %v6075_v37  ;;  %v6090_v41 = vadd.f32 1e-06, %v2169_v12  ;;  %vm2234_vm15 = vweird.f32 %v4536_v60 }
 0x6d7   : > { %v6092_v20 = vpop.eup %4539  ;;  %v2222_v24 = vmul.f32 %v4534_v10, %v2221_v47  ;;  %v2208_v63 = vmul.f32 %v4538_v56, %v6079_v51  ;;  %vm2214_vm2 = vweird.f32 %v4538_v56  ;;  %vm2235_vm3 = vmor %vm2233_vm13, %vm2234_vm15 }
 0x6d8   : > { %v2206_v62 = vsel %vm2205_vm11, %v4532_v52, %v2202_v27  ;;  %v2229_v30 = vmul.f32 %v4536_v60, %v2228_v14  ;;  %v2248_v4 = vmul.f32 %v6092_v20, %v6077_v53  ;;  %vm2254_vm4 = vweird.f32 %v6092_v20  ;;  %vm2215_vm5 = vmor %vm2213_vm14, %vm2214_vm2 }
 0x6d9   : > { %v2226_v46 = vsel %vm2225_vm12, %v4534_v10, %v2222_v24  ;;  %v2209_v13 = vmul.f32 %v4538_v56, %v2208_v63  ;;  %v2357_v49 = vmul.f32 %v2206_v62, %v5964_v5  ;;  %vm2243_vm6 = vweird.f32 %v6090_v41  ;;  %vm6153_vm7 = vmor %vm2253_vm1, %vm2254_vm4 }
 0x6da   : > { %v2230_v36 = vmul.f32 0.5, %v2229_v30  ;;  %v2249_v15 = vmul.f32 %v6092_v20, %v2248_v4  ;;  %v2359_v55 = vmul.f32 %v2226_v46, %v5961_v45  ;;  %v6120_v45 = vld [vmem:[%s7732_s12] ss:$0 sm:$0xff] }
 0x6db   : > { %v2210_v6 = vmul.f32 0.5, %v2209_v13  ;;  %v2376_v52 = vmul.f32 %v6104_v50, %v2357_v49 }
 0x6dc   : > { %v2231_v35 = vsub.f32 1.5, %v2230_v36  ;;  %v2250_v44 = vmul.f32 0.5, %v2249_v15  ;;  %v2378_v29 = vmul.f32 %v6104_v50, %v2359_v55 }
 0x6dd   : > { %v2211_v0 = vsub.f32 1.5, %v2210_v6  ;;  %v6146_v51 = vadd.f32 %v6120_v45, %v2376_v52 }
 0x6de   : > { %v2232_v10 = vmul.f32 %v4536_v60, %v2231_v35  ;;  %v2251_v1 = vsub.f32 1.5, %v2250_v44  ;;  %v6160_v14 = vadd.f32 %v6120_v45, %v2378_v29 }
 0x6df   : > { %v2212_v25 = vmul.f32 %v4538_v56, %v2211_v0  ;;  %7822 = vst [vmem:[#allocation21_spill] sm:$0xff] %v6146_v51 }
 0x6e0   : > { %v2252_v54 = vmul.f32 %v6092_v20, %v2251_v1  ;;  %7825 = vst [vmem:[#allocation22_spill] sm:$0xff] %v6160_v14 }
 0x6e1   : > { %v2216_v18 = vsel %vm2215_vm5, %v4538_v56, %v2212_v25 }
 0x6e9   : > { %v2137_v57 = vpop.xlane.xlu1 %2136  ;;  %v2143_v43 = vpop.xlane.xlu0 %2142 }
 0x6ea   : > { %v2171_v61 = vmul.f32 %v2137_v57, %v5172_v8  ;;  %v2173_v11 = vmul.f32 %v2143_v43, %v5172_v8  ;;  %v2236_v43 = vsel %vm2235_vm3, %v4536_v60, %v2232_v10  ;;  %v2358_v60 = vmul.f32 %v2216_v18, %v5982_v9 }
 0x6eb   : > { %v2256_v9 = vsel %vm6153_vm7, %v6092_v20, %v2252_v54 }
 0x6ec   : > { %v6087_v31 = vadd.f32 1e-06, %v2171_v61  ;;  %v6096_v21 = vadd.f32 1e-06, %v2173_v11  ;;  %v2360_v11 = vmul.f32 %v2236_v43, %v5979_v32  ;;  %v2377_v62 = vmul.f32 %v6104_v50, %v2358_v60 }
 0x6ed   : > { %v2362_v20 = vmul.f32 %v2256_v9, %v5976_v59 }
 0x6ee   : > { %4541 = vrsqrt.f32 %v6087_v31  ;;  %v2379_v24 = vmul.f32 %v6104_v50, %v2360_v11  ;;  %v6174_v36 = vadd.f32 %v6120_v45, %v2377_v62  ;;  %vm2263_vm10 = vweird.f32 %v6087_v31 }
 0x6ef   : > { %4543 = vrsqrt.f32 %v6090_v41  ;;  %v2381_v10 = vmul.f32 %v6104_v50, %v2362_v20  ;;  %vm2283_vm13 = vweird.f32 %v6096_v21 }
 0x6f0   : > { %4545 = vrsqrt.f32 %v6096_v21  ;;  %v6170_v13 = vadd.f32 %v6120_v45, %v2379_v24  ;;  %7827 = vst [vmem:[#allocation24_spill] sm:$0xff] %v6174_v36 }
 0x6f1   : > { %v2146_v26 = vpop.xlane.xlu1 %2145  ;;  %v2152_v56 = vpop.xlane.xlu0 %2151 }
 0x6f2   : > { %v2174_v38 = vmul.f32 %v2146_v26, %v5172_v8  ;;  %7826 = vst [vmem:[#allocation23_spill] sm:$0xff] %v6170_v13  ;;  %v2176_v35 = vmul.f32 %v2152_v56, %v5172_v8 }
 0x6f4   : > { %v6113_v5 = vpop.eup %4541  ;;  %v6138_v61 = vadd.f32 1e-06, %v2174_v38  ;;  %v6191_v52 = vadd.f32 1e-06, %v2176_v35 }
 0x6f5   : > { %v2140_v16 = vpop.xlane.xlu2 %2139  ;;  %v2258_v28 = vmul.f32 %v6113_v5, %v6087_v31  ;;  %v4544_v22 = vpop.eup %4543  ;;  %vm2264_vm8 = vweird.f32 %v6113_v5 }
 0x6f6   : > { %v2172_v34 = vmul.f32 %v2140_v16, %v5172_v8  ;;  %v2238_v40 = vmul.f32 %v4544_v22, %v6090_v41  ;;  %v6140_v37 = vpop.eup %4545  ;;  %vm2244_vm9 = vweird.f32 %v4544_v22  ;;  %vm2265_vm11 = vmor %vm2263_vm10, %vm2264_vm8  ;;  %vm2293_vm5 = vweird.f32 %v6138_v61 }
 0x6f7   : > { %v2259_v12 = vmul.f32 %v6113_v5, %v2258_v28  ;;  %v2278_v32 = vmul.f32 %v6140_v37, %v6096_v21  ;;  %vm2245_vm12 = vmor %vm2243_vm6, %vm2244_vm9  ;;  %vm2284_vm14 = vweird.f32 %v6140_v37  ;;  %vm2313_vm6 = vweird.f32 %v6191_v52 }
 0x6f8   : > { %v6130_v57 = vadd.f32 1e-06, %v2172_v34  ;;  %v2239_v27 = vmul.f32 %v4544_v22, %v2238_v40  ;;  %vm6218_vm2 = vmor %vm2283_vm13, %vm2284_vm14 }
 0x6f9   : > { %v2260_v63 = vmul.f32 0.5, %v2259_v12  ;;  %v2279_v4 = vmul.f32 %v6140_v37, %v2278_v32 }
 0x6fa   : > { %4547 = vrsqrt.f32 %v6130_v57  ;;  %v2240_v30 = vmul.f32 0.5, %v2239_v27  ;;  %vm2273_vm15 = vweird.f32 %v6130_v57 }
 0x6fb   : > { %v2261_v49 = vsub.f32 1.5, %v2260_v63  ;;  %4549 = vrsqrt.f32 %v6138_v61  ;;  %v2280_v26 = vmul.f32 0.5, %v2279_v4 }
 0x6fc   : > { %v2241_v15 = vsub.f32 1.5, %v2240_v30  ;;  %4551 = vrsqrt.f32 %v6191_v52 }
 0x6fd   : > { %v2149_v53 = vpop.xlane.xlu2 %2148  ;;  %v2155_v46 = vpop.xlane.xlu1 %2154  ;;  %v2262_v16 = vmul.f32 %v6113_v5, %v2261_v49  ;;  %v2281_v59 = vsub.f32 1.5, %v2280_v26 }
 0x6fe   : > { %v2242_v0 = vmul.f32 %v4544_v22, %v2241_v15  ;;  %v2175_v31 = vmul.f32 %v2149_v53, %v5172_v8  ;;  %v2177_v56 = vmul.f32 %v2155_v46, %v5172_v8 }
 0x6ff   : > { %v2266_v38 = vsel %vm2265_vm11, %v6113_v5, %v2262_v16  ;;  %v2282_v5 = vmul.f32 %v6140_v37, %v2281_v59 }
 0x700   : > { %v4548_v55 = vpop.eup %4547  ;;  %v2246_v1 = vsel %vm2245_vm12, %v4544_v22, %v2242_v0  ;;  %v2363_v43 = vmul.f32 %v2266_v38, %v6004_v2  ;;  %v6199_v41 = vadd.f32 1e-06, %v2175_v31  ;;  %v2161_v22 = vpop.xlane.xlu0 %2160  ;;  %v6208_v2 = vadd.f32 %v6120_v45, %v2381_v10 }
 0x701   : > { %v2268_v34 = vmul.f32 %v4548_v55, %v6130_v57  ;;  %v4550_v29 = vpop.eup %4549  ;;  %v2361_v25 = vmul.f32 %v2246_v1, %v5995_v58  ;;  %vm2274_vm1 = vweird.f32 %v4548_v55  ;;  %v2179_v24 = vmul.f32 %v2161_v22, %v5172_v8 }
 0x702   : > { %v2288_v40 = vmul.f32 %v4550_v29, %v6138_v61  ;;  %4553 = vrsqrt.f32 %v6199_v41  ;;  %7828 = vst [vmem:[#allocation25_spill] sm:$0xff] %v6208_v2  ;;  %v2382_v27 = vmul.f32 %v6104_v50, %v2363_v43  ;;  %v2286_v9 = vsel %vm6218_vm2, %v6140_v37, %v2282_v5  ;;  %v4552_v30 = vpop.eup %4551  ;;  %vm2275_vm3 = vmor %vm2273_vm15, %vm2274_vm1 }
 0x703   : > { %v2269_v28 = vmul.f32 %v4548_v55, %v2268_v34  ;;  %v2380_v11 = vmul.f32 %v6104_v50, %v2361_v25  ;;  %v6232_v4 = vadd.f32 1e-06, %v2177_v56  ;;  %v6234_v46 = vadd.f32 1e-06, %v2179_v24 }
 0x704   : > { %v2289_v12 = vmul.f32 %v4550_v29, %v2288_v40  ;;  %vm2294_vm4 = vweird.f32 %v4550_v29  ;;  %v2308_v37 = vmul.f32 %v4552_v30, %v6191_v52  ;;  %v2365_v16 = vmul.f32 %v2286_v9, %v6000_v42 }
 0x705   : > { %v2270_v54 = vmul.f32 0.5, %v2269_v28  ;;  %v2158_v58 = vpop.xlane.xlu2 %2157  ;;  %v2164_v60 = vpop.xlane.xlu1 %2163  ;;  %v6211_v47 = vadd.f32 %v6120_v45, %v2380_v11  ;;  %4555 = vrsqrt.f32 %v6232_v4  ;;  %vm2295_vm7 = vmor %vm2293_vm5, %vm2294_vm4  ;;  %vm2314_vm8 = vweird.f32 %v4552_v30 }
 0x706   : > { %v2290_v53 = vmul.f32 0.5, %v2289_v12  ;;  %v2178_v62 = vmul.f32 %v2158_v58, %v5172_v8  ;;  %v2180_v49 = vmul.f32 %v2164_v60, %v5172_v8  ;;  %v2309_v0 = vmul.f32 %v4552_v30, %v2308_v37  ;;  %vm2315_vm10 = vmor %vm2313_vm6, %vm2314_vm8 }
 0x707   : > { %v2271_v18 = vsub.f32 1.5, %v2270_v54  ;;  %7829 = vst [vmem:[#allocation26_spill] sm:$0xff] %v6211_v47  ;;  %4557 = vrsqrt.f32 %v6234_v46  ;;  %v2384_v10 = vmul.f32 %v6104_v50, %v2365_v16  ;;  %vm2303_vm11 = vweird.f32 %v6199_v41 }
 0x708   : > { %v2291_v15 = vsub.f32 1.5, %v2290_v53  ;;  %v4554_v26 = vpop.eup %4553  ;;  %v6246_v34 = vadd.f32 1e-06, %v2178_v62  ;;  %v6248_v42 = vadd.f32 1e-06, %v2180_v49  ;;  %v2310_v38 = vmul.f32 0.5, %v2309_v0 }
 0x709   : > { %v2272_v63 = vmul.f32 %v4548_v55, %v2271_v18  ;;  %v2298_v59 = vmul.f32 %v4554_v26, %v6199_v41  ;;  %vm2304_vm9 = vweird.f32 %v4554_v26  ;;  %vm2323_vm14 = vweird.f32 %v6232_v4 }
 0x70a   : > { %v2292_v57 = vmul.f32 %v4550_v29, %v2291_v15  ;;  %4559 = vrsqrt.f32 %v6246_v34  ;;  %v2311_v25 = vsub.f32 1.5, %v2310_v38  ;;  %vm2305_vm12 = vmor %vm2303_vm11, %vm2304_vm9  ;;  %vm2343_vm15 = vweird.f32 %v6234_v46 }
 0x70b   : > { %v2276_v20 = vsel %vm2275_vm3, %v4548_v55, %v2272_v63  ;;  %v2299_v31 = vmul.f32 %v4554_v26, %v2298_v59  ;;  %4561 = vrsqrt.f32 %v6248_v42  ;;  %v4556_v5 = vpop.eup %4555  ;;  %vm2333_vm6 = vweird.f32 %v6246_v34 }
 0x70c   : > { %v2364_v35 = vmul.f32 %v2276_v20, %v6013_v3  ;;  %v6251_v3 = vadd.f32 %v6120_v45, %v2382_v27  ;;  %v2296_v61 = vsel %vm2295_vm7, %v4550_v29, %v2292_v57  ;;  %v2312_v40 = vmul.f32 %v4552_v30, %v2311_v25 }
 0x70d   : > { %v2366_v28 = vmul.f32 %v2296_v61, %v6027_v7  ;;  %v2300_v43 = vmul.f32 0.5, %v2299_v31  ;;  %v2318_v11 = vmul.f32 %v4556_v5, %v6232_v4  ;;  %v4558_v58 = vpop.eup %4557  ;;  %v6265_v7 = vadd.f32 %v6120_v45, %v2384_v10 }
 0x70e   : > { %v2383_v55 = vmul.f32 %v6104_v50, %v2364_v35  ;;  %7832 = vst [vmem:[#allocation27_spill] sm:$0xff] %v6251_v3  ;;  %v2316_v12 = vsel %vm2315_vm10, %v4552_v30, %v2312_v40  ;;  %v2338_v32 = vmul.f32 %v4558_v58, %v6234_v46  ;;  %vm2324_vm13 = vweird.f32 %v4556_v5 }
 0x70f   : > { %v2385_v54 = vmul.f32 %v6104_v50, %v2366_v28  ;;  %v2301_v22 = vsub.f32 1.5, %v2300_v43  ;;  %7834 = vst [vmem:[#allocation29_spill] sm:$0xff] %v6265_v7  ;;  %v2319_v27 = vmul.f32 %v4556_v5, %v2318_v11  ;;  %v2368_v9 = vmul.f32 %v2316_v12, %v6021_v48  ;;  %vm2325_vm2 = vmor %vm2323_vm14, %vm2324_vm13 }
 0x710   : > { %v6255_v1 = vadd.f32 %v6120_v45, %v2383_v55  ;;  %v4560_v56 = vpop.eup %4559  ;;  %v2339_v49 = vmul.f32 %v4558_v58, %v2338_v32  ;;  %vm2344_vm1 = vweird.f32 %v4558_v58  ;;  %vm2353_vm8 = vweird.f32 %v6248_v42 }
 0x711   : > { %v6268_v18 = vadd.f32 %v6120_v45, %v2385_v54  ;;  %v2302_v60 = vmul.f32 %v4554_v26, %v2301_v22  ;;  %v4562_v63 = vpop.eup %4561  ;;  %v2320_v62 = vmul.f32 0.5, %v2319_v27  ;;  %v2328_v52 = vmul.f32 %v4560_v56, %v6246_v34  ;;  %vm2345_vm4 = vmor %vm2343_vm15, %vm2344_vm1 }
 0x712   : > { %7833 = vst [vmem:[#allocation28_spill] sm:$0xff] %v6255_v1  ;;  %v2387_v41 = vmul.f32 %v6104_v50, %v2368_v9  ;;  %v2348_v20 = vmul.f32 %v4562_v63, %v6248_v42  ;;  %v2340_v37 = vmul.f32 0.5, %v2339_v49  ;;  %vm2334_vm3 = vweird.f32 %v4560_v56 }
 0x713   : > { %7835 = vst [vmem:[#allocation30_spill] sm:$0xff] %v6268_v18  ;;  %v2306_v53 = vsel %vm2305_vm12, %v4554_v26, %v2302_v60  ;;  %v2321_v15 = vsub.f32 1.5, %v2320_v62  ;;  %v2329_v16 = vmul.f32 %v4560_v56, %v2328_v52  ;;  %vm2354_vm5 = vweird.f32 %v4562_v63  ;;  %vm2335_vm7 = vmor %vm2333_vm6, %vm2334_vm3 }
 0x714   : > { %v2367_v30 = vmul.f32 %v2306_v53, %v6034_v19  ;;  %v2349_v48 = vmul.f32 %v4562_v63, %v2348_v20  ;;  %v2341_v57 = vsub.f32 1.5, %v2340_v37  ;;  %v6285_v59 = vadd.f32 %v6120_v45, %v2387_v41  ;;  %vm2355_vm9 = vmor %vm2353_vm8, %vm2354_vm5 }
 0x715   : > { %v2322_v26 = vmul.f32 %v4556_v5, %v2321_v15  ;;  %v2330_v0 = vmul.f32 0.5, %v2329_v16 }
 0x716   : > { %v2386_v35 = vmul.f32 %v6104_v50, %v2367_v30  ;;  %7836 = vst [vmem:[#allocation31_spill] sm:$0xff] %v6285_v59  ;;  %v2350_v55 = vmul.f32 0.5, %v2349_v48  ;;  %v2342_v38 = vmul.f32 %v4558_v58, %v2341_v57 }
 0x717   : > { %v2326_v61 = vsel %vm2325_vm2, %v4556_v5, %v2322_v26  ;;  %v2331_v31 = vsub.f32 1.5, %v2330_v0 }
 0x718   : > { %v6288_v19 = vadd.f32 %v6120_v45, %v2386_v35  ;;  %v2369_v10 = vmul.f32 %v2326_v61, %v6048_v17  ;;  %v2351_v28 = vsub.f32 1.5, %v2350_v55  ;;  %v2346_v25 = vsel %vm2345_vm4, %v4558_v58, %v2342_v38 }
 0x719   : > { %v2332_v43 = vmul.f32 %v4560_v56, %v2331_v31  ;;  %v2371_v54 = vmul.f32 %v2346_v25, %v6042_v39 }
 0x71a   : > { %7837 = vst [vmem:[#allocation32_spill] sm:$0xff] %v6288_v19  ;;  %v2352_v5 = vmul.f32 %v4562_v63, %v2351_v28  ;;  %v2388_v22 = vmul.f32 %v6104_v50, %v2369_v10 }
 0x71b   : > { %v2336_v40 = vsel %vm2335_vm7, %v4560_v56, %v2332_v43  ;;  %v2390_v11 = vmul.f32 %v6104_v50, %v2371_v54 }
 0x71c   : > { %v2370_v17 = vmul.f32 %v2336_v40, %v6055_v33  ;;  %v2356_v46 = vsel %vm2355_vm9, %v4562_v63, %v2352_v5  ;;  %v6305_v39 = vadd.f32 %v6120_v45, %v2388_v22 }
 0x71d   : > { %v2372_v58 = vmul.f32 %v2356_v46, %v6064_v23  ;;  %v6311_v60 = vadd.f32 %v6120_v45, %v2390_v11 }
 0x71e   : > { %v2389_v12 = vmul.f32 %v6104_v50, %v2370_v17  ;;  %7838 = vst [vmem:[#allocation33_spill] sm:$0xff] %v6305_v39 }
 0x71f   : > { %v2391_v34 = vmul.f32 %v6104_v50, %v2372_v58 }
 0x720   : > { %v6308_v42 = vadd.f32 %v6120_v45, %v2389_v12 }
 0x721   : > { %v6314_v33 = vadd.f32 %v6120_v45, %v2391_v34 }
 0x722   : > { %7839 = vst [vmem:[#allocation34_spill] sm:$0xff] %v6308_v42 }
 0x723   : > { %7840 = vst [vmem:[#allocation35_spill] sm:$0xff] %v6314_v33 }
 0x724 LB: >> { %s4281_s2 = sshll.u32 %s4825_s21, 4  ;;  %s2448_s5 = scalar_lea.vmem %s7734_s14, %s4825_s21  ;;  %v7841_v36 = vld [vmem:[#allocation24_spill] sm:$0xff]  ;;  %v7842_v51 = vld [vmem:[#allocation21_spill] sm:$0xff]  ;;  %v7844_v59 = vld [vmem:[#allocation31_spill] sm:$0xff]  ;;  %s4825_s21 = sphi %s6320_s21, %s2440_s21  }
 0x725   : >> { %s2443_s23 = scalar_lea.vmem [#allocation8], %s4281_s2  ;;  %v7843_v44 = vpack.c.bf16 %v7841_v36, %v7842_v51  ;;  %v7845_v19 = vld [vmem:[#allocation32_spill] sm:$0xff]  ;;  %v7847_v13 = vld [vmem:[#allocation23_spill] sm:$0xff]  ;;  %v7848_v14 = vld [vmem:[#allocation22_spill] sm:$0xff]  ;;  %s4284_s30 = sshll.u32 %s4825_s21, 5 }
 0x726   : >> { %v4283_v50 = vld [vmem:[%s2443_s23 + $0x8] sm:$0xff]  ;;  %v4282_v45 = vld [vmem:[%s2443_s23] sm:$0xff]  ;;  %v7846_v4 = vpack.c.bf16 %v7844_v59, %v7845_v19  ;;  %v7849_v6 = vpack.c.bf16 %v7847_v13, %v7848_v14  ;;  %v7854_v47 = vld [vmem:[#allocation26_spill] sm:$0xff]  ;;  %s6448_s3 = scalar_lea.vmem %s7735_s15, %s4284_s30  ;;  %s2440_s21 = sadd.s32 1, %s4825_s21  }
 0x727   : >> { %2495 = vmatpush.bf16.msra.mxu0 %v4283_v50  ;;  %4313 = vmatpush.bf16.msra.mxu3 %v4283_v50  ;;  %v7851_v39 = vld [vmem:[#allocation33_spill] sm:$0xff]  ;;  %v7858_v1 = vld [vmem:[#allocation28_spill] sm:$0xff]  ;;  %v7859_v3 = vld [vmem:[#allocation27_spill] sm:$0xff]  ;;  %p2437_p2 = scmp.ge.s32.totalorder %s2440_s21, 2  }
 0x728   : >> { %v7853_v2 = vld [vmem:[#allocation25_spill] sm:$0xff]  ;;  %v7860_v29 = vpack.c.bf16 %v7858_v1, %v7859_v3  ;;  %v7861_v18 = vld [vmem:[#allocation30_spill] sm:$0xff]  ;;  %v6362_v56 = vld [vmem:[%s2448_s5] ss:$0 sm:$0xff]  ;;  %s7910_s26 = sld [smem:[#allocation43_spill]] (%p2437_p2)  ;;  %s4256_s28 = sshll.u32 (%p2437_p2), %s4809_s27, 2 }
 0x729   : >> { %v7850_v42 = vld [vmem:[#allocation34_spill] sm:$0xff]  ;;  %v7855_v21 = vpack.c.bf16 %v7853_v2, %v7854_v47  ;;  %v7862_v7 = vld [vmem:[#allocation29_spill] sm:$0xff]  ;;  %s7927_s23 = sld [smem:[#allocation45_spill]] (%p2437_p2)  ;;  %s3905_s2 = sshll.u32 (%p2437_p2), %s750_s24, 4  ;;  %s3906_s2 = int_to_ptr.vmem [resolvable:$true] %s3905_s2 }
 0x72a   : >> { %v7852_v27 = vpack.c.bf16 %v7850_v42, %v7851_v39  ;;  %v7856_v33 = vld [vmem:[#allocation35_spill] sm:$0xff]  ;;  %v7863_v24 = vpack.c.bf16 %v7861_v18, %v7862_v7  ;;  %v4286_v3 = vld [vmem:[%s6448_s3 + $0x8] sm:$0xff]  ;;  %s7928_s0 = sld [smem:[#allocation44_spill]] (%p2437_p2)  ;;  %s3892_s19 = scalar_lea.sflag (%p2437_p2), [#allocation5], %s748_s6 }
 0x72b   : >> { %2496 = vmatpush.bf16.msra.mxu0 %v4282_v45  ;;  %4314 = vmatpush.bf16.msra.mxu3 %v4282_v45  ;;  %v7857_v23 = vpack.c.bf16 %v7856_v33, %v6311_v60  ;;  %s7930_s20 = sld [smem:[#allocation46_spill]] (%p2437_p2) }
 0x72e   : >> { %4204 = vmatmul.msk.bf16.vlgmr.msra.gmra.mxu0 %vm955_vm0, %v7843_v44  ;;  %4209 = vmatmul.msk.bf16.vlgmr.msra.gmra.mxu3 %vm955_vm0, %v7846_v4 }
 0x731   : > { %s3903_s21 = scalar_lea.hbm (%p2437_p2), %s7930_s20, %s4256_s28  ;;  %s4743_s4 = scalar_lea.hbm (%p2437_p2), %s7930_s20, 8 }
 0x73e   : >> { %4205 = vmatmul.msk.bf16.gmra.mxu0 %vm955_vm0, %v7849_v6  ;;  %4210 = vmatmul.msk.bf16.gmra.mxu3 %vm955_vm0, %v7852_v27 }
 0x74e   : >> { %4206 = vmatmul.msk.bf16.gmra.mxu0 %vm955_vm0, %v7855_v21  ;;  %4211 = vmatmul.msk.bf16.gmra.mxu3 %vm955_vm0, %v7857_v23 }
 0x75e   : >> { %4207 = vmatmul.msk.bf16.gmra.mxu0 %vm955_vm0, %v7860_v29 }
 0x76e   : >> { %4208 = vmatmul.msk.bf16.gmra.mxu0 %vm955_vm0, %v7863_v24 }
 0x7ab   : >> { %v2498_v32 = vpop.f32.mrf.mxu0 }
 0x7ac   : >> { %v6365_v63 = vadd.f32 %v6362_v56, %v2498_v32 }
 0x7ae   : >> { %v6368_v53 = vmul.f32 0.70710677, %v6365_v63 }
 0x7b0   : >> { %v2570_v62 = vmul.f32 %v6368_v53, %v6368_v53 }
 0x7b1   : >> { %v2523_v34 = vpop.f32.mrf.mxu3 }
 0x7b2   : >> { %v6375_v41 = vmin.f32 %v2570_v62, 16.0  ;;  %v6413_v50 = vadd.f32 %v6362_v56, %v2523_v34 }
 0x7b3   : >> { %v2500_v9 = vpop.f32.mrf.mxu0 }
 0x7b4   : >> { %v6373_v49 = vadd.f32 %v6362_v56, %v2500_v9  ;;  %v2583_v20 = vmul.f32 3.8918573e-05, %v6375_v41  ;;  %v2572_v58 = vmul.f32 2.1237322e-06, %v6375_v41 }
 0x7b6   : >> { %v6378_v30 = vmul.f32 0.70710677, %v6373_v49  ;;  %v2584_v35 = vadd.f32 0.001143296, %v2583_v20 }
 0x7b8   : >> { %v2610_v15 = vmul.f32 %v6378_v30, %v6378_v30  ;;  %v2585_v0 = vmul.f32 %v2584_v35, %v6375_v41  ;;  %v6423_v35 = vmul.f32 0.70710677, %v6413_v50 }
 0x7ba   : >> { %v6386_v48 = vmin.f32 %v2610_v15, 16.0  ;;  %v2586_v31 = vadd.f32 0.014752088, %v2585_v0 }
 0x7bb   : >> { %v2503_v52 = vpop.f32.mrf.mxu0 }
 0x7bc   : >> { %v6384_v37 = vadd.f32 %v6362_v56, %v2503_v52  ;;  %v2623_v55 = vmul.f32 3.8918573e-05, %v6386_v48  ;;  %v2587_v43 = vmul.f32 %v2586_v31, %v6375_v41  ;;  %v2573_v52 = vadd.f32 0.00028619796, %v2572_v58 }
 0x7bd   : >> { %v2612_v20 = vmul.f32 2.1237322e-06, %v6386_v48 }
 0x7be   : >> { %v6389_v26 = vmul.f32 0.70710677, %v6384_v37  ;;  %v2624_v10 = vadd.f32 0.001143296, %v2623_v55  ;;  %v2588_v17 = vadd.f32 0.112945676, %v2587_v43 }
 0x7bf   : >> { %v2613_v43 = vadd.f32 0.00028619796, %v2612_v20 }
 0x7c0   : >> { %v2650_v61 = vmul.f32 %v6389_v26, %v6389_v26  ;;  %v2625_v54 = vmul.f32 %v2624_v10, %v6386_v48  ;;  %v2589_v45 = vmul.f32 %v2588_v17, %v6375_v41 }
 0x7c2   : >> { %v6401_v28 = vmin.f32 %v2650_v61, 16.0  ;;  %v2626_v46 = vadd.f32 0.014752088, %v2625_v54  ;;  %v2590_v0 = vadd.f32 0.4994258, %v2589_v45  ;;  %v2614_v45 = vmul.f32 %v2613_v43, %v6386_v48 }
 0x7c3   : >> { %v2505_v16 = vpop.f32.mrf.mxu0 }
 0x7c4   : >> { %v6392_v57 = vadd.f32 %v6362_v56, %v2505_v16  ;;  %v2663_v40 = vmul.f32 3.8918573e-05, %v6401_v28  ;;  %v2627_v32 = vmul.f32 %v2626_v46, %v6386_v48  ;;  %v2652_v46 = vmul.f32 2.1237322e-06, %v6401_v28 }
 0x7c6   : >> { %v6399_v38 = vmul.f32 0.70710677, %v6392_v57  ;;  %v2664_v11 = vadd.f32 0.001143296, %v2663_v40  ;;  %v2628_v55 = vadd.f32 0.112945676, %v2627_v32  ;;  %v2591_v40 = vmul.f32 %v2590_v0, %v6375_v41 }
 0x7c8   : >> { %v2690_v25 = vmul.f32 %v6399_v38, %v6399_v38  ;;  %v2665_v9 = vmul.f32 %v2664_v11, %v6401_v28  ;;  %v2629_v17 = vmul.f32 %v2628_v55, %v6386_v48 }
 0x7ca   : >> { %v6408_v22 = vmin.f32 %v2690_v25, 16.0  ;;  %v2666_v61 = vadd.f32 0.014752088, %v2665_v9  ;;  %v2574_v25 = vmul.f32 %v2573_v52, %v6375_v41  ;;  %v6453_v52 = vadd.f32 1.0, %v2591_v40 }
 0x7cb   : >> { %v2508_v5 = vpop.f32.mrf.mxu0  ;;  %v2630_v20 = vadd.f32 0.4994258, %v2629_v17 }
 0x7cc   : >> { %v2703_v12 = vmul.f32 3.8918573e-05, %v6408_v22  ;;  %v6419_v62 = vadd.f32 %v6362_v56, %v2508_v5  ;;  %v2970_v5 = vmul.f32 %v6423_v35, %v6423_v35  ;;  %v2667_v11 = vmul.f32 %v2666_v61, %v6401_v28  ;;  %v4288_v61 = vld [vmem:[%s6448_s3 + $0x18] sm:$0xff] }
 0x7cd   : >> { %v2575_v34 = vadd.f32 0.0036580483, %v2574_v25  ;;  %v2615_v25 = vadd.f32 0.0036580483, %v2614_v45  ;;  %3330 = vmatpush.bf16.msra.mxu1 %v4288_v61  ;;  %4315 = vmatpush.bf16.msra.mxu2 %v4288_v61  ;;  %4564 = vrcp.f32 %v6453_v52  ;;  %vm2598_vm11 = vweird.f32 %v6453_v52 }
 0x7ce   : >> { %v2704_v15 = vadd.f32 0.001143296, %v2703_v12  ;;  %v6426_v31 = vmul.f32 0.70710677, %v6419_v62  ;;  %v6451_v9 = vmin.f32 %v2970_v5, 16.0  ;;  %v2631_v5 = vmul.f32 %v2630_v20, %v6386_v48 }
 0x7cf   : >> { %v2576_v4 = vmul.f32 %v2575_v34, %v6375_v41  ;;  %v2616_v45 = vmul.f32 %v2615_v25, %v6386_v48 }
 0x7d0   : >> { %v2705_v54 = vmul.f32 %v2704_v15, %v6408_v22  ;;  %v2730_v58 = vmul.f32 %v6426_v31, %v6426_v31  ;;  %v2653_v15 = vadd.f32 0.00028619796, %v2652_v46  ;;  %v6472_v61 = vadd.f32 1.0, %v2631_v5 }
 0x7d1   : >> { %v2577_v34 = vadd.f32 0.05243302, %v2576_v4  ;;  %v2617_v27 = vadd.f32 0.05243302, %v2616_v45  ;;  %v2692_v5 = vmul.f32 2.1237322e-06, %v6408_v22 }
 0x7d2   : >> { %v2706_v32 = vadd.f32 0.014752088, %v2705_v54  ;;  %v6455_v0 = vmin.f32 %v2730_v58, 16.0  ;;  %v2983_v54 = vmul.f32 3.8918573e-05, %v6451_v9  ;;  %v2654_v40 = vmul.f32 %v2653_v15, %v6401_v28  ;;  %v4287_v58 = vld [vmem:[%s6448_s3 + $0x10] sm:$0xff] }
 0x7d3   : >> { %v2510_v16 = vpop.f32.mrf.mxu0  ;;  %3331 = vmatpush.bf16.msra.mxu1 %v4287_v58  ;;  %4316 = vmatpush.bf16.msra.mxu2 %v4287_v58  ;;  %v6475_v24 = vpop.eup %4564  ;;  %4566 = vrcp.f32 %v6472_v61  ;;  %v2693_v29 = vadd.f32 0.00028619796, %v2692_v5  ;;  %v2972_v44 = vmul.f32 2.1237322e-06, %v6451_v9  ;;  %vm2638_vm14 = vweird.f32 %v6472_v61 }
 0x7d4   : >> { %v6429_v10 = vadd.f32 %v6362_v56, %v2510_v16  ;;  %v2668_v16 = vadd.f32 0.112945676, %v2667_v11  ;;  %v2707_v43 = vmul.f32 %v2706_v32, %v6408_v22  ;;  %v2743_v46 = vmul.f32 3.8918573e-05, %v6455_v0 }
 0x7d5   : >> { %v2984_v6 = vadd.f32 0.001143296, %v2983_v54  ;;  %v2655_v21 = vadd.f32 0.0036580483, %v2654_v40  ;;  %vm2599_vm10 = vweird.f32 %v6475_v24 }
 0x7d6   : >> { %v6443_v12 = vmul.f32 0.70710677, %v6429_v10  ;;  %v2669_v17 = vmul.f32 %v2668_v16, %v6401_v28  ;;  %v2708_v32 = vadd.f32 0.112945676, %v2707_v43  ;;  %v2744_v15 = vadd.f32 0.001143296, %v2743_v46  ;;  %vm6552_vm13 = vmor %vm2598_vm11, %vm2599_vm10 }
 0x7d7   : >> { %v2985_v25 = vmul.f32 %v2984_v6, %v6451_v9  ;;  %v2656_v54 = vmul.f32 %v2655_v21, %v6401_v28  ;;  %v2618_v6 = vmul.f32 %v2617_v27, %v6386_v48  ;;  %3332 = vmatpush.bf16.msra.mxu1 %v4286_v3  ;;  %4317 = vmatpush.bf16.msra.mxu2 %v4286_v3 }
 0x7d8   : >> { %v2770_v55 = vmul.f32 %v6443_v12, %v6443_v12  ;;  %v2670_v23 = vadd.f32 0.4994258, %v2669_v17  ;;  %v2709_v4 = vmul.f32 %v2708_v32, %v6408_v22  ;;  %v2594_v17 = vmul.f32 %v6475_v24, %v6453_v52 }
 0x7d9   : >> { %v2745_v58 = vmul.f32 %v2744_v15, %v6455_v0  ;;  %v2986_v32 = vadd.f32 0.014752088, %v2985_v25  ;;  %v6504_v25 = vmul.f32 0.5, %v6365_v63 }
 0x7da   : >> { %v6468_v11 = vmin.f32 %v2770_v55, 16.0  ;;  %v2578_v55 = vmul.f32 %v2577_v34, %v6375_v41  ;;  %v2671_v46 = vmul.f32 %v2670_v23, %v6401_v28  ;;  %v2710_v45 = vadd.f32 0.4994258, %v2709_v4  ;;  %v6501_v4 = vpop.eup %4566 }
 0x7db   : >> { %v2513_v20 = vpop.f32.mrf.mxu0  ;;  %v2595_v1 = vsub.f32 1.0, %v2594_v17  ;;  %v2746_v23 = vadd.f32 0.014752088, %v2745_v58  ;;  %v2987_v58 = vmul.f32 %v2986_v32, %v6451_v9  ;;  %vm2639_vm1 = vweird.f32 %v6501_v4 }
 0x7dc   : >> { %v2783_v16 = vmul.f32 3.8918573e-05, %v6468_v11  ;;  %v6481_v43 = vadd.f32 %v6362_v56, %v2513_v20  ;;  %v2579_v34 = vadd.f32 0.18741608, %v2578_v55  ;;  %v6496_v2 = vadd.f32 1.0, %v2671_v46  ;;  %vm6600_vm2 = vmor %vm2638_vm14, %vm2639_vm1 }
 0x7dd   : >> { %v2619_v55 = vadd.f32 0.18741608, %v2618_v6  ;;  %v2711_v27 = vmul.f32 %v2710_v45, %v6408_v22  ;;  %v2973_v46 = vadd.f32 0.00028619796, %v2972_v44  ;;  %v2596_v63 = vmul.f32 %v6475_v24, %v2595_v1  ;;  %v2525_v6 = vpop.f32.mrf.mxu3  ;;  %v4285_v45 = vld [vmem:[%s6448_s3] sm:$0xff] }
 0x7de   : >> { %v2784_v40 = vadd.f32 0.001143296, %v2783_v16  ;;  %v6493_v20 = vmul.f32 0.70710677, %v6481_v43  ;;  %v2657_v16 = vadd.f32 0.05243302, %v2656_v54  ;;  %v2580_v15 = vmul.f32 %v2579_v34, %v6375_v41  ;;  %3333 = vmatpush.bf16.msra.mxu1 %v4285_v45  ;;  %4318 = vmatpush.bf16.msra.mxu2 %v4285_v45 }
 0x7df   : >> { %v6507_v54 = vmul.f32 0.5, %v6373_v49  ;;  %v6512_v41 = vmul.f32 0.5, %v6384_v37  ;;  %4568 = vrcp.f32 %v6496_v2  ;;  %v2694_v49 = vmul.f32 %v2693_v29, %v6408_v22 }
 0x7e0   : >> { %v2785_v21 = vmul.f32 %v2784_v40, %v6468_v11  ;;  %v2810_v40 = vmul.f32 %v6493_v20, %v6493_v20  ;;  %v2658_v17 = vmul.f32 %v2657_v16, %v6401_v28  ;;  %v2747_v34 = vmul.f32 %v2746_v23, %v6455_v0 }
 0x7e1   : >> { %v2620_v3 = vmul.f32 %v2619_v55, %v6386_v48  ;;  %v2634_v37 = vmul.f32 %v6501_v4, %v6472_v61  ;;  %v6524_v16 = vadd.f32 1.0, %v2711_v27  ;;  %v2602_v44 = vand.u32 2147483647, %v6453_v52 }
 0x7e2   : >> { %v2786_v5 = vadd.f32 0.014752088, %v2785_v21  ;;  %v2581_v21 = vadd.f32 1.1283791, %v2580_v15  ;;  %v2604_v1 = vand.u32 2147483648, %v6453_v52  ;;  %v6529_v7 = vmin.f32 %v2810_v40, 16.0 }
 0x7e3   : >> { %v6533_v29 = vmul.f32 0.5, %v6392_v57  ;;  %v2974_v48 = vmul.f32 %v2973_v46, %v6451_v9  ;;  %v6537_v23 = vadd.f32 %v6362_v56, %v2525_v6  ;;  %v2597_v15 = vadd.f32 %v6475_v24, %v2596_v63  ;;  %v2515_v19 = vpop.f32.mrf.mxu0 }
 0x7e4   : >> { %v2787_v32 = vmul.f32 %v2786_v5, %v6468_v11  ;;  %v2659_v55 = vadd.f32 0.18741608, %v2658_v17  ;;  %v2695_v27 = vadd.f32 0.0036580483, %v2694_v49  ;;  %v2748_v13 = vadd.f32 0.112945676, %v2747_v34 }
 0x7e5   : >> { %v2621_v5 = vadd.f32 1.1283791, %v2620_v3  ;;  %v2635_v40 = vsub.f32 1.0, %v2634_v37  ;;  %4570 = vrcp.f32 %v6524_v16  ;;  %v6542_v45 = vpop.eup %4568  ;;  %vm6544_vm12 = vcmp.eq.f32.partialorder %v2602_v44, 8.507059e+37 }
 0x7e6   : >> { %v2605_v46 = vor.u32 1.1754944e-38, %v2604_v1  ;;  %v2788_v6 = vadd.f32 0.112945676, %v2787_v32  ;;  %v2823_v14 = vmul.f32 3.8918573e-05, %v6529_v7  ;;  %v2582_v17 = vmul.f32 %v2581_v21, %v6368_v53 }
 0x7e7   : >> { %v2642_v63 = vand.u32 2147483647, %v6472_v61  ;;  %v2975_v49 = vadd.f32 0.0036580483, %v2974_v48  ;;  %v2732_v34 = vmul.f32 2.1237322e-06, %v6455_v0  ;;  %v2601_v3 = vsel %vm6552_vm13, %v6475_v24, %v2597_v15 }
 0x7e8   : >> { %v2660_v37 = vmul.f32 %v2659_v55, %v6401_v28  ;;  %v2696_v44 = vmul.f32 %v2695_v27, %v6408_v22  ;;  %v2749_v53 = vmul.f32 %v2748_v13, %v6455_v0  ;;  %v6565_v21 = vmul.f32 %v2621_v5, %v6378_v30 }
 0x7e9   : >> { %v2636_v1 = vmul.f32 %v6501_v4, %v2635_v40  ;;  %v2674_v32 = vmul.f32 %v6542_v45, %v6496_v2  ;;  %v2988_v48 = vadd.f32 0.112945676, %v2987_v58  ;;  %v2644_v52 = vand.u32 2147483648, %v6472_v61 }
 0x7ea   : >> { %v2789_v24 = vmul.f32 %v2788_v6, %v6468_v11  ;;  %v2824_v28 = vadd.f32 0.001143296, %v2823_v14  ;;  %v2606_v13 = vsel %vm6544_vm12, %v2605_v46, %v2601_v3  ;;  %vm6577_vm15 = vcmp.eq.f32.partialorder %v2642_v63, 8.507059e+37 }
 0x7eb   : >> { %v6573_v15 = vpop.eup %4570  ;;  %v2976_v55 = vmul.f32 %v2975_v49, %v6451_v9  ;;  %v2733_v27 = vadd.f32 0.00028619796, %v2732_v34  ;;  %v2661_v58 = vadd.f32 1.1283791, %v2660_v37  ;;  %v2697_v5 = vadd.f32 0.05243302, %v2696_v44 }
 0x7ec   : >> { %v2750_v40 = vadd.f32 0.4994258, %v2749_v53  ;;  %v2637_v6 = vadd.f32 %v6501_v4, %v2636_v1  ;;  %v2675_v14 = vsub.f32 1.0, %v2674_v32  ;;  %v6585_v18 = vmul.f32 0.70710677, %v6537_v23 }
 0x7ed   : >> { %v2772_v57 = vmul.f32 2.1237322e-06, %v6468_v11  ;;  %v2714_v46 = vmul.f32 %v6573_v15, %v6524_v16  ;;  %v2989_v63 = vmul.f32 %v2988_v48, %v6451_v9  ;;  %v2790_v49 = vadd.f32 0.4994258, %v2789_v24 }
 0x7ee   : >> { %v2825_v34 = vmul.f32 %v2824_v28, %v6529_v7  ;;  %v2607_v3 = vmul.f32 %v2606_v13, %v2582_v17  ;;  %v2645_v37 = vor.u32 1.1754944e-38, %v2644_v52  ;;  %v6593_v44 = vmul.f32 0.5, %v6419_v62 }
 0x7ef   : >> { %v2734_v53 = vmul.f32 %v2733_v27, %v6455_v0  ;;  %v6605_v32 = vmul.f32 %v2661_v58, %v6389_v26  ;;  %v2698_v48 = vmul.f32 %v2697_v5, %v6408_v22  ;;  %v2977_v17 = vadd.f32 0.05243302, %v2976_v55 }
 0x7f0   : >> { %v2751_v52 = vmul.f32 %v2750_v40, %v6455_v0  ;;  %v2641_v62 = vsel %vm6600_vm2, %v6501_v4, %v2637_v6  ;;  %v2676_v24 = vmul.f32 %v6542_v45, %v2675_v14  ;;  %v3010_v61 = vmul.f32 %v6585_v18, %v6585_v18 }
 0x7f1   : >> { %v2773_v28 = vadd.f32 0.00028619796, %v2772_v57  ;;  %v2715_v13 = vsub.f32 1.0, %v2714_v46  ;;  %v2990_v27 = vadd.f32 0.4994258, %v2989_v63  ;;  %v2791_v26 = vmul.f32 %v2790_v49, %v6468_v11 }
 0x7f2   : >> { %v2826_v58 = vadd.f32 0.014752088, %v2825_v34  ;;  %v4212_v5 = vclamps-f32 %v2607_v3, 1.0  ;;  %v2682_v55 = vand.u32 2147483647, %v6496_v2  ;;  %v2684_v40 = vand.u32 2147483648, %v6496_v2 }
 0x7f3   : >> { %v2735_v33 = vadd.f32 0.0036580483, %v2734_v53  ;;  %v2646_v4 = vsel %vm6577_vm15, %v2645_v37, %v2641_v62  ;;  %vm2679_vm3 = vweird.f32 %v6542_v45  ;;  %v2699_v6 = vadd.f32 0.18741608, %v2698_v48 }
 0x7f4   : >> { %v6621_v14 = vadd.f32 1.0, %v2751_v52  ;;  %v2677_v57 = vadd.f32 %v6542_v45, %v2676_v24  ;;  %v6624_v46 = vmin.f32 %v3010_v61, 16.0  ;;  %v2774_v63 = vmul.f32 %v2773_v28, %v6468_v11 }
 0x7f5   : >> { %v6628_v49 = vadd.f32 %v6362_v56, %v2515_v19  ;;  %v2716_v34 = vmul.f32 %v6573_v15, %v2715_v13  ;;  %v6632_v3 = vmul.f32 %v2977_v17, %v6451_v9  ;;  %v6634_v30 = vadd.f32 1.0, %v2791_v26 }
 0x7f6   : >> { %v2827_v37 = vmul.f32 %v2826_v58, %v6529_v7  ;;  %v3210_v53 = vadd.f32 1.0, %v4212_v5  ;;  %vm2678_vm4 = vweird.f32 %v6496_v2  ;;  %vm6638_vm5 = vcmp.eq.f32.partialorder %v2682_v55, 8.507059e+37  ;;  %v2528_v55 = vpop.f32.mrf.mxu3 }
 0x7f7   : >> { %v2736_v48 = vmul.f32 %v2735_v33, %v6455_v0  ;;  %v2647_v19 = vmul.f32 %v2646_v4, %v6565_v21  ;;  %vm6646_vm6 = vmor %vm2678_vm4, %vm2679_vm3  ;;  %v2685_v52 = vor.u32 1.1754944e-38, %v2684_v40  ;;  %v2700_v62 = vmul.f32 %v2699_v6, %v6408_v22 }
 0x7f8   : >> { %4572 = vrcp.f32 %v6621_v14  ;;  %v2681_v2 = vsel %vm6646_vm6, %v6542_v45, %v2677_v57  ;;  %v3023_v24 = vmul.f32 3.8918573e-05, %v6624_v46  ;;  %v2775_v33 = vadd.f32 0.0036580483, %v2774_v63 }
 0x7f9   : >> { %v6657_v21 = vmul.f32 0.70710677, %v6628_v49  ;;  %v2717_v61 = vadd.f32 %v6573_v15, %v2716_v34  ;;  %vm2719_vm7 = vweird.f32 %v6573_v15  ;;  %4574 = vrcp.f32 %v6634_v30 }
 0x7fa   : >> { %v2828_v28 = vadd.f32 0.112945676, %v2827_v37  ;;  %v2722_v22 = vand.u32 2147483647, %v6524_v16  ;;  %v2724_v13 = vand.u32 2147483648, %v6524_v16  ;;  %v2686_v58 = vsel %vm6638_vm5, %v2685_v52, %v2681_v2 }
 0x7fb   : >> { %v2737_v26 = vadd.f32 0.05243302, %v2736_v48  ;;  %v2850_v45 = vmul.f32 %v6657_v21, %v6657_v21  ;;  %vm2718_vm8 = vweird.f32 %v6524_v16  ;;  %v2991_v5 = vmul.f32 %v2990_v27, %v6451_v9 }
 0x7fc   : >> { %v2812_v40 = vmul.f32 2.1237322e-06, %v6529_v7  ;;  %v6672_v4 = vmul.f32 %v3210_v53, %v6504_v25  ;;  %vm6674_vm9 = vmor %vm2718_vm8, %vm2719_vm7  ;;  %v3024_v57 = vadd.f32 0.001143296, %v3023_v24  ;;  %v2776_v63 = vmul.f32 %v2775_v33, %v6468_v11 }
 0x7fd   : >> { %v6679_v34 = vmin.f32 %v2850_v45, 16.0  ;;  %v4213_v16 = vclamps-f32 %v2647_v19, 1.0  ;;  %v2701_v1 = vadd.f32 1.1283791, %v2700_v62  ;;  %v2721_v27 = vsel %vm6674_vm9, %v6573_v15, %v2717_v61 }
 0x7fe   : >> { %v6681_v37 = vpop.eup %4572  ;;  %v2829_v25 = vmul.f32 %v2828_v28, %v6529_v7  ;;  %v2687_v53 = vmul.f32 %v2686_v58, %v6605_v32  ;;  %vm2723_vm10 = vcmp.eq.f32.partialorder %v2722_v22, 8.507059e+37  ;;  %v2725_v48 = vor.u32 1.1754944e-38, %v2724_v13 }
 0x7ff   : >> { %v2738_v17 = vmul.f32 %v2737_v26, %v6455_v0  ;;  %v6689_v52 = vpop.eup %4574  ;;  %v3012_v2 = vmul.f32 2.1237322e-06, %v6624_v46  ;;  %v6693_v24 = vadd.f32 %v6362_v56, %v2528_v55  ;;  %v2813_v19 = vadd.f32 0.00028619796, %v2812_v40 }
 0x800   : >> { %v2863_v62 = vmul.f32 3.8918573e-05, %v6679_v34  ;;  %v2726_v33 = vsel %vm2723_vm10, %v2725_v48, %v2721_v27  ;;  %v2754_v15 = vmul.f32 %v6681_v37, %v6621_v14  ;;  %v3025_v32 = vmul.f32 %v3024_v57, %v6624_v46 }
 0x801   : >> { %v2777_v61 = vadd.f32 0.05243302, %v2776_v63  ;;  %v2702_v28 = vmul.f32 %v2701_v1, %v6399_v38  ;;  %v2830_v22 = vadd.f32 0.4994258, %v2829_v25  ;;  %v2852_v13 = vmul.f32 2.1237322e-06, %v6679_v34 }
 0x802   : >> { %v2864_v26 = vadd.f32 0.001143296, %v2863_v62  ;;  %v3211_v45 = vadd.f32 1.0, %v4213_v16  ;;  %v4214_v58 = vclamps-f32 %v2687_v53, 1.0  ;;  %v2739_v55 = vadd.f32 0.18741608, %v2738_v17  ;;  %v2530_v53 = vpop.f32.mrf.mxu3 }
 0x803   : >> { %v2794_v40 = vmul.f32 %v6689_v52, %v6634_v30  ;;  %v2727_v6 = vmul.f32 %v2726_v33, %v2702_v28  ;;  %v3013_v27 = vadd.f32 0.00028619796, %v3012_v2  ;;  %v2814_v48 = vmul.f32 %v2813_v19, %v6529_v7 }
 0x804   : >> { %v2865_v36 = vmul.f32 %v2864_v26, %v6679_v34  ;;  %v6705_v57 = vadd.f32 1.0, %v2991_v5  ;;  %v2755_v63 = vsub.f32 1.0, %v2754_v15  ;;  %v3026_v38 = vadd.f32 0.014752088, %v3025_v32 }
 0x805   : >> { %v6708_v1 = vmul.f32 0.70710677, %v6693_v24  ;;  %v2778_v16 = vmul.f32 %v2777_v61, %v6468_v11  ;;  %v2831_v25 = vmul.f32 %v2830_v22, %v6529_v7  ;;  %v2853_v17 = vadd.f32 0.00028619796, %v2852_v13  ;;  %v2518_v13 = vpop.f32.mrf.mxu0 }
 0x806   : >> { %v2866_v62 = vadd.f32 0.014752088, %v2865_v36  ;;  %v3227_v2 = vmul.f32 %v3211_v45, %v6507_v54  ;;  %v6713_v33 = vadd.f32 1.0, %v4214_v58  ;;  %v2740_v19 = vmul.f32 %v2739_v55, %v6455_v0 }
 0x807   : >> { %v2795_v5 = vsub.f32 1.0, %v2794_v40  ;;  %v4215_v28 = vclamps-f32 %v2727_v6, 1.0  ;;  %v6717_v15 = vmul.f32 %v3013_v27, %v6624_v46  ;;  %v2815_v32 = vadd.f32 0.0036580483, %v2814_v48 }
 0x808   : >> { %v2867_v26 = vmul.f32 %v2866_v62, %v6679_v34  ;;  %v2756_v61 = vmul.f32 %v6681_v37, %v2755_v63  ;;  %v3027_v22 = vmul.f32 %v3026_v38, %v6624_v46  ;;  %v3050_v36 = vmul.f32 %v6708_v1, %v6708_v1 }
 0x809   : >> { %v6725_v54 = vadd.f32 %v6362_v56, %v2530_v53  ;;  %v2779_v0 = vadd.f32 0.18741608, %v2778_v16  ;;  %v6727_v45 = vadd.f32 1.0, %v2831_v25  ;;  %v2854_v58 = vmul.f32 %v2853_v17, %v6679_v34 }
 0x80a   : >> { %v2868_v55 = vadd.f32 0.112945676, %v2867_v26  ;;  %v2741_v40 = vadd.f32 1.1283791, %v2740_v19  ;;  %vm2758_vm11 = vweird.f32 %v6621_v14  ;;  %v2762_v6 = vand.u32 2147483647, %v6621_v14 }
 0x80b   : >> { %v2796_v27 = vmul.f32 %v6689_v52, %v2795_v5  ;;  %v2764_v48 = vand.u32 2147483648, %v6621_v14  ;;  %v2816_v63 = vmul.f32 %v2815_v32, %v6529_v7  ;;  %v6736_v38 = vadd.f32 %v6362_v56, %v2518_v13 }
 0x80c   : >> { %v3242_v16 = vpack.c.bf16 %v3227_v2, %v6672_v4  ;;  %v2757_v25 = vadd.f32 %v6681_v37, %v2756_v61  ;;  %vm2759_vm12 = vweird.f32 %v6681_v37  ;;  %v6741_v53 = vmin.f32 %v3050_v36, 16.0 }
 0x80d   : >> { %v2869_v17 = vmul.f32 %v2868_v55, %v6679_v34  ;;  %v2780_v62 = vmul.f32 %v2779_v0, %v6468_v11  ;;  %4576 = vrcp.f32 %v6727_v45  ;;  %v6747_v19 = vmul.f32 0.70710677, %v6725_v54  ;;  %vm6753_vm15 = vmor %vm2758_vm11, %vm2759_vm12 }
 0x80e   : >> { %v2855_v5 = vadd.f32 0.0036580483, %v2854_v58  ;;  %v2797_v32 = vadd.f32 %v6689_v52, %v2796_v27  ;;  %vm2799_vm13 = vweird.f32 %v6689_v52  ;;  %vm3301_vm14 = vcmask 523264  }
 0x80f   : >> { %v2870_v4 = vadd.f32 0.4994258, %v2869_v17  ;;  %v3213_v2 = vadd.f32 1.0, %v4215_v28  ;;  %v2804_v11 = vand.u32 2147483648, %v6634_v30  ;;  %v2817_v61 = vadd.f32 0.05243302, %v2816_v63  ;;  %4246 = vmatmul.msk.bf16.vlgmr.msra.gmra.mxu1 %vm3301_vm14, %v3242_v16 }
 0x810   : >> { %v6759_v36 = vmul.f32 0.70710677, %v6736_v38  ;;  %v2761_v13 = vsel %vm6753_vm15, %v6681_v37, %v2757_v25  ;;  %vm2798_vm1 = vweird.f32 %v6634_v30  ;;  %v2802_v14 = vand.u32 2147483647, %v6634_v30 }
 0x811   : >> { %v2871_v28 = vmul.f32 %v2870_v4, %v6679_v34  ;;  %vm2763_vm2 = vcmp.eq.f32.partialorder %v2762_v6, 8.507059e+37  ;;  %v2765_v0 = vor.u32 1.1754944e-38, %v2764_v48  ;;  %vm6770_vm3 = vmor %vm2798_vm1, %vm2799_vm13  ;;  %v3063_v55 = vmul.f32 3.8918573e-05, %v6741_v53 }
 0x812   : >> { %v2856_v27 = vmul.f32 %v2855_v5, %v6679_v34  ;;  %v2781_v63 = vadd.f32 1.1283791, %v2780_v62  ;;  %v2801_v37 = vsel %vm6770_vm3, %v6689_v52, %v2797_v32  ;;  %v2890_v6 = vmul.f32 %v6759_v36, %v6759_v36  ;;  %v2533_v5 = vpop.f32.mrf.mxu3 }
 0x813   : >> { %v6779_v30 = vadd.f32 1.0, %v2871_v28  ;;  %v6783_v48 = vpop.eup %4576  ;;  %v2766_v16 = vsel %vm2763_vm2, %v2765_v0, %v2761_v13  ;;  %v2805_v25 = vor.u32 1.1754944e-38, %v2804_v11  ;;  %v2818_v17 = vmul.f32 %v2817_v61, %v6529_v7 }
 0x814   : >> { %v3090_v4 = vmul.f32 %v6747_v19, %v6747_v19  ;;  %v2742_v62 = vmul.f32 %v2741_v40, %v6426_v31  ;;  %v3028_v26 = vadd.f32 0.112945676, %v3027_v22  ;;  %vm2803_vm4 = vcmp.eq.f32.partialorder %v2802_v14, 8.507059e+37  ;;  %v2520_v14 = vpop.f32.mrf.mxu0 }
 0x815   : >> { %4578 = vrcp.f32 %v6779_v30  ;;  %v2806_v52 = vsel %vm2803_vm4, %v2805_v25, %v2801_v37  ;;  %v3064_v32 = vadd.f32 0.001143296, %v3063_v55  ;;  %v2857_v28 = vadd.f32 0.05243302, %v2856_v27 }
 0x816   : >> { %v6790_v58 = vmin.f32 %v2890_v6, 16.0  ;;  %v6793_v13 = vadd.f32 0.18741608, %v6632_v3  ;;  %v2767_v11 = vmul.f32 %v2766_v16, %v2742_v62  ;;  %v2782_v61 = vmul.f32 %v2781_v63, %v6443_v12 }
 0x817   : >> { %v2834_v0 = vmul.f32 %v6783_v48, %v6727_v45  ;;  %v3229_v31 = vmul.f32 %v3213_v2, %v6533_v29  ;;  %4580 = vrcp.f32 %v6705_v57  ;;  %v2819_v22 = vadd.f32 0.18741608, %v2818_v17 }
 0x818   : >> { %v6800_v40 = vmin.f32 %v3090_v4, 16.0  ;;  %v3015_v55 = vadd.f32 0.0036580483, %v6717_v15  ;;  %v3029_v27 = vmul.f32 %v3028_v26, %v6624_v46  ;;  %v2807_v3 = vmul.f32 %v2806_v52, %v2782_v61 }
 0x819   : >> { %v2903_v37 = vmul.f32 3.8918573e-05, %v6790_v58  ;;  %v3228_v12 = vmul.f32 %v6713_v33, %v6512_v41  ;;  %v2543_v63 = vmul.f32 0.5, %v6429_v10  ;;  %v3065_v29 = vmul.f32 %v3064_v32, %v6741_v53 }
 0x81a   : >> { %v2858_v2 = vmul.f32 %v2857_v28, %v6679_v34  ;;  %v4216_v16 = vclamps-f32 %v2767_v11, 1.0  ;;  %v2835_v25 = vsub.f32 1.0, %v2834_v0  ;;  %v6813_v15 = vadd.f32 %v6362_v56, %v2520_v14 }
 0x81b   : >> { %v6810_v6 = vpop.eup %4578  ;;  %v2904_v17 = vadd.f32 0.001143296, %v2903_v37  ;;  %v2820_v4 = vmul.f32 %v2819_v22, %v6529_v7  ;;  %v3103_v62 = vmul.f32 3.8918573e-05, %v6800_v40  ;;  %v3243_v10 = vpack.c.bf16 %v3229_v31, %v3228_v12  ;;  %v2535_v22 = vpop.f32.mrf.mxu3 }
 0x81c   : >> { %v2874_v41 = vmul.f32 %v6810_v6, %v6779_v30  ;;  %v6820_v33 = vmul.f32 %v3015_v55, %v6624_v46  ;;  %v6822_v26 = vadd.f32 0.4994258, %v3029_v27  ;;  %v4217_v52 = vclamps-f32 %v2807_v3, 1.0 }
 0x81d   : >> { %v2905_v32 = vmul.f32 %v2904_v17, %v6790_v58  ;;  %v6825_v28 = vpop.eup %4580  ;;  %v6827_v11 = vadd.f32 0.014752088, %v3065_v29  ;;  %v2859_v61 = vadd.f32 0.18741608, %v2858_v2  ;;  %v6830_v0 = vadd.f32 %v6362_v56, %v2533_v5 }
 0x81e   : >> { %v2875_v7 = vsub.f32 1.0, %v2874_v41  ;;  %v3214_v14 = vadd.f32 1.0, %v4216_v16  ;;  %v2836_v31 = vmul.f32 %v6783_v48, %v2835_v25  ;;  %v6834_v27 = vmul.f32 0.70710677, %v6813_v15 }
 0x81f   : >> { %v2906_v55 = vadd.f32 0.014752088, %v2905_v32  ;;  %v2821_v3 = vadd.f32 1.1283791, %v2820_v4  ;;  %v3104_v37 = vadd.f32 0.001143296, %v3103_v62  ;;  %4247 = vmatmul.msk.bf16.gmra.mxu1 %vm3301_vm14, %v3243_v10  ;;  %v6842_v16 = vadd.f32 %v6362_v56, %v2535_v22 }
 0x820   : >> { %v2876_v12 = vmul.f32 %v6810_v6, %v2875_v7  ;;  %v2892_v29 = vmul.f32 2.1237322e-06, %v6790_v58  ;;  %v3215_v2 = vadd.f32 1.0, %v4217_v52  ;;  %v2844_v5 = vand.u32 2147483648, %v6727_v45 }
 0x821   : >> { %v2907_v17 = vmul.f32 %v2906_v55, %v6790_v58  ;;  %v2860_v25 = vmul.f32 %v2859_v61, %v6679_v34  ;;  %vm2879_vm5 = vweird.f32 %v6810_v6  ;;  %v6848_v4 = vmul.f32 0.70710677, %v6830_v0 }
 0x822   : >> { %v2877_v41 = vadd.f32 %v6810_v6, %v2876_v12  ;;  %v2837_v62 = vadd.f32 %v6783_v48, %v2836_v31  ;;  %vm2839_vm6 = vweird.f32 %v6783_v48  ;;  %v2884_v10 = vand.u32 2147483648, %v6779_v30 }
 0x823   : >> { %v2930_v52 = vmul.f32 %v6834_v27, %v6834_v27  ;;  %vm2878_vm7 = vweird.f32 %v6779_v30  ;;  %v2882_v56 = vand.u32 2147483647, %v6779_v30  ;;  %v2893_v34 = vadd.f32 0.00028619796, %v2892_v29 }
 0x824   : >> { %v2908_v32 = vadd.f32 0.112945676, %v2907_v17  ;;  %vm2838_vm8 = vweird.f32 %v6727_v45  ;;  %v2842_v61 = vand.u32 2147483647, %v6727_v45  ;;  %v3105_v7 = vmul.f32 %v3104_v37, %v6800_v40  ;;  %vm6860_vm9 = vmor %vm2878_vm7, %vm2879_vm5 }
 0x825   : >> { %v6865_v31 = vmul.f32 0.70710677, %v6842_v16  ;;  %v2845_v55 = vor.u32 1.1754944e-38, %v2844_v5  ;;  %v2861_v12 = vadd.f32 1.1283791, %v2860_v25  ;;  %v2881_v30 = vsel %vm6860_vm9, %v6810_v6, %v2877_v41  ;;  %vm6873_vm10 = vmor %vm2838_vm8, %vm2839_vm6 }
 0x826   : >> { %v2909_v29 = vmul.f32 %v2908_v32, %v6790_v58  ;;  %v3231_v17 = vmul.f32 %v3215_v2, %v2543_v63  ;;  %v2885_v37 = vor.u32 1.1754944e-38, %v2884_v10  ;;  %v3130_v39 = vmul.f32 %v6848_v4, %v6848_v4 }
 0x827   : >> { %v6879_v42 = vmin.f32 %v2930_v52, 16.0  ;;  %v2841_v5 = vsel %vm6873_vm10, %v6783_v48, %v2837_v62  ;;  %vm2883_vm11 = vcmp.eq.f32.partialorder %v2882_v56, 8.507059e+37  ;;  %v2894_v6 = vmul.f32 %v2893_v34, %v6790_v58 }
 0x828   : >> { %v2910_v63 = vadd.f32 0.4994258, %v2909_v29  ;;  %v2886_v2 = vsel %vm2883_vm11, %v2885_v37, %v2881_v30  ;;  %v3170_v25 = vmul.f32 %v6865_v31, %v6865_v31  ;;  %v3230_v32 = vmul.f32 %v3214_v14, %v6593_v44 }
 0x829   : >> { %v2932_v41 = vmul.f32 2.1237322e-06, %v6879_v42  ;;  %v2943_v10 = vmul.f32 3.8918573e-05, %v6879_v42  ;;  %v2822_v52 = vmul.f32 %v2821_v3, %v6493_v20  ;;  %vm2843_vm12 = vcmp.eq.f32.partialorder %v2842_v61, 8.507059e+37 }
 0x82a   : >> { %v2862_v22 = vmul.f32 %v2861_v12, %v6657_v21  ;;  %v2846_v48 = vsel %vm2843_vm12, %v2845_v55, %v2841_v5  ;;  %v6892_v62 = vmin.f32 %v3130_v39, 16.0  ;;  %v2911_v56 = vmul.f32 %v2910_v63, %v6790_v58 }
 0x82b   : >> { %v2933_v34 = vadd.f32 0.00028619796, %v2932_v41  ;;  %v2895_v29 = vadd.f32 0.0036580483, %v2894_v6  ;;  %v2944_v45 = vadd.f32 0.001143296, %v2943_v10  ;;  %v3244_v37 = vpack.c.bf16 %v3231_v17, %v3230_v32 }
 0x82c   : >> { %v2887_v30 = vmul.f32 %v2886_v2, %v2862_v22  ;;  %v3106_v47 = vadd.f32 0.014752088, %v3105_v7  ;;  %v6895_v51 = vadd.f32 1.0, %v2911_v56  ;;  %v6897_v59 = vmin.f32 %v3170_v25, 16.0 }
 0x82d   : >> { %v2934_v20 = vmul.f32 %v2933_v34, %v6879_v42  ;;  %v2980_v44 = vmul.f32 %v6793_v13, %v6451_v9  ;;  %v3031_v39 = vmul.f32 %v6822_v26, %v6624_v46  ;;  %v2847_v21 = vmul.f32 %v2846_v48, %v2822_v52 }
 0x82e   : >> { %v2945_v14 = vmul.f32 %v2944_v45, %v6879_v42  ;;  %v2994_v3 = vmul.f32 %v6825_v28, %v6705_v57  ;;  %v3002_v61 = vand.u32 2147483647, %v6705_v57  ;;  %v3067_v7 = vmul.f32 %v6827_v11, %v6741_v53 }
 0x82f   : >> { %4582 = vrcp.f32 %v6895_v51  ;;  %v3017_v55 = vadd.f32 0.05243302, %v6820_v33  ;;  %v4219_v12 = vclamps-f32 %v2887_v30, 1.0  ;;  %v3143_v9 = vmul.f32 3.8918573e-05, %v6892_v62  ;;  %4248 = vmatmul.msk.bf16.gmra.mxu1 %vm3301_vm14, %v3244_v37 }
 0x830   : >> { %v2896_v13 = vmul.f32 %v2895_v29, %v6790_v58  ;;  %v3107_v26 = vmul.f32 %v3106_v47, %v6800_v40  ;;  %v3183_v17 = vmul.f32 3.8918573e-05, %v6897_v59  ;;  %v2935_v5 = vadd.f32 0.0036580483, %v2934_v20 }
 0x831   : >> { %v2946_v6 = vadd.f32 0.014752088, %v2945_v14  ;;  %v2981_v63 = vadd.f32 1.1283791, %v2980_v44  ;;  %v3004_v11 = vand.u32 2147483648, %v6705_v57  ;;  %v6918_v2 = vadd.f32 1.0, %v3031_v39 }
 0x832   : >> { %v4218_v25 = vclamps-f32 %v2847_v21, 1.0  ;;  %v2995_v33 = vsub.f32 1.0, %v2994_v3  ;;  %v3052_v41 = vmul.f32 2.1237322e-06, %v6741_v53  ;;  %v3068_v10 = vadd.f32 0.112945676, %v3067_v7 }
 0x833   : >> { %v2947_v32 = vmul.f32 %v2946_v6, %v6879_v42  ;;  %vm2998_vm13 = vweird.f32 %v6705_v57  ;;  %v3018_v47 = vmul.f32 %v3017_v55, %v6624_v46  ;;  %v3217_v52 = vadd.f32 1.0, %v4219_v12 }
 0x834   : >> { %v3144_v22 = vadd.f32 0.001143296, %v3143_v9  ;;  %v2897_v48 = vadd.f32 0.05243302, %v2896_v13  ;;  %v3108_v34 = vadd.f32 0.112945676, %v3107_v26  ;;  %v2936_v29 = vmul.f32 %v2935_v5, %v6879_v42 }
 0x835   : >> { %v6924_v56 = vpop.eup %4582  ;;  %v3184_v30 = vadd.f32 0.001143296, %v3183_v17  ;;  %v2948_v45 = vadd.f32 0.112945676, %v2947_v32  ;;  %4584 = vrcp.f32 %v6918_v2  ;;  %v3216_v37 = vadd.f32 1.0, %v4218_v25 }
 0x836   : >> { %v2545_v20 = vmul.f32 0.5, %v6628_v49  ;;  %v2914_v44 = vmul.f32 %v6924_v56, %v6895_v51  ;;  %v6932_v39 = vmul.f32 %v2981_v63, %v6423_v35  ;;  %v3069_v21 = vmul.f32 %v3068_v10, %v6741_v53 }
 0x837   : >> { %v2544_v14 = vmul.f32 0.5, %v6481_v43  ;;  %v2949_v3 = vmul.f32 %v2948_v45, %v6879_v42  ;;  %v3145_v55 = vmul.f32 %v3144_v22, %v6892_v62  ;;  %v2898_v12 = vmul.f32 %v2897_v48, %v6790_v58 }
 0x838   : >> { %v3233_v7 = vmul.f32 %v3217_v52, %v2545_v20  ;;  %v2915_v9 = vsub.f32 1.0, %v2914_v44  ;;  %v3109_v49 = vmul.f32 %v3108_v34, %v6800_v40  ;;  %v3185_v13 = vmul.f32 %v3184_v30, %v6897_v59 }
 0x839   : >> { %v2937_v26 = vadd.f32 0.05243302, %v2936_v29  ;;  %v2950_v17 = vadd.f32 0.4994258, %v2949_v3  ;;  %v2996_v35 = vmul.f32 %v6825_v28, %v2995_v33  ;;  %v3019_v5 = vadd.f32 0.18741608, %v3018_v47 }
 0x83a   : >> { %v3053_v6 = vadd.f32 0.00028619796, %v3052_v41  ;;  %v3232_v63 = vmul.f32 %v3216_v37, %v2544_v14  ;;  %vm2999_vm15 = vweird.f32 %v6825_v28  ;;  %v3070_v43 = vadd.f32 0.4994258, %v3069_v21 }
 0x83b   : >> { %v3092_v25 = vmul.f32 2.1237322e-06, %v6800_v40  ;;  %v2951_v10 = vmul.f32 %v2950_v17, %v6879_v42  ;;  %v6945_v32 = vpop.eup %4584  ;;  %v3146_v52 = vadd.f32 0.014752088, %v3145_v55  ;;  %v2899_v22 = vadd.f32 0.18741608, %v2898_v12  ;;  %vm6962_vm1 = vmor %vm2998_vm13, %vm2999_vm15 }
 0x83c   : >> { %v2916_v48 = vmul.f32 %v6924_v56, %v2915_v9  ;;  %v3245_v34 = vpack.c.bf16 %v3233_v7, %v3232_v63  ;;  %v3110_v30 = vadd.f32 0.4994258, %v3109_v49  ;;  %v3186_v29 = vadd.f32 0.014752088, %v3185_v13 }
 0x83d   : >> { %v2938_v33 = vmul.f32 %v2937_v26, %v6879_v42  ;;  %v6949_v41 = vadd.f32 1.0, %v2951_v10  ;;  %v6952_v47 = vadd.f32 %v6825_v28, %v2996_v35  ;;  %v6954_v45 = vor.u32 1.1754944e-38, %v3004_v11 }
 0x83e   : >> { %v3020_v37 = vmul.f32 %v3019_v5, %v6624_v46  ;;  %v3054_v20 = vmul.f32 %v3053_v6, %v6741_v53  ;;  %v3034_v21 = vmul.f32 %v6945_v32, %v6918_v2  ;;  %v3071_v14 = vmul.f32 %v3070_v43, %v6741_v53 }
 0x83f   : >> { %v3093_v3 = vadd.f32 0.00028619796, %v3092_v25  ;;  %4586 = vrcp.f32 %v6949_v41  ;;  %v3147_v46 = vmul.f32 %v3146_v52, %v6892_v62  ;;  %v2900_v11 = vmul.f32 %v2899_v22, %v6790_v58  ;;  %4249 = vmatmul.msk.bf16.gmra.mxu1 %vm3301_vm14, %v3245_v34 }
 0x840   : >> { %v2917_v7 = vadd.f32 %v6924_v56, %v2916_v48  ;;  %vm2919_vm2 = vweird.f32 %v6924_v56  ;;  %v3111_v55 = vmul.f32 %v3110_v30, %v6800_v40  ;;  %v2924_v12 = vand.u32 2147483648, %v6895_v51 }
 0x841   : >> { %v3187_v9 = vmul.f32 %v3186_v29, %v6897_v59  ;;  %v2939_v49 = vadd.f32 0.18741608, %v2938_v33  ;;  %v3001_v13 = vsel %vm6962_vm1, %v6825_v28, %v6952_v47  ;;  %v6982_v26 = vadd.f32 1.1283791, %v3020_v37 }
 0x842   : >> { %vm2918_vm3 = vweird.f32 %v6895_v51  ;;  %v2922_v58 = vand.u32 2147483647, %v6895_v51  ;;  %v3035_v17 = vsub.f32 1.0, %v3034_v21  ;;  %vm3038_vm4 = vweird.f32 %v6918_v2 }
 0x843   : >> { %v3055_v35 = vadd.f32 0.0036580483, %v3054_v20  ;;  %v3094_v5 = vmul.f32 %v3093_v3, %v6800_v40  ;;  %vm6988_vm5 = vmor %vm2918_vm3, %vm2919_vm2  ;;  %v6992_v63 = vadd.f32 1.0, %v3071_v14  ;;  %v3148_v43 = vadd.f32 0.112945676, %v3147_v46 }
 0x844   : >> { %v2901_v25 = vadd.f32 1.1283791, %v2900_v11  ;;  %v2921_v10 = vsel %vm6988_vm5, %v6924_v56, %v2917_v7  ;;  %v6997_v51 = vadd.f32 1.0, %v3111_v55  ;;  %v2925_v22 = vor.u32 1.1754944e-38, %v2924_v12 }
 0x845   : >> { %v4587_v52 = vpop.eup %4586  ;;  %v3188_v48 = vadd.f32 0.112945676, %v3187_v9  ;;  %v2940_v34 = vmul.f32 %v2939_v49, %v6879_v42  ;;  %vm7002_vm6 = vcmp.eq.f32.partialorder %v3002_v61, 8.507059e+37  ;;  %vm3039_vm7 = vweird.f32 %v6945_v32 }
 0x846   : >> { %v3042_v29 = vand.u32 2147483647, %v6918_v2  ;;  %vm2923_vm8 = vcmp.eq.f32.partialorder %v2922_v58, 8.507059e+37  ;;  %v2954_v56 = vmul.f32 %v4587_v52, %v6949_v41  ;;  %v3036_v33 = vmul.f32 %v6945_v32, %v3035_v17  ;;  %vm7026_vm10 = vmor %vm3038_vm4, %vm3039_vm7 }
 0x847   : >> { %v3056_v37 = vmul.f32 %v3055_v35, %v6741_v53  ;;  %v3095_v20 = vadd.f32 0.0036580483, %v3094_v5  ;;  %v2926_v21 = vsel %vm2923_vm8, %v2925_v22, %v2921_v10  ;;  %4588 = vrcp.f32 %v6992_v63 }
 0x848   : >> { %v3149_v42 = vmul.f32 %v3148_v43, %v6892_v62  ;;  %v2902_v57 = vmul.f32 %v2901_v25, %v6759_v36  ;;  %v2955_v61 = vsub.f32 1.0, %v2954_v56  ;;  %4590 = vrcp.f32 %v6997_v51 }
 0x849   : >> { %v3189_v14 = vmul.f32 %v3188_v48, %v6897_v59  ;;  %v2941_v3 = vadd.f32 1.1283791, %v2940_v34  ;;  %v2964_v46 = vand.u32 2147483648, %v6949_v41  ;;  %vm2959_vm9 = vweird.f32 %v4587_v52 }
 0x84a   : >> { %v2927_v11 = vmul.f32 %v2926_v21, %v2902_v57  ;;  %v2956_v7 = vmul.f32 %v4587_v52, %v2955_v61  ;;  %v2962_v55 = vand.u32 2147483647, %v6949_v41  ;;  %v3037_v12 = vadd.f32 %v6945_v32, %v3036_v33 }
 0x84b   : >> { %v3044_v9 = vand.u32 2147483648, %v6918_v2  ;;  %v3096_v49 = vmul.f32 %v3095_v20, %v6800_v40  ;;  %v3132_v36 = vmul.f32 2.1237322e-06, %v6892_v62  ;;  %v3150_v17 = vadd.f32 0.4994258, %v3149_v42 }
 0x84c   : >> { %v3172_v35 = vmul.f32 2.1237322e-06, %v6897_v59  ;;  %v2957_v5 = vadd.f32 %v4587_v52, %v2956_v7  ;;  %vm2958_vm11 = vweird.f32 %v6949_v41  ;;  %vm7032_vm12 = vcmp.eq.f32.partialorder %v3042_v29, 8.507059e+37 }
 0x84d   : >> { %v3057_v43 = vadd.f32 0.05243302, %v3056_v37  ;;  %v3190_v25 = vadd.f32 0.4994258, %v3189_v14  ;;  %vm2960_vm13 = vmor %vm2958_vm11, %vm2959_vm9  ;;  %v2965_v10 = vor.u32 1.1754944e-38, %v2964_v46  ;;  %v7036_v22 = vpop.eup %4588  ;;  %v4220_v2 = vclamps-f32 %v2927_v11, 1.0 }
 0x84e   : >> { %v2942_v48 = vmul.f32 %v2941_v3, %v6834_v27  ;;  %v2961_v34 = vsel %vm2960_vm13, %v4587_v52, %v2957_v5  ;;  %vm2963_vm15 = vcmp.eq.f32.partialorder %v2962_v55, 8.507059e+37  ;;  %v7039_v56 = vpop.eup %4590  ;;  %v3045_v33 = vor.u32 1.1754944e-38, %v3044_v9 }
 0x84f   : >> { %v3097_v20 = vadd.f32 0.05243302, %v3096_v49  ;;  %v3133_v41 = vadd.f32 0.00028619796, %v3132_v36  ;;  %v2966_v29 = vsel %vm2963_vm15, %v2965_v10, %v2961_v34  ;;  %v3041_v37 = vsel %vm7026_vm10, %v6945_v32, %v3037_v12 }
 0x850   : >> { %v3151_v21 = vmul.f32 %v3150_v17, %v6892_v62  ;;  %v3173_v42 = vadd.f32 0.00028619796, %v3172_v35  ;;  %v2967_v57 = vmul.f32 %v2966_v29, %v2942_v48  ;;  %v3006_v27 = vsel %vm7002_vm6, %v6954_v45, %v3001_v13 }
 0x851   : >> { %v3058_v52 = vmul.f32 %v3057_v43, %v6741_v53  ;;  %v3074_v61 = vmul.f32 %v7036_v22, %v6992_v63  ;;  %v3191_v32 = vmul.f32 %v3190_v25, %v6897_v59  ;;  %v3022_v14 = vmul.f32 %v6982_v26, %v6585_v18 }
 0x852   : >> { %v3114_v44 = vmul.f32 %v7039_v56, %v6997_v51  ;;  %v3218_v3 = vadd.f32 1.0, %v4220_v2  ;;  %v4221_v46 = vclamps-f32 %v2967_v57, 1.0  ;;  %v3046_v28 = vsel %vm7032_vm12, %v3045_v33, %v3041_v37 }
 0x853   : >> { %v3098_v47 = vmul.f32 %v3097_v20, %v6800_v40  ;;  %v3134_v45 = vmul.f32 %v3133_v41, %v6892_v62  ;;  %v2546_v13 = vmul.f32 0.5, %v6736_v38  ;;  %v7066_v30 = vadd.f32 1.0, %v3151_v21 }
 0x854   : >> { %v3174_v11 = vmul.f32 %v3173_v42, %v6897_v59  ;;  %v2547_v18 = vmul.f32 0.5, %v6813_v15  ;;  %v3219_v26 = vadd.f32 1.0, %v4221_v46  ;;  %v3007_v7 = vmul.f32 %v3006_v27, %v6932_v39 }
 0x855   : >> { %v3059_v55 = vadd.f32 0.18741608, %v3058_v52  ;;  %v3075_v12 = vsub.f32 1.0, %v3074_v61  ;;  %v7071_v9 = vadd.f32 1.0, %v3191_v32  ;;  %v3047_v49 = vmul.f32 %v3046_v28, %v3022_v14 }
 0x856   : >> { %v3115_v36 = vsub.f32 1.0, %v3114_v44  ;;  %v3234_v58 = vmul.f32 %v3218_v3, %v2546_v13  ;;  %v3235_v17 = vmul.f32 %v3219_v26, %v2547_v18  ;;  %v3135_v35 = vadd.f32 0.0036580483, %v3134_v45 }
 0x857   : >> { %v3099_v5 = vadd.f32 0.18741608, %v3098_v47  ;;  %4592 = vrcp.f32 %v7066_v30  ;;  %v3175_v38 = vadd.f32 0.0036580483, %v3174_v11  ;;  %v3076_v43 = vmul.f32 %v7036_v22, %v3075_v12 }
 0x858   : >> { %v3246_v6 = vpack.c.bf16 %v3235_v17, %v3234_v58  ;;  %4594 = vrcp.f32 %v7071_v9  ;;  %v4222_v15 = vclamps-f32 %v3007_v7, 1.0  ;;  %v4223_v39 = vclamps-f32 %v3047_v49, 1.0 }
 0x859   : >> { %v3060_v25 = vmul.f32 %v3059_v55, %v6741_v53  ;;  %v3116_v10 = vmul.f32 %v7039_v56, %v3115_v36  ;;  %vm3078_vm1 = vweird.f32 %v6992_v63  ;;  %vm3079_vm2 = vweird.f32 %v7036_v22 }
 0x85a   : >> { %4250 = vmatmul.msk.bf16.vlgmr.msra.gmra.mxu2 %vm3301_vm14, %v3246_v6  ;;  %v3084_v2 = vand.u32 2147483648, %v6992_v63  ;;  %v3136_v48 = vmul.f32 %v3135_v35, %v6892_v62  ;;  %v3100_v34 = vmul.f32 %v3099_v5, %v6800_v40  ;;  %vm3118_vm3 = vweird.f32 %v6997_v51  ;;  %vm7093_vm5 = vmor %vm3078_vm1, %vm3079_vm2 }
 0x85b   : >> { %vm3119_vm4 = vweird.f32 %v7039_v56  ;;  %v3176_v53 = vmul.f32 %v3175_v38, %v6897_v59  ;;  %v3077_v33 = vadd.f32 %v7036_v22, %v3076_v43  ;;  %v3082_v20 = vand.u32 2147483647, %v6992_v63 }
 0x85c   : >> { %v3124_v41 = vand.u32 2147483648, %v6997_v51  ;;  %v2548_v37 = vmul.f32 0.5, %v6413_v50  ;;  %v3117_v40 = vadd.f32 %v7039_v56, %v3116_v10  ;;  %v3122_v42 = vand.u32 2147483647, %v6997_v51  ;;  %vm7104_vm6 = vmor %vm3118_vm3, %vm3119_vm4 }
 0x85d   : >> { %v7090_v29 = vpop.eup %4592  ;;  %v3220_v27 = vadd.f32 1.0, %v4222_v15  ;;  %v2549_v52 = vmul.f32 0.5, %v6537_v23  ;;  %v3061_v63 = vadd.f32 1.1283791, %v3060_v25  ;;  %v3137_v50 = vadd.f32 0.05243302, %v3136_v48 }
 0x85e   : >> { %v7099_v57 = vpop.eup %4594  ;;  %v3221_v32 = vadd.f32 1.0, %v4223_v39  ;;  %v3085_v14 = vor.u32 1.1754944e-38, %v3084_v2  ;;  %v3101_v44 = vadd.f32 1.1283791, %v3100_v34  ;;  %v3177_v3 = vadd.f32 0.05243302, %v3176_v53 }
 0x85f   : >> { %v3081_v46 = vsel %vm7093_vm5, %v7036_v22, %v3077_v33  ;;  %vm3083_vm7 = vcmp.eq.f32.partialorder %v3082_v20, 8.507059e+37  ;;  %v3125_v28 = vor.u32 1.1754944e-38, %v3124_v41  ;;  %v3121_v23 = vsel %vm7104_vm6, %v7039_v56, %v3117_v40 }
 0x860   : >> { %vm3123_vm8 = vcmp.eq.f32.partialorder %v3122_v42, 8.507059e+37  ;;  %v3154_v51 = vmul.f32 %v7090_v29, %v7066_v30  ;;  %v3194_v47 = vmul.f32 %v7099_v57, %v7071_v9  ;;  %v3236_v45 = vmul.f32 %v3220_v27, %v2548_v37 }
 0x861   : >> { %v3062_v13 = vmul.f32 %v3061_v63, %v6708_v1  ;;  %v3138_v11 = vmul.f32 %v3137_v50, %v6892_v62  ;;  %v3237_v18 = vmul.f32 %v3221_v32, %v2549_v52  ;;  %v3086_v22 = vsel %vm3083_vm7, %v3085_v14, %v3081_v46 }
 0x862   : >> { %v3102_v26 = vmul.f32 %v3101_v44, %v6747_v19  ;;  %v3178_v7 = vmul.f32 %v3177_v3, %v6897_v59  ;;  %v3126_v55 = vsel %vm3123_vm8, %v3125_v28, %v3121_v23  ;;  %v3155_v56 = vsub.f32 1.0, %v3154_v51 }
 0x863   : >> { %v3195_v12 = vsub.f32 1.0, %v3194_v47  ;;  %v3087_v49 = vmul.f32 %v3086_v22, %v3062_v13  ;;  %v3139_v36 = vadd.f32 0.18741608, %v3138_v11  ;;  %v3247_v35 = vpack.c.bf16 %v3237_v18, %v3236_v45  ;;  %v3251_v45 = vld [vmem:[#allocation2 + $0x8] sm:$0xff] }
 0x864   : >> { %v3127_v58 = vmul.f32 %v3126_v55, %v3102_v26  ;;  %v3179_v17 = vadd.f32 0.18741608, %v3178_v7  ;;  %v3156_v5 = vmul.f32 %v7090_v29, %v3155_v56  ;;  %vm3158_vm9 = vweird.f32 %v7066_v30  ;;  %v3254_v55 = vld [vmem:[#allocation2 + $0x20] sm:$0xff] }
 0x865   : >> { %v3196_v1 = vmul.f32 %v7099_v57, %v3195_v12  ;;  %v4224_v38 = vclamps-f32 %v3087_v49, 1.0  ;;  %v3140_v6 = vmul.f32 %v3139_v36, %v6892_v62  ;;  %vm3159_vm10 = vweird.f32 %v7090_v29  ;;  %v3255_v49 = vld [vmem:[#allocation2 + $0x28] sm:$0xff] }
 0x866   : >> { %v4225_v19 = vclamps-f32 %v3127_v58, 1.0  ;;  %v3180_v43 = vmul.f32 %v3179_v17, %v6897_v59  ;;  %vm3198_vm11 = vweird.f32 %v7071_v9  ;;  %vm3199_vm12 = vweird.f32 %v7099_v57  ;;  %vm7134_vm13 = vmor %vm3158_vm9, %vm3159_vm10  ;;  %v3256_v17 = vld [vmem:[#allocation2 + $0x30] sm:$0xff] }
 0x867   : >> { %v3164_v15 = vand.u32 2147483648, %v7066_v30  ;;  %v3204_v39 = vand.u32 2147483648, %v7071_v9  ;;  %v3157_v25 = vadd.f32 %v7090_v29, %v3156_v5  ;;  %v3162_v62 = vand.u32 2147483647, %v7066_v30  ;;  %vm7143_vm15 = vmor %vm3198_vm11, %vm3199_vm12 }
 0x868   : >> { %v3197_v2 = vadd.f32 %v7099_v57, %v3196_v1  ;;  %v3202_v59 = vand.u32 2147483647, %v7071_v9  ;;  %v2550_v48 = vmul.f32 0.5, %v6693_v24  ;;  %v2551_v34 = vmul.f32 0.5, %v6725_v54  ;;  %v3257_v1 = vld [vmem:[#allocation2 + $0x38] sm:$0xff] }
 0x869   : >> { %v3222_v33 = vadd.f32 1.0, %v4224_v38  ;;  %v3223_v20 = vadd.f32 1.0, %v4225_v19  ;;  %v3141_v41 = vadd.f32 1.1283791, %v3140_v6  ;;  %v3181_v37 = vadd.f32 1.1283791, %v3180_v43 }
 0x86a   : >> { %4251 = vmatmul.msk.bf16.gmra.mxu2 %vm3301_vm14, %v3247_v35  ;;  %v3165_v21 = vor.u32 1.1754944e-38, %v3164_v15  ;;  %v3205_v40 = vor.u32 1.1754944e-38, %v3204_v39  ;;  %v3161_v30 = vsel %vm7134_vm13, %v7090_v29, %v3157_v25  ;;  %vm3163_vm1 = vcmp.eq.f32.partialorder %v3162_v62, 8.507059e+37  ;;  %v3258_v19 = vld [vmem:[#allocation2 + $0x40] sm:$0xff]  ;;  %v3259_v39 = vld [vmem:[#allocation2 + $0x48] sm:$0xff]  ;;  %v3260_v62 = vld [vmem:[#allocation2 + $0x50] sm:$0xff] }
 0x86b   : >> { %v3201_v24 = vsel %vm7143_vm15, %v7099_v57, %v3197_v2  ;;  %vm3203_vm2 = vcmp.eq.f32.partialorder %v3202_v59, 8.507059e+37  ;;  %v3238_v54 = vmul.f32 %v3222_v33, %v2550_v48  ;;  %v3239_v9 = vmul.f32 %v3223_v20, %v2551_v34  ;;  %v3261_v48 = vld [vmem:[#allocation2 + $0x58] sm:$0xff]  ;;  %v3262_v33 = vld [vmem:[#allocation2 + $0x60] sm:$0xff] }
 0x86c   : >> { %v3142_v42 = vmul.f32 %v3141_v41, %v6848_v4  ;;  %v3182_v27 = vmul.f32 %v3181_v37, %v6865_v31  ;;  %v3166_v52 = vsel %vm3163_vm1, %v3165_v21, %v3161_v30  ;;  %v3206_v63 = vsel %vm3203_vm2, %v3205_v40, %v3201_v24  ;;  %v3250_v31 = vld [vmem:[#allocation2] sm:$0xff]  ;;  %v3263_v37 = vld [vmem:[#allocation2 + $0x68] sm:$0xff]  ;;  %v3264_v30 = vld [vmem:[#allocation2 + $0x70] sm:$0xff] }
 0x86d   : >> { %v3248_v32 = vpack.c.bf16 %v3239_v9, %v3238_v54  ;;  %v2552_v44 = vmul.f32 0.5, %v6830_v0  ;;  %v2553_v57 = vmul.f32 0.5, %v6842_v16  ;;  %v3252_v0 = vld [vmem:[#allocation2 + $0x10] sm:$0xff]  ;;  %v3253_v16 = vld [vmem:[#allocation2 + $0x18] sm:$0xff] }
 0x86e   : >> { %v3167_v61 = vmul.f32 %v3166_v52, %v3142_v42  ;;  %v3207_v50 = vmul.f32 %v3206_v63, %v3182_v27  ;;  %v3265_v9 = vld [vmem:[#allocation2 + $0x78] sm:$0xff]  ;;  %v7181_v63 = vld [vmem:[%s7736_s16] ss:$0 sm:$0xff] (%p2437_p2) }
 0x870   : >> { %v4226_v29 = vclamps-f32 %v3167_v61, 1.0  ;;  %v4227_v14 = vclamps-f32 %v3207_v50, 1.0 }
 0x872   : >> { %v3224_v3 = vadd.f32 1.0, %v4226_v29  ;;  %v3225_v46 = vadd.f32 1.0, %v4227_v14 }
 0x874   : >> { %v3240_v28 = vmul.f32 %v3224_v3, %v2552_v44  ;;  %v3241_v23 = vmul.f32 %v3225_v46, %v2553_v57 }
 0x876   : >> { %v3249_v4 = vpack.c.bf16 %v3241_v23, %v3240_v28 }
 0x87a   : >> { %4252 = vmatmul.msk.bf16.gmra.mxu2 %vm3301_vm14, %v3248_v32 }
 0x88a   : >> { %4253 = vmatmul.msk.bf16.gmra.mxu2 %vm3301_vm14, %v3249_v4 }
 0x88c   : >> { %v3335_v51 = vpop.f32.mrf.mxu1 }
 0x88d   : >> { %v3375_v47 = vadd.f32 %v3335_v51, %v3250_v31 }
 0x88f   : >> { %3391 = vst.msk [vmem:[#allocation2] sm:$0xff] %vm955_vm0, %v3375_v47 }
 0x894   : >> { %v3337_v13 = vpop.f32.mrf.mxu1 }
 0x895   : >> { %v3376_v11 = vadd.f32 %v3337_v13, %v3251_v45 }
 0x897   : >> { %3392 = vst.msk [vmem:[#allocation2 + $0x8] sm:$0xff] %vm955_vm0, %v3376_v11 }
 0x89c   : >> { %v3340_v18 = vpop.f32.mrf.mxu1 }
 0x89d   : >> { %v3377_v22 = vadd.f32 %v3340_v18, %v3252_v0 }
 0x89f   : >> { %3393 = vst.msk [vmem:[#allocation2 + $0x10] sm:$0xff] %vm955_vm0, %v3377_v22 }
 0x8a4   : >> { %v3342_v26 = vpop.f32.mrf.mxu1 }
 0x8a5   : >> { %v3378_v7 = vadd.f32 %v3342_v26, %v3253_v16 }
 0x8a7   : >> { %3394 = vst.msk [vmem:[#allocation2 + $0x18] sm:$0xff] %vm955_vm0, %v3378_v7 }
 0x8ac   : >> { %v3345_v56 = vpop.f32.mrf.mxu1 }
 0x8ad   : >> { %v3379_v12 = vadd.f32 %v3345_v56, %v3254_v55 }
 0x8af   : >> { %3395 = vst.msk [vmem:[#allocation2 + $0x20] sm:$0xff] %vm955_vm0, %v3379_v12 }
 0x8b4   : >> { %v3347_v36 = vpop.f32.mrf.mxu1 }
 0x8b5   : >> { %v3380_v58 = vadd.f32 %v3347_v36, %v3255_v49 }
 0x8b6   : > { %v3411_v12 = vld [vmem:[#allocation2 + $0x20] sm:$0xff] (%p2437_p2) }
 0x8b7   : >> { %3396 = vst.msk [vmem:[#allocation2 + $0x28] sm:$0xff] %vm955_vm0, %v3380_v58  ;;  %v7223_v58 = vadd.f32 (%p2437_p2), %v7181_v63, %v3411_v12 }
 0x8bc   : >> { %v3350_v35 = vpop.f32.mrf.mxu1 }
 0x8bd   : >> { %v3381_v5 = vadd.f32 %v3350_v35, %v3256_v17 }
 0x8be   : > { %v3412_v49 = vld [vmem:[#allocation2 + $0x28] sm:$0xff] (%p2437_p2) }
 0x8bf   : >> { %3397 = vst.msk [vmem:[#allocation2 + $0x30] sm:$0xff] %vm955_vm0, %v3381_v5  ;;  %v7226_v17 = vadd.f32 (%p2437_p2), %v7181_v63, %v3412_v49  ;;  %v3457_v5 = vsel (%p2437_p2), %vm955_vm0, %v7223_v58, 0.0 }
 0x8c4   : >> { %v3352_v38 = vpop.f32.mrf.mxu1 }
 0x8c5   : >> { %v3382_v6 = vadd.f32 %v3352_v38, %v3257_v1  ;;  %v3460_v1 = vsel (%p2437_p2), %vm955_vm0, %v7226_v17, 0.0  ;;  %v3410_v38 = vld [vmem:[#allocation2 + $0x18] sm:$0xff] (%p2437_p2) }
 0x8c6   : > { %v3413_v0 = vld [vmem:[#allocation2 + $0x30] sm:$0xff] (%p2437_p2) }
 0x8c7   : >> { %3398 = vst.msk [vmem:[#allocation2 + $0x38] sm:$0xff] %vm955_vm0, %v3382_v6  ;;  %v7211_v16 = vadd.f32 (%p2437_p2), %v7181_v63, %v3413_v0  ;;  %v3409_v6 = vld [vmem:[#allocation2 + $0x10] sm:$0xff] (%p2437_p2)  ;;  %v3408_v0 = vld [vmem:[#allocation2 + $0x8] sm:$0xff] (%p2437_p2) }
 0x8c8   : > { %v7301_v49 = vadd.f32 (%p2437_p2), %v7181_v63, %v3408_v0 }
 0x8c9   : > { %v3463_v55 = vsel (%p2437_p2), %vm955_vm0, %v7211_v16, 0.0 }
 0x8ce   : > { %v3414_v56 = vld [vmem:[#allocation2 + $0x38] sm:$0xff] (%p2437_p2) }
 0x8cf   : > { %v7220_v36 = vadd.f32 (%p2437_p2), %v7181_v63, %v3414_v56 }
 0x8d1   : > { %v3466_v35 = vsel (%p2437_p2), %vm955_vm0, %v7220_v36, 0.0 }
 0x8dd   : >> { %v3355_v43 = vpop.f32.mrf.mxu2 }
 0x8de   : >> { %v3383_v15 = vadd.f32 %v3355_v43, %v3258_v19  ;;  %v7235_v19 = vadd.f32 (%p2437_p2), %v7181_v63, %v3410_v38  ;;  %v7238_v43 = vadd.f32 (%p2437_p2), %v7181_v63, %v3409_v6  ;;  %v3448_v6 = vsel (%p2437_p2), %vm955_vm0, %v7301_v49, 0.0 }
 0x8e0   : >> { %3399 = vst.msk [vmem:[#allocation2 + $0x40] sm:$0xff] %vm955_vm0, %v3383_v15  ;;  %v3454_v15 = vsel (%p2437_p2), %vm955_vm0, %v7235_v19, 0.0 }
 0x8e5   : >> { %v3357_v25 = vpop.f32.mrf.mxu2 }
 0x8e6   : >> { %v3384_v10 = vadd.f32 %v3357_v25, %v3259_v39  ;;  %v3451_v39 = vsel (%p2437_p2), %vm955_vm0, %v7238_v43, 0.0 }
 0x8e7   : > { %v3415_v11 = vld [vmem:[#allocation2 + $0x40] sm:$0xff] (%p2437_p2) }
 0x8e8   : >> { %3400 = vst.msk [vmem:[#allocation2 + $0x48] sm:$0xff] %vm955_vm0, %v3384_v10  ;;  %v7208_v22 = vadd.f32 (%p2437_p2), %v7181_v63, %v3415_v11 }
 0x8ea   : > { %v3469_v7 = vsel (%p2437_p2), %vm955_vm0, %v7208_v22, 0.0 }
 0x8ed   : >> { %v3360_v2 = vpop.f32.mrf.mxu2 }
 0x8ee   : >> { %v3385_v59 = vadd.f32 %v3360_v2, %v3260_v62 }
 0x8ef   : > { %v3416_v13 = vld [vmem:[#allocation2 + $0x48] sm:$0xff] (%p2437_p2) }
 0x8f0   : >> { %3401 = vst.msk [vmem:[#allocation2 + $0x50] sm:$0xff] %vm955_vm0, %v3385_v59  ;;  %v7205_v18 = vadd.f32 (%p2437_p2), %v7181_v63, %v3416_v13 }
 0x8f2   : > { %v3472_v26 = vsel (%p2437_p2), %vm955_vm0, %v7205_v18, 0.0 }
 0x8f5   : >> { %v3362_v34 = vpop.f32.mrf.mxu2 }
 0x8f6   : >> { %v3386_v53 = vadd.f32 %v3362_v34, %v3261_v48 }
 0x8f7   : > { %v3417_v29 = vld [vmem:[#allocation2 + $0x50] sm:$0xff] (%p2437_p2) }
 0x8f8   : >> { %3402 = vst.msk [vmem:[#allocation2 + $0x58] sm:$0xff] %vm955_vm0, %v3386_v53  ;;  %v7188_v3 = vadd.f32 (%p2437_p2), %v7181_v63, %v3417_v29  ;;  %v3407_v53 = vld [vmem:[#allocation2] sm:$0xff] (%p2437_p2) }
 0x8fa   : > { %v3475_v28 = vsel (%p2437_p2), %vm955_vm0, %v7188_v3, 0.0 }
 0x8fb   : > { %3476 = vadd.xlane.f32.xlu2 (%p2437_p2), %v3475_v28 }
 0x8fd   : >> { %v3365_v20 = vpop.f32.mrf.mxu2 }
 0x8fe   : >> { %v3387_v41 = vadd.f32 %v3365_v20, %v3262_v33 }
 0x8ff   : > { %v3418_v46 = vld [vmem:[#allocation2 + $0x58] sm:$0xff] (%p2437_p2) }
 0x900   : >> { %3403 = vst.msk [vmem:[#allocation2 + $0x60] sm:$0xff] %vm955_vm0, %v3387_v41  ;;  %v7198_v31 = vadd.f32 (%p2437_p2), %v7181_v63, %v3418_v46 }
 0x902   : > { %v3478_v45 = vsel (%p2437_p2), %vm955_vm0, %v7198_v31, 0.0 }
 0x903   : > { %3479 = vadd.xlane.f32.xlu2 (%p2437_p2), %v3478_v45 }
 0x905   : >> { %v3367_v21 = vpop.f32.mrf.mxu2 }
 0x906   : >> { %v3388_v40 = vadd.f32 %v3367_v21, %v3263_v37 }
 0x907   : > { %v3419_v61 = vld [vmem:[#allocation2 + $0x60] sm:$0xff] (%p2437_p2) }
 0x908   : >> { %3404 = vst.msk [vmem:[#allocation2 + $0x68] sm:$0xff] %vm955_vm0, %v3388_v40  ;;  %v7185_v32 = vadd.f32 (%p2437_p2), %v7181_v63, %v3419_v61 }
 0x90a   : > { %v3481_v60 = vsel (%p2437_p2), %vm955_vm0, %v7185_v32, 0.0 }
 0x90b   : > { %3482 = vadd.xlane.f32.xlu1 (%p2437_p2), %v3481_v60  ;;  %3464 = vadd.xlane.f32.xlu2 (%p2437_p2), %v3463_v55 }
 0x90d   : >> { %v3370_v24 = vpop.f32.mrf.mxu2 }
 0x90e   : >> { %v3389_v54 = vadd.f32 %v3370_v24, %v3264_v30 }
 0x90f   : > { %v3420_v44 = vld [vmem:[#allocation2 + $0x68] sm:$0xff] (%p2437_p2) }
 0x910   : >> { %3405 = vst.msk [vmem:[#allocation2 + $0x70] sm:$0xff] %vm955_vm0, %v3389_v54  ;;  %v3440_v4 = vadd.f32 (%p2437_p2), %v7181_v63, %v3420_v44  ;;  %v7256_v54 = vadd.f32 (%p2437_p2), %v7181_v63, %v3407_v53 }
 0x912   : > { %v3484_v47 = vsel (%p2437_p2), %vm955_vm0, %v3440_v4, 0.0 }
 0x913   : > { %3485 = vadd.xlane.f32.xlu1 (%p2437_p2), %v3484_v47  ;;  %3461 = vadd.xlane.f32.xlu2 (%p2437_p2), %v3460_v1 }
 0x914   : > { %2439 = sbr.rel (!%p2437_p2) target bundleno = 1828 (0x724), region = 191 }
 0x915   : >> { %v3372_v42 = vpop.f32.mrf.mxu2 }
 0x916   : >> { %v3390_v27 = vadd.f32 %v3372_v42, %v3265_v9 }
 0x917   : > { %v3421_v52 = vld [vmem:[#allocation2 + $0x70] sm:$0xff] (%p2437_p2) }
 0x918   : >> { %3406 = vst.msk [vmem:[#allocation2 + $0x78] sm:$0xff] %vm955_vm0, %v3390_v27  ;;  %v3441_v50 = vadd.f32 (%p2437_p2), %v7181_v63, %v3421_v52 }
 0x91a   : > { %v3487_v57 = vsel %vm955_vm0, %v3441_v50, 0.0 }
 0x91b   : > { %3488 = vadd.xlane.f32.xlu0 %v3487_v57  ;;  %3473 = vadd.xlane.f32.xlu1 %v3472_v26 }
 0x91c   : > { %3452 = vadd.xlane.f32.xlu2 %v3451_v39 }
 0x91f   : > { %v3422_v14 = vld [vmem:[#allocation2 + $0x78] sm:$0xff] }
 0x920   : > { %v3442_v23 = vadd.f32 %v7181_v63, %v3422_v14  ;;  %v3445_v14 = vsel %vm955_vm0, %v7256_v54, 0.0 }
 0x922   : > { %v3490_v51 = vsel %vm955_vm0, %v3442_v23, 0.0 }
 0x923   : > { %3491 = vadd.xlane.f32.xlu0 %v3490_v51  ;;  %3458 = vadd.xlane.f32.xlu1 %v3457_v5 }
 0x92b   : > { %3470 = vadd.xlane.f32.xlu0 %v3469_v7 }
 0x933   : > { %3467 = vadd.xlane.f32.xlu0 %v3466_v35 }
 0x93b   : > { %3455 = vadd.xlane.f32.xlu0 %v3454_v15 }
 0x96e   : > { %v3477_v2 = vpop.xlane.xlu2 %3476 }
 0x96f   : > { %v3503_v40 = vmul.f32 %v3477_v2, %v5172_v8 }
 0x971   : > { %v7266_v52 = vsub.f32 %v7188_v3, %v3503_v40 }
 0x976   : > { %v3480_v30 = vpop.xlane.xlu2 %3479 }
 0x977   : > { %v3504_v24 = vmul.f32 %v3480_v30, %v5172_v8 }
 0x979   : > { %v7273_v29 = vsub.f32 %v7198_v31, %v3504_v24 }
 0x97b   : > { %v3536_v31 = vmul.f32 %v7273_v29, %v7273_v29 }
 0x97d   : > { %v3574_v11 = vsel %vm955_vm0, %v3536_v31, 0.0 }
 0x97e   : > { %v3483_v10 = vpop.xlane.xlu1 %3482  ;;  %v3465_v46 = vpop.xlane.xlu2 %3464 }
 0x97f   : > { %v3505_v41 = vmul.f32 %v3483_v10, %v5172_v8 }
 0x981   : > { %v7263_v27 = vsub.f32 %v7185_v32, %v3505_v41 }
 0x983   : > { %v3537_v28 = vmul.f32 %v7263_v27, %v7263_v27 }
 0x985   : > { %v3577_v47 = vsel %vm955_vm0, %v3537_v28, 0.0 }
 0x986   : > { %v3486_v20 = vpop.xlane.xlu1 %3485  ;;  %v3462_v56 = vpop.xlane.xlu2 %3461 }
 0x987   : > { %v3506_v21 = vmul.f32 %v3486_v20, %v5172_v8 }
 0x989   : > { %v7260_v42 = vsub.f32 %v3440_v4, %v3506_v21  ;;  %v3499_v4 = vmul.f32 %v3465_v46, %v5172_v8 }
 0x98b   : > { %v7293_v13 = vsub.f32 %v7211_v16, %v3499_v4  ;;  %v3498_v16 = vmul.f32 %v3462_v56, %v5172_v8 }
 0x98d   : > { %v3531_v35 = vmul.f32 %v7293_v13, %v7293_v13  ;;  %v7316_v15 = vsub.f32 %v7226_v17, %v3498_v16 }
 0x98e   : > { %v3489_v25 = vpop.xlane.xlu0 %3488  ;;  %v3474_v3 = vpop.xlane.xlu1 %3473 }
 0x98f   : > { %v3507_v62 = vmul.f32 %v3489_v25, %v5172_v8  ;;  %v3502_v60 = vmul.f32 %v3474_v3, %v5172_v8  ;;  %v3559_v63 = vsel %vm955_vm0, %v3531_v35, 0.0  ;;  %v3530_v17 = vmul.f32 %v7316_v15, %v7316_v15 }
 0x991   : > { %v7245_v59 = vsub.f32 %v3441_v50, %v3507_v62  ;;  %v3538_v50 = vmul.f32 %v7260_v42, %v7260_v42  ;;  %v7288_v51 = vsub.f32 %v7205_v18, %v3502_v60  ;;  %v3556_v53 = vsel %vm955_vm0, %v3530_v17, 0.0 }
 0x993   : > { %v3539_v48 = vmul.f32 %v7245_v59, %v7245_v59  ;;  %v3580_v32 = vsel %vm955_vm0, %v3538_v50, 0.0  ;;  %v3534_v12 = vmul.f32 %v7288_v51, %v7288_v51 }
 0x994   : > { %3581 = vadd.xlane.f32.xlu2 %v3580_v32 }
 0x995   : > { %v3583_v34 = vsel %vm955_vm0, %v3539_v48, 0.0  ;;  %v3568_v38 = vsel %vm955_vm0, %v3534_v12, 0.0 }
 0x996   : > { %v3492_v33 = vpop.xlane.xlu0 %3491  ;;  %3584 = vadd.xlane.f32.xlu0 %v3583_v34  ;;  %v3459_v7 = vpop.xlane.xlu1 %3458 }
 0x997   : > { %v3508_v37 = vmul.f32 %v3492_v33, %v5172_v8  ;;  %v3497_v18 = vmul.f32 %v3459_v7, %v5172_v8  ;;  %v3453_v33 = vpop.xlane.xlu2 %3452 }
 0x998   : > { %v3495_v41 = vmul.f32 %v3453_v33, %v5172_v8 }
 0x999   : > { %v7258_v9 = vsub.f32 %v3442_v23, %v3508_v37  ;;  %v3535_v23 = vmul.f32 %v7266_v52, %v7266_v52  ;;  %v7310_v1 = vsub.f32 %v7223_v58, %v3497_v18 }
 0x99a   : > { %v7343_v37 = vsub.f32 %v7238_v43, %v3495_v41 }
 0x99b   : > { %v3540_v61 = vmul.f32 %v7258_v9, %v7258_v9  ;;  %v3571_v45 = vsel %vm955_vm0, %v3535_v23, 0.0  ;;  %v3529_v58 = vmul.f32 %v7310_v1, %v7310_v1 }
 0x99c   : > { %3572 = vadd.xlane.f32.xlu2 %v3571_v45  ;;  %v3527_v40 = vmul.f32 %v7343_v37, %v7343_v37 }
 0x99d   : > { %v3586_v44 = vsel %vm955_vm0, %v3540_v61, 0.0  ;;  %v3553_v48 = vsel %vm955_vm0, %v3529_v58, 0.0 }
 0x99e   : > { %3587 = vadd.xlane.f32.xlu1 %v3586_v44  ;;  %v3471_v57 = vpop.xlane.xlu0 %3470  ;;  %3446 = vadd.xlane.f32.xlu0 %v3445_v14  ;;  %v3547_v30 = vsel %vm955_vm0, %v3527_v40, 0.0 }
 0x99f   : > { %v3501_v55 = vmul.f32 %v3471_v57, %v5172_v8 }
 0x9a1   : > { %v7307_v5 = vsub.f32 %v7208_v22, %v3501_v55 }
 0x9a3   : > { %v3533_v10 = vmul.f32 %v7307_v5, %v7307_v5 }
 0x9a4   : > { %3569 = vadd.xlane.f32.xlu2 %v3568_v38 }
 0x9a5   : > { %v3565_v34 = vsel %vm955_vm0, %v3533_v10, 0.0 }
 0x9a6   : > { %3578 = vadd.xlane.f32.xlu1 %v3577_v47  ;;  %v3468_v26 = vpop.xlane.xlu0 %3467  ;;  %3575 = vadd.xlane.f32.xlu0 %v3574_v11 }
 0x9a7   : > { %v3500_v25 = vmul.f32 %v3468_v26, %v5172_v8 }
 0x9a9   : > { %v7328_v62 = vsub.f32 %v7220_v36, %v3500_v25 }
 0x9ab   : > { %v3532_v36 = vmul.f32 %v7328_v62, %v7328_v62 }
 0x9ac   : > { %3554 = vadd.xlane.f32.xlu2 %v3553_v48 }
 0x9ad   : > { %v3562_v21 = vsel %vm955_vm0, %v3532_v36, 0.0 }
 0x9ae   : > { %3449 = vadd.xlane.f32.xlu1 %v3448_v6  ;;  %v3456_v39 = vpop.xlane.xlu0 %3455  ;;  %3560 = vadd.xlane.f32.xlu0 %v3559_v63 }
 0x9af   : > { %v3496_v22 = vmul.f32 %v3456_v39, %v5172_v8 }
 0x9b1   : > { %v7331_v2 = vsub.f32 %v7235_v19, %v3496_v22 }
 0x9b3   : > { %v3528_v20 = vmul.f32 %v7331_v2, %v7331_v2 }
 0x9b5   : > { %v3550_v19 = vsel %vm955_vm0, %v3528_v20, 0.0 }
 0x9b6   : > { %3566 = vadd.xlane.f32.xlu1 %v3565_v34  ;;  %3557 = vadd.xlane.f32.xlu0 %v3556_v53 }
 0x9b7   : > { %3551 = vadd.xlane.f32.xlu2 %v3550_v19 }
 0x9be   : > { %3563 = vadd.xlane.f32.xlu1 %v3562_v21 }
 0x9c6   : > { %3548 = vadd.xlane.f32.xlu1 %v3547_v30 }
 0xa07   : > { %v3582_v44 = vpop.xlane.xlu2 %3581 }
 0xa08   : > { %v3602_v32 = vmul.f32 %v3582_v44, %v5172_v8 }
 0xa09   : > { %v3585_v24 = vpop.xlane.xlu0 %3584 }
 0xa0a   : > { %v3603_v61 = vmul.f32 %v3585_v24, %v5172_v8  ;;  %v7353_v28 = vadd.f32 1e-05, %v3602_v32 }
 0xa0c   : > { %v3619_v50 = vadd.f32 1e-05, %v3603_v61  ;;  %vm3757_vm7 = vweird.f32 %v7353_v28 }
 0xa0e   : > { %4601 = vrsqrt.f32 %v3619_v50  ;;  %vm3767_vm3 = vweird.f32 %v3619_v50 }
 0xa0f   : > { %v3573_v0 = vpop.xlane.xlu2 %3572 }
 0xa10   : > { %v3599_v55 = vmul.f32 %v3573_v0, %v5172_v8 }
 0xa11   : > { %v3588_v14 = vpop.xlane.xlu1 %3587  ;;  %v3447_v3 = vpop.xlane.xlu0 %3446 }
 0xa12   : > { %v3604_v43 = vmul.f32 %v3588_v14, %v5172_v8  ;;  %v3493_v57 = vmul.f32 %v3447_v3, %v5172_v8  ;;  %v7369_v35 = vadd.f32 1e-05, %v3599_v55 }
 0xa14   : > { %v4602_v60 = vpop.eup %4601  ;;  %v3620_v46 = vadd.f32 1e-05, %v3604_v43  ;;  %v7356_v4 = vsub.f32 %v7256_v54, %v3493_v57  ;;  %vm3727_vm13 = vweird.f32 %v7369_v35 }
 0xa15   : > { %v3762_v23 = vmul.f32 %v4602_v60, %v3619_v50  ;;  %vm3768_vm14 = vweird.f32 %v4602_v60 }
 0xa16   : > { %4603 = vrsqrt.f32 %v3620_v46  ;;  %v3525_v47 = vmul.f32 %v7356_v4, %v7356_v4  ;;  %vm7385_vm4 = vmor %vm3767_vm3, %vm3768_vm14  ;;  %vm3777_vm6 = vweird.f32 %v3620_v46 }
 0xa17   : > { %v3763_v31 = vmul.f32 %v4602_v60, %v3762_v23  ;;  %4605 = vrsqrt.f32 %v7353_v28  ;;  %v3570_v17 = vpop.xlane.xlu2 %3569  ;;  %v7420_v23 = vld [vmem:[%s7737_s17] ss:$0 sm:$0xff] }
 0xa18   : > { %v3541_v26 = vsel %vm955_vm0, %v3525_v47, 0.0  ;;  %v3598_v53 = vmul.f32 %v3570_v17, %v5172_v8 }
 0xa19   : > { %v3764_v45 = vmul.f32 0.5, %v3763_v31  ;;  %v3579_v11 = vpop.xlane.xlu1 %3578  ;;  %3542 = vadd.xlane.f32.xlu0 %v3541_v26  ;;  %v3576_v56 = vpop.xlane.xlu0 %3575 }
 0xa1a   : > { %v3601_v7 = vmul.f32 %v3579_v11, %v5172_v8  ;;  %v3600_v54 = vmul.f32 %v3576_v56, %v5172_v8  ;;  %v7393_v40 = vadd.f32 1e-05, %v3598_v53 }
 0xa1b   : > { %v3765_v12 = vsub.f32 1.5, %v3764_v45 }
 0xa1c   : > { %v7365_v18 = vpop.eup %4603  ;;  %v7367_v16 = vadd.f32 1e-05, %v3601_v7  ;;  %v7374_v63 = vadd.f32 1e-05, %v3600_v54 }
 0xa1d   : > { %v7371_v38 = vpop.eup %4605  ;;  %v3772_v6 = vmul.f32 %v7365_v18, %v3620_v46  ;;  %v3766_v22 = vmul.f32 %v4602_v60, %v3765_v12  ;;  %vm3778_vm5 = vweird.f32 %v7365_v18 }
 0xa1e   : > { %v3752_v39 = vmul.f32 %v7371_v38, %v7353_v28  ;;  %4607 = vrsqrt.f32 %v7367_v16  ;;  %vm7424_vm8 = vmor %vm3777_vm6, %vm3778_vm5  ;;  %vm3758_vm9 = vweird.f32 %v7371_v38  ;;  %vm3747_vm10 = vweird.f32 %v7367_v16 }
 0xa1f   : > { %v3773_v25 = vmul.f32 %v7365_v18, %v3772_v6  ;;  %4609 = vrsqrt.f32 %v7369_v35  ;;  %v3770_v24 = vsel %vm7385_vm4, %v4602_v60, %v3766_v22  ;;  %v3555_v11 = vpop.xlane.xlu2 %3554  ;;  %vm7446_vm11 = vmor %vm3757_vm7, %vm3758_vm9  ;;  %v7455_v22 = vld [vmem:[%s7910_s26] ss:$0 sm:$0xff]  ;;  %vm3737_vm15 = vweird.f32 %v7374_v63  ;;  %s3907_s26 = sshll.u32 %s3903_s21, 4  ;;  %s3908_s26 = int_to_ptr.hbm [resolvable:$true] %s3907_s26 }
 0xa20   : > { %v3753_v58 = vmul.f32 %v7371_v38, %v3752_v39  ;;  %4611 = vrsqrt.f32 %v7374_v63  ;;  %v3795_v60 = vmul.f32 %v3770_v24, %v7245_v59  ;;  %v3593_v55 = vmul.f32 %v3555_v11, %v5172_v8  ;;  %s4737_s5 = sshra.s32 %s3908_s26, 4  ;;  %s4738_s5 = int_to_ptr.hbm [resolvable:$true] %s4737_s5 }
 0xa21   : > { %v3774_v10 = vmul.f32 0.5, %v3773_v25  ;;  %v3450_v48 = vpop.xlane.xlu1 %3449  ;;  %v3561_v20 = vpop.xlane.xlu0 %3560  ;;  %4613 = vrsqrt.f32 %v7393_v40  ;;  %vm3717_vm4 = vweird.f32 %v7393_v40  ;;  %p4744_p7 = scmp.lt.s32.totalorder %s4738_s5, %s7930_s20 }
 0xa22   : > { %v3754_v34 = vmul.f32 0.5, %v3753_v58  ;;  %v3494_v33 = vmul.f32 %v3450_v48, %v5172_v8  ;;  %v3595_v19 = vmul.f32 %v3561_v20, %v5172_v8  ;;  %v3814_v25 = vmul.f32 %v7420_v23, %v3795_v60 }
 0xa23   : > { %v3775_v36 = vsub.f32 1.5, %v3774_v10  ;;  %v7459_v10 = vadd.f32 1e-05, %v3593_v55 }
 0xa24   : > { %v7390_v21 = vpop.eup %4607  ;;  %v7396_v30 = vsub.f32 %v7301_v49, %v3494_v33  ;;  %v3755_v14 = vsub.f32 1.5, %v3754_v34  ;;  %v7405_v43 = vadd.f32 1e-05, %v3595_v19  ;;  %v3833_v24 = vadd.f32 %v7455_v22, %v3814_v25 }
 0xa25   : > { %v7400_v61 = vpop.eup %4609  ;;  %v3776_v50 = vmul.f32 %v7365_v18, %v3775_v36  ;;  %v3742_v44 = vmul.f32 %v7390_v21, %v7367_v16  ;;  %vm3748_vm12 = vweird.f32 %v7390_v21 }
 0xa26   : > { %v7407_v32 = vpop.eup %4611  ;;  %v3722_v49 = vmul.f32 %v7400_v61, %v7369_v35  ;;  %4615 = vrsqrt.f32 %v7405_v43  ;;  %v3526_v59 = vmul.f32 %v7396_v30, %v7396_v30  ;;  %v3756_v47 = vmul.f32 %v7371_v38, %v3755_v14  ;;  %vm3749_vm2 = vmor %vm3747_vm10, %vm3748_vm12 }
 0xa27   : > { %v3743_v3 = vmul.f32 %v7390_v21, %v3742_v44  ;;  %v3732_v57 = vmul.f32 %v7407_v32, %v7374_v63  ;;  %v3780_v26 = vsel %vm7424_vm8, %v7365_v18, %v3776_v50  ;;  %v7457_v58 = vpop.eup %4613  ;;  %vm3728_vm1 = vweird.f32 %v7400_v61 }
 0xa28   : > { %v3723_v31 = vmul.f32 %v7400_v61, %v3722_v49  ;;  %v3544_v56 = vsel %vm955_vm0, %v3526_v59, 0.0  ;;  %v3796_v48 = vmul.f32 %v3780_v26, %v7258_v9  ;;  %v3712_v53 = vmul.f32 %v7457_v58, %v7393_v40  ;;  %vm7505_vm3 = vmor %vm3727_vm13, %vm3728_vm1 }
 0xa29   : > { %v3744_v45 = vmul.f32 0.5, %v3743_v3  ;;  %v3567_v0 = vpop.xlane.xlu1 %3566  ;;  %v3733_v7 = vmul.f32 %v7407_v32, %v3732_v57  ;;  %v3558_v12 = vpop.xlane.xlu0 %3557  ;;  %3545 = vadd.xlane.f32.xlu1 %v3544_v56  ;;  %4617 = vrsqrt.f32 %v7459_v10  ;;  %v3760_v9 = vsel %vm7446_vm11, %v7371_v38, %v3756_v47 }
 0xa2a   : > { %v3597_v54 = vmul.f32 %v3567_v0, %v5172_v8  ;;  %v3724_v18 = vmul.f32 0.5, %v3723_v31  ;;  %v3594_v17 = vmul.f32 %v3558_v12, %v5172_v8  ;;  %v3713_v36 = vmul.f32 %v7457_v58, %v3712_v53  ;;  %v3552_v49 = vpop.xlane.xlu2 %3551 }
 0xa2b   : > { %v3745_v39 = vsub.f32 1.5, %v3744_v45  ;;  %v3734_v20 = vmul.f32 0.5, %v3733_v7  ;;  %v3815_v14 = vmul.f32 %v7420_v23, %v3796_v48  ;;  %v3794_v60 = vmul.f32 %v3760_v9, %v7260_v42 }
 0xa2c   : > { %v7461_v28 = vadd.f32 1e-05, %v3597_v54  ;;  %v7470_v33 = vpop.eup %4615  ;;  %v3725_v41 = vsub.f32 1.5, %v3724_v18  ;;  %v7486_v50 = vadd.f32 1e-05, %v3594_v17  ;;  %v3714_v44 = vmul.f32 0.5, %v3713_v36 }
 0xa2d   : > { %v3746_v34 = vmul.f32 %v7390_v21, %v3745_v39  ;;  %v3682_v19 = vmul.f32 %v7470_v33, %v7405_v43  ;;  %v3735_v46 = vsub.f32 1.5, %v3734_v20  ;;  %v3834_v31 = vadd.f32 %v7455_v22, %v3815_v14 }
 0xa2e   : > { %4619 = vrsqrt.f32 %v7461_v28  ;;  %v3592_v59 = vmul.f32 %v3552_v49, %v5172_v8  ;;  %v3726_v47 = vmul.f32 %v7400_v61, %v3725_v41  ;;  %vm3738_vm14 = vweird.f32 %v7407_v32 }
 0xa2f   : > { %v3750_v38 = vsel %vm3749_vm2, %v7390_v21, %v3746_v34  ;;  %v3683_v16 = vmul.f32 %v7470_v33, %v3682_v19  ;;  %4621 = vrsqrt.f32 %v7486_v50  ;;  %v3715_v21 = vsub.f32 1.5, %v3714_v44  ;;  %v7499_v11 = vpop.eup %4617  ;;  %vm7525_vm6 = vmor %vm3737_vm15, %vm3738_vm14 }
 0xa30   : > { %v3793_v57 = vmul.f32 %v3750_v38, %v7263_v27  ;;  %v3842_v27 = vpack.c.bf16 %v3834_v31, %v3833_v24  ;;  %v7509_v0 = vadd.f32 1e-05, %v3592_v59  ;;  %v3813_v7 = vmul.f32 %v7420_v23, %v3794_v60 }
 0xa31   : > { %v3564_v3 = vpop.xlane.xlu1 %3563  ;;  %v3684_v55 = vmul.f32 0.5, %v3683_v16  ;;  %v3662_v56 = vmul.f32 %v7499_v11, %v7459_v10  ;;  %v3736_v35 = vmul.f32 %v7407_v32, %v3735_v46  ;;  %vm3718_vm5 = vweird.f32 %v7457_v58 }
 0xa32   : > { %v3596_v45 = vmul.f32 %v3564_v3, %v5172_v8  ;;  %v3812_v26 = vmul.f32 %v7420_v23, %v3793_v57  ;;  %v3875_v12 = vsel %vm955_vm0, %v3842_v27, 0  ;;  %vm3707_vm7 = vweird.f32 %v7461_v28  ;;  %vm7548_vm8 = vmor %vm3717_vm4, %vm3718_vm5 }
 0xa33   : > { %3877 = vmatpush.bf16.xpose.msra.mxu0 %v3875_v12  ;;  %4623 = vrsqrt.f32 %v7509_v0  ;;  %v3730_v25 = vsel %vm7505_vm3, %v7400_v61, %v3726_v47  ;;  %v3716_v48 = vmul.f32 %v7457_v58, %v3715_v21  ;;  %v3832_v34 = vadd.f32 %v7455_v22, %v3813_v7 }
 0xa34   : > { %v4620_v54 = vpop.eup %4619  ;;  %v7519_v6 = vadd.f32 1e-05, %v3596_v45  ;;  %v3831_v63 = vadd.f32 %v7455_v22, %v3812_v26  ;;  %v3685_v53 = vsub.f32 1.5, %v3684_v55  ;;  %v3663_v20 = vmul.f32 %v7499_v11, %v3662_v56 }
 0xa35   : > { %v3702_v18 = vmul.f32 %v4620_v54, %v7461_v28  ;;  %v7535_v17 = vpop.eup %4621  ;;  %v3740_v14 = vsel %vm7525_vm6, %v7407_v32, %v3736_v35  ;;  %v3791_v38 = vmul.f32 %v3730_v25, %v7266_v52  ;;  %vm3708_vm9 = vweird.f32 %v4620_v54 }
 0xa36   : > { %4625 = vrsqrt.f32 %v7519_v6  ;;  %v3672_v41 = vmul.f32 %v7535_v17, %v7486_v50  ;;  %v3841_v19 = vpack.c.bf16 %v3832_v34, %v3831_v63  ;;  %v3792_v49 = vmul.f32 %v3740_v14, %v7273_v29  ;;  %vm7572_vm12 = vmor %vm3707_vm7, %vm3708_vm9 }
 0xa37   : > { %v3703_v9 = vmul.f32 %v4620_v54, %v3702_v18  ;;  %v3810_v57 = vmul.f32 %v7420_v23, %v3791_v38  ;;  %vm3687_vm10 = vweird.f32 %v7405_v43  ;;  %vm3688_vm11 = vweird.f32 %v7470_v33 }
 0xa38   : > { %v3673_v16 = vmul.f32 %v7535_v17, %v3672_v41  ;;  %v3872_v40 = vsel %vm955_vm0, %v3841_v19, 0  ;;  %v3720_v52 = vsel %vm7548_vm8, %v7457_v58, %v3716_v48  ;;  %v3664_v31 = vmul.f32 0.5, %v3663_v20  ;;  %vm7580_vm13 = vmor %vm3687_vm10, %vm3688_vm11 }
 0xa39   : > { %v3549_v36 = vpop.xlane.xlu1 %3548  ;;  %v3704_v44 = vmul.f32 0.5, %v3703_v9  ;;  %v7563_v60 = vpop.eup %4623  ;;  %v3811_v59 = vmul.f32 %v7420_v23, %v3792_v49  ;;  %v3686_v43 = vmul.f32 %v7470_v33, %v3685_v53  ;;  %v3829_v28 = vadd.f32 %v7455_v22, %v3810_v57 }
 0xa3a   : > { %v3591_v24 = vmul.f32 %v3549_v36, %v5172_v8  ;;  %v3674_v21 = vmul.f32 0.5, %v3673_v16  ;;  %v3790_v27 = vmul.f32 %v3720_v52, %v7288_v51  ;;  %v3652_v26 = vmul.f32 %v7563_v60, %v7509_v0 }
 0xa3b   : > { %v3705_v32 = vsub.f32 1.5, %v3704_v44  ;;  %3878 = vmatpush.bf16.xpose.msra.mxu0 %v3872_v40  ;;  %v3830_v42 = vadd.f32 %v7455_v22, %v3811_v59  ;;  %vm3697_vm15 = vweird.f32 %v7519_v6  ;;  %v3665_v56 = vsub.f32 1.5, %v3664_v31 }
 0xa3c   : > { %v7560_v3 = vadd.f32 1e-05, %v3591_v24  ;;  %v4626_v46 = vpop.eup %4625  ;;  %v3809_v39 = vmul.f32 %v7420_v23, %v3790_v27  ;;  %v3675_v18 = vsub.f32 1.5, %v3674_v21  ;;  %v3690_v51 = vsel %vm7580_vm13, %v7470_v33, %v3686_v43 }
 0xa3d   : > { %v3706_v47 = vmul.f32 %v4620_v54, %v3705_v32  ;;  %v3692_v45 = vmul.f32 %v4626_v46, %v7519_v6  ;;  %v3840_v35 = vpack.c.bf16 %v3830_v42, %v3829_v28  ;;  %vm3698_vm1 = vweird.f32 %v4626_v46 }
 0xa3e   : > { %4627 = vrsqrt.f32 %v7560_v3  ;;  %vm3667_vm2 = vweird.f32 %v7459_v10  ;;  %vm3668_vm14 = vweird.f32 %v7499_v11  ;;  %vm3677_vm3 = vweird.f32 %v7486_v50  ;;  %vm7606_vm5 = vmor %vm3697_vm15, %vm3698_vm1 }
 0xa3f   : > { %v3693_v7 = vmul.f32 %v4626_v46, %v3692_v45  ;;  %v3710_v55 = vsel %vm7572_vm12, %v4620_v54, %v3706_v47  ;;  %vm3678_vm4 = vweird.f32 %v7535_v17  ;;  %v3869_v10 = vsel %vm955_vm0, %v3840_v35, 0  ;;  %vm7615_vm6 = vmor %vm3667_vm2, %vm3668_vm14 }
 0xa40   : > { %v3789_v12 = vmul.f32 %v3710_v55, %v7307_v5  ;;  %v3653_v5 = vmul.f32 %v7563_v60, %v3652_v26  ;;  %v3828_v20 = vadd.f32 %v7455_v22, %v3809_v39  ;;  %v3787_v9 = vmul.f32 %v3690_v51, %v7293_v13  ;;  %vm7624_vm7 = vmor %vm3677_vm3, %vm3678_vm4 }
 0xa41   : > { %v3694_v25 = vmul.f32 0.5, %v3693_v7  ;;  %v3666_v41 = vmul.f32 %v7499_v11, %v3665_v56  ;;  %v3676_v6 = vmul.f32 %v7535_v17, %v3675_v18  ;;  %vm3647_vm8 = vweird.f32 %v7560_v3 }
 0xa42   : > { %v3808_v54 = vmul.f32 %v7420_v23, %v3789_v12  ;;  %v3654_v14 = vmul.f32 0.5, %v3653_v5  ;;  %v3806_v49 = vmul.f32 %v7420_v23, %v3787_v9  ;;  %vm3657_vm10 = vweird.f32 %v7509_v0 }
 0xa43   : > { %v3695_v63 = vsub.f32 1.5, %v3694_v25  ;;  %3879 = vmatpush.bf16.xpose.msra.mxu0 %v3869_v10  ;;  %v3670_v57 = vsel %vm7615_vm6, %v7499_v11, %v3666_v41  ;;  %v3680_v50 = vsel %vm7624_vm7, %v7535_v17, %v3676_v6  ;;  %vm3658_vm11 = vweird.f32 %v7563_v60 }
 0xa44   : > { %v4628_v48 = vpop.eup %4627  ;;  %v3827_v53 = vadd.f32 %v7455_v22, %v3808_v54  ;;  %v3655_v31 = vsub.f32 1.5, %v3654_v14  ;;  %v3785_v29 = vmul.f32 %v3670_v57, %v7310_v1  ;;  %v3786_v11 = vmul.f32 %v3680_v50, %v7316_v15  ;;  %vm3659_vm13 = vmor %vm3657_vm10, %vm3658_vm11 }
 0xa45   : > { %v3642_v34 = vmul.f32 %v4628_v48, %v7560_v3  ;;  %v3696_v61 = vmul.f32 %v4626_v46, %v3695_v63  ;;  %vm3648_vm9 = vweird.f32 %v4628_v48  ;;  %v3844_v63 = vld [vmem:[%s7927_s23] sm:$0xf]  ;;  %v4834_v33 = vmov 0   ;;  %s4739_s23 = scalar_lea.hbm %s4738_s5, 4 }
 0xa46   : > { %v3839_v13 = vpack.c.bf16 %v3828_v20, %v3827_v53  ;;  %vm3649_vm12 = vmor %vm3647_vm8, %vm3648_vm9  ;;  %v3656_v43 = vmul.f32 %v7563_v60, %v3655_v31  ;;  %v3804_v3 = vmul.f32 %v7420_v23, %v3785_v29  ;;  %v3805_v47 = vmul.f32 %v7420_v23, %v3786_v11  ;;  %4596 = vset.pattern.permute.xlu2 %v4834_v33  ;;  %p4740_p3 = scmp.ne.s32.totalorder %s4738_s5, %s4739_s23  ;;  %p4745_p9 = scmp.lt.s32.totalorder %s4743_s4, %s4739_s23 }
 0xa47   : > { %v3643_v19 = vmul.f32 %v4628_v48, %v3642_v34  ;;  %v3700_v44 = vsel %vm7606_vm5, %v4626_v46, %v3696_v61  ;;  %4597 = vset.pattern.permute.xlu0 %v4834_v33  ;;  %3847 = vperm.xlu2 %4596, %v3844_v63  }
 0xa48   : > { %v3788_v16 = vmul.f32 %v3700_v44, %v7328_v62  ;;  %v3866_v32 = vsel %vm955_vm0, %v3839_v13, 0  ;;  %v3825_v62 = vadd.f32 %v7455_v22, %v3806_v49  ;;  %v3660_v15 = vsel %vm3659_vm13, %v7563_v60, %v3656_v43  ;;  %v3843_v49 = vld [vmem:[%s7928_s0] sm:$0x3]  ;;  %p4741_p5 = pnand %p4740_p3, %p4985_p4  ;;  %p4746_p10 = por %p4745_p9, %p4744_p7 }
 0xa49   : > { %v3644_v38 = vmul.f32 0.5, %v3643_v19  ;;  %v3823_v0 = vadd.f32 %v7455_v22, %v3804_v3  ;;  %v3824_v45 = vadd.f32 %v7455_v22, %v3805_v47  ;;  %v3784_v28 = vmul.f32 %v3660_v15, %v7331_v2 }
 0xa4a   : > { %v3807_v52 = vmul.f32 %v7420_v23, %v3788_v16  ;;  %p4742_p6 = pneg %p4741_p5 }
 0xa4b   : > { %v3645_v40 = vsub.f32 1.5, %v3644_v38  ;;  %3880 = vmatpush.bf16.xpose.msra.mxu0 %v3866_v32  ;;  %v3837_v42 = vpack.c.bf16 %v3824_v45, %v3823_v0  ;;  %v3803_v26 = vmul.f32 %v7420_v23, %v3784_v28 }
 0xa4c   : > { %v3826_v46 = vadd.f32 %v7455_v22, %v3807_v52  ;;  %p4747_p11 = pnand %p4746_p10, %p4742_p6 }
 0xa4d   : > { %v3646_v17 = vmul.f32 %v4628_v48, %v3645_v40  ;;  %v3860_v7 = vsel %vm955_vm0, %v3837_v42, 0  ;;  %v3822_v60 = vadd.f32 %v7455_v22, %v3803_v26 }
 0xa4e   : > { %v3838_v59 = vpack.c.bf16 %v3826_v46, %v3825_v62 }
 0xa4f   : > { %v3650_v21 = vsel %vm3649_vm12, %v4628_v48, %v3646_v17 }
 0xa50   : > { %v3863_v1 = vsel %vm955_vm0, %v3838_v59, 0  ;;  %v3783_v58 = vmul.f32 %v3650_v21, %v7343_v37 }
 0xa52   : > { %v3802_v27 = vmul.f32 %v7420_v23, %v3783_v58 }
 0xa53   : > { %3881 = vmatpush.bf16.xpose.msra.mxu0 %v3863_v1 }
 0xa54   : > { %v3821_v55 = vadd.f32 %v7455_v22, %v3802_v27 }
 0xa56   : > { %v3836_v56 = vpack.c.bf16 %v3822_v60, %v3821_v55 }
 0xa58   : > { %v3857_v35 = vsel %vm955_vm0, %v3836_v56, 0 }
 0xa5b   : > { %3882 = vmatpush.bf16.xpose.msra.mxu0 %v3860_v7 }
 0xa63   : > { %3883 = vmatpush.bf16.xpose.msra.mxu0 %v3857_v35 }
 0xa8c   : > { %v3543_v37 = vpop.xlane.xlu0 %3542 }
 0xa8d   : > { %v3589_v12 = vmul.f32 %v3543_v37, %v5172_v8 }
 0xa8f   : > { %v3605_v2 = vadd.f32 1e-05, %v3589_v12 }
 0xa91   : > { %4629 = vrsqrt.f32 %v3605_v2  ;;  %vm3627_vm15 = vweird.f32 %v3605_v2 }
 0xa97   : > { %v4630_v39 = vpop.eup %4629 }
 0xa98   : > { %v3622_v18 = vmul.f32 %v4630_v39, %v3605_v2  ;;  %vm3628_vm1 = vweird.f32 %v4630_v39 }
 0xa99   : > { %vm3629_vm2 = vmor %vm3627_vm15, %vm3628_vm1 }
 0xa9a   : > { %v3623_v25 = vmul.f32 %v4630_v39, %v3622_v18 }
 0xa9c   : > { %v3546_v51 = vpop.xlane.xlu1 %3545  ;;  %v3624_v5 = vmul.f32 0.5, %v3623_v25 }
 0xa9d   : > { %v3590_v48 = vmul.f32 %v3546_v51, %v5172_v8 }
 0xa9e   : > { %v3625_v34 = vsub.f32 1.5, %v3624_v5 }
 0xa9f   : > { %v3606_v54 = vadd.f32 1e-05, %v3590_v48 }
 0xaa0   : > { %v3626_v53 = vmul.f32 %v4630_v39, %v3625_v34 }
 0xaa1   : > { %4631 = vrsqrt.f32 %v3606_v54  ;;  %vm3637_vm3 = vweird.f32 %v3606_v54 }
 0xaa2   : > { %v3630_v41 = vsel %vm3629_vm2, %v4630_v39, %v3626_v53 }
 0xaa3   : > { %v3781_v6 = vmul.f32 %v3630_v41, %v7356_v4 }
 0xaa5   : > { %v3800_v13 = vmul.f32 %v7420_v23, %v3781_v6 }
 0xaa7   : > { %v4632_v10 = vpop.eup %4631  ;;  %v3819_v38 = vadd.f32 %v7455_v22, %v3800_v13 }
 0xaa8   : > { %v3632_v20 = vmul.f32 %v4632_v10, %v3606_v54  ;;  %vm3638_vm14 = vweird.f32 %v4632_v10 }
 0xaa9   : > { %vm3639_vm4 = vmor %vm3637_vm3, %vm3638_vm14 }
 0xaaa   : > { %v3633_v9 = vmul.f32 %v4632_v10, %v3632_v20 }
 0xaac   : > { %v3634_v8 = vmul.f32 0.5, %v3633_v9 }
 0xaae   : > { %v3635_v36 = vsub.f32 1.5, %v3634_v8 }
 0xab0   : > { %v3636_v61 = vmul.f32 %v4632_v10, %v3635_v36 }
 0xab2   : > { %v3640_v19 = vsel %vm3639_vm4, %v4632_v10, %v3636_v61 }
 0xab3   : > { %v3782_v24 = vmul.f32 %v3640_v19, %v7396_v30  ;;  %v3848_v30 = vpop.permute.xlu2 %3847 }
 0xab5   : > { %v3801_v14 = vmul.f32 %v7420_v23, %v3782_v24 }
 0xab7   : > { %v3820_v44 = vadd.f32 %v7455_v22, %v3801_v14 }
 0xab9   : > { %v3835_v16 = vpack.c.bf16 %v3820_v44, %v3819_v38 }
 0xabb   : > { %v3854_v4 = vsel %vm955_vm0, %v3835_v16, 0 }
 0xabc   : > { %3884 = vmatpush.bf16.xpose.msra.mxu0 %v3854_v4 }
 0xac3   : > { %4254 = vmatmul.msk.bf16.vlgmr.msra.gmra.mxu0 %vm955_vm0, %v3843_v49 }
 0xb40   : > { %v3886_v23 = vpop.f32.mrf.mxu0 }
 0xb41   : > { %v3887_v22 = vadd.f32 %v3886_v23, %v3848_v30 }
 0xb43   : > { %3890 = vst [vmem:[%s750_s24] sm:$0xf] %v3887_v22 }
 0xb44   : > { %4750 = shalt.err (!%p4747_p11)
}
 0xb45   : > { %4331 = dma.vmem_to_hbm [thread:$0]  (%p4985_p4), %s3906_s2, 64, %s3908_s26, %s3892_s19  }
 0xb48   : > { %v3888_v40 = vpop.f32.mrf.mxu0 }
 0xb49 PF: > { %s7931_s6 = sld [smem:[#allocation16_spill]] }
 0xb4a   : > { %s7932_s18 = sld [smem:[#allocation13_spill]] }
 0xb4f   : > { %p4353_p12 = scmp.ge.s32.totalorder %s7931_s6, 2 }
 0xb50   : > { %s3919_s29 = sand.u32 1, %s7932_s18  }
 0xb51   : > { %p4344_p13 = pnand %p4353_p12, %p4992_p8  ;;  %s3920_s22 = scalar_lea.sflag [#allocation5], %s3919_s29 }
 0xb53   : > { %p4345_p0 = pneg %p4344_p13 }
 0xb55   : > { %4792 = dma.done.wait (%p4345_p0), %s3920_s22, 64  }
 0xb56   : > { %4794 = vsyncadd (%p4345_p0), %s3920_s22, 4294967232  ;;  %s36_s28 = sadd.s32 1, %s7931_s6   ;;  %s7934_s21 = sld [smem:[#allocation14_spill]] }
 0xb57   : > { %p33_p1 = scmp.ge.s32.totalorder %s36_s28, 4   ;;  %s7935_s26 = sld [smem:[#allocation20_spill]] }
 0xb58   : > { %s7936_s27 = sld [smem:[#allocation15_spill]]  ;;  %s7938_s2 = smov %s4801_s25 }
 0xb59   : > { %s7937_s3 = sld [smem:[#allocation17_spill]]  ;;  %35 = sbr.rel (!%p33_p1) target bundleno = 18 (0x12), region = 202 }
 0xb5c   : > { %s7939_s25 = smov %s7934_s21 }
 0xb5e   :  { %3926 = vsyncpa [#allocation4], 1 }
 0xb5f   :  { %3928 = vsyncpa [#allocation4 + $0x1], 1 }
 0xb60   :  { %3929 = vsyncpa [#allocation7], 1 }
 0xb61   :  { %3930 = vsyncpa [#allocation5], 1 }
 0xb62   :  { %3932 = vsyncpa [#allocation5 + $0x1], 1 }

// kernel: tpu_custom_call.1
= control target key start
LH: loop header
LB: loop body
LE: loop exit
PB: predicated region body
PF: predicated region fallthrough
CT: control target
= control target key end

     0   :  { %s7714_s0 = inlined_call_operand.vmem [shape: bf16[2,128,128], index: 0, kind: input, shape index: {}]   ;;  %s7715_s1 = inlined_call_operand.vmem [shape: bf16[2,4,8,8], index: 1, kind: input, shape index: {}]   ;;  %s7716_s2 = inlined_call_operand.vmem [shape: bf16[2,4,8,8], index: 2, kind: input, shape index: {}]   ;;  %s7717_s3 = inlined_call_operand.vmem [shape: bf16[128,32], index: 3, kind: input, shape index: {}]   ;;  %s7718_s4 = inlined_call_operand.vmem [shape: f32[1,32], index: 4, kind: input, shape index: {}]   ;;  %s7719_s5 = inlined_call_operand.hbm [shape: f32[1,32], index: 5, kind: input, shape index: {}]   ;;  %s7720_s6 = inlined_call_operand.hbm [shape: f32[1,32], index: 6, kind: input, shape index: {}]   ;;  %s7721_s7 = inlined_call_operand.vmem [shape: bf16[4,32,8], index: 7, kind: input, shape index: {}]   ;;  %s7722_s8 = inlined_call_operand.vmem [shape: f32[4,1,8], index: 8, kind: input, shape index: {}]   ;;  %s7723_s9 = inlined_call_operand.vmem [shape: bf16[4,8,32], index: 9, kind: input, shape index: {}]   ;;  %s7724_s10 = inlined_call_operand.vmem [shape: f32[1,32], index: 10, kind: input, shape index: {}]   ;;  %s7725_s11 = inlined_call_operand.vmem [shape: f32[1,32], index: 11, kind: input, shape index: {}]   ;;  %s7726_s12 = inlined_call_operand.vmem [shape: f32[1,32], index: 12, kind: input, shape index: {}]   ;;  %s7727_s13 = inlined_call_operand.hbm [shape: bf16[2,32,64], index: 13, kind: input, shape index: {}]   ;;  %s7728_s14 = inlined_call_operand.vmem [shape: f32[2,1,64], index: 14, kind: input, shape index: {}]   ;;  %s7729_s15 = inlined_call_operand.vmem [shape: bf16[2,64,32], index: 15, kind: input, shape index: {}]   ;;  %s7730_s16 = inlined_call_operand.vmem [shape: f32[1,32], index: 16, kind: input, shape index: {}]   ;;  %s7731_s17 = inlined_call_operand.vmem [shape: f32[1,32], index: 17, kind: input, shape index: {}]   ;;  %s7732_s18 = inlined_call_operand.vmem [shape: f32[1,32], index: 18, kind: input, shape index: {}]   ;;  %s7733_s19 = inlined_call_operand.vmem [shape: bf16[4,32], index: 19, kind: input, shape index: {}]   ;;  %s7734_s20 = inlined_call_operand.vmem [shape: f32[4,1], index: 20, kind: input, shape index: {}]   ;;  %s7735_s21 = inlined_call_operand.hbm [shape: f32[2,4,128], index: 21, kind: output, shape index: {}]  }
   0x1   :  { %7764 = sst [smem:[#allocation36_spill]] %s7714_s0 }
   0x2   :  { %7765 = sst [smem:[#allocation37_spill]] %s7715_s1 }
   0x3   :  { %7766 = sst [smem:[#allocation38_spill]] %s7716_s2 }
   0x4   :  { %7767 = sst [smem:[#allocation39_spill]] %s7717_s3 }
   0x5   :  { %7768 = sst [smem:[#allocation40_spill]] %s7718_s4 }
   0x6   :  { %7769 = sst [smem:[#allocation41_spill]] %s7719_s5 }
   0x7   :  { %7770 = sst [smem:[#allocation42_spill]] %s7720_s6 }
   0x8   :  { %7771 = sst [smem:[#allocation43_spill]] %s7732_s18 }
   0x9   :  { %7772 = sst [smem:[#allocation44_spill]] %s7733_s19 }
   0xa   :  { %7773 = sst [smem:[#allocation45_spill]] %s7734_s20 }
   0xb   :  { %7774 = sst [smem:[#allocation46_spill]] %s7735_s21 }
   0xc   :  { %26 = vsyncpa [#allocation4], 0 }
   0xd   :  { %27 = vsyncpa [#allocation7], 0 }
   0xe   :  { %28 = vsyncpa [#allocation5], 0 }
   0xf   :  { %30 = vsyncpa [#allocation5 + $0x1], 0  ;;  %s4939_s2 = smov 0   ;;  %s4941_s25 = smov 0  }
  0x10   :  { %s4943_s26 = smov 0   ;;  %s4945_s27 = smov 0  }
  0x11   :  { %s4947_s3 = smov 0   ;;  %s4949_s28 = smov 0  }
  0x12 LB: > { %7775 = sst [smem:[#allocation13_spill]] %s4791_s2  ;;  %s4061_s29 = sadd.s32 4294967295, %s4811_s28   ;;  %s4811_s28 = sphi %s4949_s28, %s36_s28   ;;  %s4807_s3 = sphi %s4947_s3, %s7931_s3   ;;  %s4803_s27 = sphi %s4945_s27, %s7930_s27   ;;  %s4799_s26 = sphi %s4943_s26, %s7929_s26   ;;  %s4795_s25 = sphi %s4941_s25, %s7933_s25   ;;  %s4791_s2 = sphi %s4939_s2, %s7932_s2  }
  0x13   : > { %7776 = sst [smem:[#allocation14_spill]] %s4799_s26  ;;  %s4062_s0 = sadd.s32 4294967294, %s4811_s28  }
  0x14   : > { %7777 = sst [smem:[#allocation15_spill]] %s4807_s3  ;;  %s48_s4 = sadd.s32 1, %s4807_s3 }
  0x15   : > { %7778 = sst [smem:[#allocation16_spill]] %s4811_s28  ;;  %s515_s30 = sadd.s32 1, %s4799_s26 }
  0x16   : > { %p50_p0 = scmp.ge.s32.totalorder %s48_s4, 2  ;;  %p525_p1 = scmp.ne.s32.totalorder %s4799_s26, %s4795_s25 }
  0x17   : > { %p526_p2 = scmp.eq.s32.totalorder %s4061_s29, 1  ;;  %p531_p3 = scmp.ne.s32.totalorder %s4795_s25, %s4791_s2 }
  0x18   : > { %s7935_s4 = smov (%p50_p0, %s48_s4), 0  ;;  %p532_p5 = scmp.eq.s32.totalorder %s4062_s0, 1 }
  0x19   : > { %7779 = sst [smem:[#allocation17_spill]] %s7935_s4  ;;  %p4979_p4 = por %p526_p2, %p525_p1 }
  0x1a   : > { %s510_s22 = ssub.s32 %s4807_s3, %s7935_s4  ;;  %p4063_p6 = scmp.ge.s32.totalorder %s4811_s28, 1 }
  0x1b   : > { %s7780_s5 = scalar_select %p4979_p4, 1, 0 }
  0x1c   : > { %p513_p7 = scmp.eq.s32.totalorder %s510_s22, 0  ;;  %p4986_p8 = por %p532_p5, %p531_p3 }
  0x1d   : > { %7781 = sst [smem:[#allocation18_spill]] %s7780_s5  ;;  %p539_p9 = scmp.lt.s32.totalorder %s4811_s28, 3 }
  0x1e   : > { %s7782_s23 = scalar_select %p4986_p8, 1, 0 }
  0x1f   : > { %s4992_s1 = scalar_select %p513_p7, %s4799_s26, %s515_s30  }
  0x20   : > { %7783 = sst [smem:[#allocation19_spill]] %s7782_s23  ;;  %p4994_p10 = pnand %p4063_p6, %p539_p9 }
  0x21   : > { %7784 = sst [smem:[#allocation20_spill]] %s4992_s1  ;;  %p4998_p11 = scmp.eq.s32.totalorder %s4061_s29, 0 }
  0x22   : > { %s7787_s6 = sld [smem:[#allocation42_spill]]  ;;  %p4327_p12 = pneg %p4994_p10 }
  0x23   : > { %s4821_s3 = smov [#allocation6]   ;;  %s7789_s23 = sld [smem:[#allocation41_spill]] }
  0x24   : > { %s571_s30 = sshll.u32 %s4821_s3, 4  ;;  %p5009_p13 = pnand %p4998_p11, %p4327_p12  ;;  %s572_s30 = int_to_ptr.vmem [resolvable:$true] %s571_s30 }
  0x25   : > { %s598_s3 = sshll.u32 %s7727_s13, 4  ;;  %s4822_s28 = smov [#allocation3]   ;;  %s599_s3 = int_to_ptr.hbm [resolvable:$true] %s598_s3 }
  0x26   : > { %s559_s21 = sshll.u32 %s4822_s28, 4  ;;  %s4823_s5 = smov [#allocation8]   ;;  %s560_s21 = int_to_ptr.vmem [resolvable:$true] %s559_s21 }
  0x27   : > { %s600_s19 = sshll.u32 %s4823_s5, 4  ;;  %s4824_s20 = smov 64   ;;  %s601_s19 = int_to_ptr.vmem [resolvable:$true] %s600_s19 }
  0x28   : > { %s569_s22 = sshll.u32 %s7787_s6, 4  ;;  %s4825_s18 = smov 4   ;;  %s570_s22 = int_to_ptr.hbm [resolvable:$true] %s569_s22 }
  0x29   : > { %s557_s4 = sshll.u32 %s7789_s23, 4  ;;  %666 = sbr.rel (%p4994_p10) target bundleno = 2889 (0xb49), region = 104  ;;  %s558_s4 = int_to_ptr.hbm [resolvable:$true] %s557_s4 }
  0x2a   : > { %4333 = dma.hbm_to_vmem [thread:$0]  (!%p5009_p13), %s570_s22, 16, %s572_s30, [#allocation7]  }
  0x2b   : > { %4330 = dma.hbm_to_vmem [thread:$0]  (!%p5009_p13), %s558_s4, 16, %s560_s21, [#allocation4]  }
  0x2c   : > { %4336 = dma.hbm_to_vmem [thread:$0]  (!%p5009_p13), %s599_s3, 512, %s601_s19, [#allocation7], %s4824_s20, %s4824_s20, %s4825_s18  }
  0x2e   : > { %4778 = dma.done.wait (%p4998_p11), [#allocation4], 16  }
  0x2f   : > { %4780 = vsyncadd (%p4998_p11), [#allocation4], 4294967280 }
  0x30   : > { %4782 = dma.done.wait (%p4998_p11), [#allocation7], 528  }
  0x31   : > { %4784 = vsyncadd (%p4998_p11), [#allocation7], 4294966768  ;;  %vm955_vm0 = vcmask 261120   ;;  %s748_s6 = sand.u32 1, %s4795_s25   ;;  %p752_p0 = scmp.lt.s32.totalorder %s4803_s27, 1  ;;  %v4826_v0 = vmov 0.0  }
  0x32   : > { %1361 = vst.msk [vmem:[#allocation2] sm:$0xff] %vm955_vm0, %v4826_v0  ;;  %s5040_s18 = sshll.u32 %s748_s6, 2  ;;  %s7790_s26 = sld [smem:[#allocation37_spill]] }
  0x33   : > { %1362 = vst.msk [vmem:[#allocation2 + $0x8] sm:$0xff] %vm955_vm0, %v4826_v0  ;;  %s5045_s19 = scalar_select %p752_p0, %s4803_s27, 1 }
  0x34   : > { %1363 = vst.msk [vmem:[#allocation2 + $0x10] sm:$0xff] %vm955_vm0, %v4826_v0  ;;  %s7791_s1 = sld [smem:[#allocation39_spill]]  ;;  %s750_s24 = scalar_lea.vmem [#allocation9], %s5040_s18 }
  0x35   : > { %1364 = vst.msk [vmem:[#allocation2 + $0x18] sm:$0xff] %vm955_vm0, %v4826_v0  ;;  %s4254_s20 = sshll.u32 %s5045_s19, 4  ;;  %s7792_s30 = sld [smem:[#allocation38_spill]] }
  0x36   : > { %1365 = vst.msk [vmem:[#allocation2 + $0x20] sm:$0xff] %vm955_vm0, %v4826_v0  ;;  %s4253_s4 = sshll.u32 %s5045_s19, 6  ;;  %s7793_s2 = sld [smem:[#allocation36_spill]] }
  0x37   : > { %1366 = vst.msk [vmem:[#allocation2 + $0x28] sm:$0xff] %vm955_vm0, %v4826_v0  ;;  %s7794_s23 = sld [smem:[#allocation40_spill]]  ;;  %s5585_s22 = smov 0  }
  0x38   : > { %s5054_s28 = scalar_lea.vmem %s7790_s26, %s4254_s20  ;;  %1367 = vst.msk [vmem:[#allocation2 + $0x30] sm:$0xff] %vm955_vm0, %v4826_v0 }
  0x39   : > { %1368 = vst.msk [vmem:[#allocation2 + $0x38] sm:$0xff] %vm955_vm0, %v4826_v0 }
  0x3a   : > { %v4271_v1 = vld [vmem:[%s7791_s1 + $0x38] sm:$0xff]  ;;  %1369 = vst.msk [vmem:[#allocation2 + $0x40] sm:$0xff] %vm955_vm0, %v4826_v0  ;;  %v4270_v2 = vld [vmem:[%s7791_s1 + $0x30] sm:$0xff]  ;;  %v4269_v3 = vld [vmem:[%s7791_s1 + $0x28] sm:$0xff] }
  0x3b   : > { %s5063_s29 = scalar_lea.vmem %s7792_s30, %s4254_s20  ;;  %904 = vmatpush.bf16.msra.mxu0 %v4271_v1  ;;  %4283 = vmatpush.bf16.msra.mxu1 %v4271_v1  ;;  %1370 = vst.msk [vmem:[#allocation2 + $0x48] sm:$0xff] %vm955_vm0, %v4826_v0  ;;  %v4268_v4 = vld [vmem:[%s7791_s1 + $0x20] sm:$0xff]  ;;  %v4267_v5 = vld [vmem:[%s7791_s1 + $0x18] sm:$0xff]  ;;  %v4266_v6 = vld [vmem:[%s7791_s1 + $0x10] sm:$0xff] }
  0x3c   : > { %4284 = vmatpush.bf16.msra.mxu2 %v4271_v1  ;;  %4285 = vmatpush.bf16.msra.mxu3 %v4271_v1  ;;  %1371 = vst.msk [vmem:[#allocation2 + $0x50] sm:$0xff] %vm955_vm0, %v4826_v0  ;;  %v4265_v7 = vld [vmem:[%s7791_s1 + $0x8] sm:$0xff]  ;;  %v4264_v8 = vld [vmem:[%s7791_s1] sm:$0xff]  ;;  %s759_s26 = scalar_lea.vmem %s7793_s2, %s4253_s4 }
  0x3d   : > { %1372 = vst.msk [vmem:[#allocation2 + $0x58] sm:$0xff] %vm955_vm0, %v4826_v0  ;;  %v4256_v9 = vld [vmem:[%s759_s26] sm:$0xff]  ;;  %v4258_v10 = vld [vmem:[%s759_s26 + $0x10] sm:$0xff]  ;;  %v4257_v13 = vld [vmem:[%s759_s26 + $0x8] sm:$0xff] }
  0x3e   : > { %1373 = vst.msk [vmem:[#allocation2 + $0x60] sm:$0xff] %vm955_vm0, %v4826_v0  ;;  %v4260_v11 = vld [vmem:[%s759_s26 + $0x20] sm:$0xff]  ;;  %v4262_v12 = vld [vmem:[%s759_s26 + $0x30] sm:$0xff]  ;;  %v4259_v14 = vld [vmem:[%s759_s26 + $0x18] sm:$0xff] }
  0x3f   : > { %905 = vmatpush.bf16.msra.mxu0 %v4270_v2  ;;  %4286 = vmatpush.bf16.msra.mxu1 %v4270_v2  ;;  %1374 = vst.msk [vmem:[#allocation2 + $0x68] sm:$0xff] %vm955_vm0, %v4826_v0  ;;  %v4261_v15 = vld [vmem:[%s759_s26 + $0x28] sm:$0xff]  ;;  %v4263_v16 = vld [vmem:[%s759_s26 + $0x38] sm:$0xff]  ;;  %v4420_v17 = vld [vmem:[%s7794_s23] ss:$0 sm:$0xff] }
  0x40   : > { %4287 = vmatpush.bf16.msra.mxu2 %v4270_v2  ;;  %4288 = vmatpush.bf16.msra.mxu3 %v4270_v2  ;;  %1375 = vst.msk [vmem:[#allocation2 + $0x70] sm:$0xff] %vm955_vm0, %v4826_v0  ;;  %v4827_v2 = vmov 32.0  }
  0x41   : > { %1376 = vst.msk [vmem:[#allocation2 + $0x78] sm:$0xff] %vm955_vm0, %v4826_v0  ;;  %4423 = vrcp.f32 %v4827_v2 }
  0x43   : > { %906 = vmatpush.bf16.msra.mxu0 %v4269_v3  ;;  %4289 = vmatpush.bf16.msra.mxu1 %v4269_v3 }
  0x44   : > { %4290 = vmatpush.bf16.msra.mxu2 %v4269_v3  ;;  %4291 = vmatpush.bf16.msra.mxu3 %v4269_v3 }
  0x47   : > { %907 = vmatpush.bf16.msra.mxu0 %v4268_v4  ;;  %4292 = vmatpush.bf16.msra.mxu1 %v4268_v4  ;;  %v4424_v3 = vpop.eup %4423 }
  0x48   : > { %4293 = vmatpush.bf16.msra.mxu2 %v4268_v4  ;;  %4294 = vmatpush.bf16.msra.mxu3 %v4268_v4  ;;  %v1005_v4 = vmul.f32 32.0, %v4424_v3  ;;  %vm1009_vm1 = vweird.f32 %v4424_v3 }
  0x4b   : > { %908 = vmatpush.bf16.msra.mxu0 %v4267_v5  ;;  %4295 = vmatpush.bf16.msra.mxu1 %v4267_v5 }
  0x4c   : > { %4296 = vmatpush.bf16.msra.mxu2 %v4267_v5  ;;  %4297 = vmatpush.bf16.msra.mxu3 %v4267_v5  ;;  %v1006_v5 = vsub.f32 1.0, %v1005_v4 }
  0x4f   : > { %909 = vmatpush.bf16.msra.mxu0 %v4266_v6  ;;  %4298 = vmatpush.bf16.msra.mxu1 %v4266_v6 }
  0x50   : > { %4299 = vmatpush.bf16.msra.mxu2 %v4266_v6  ;;  %4300 = vmatpush.bf16.msra.mxu3 %v4266_v6  ;;  %v1007_v6 = vmul.f32 %v4424_v3, %v1006_v5 }
  0x53   : > { %910 = vmatpush.bf16.msra.mxu0 %v4265_v7  ;;  %4301 = vmatpush.bf16.msra.mxu1 %v4265_v7 }
  0x54   : > { %4302 = vmatpush.bf16.msra.mxu2 %v4265_v7  ;;  %4303 = vmatpush.bf16.msra.mxu3 %v4265_v7  ;;  %v1008_v7 = vadd.f32 %v4424_v3, %v1007_v6 }
  0x57   : > { %911 = vmatpush.bf16.msra.mxu0 %v4264_v8  ;;  %4304 = vmatpush.bf16.msra.mxu1 %v4264_v8 }
  0x58   : > { %4305 = vmatpush.bf16.msra.mxu2 %v4264_v8  ;;  %4306 = vmatpush.bf16.msra.mxu3 %v4264_v8  ;;  %v5166_v8 = vsel %vm1009_vm1, %v4424_v3, %v1008_v7 }
  0x5a   : > { %912 = vmatmul.bf16.vlgmr.msra.gmra.mxu0 %v4256_v9  ;;  %922 = vmatmul.bf16.vlgmr.msra.gmra.mxu1 %v4258_v10 }
  0x5b   : > { %932 = vmatmul.bf16.vlgmr.msra.gmra.mxu2 %v4260_v11  ;;  %942 = vmatmul.bf16.vlgmr.msra.gmra.mxu3 %v4262_v12 }
  0x6a   : > { %917 = vmatmul.bf16.gmra.mxu0 %v4257_v13  ;;  %927 = vmatmul.bf16.gmra.mxu1 %v4259_v14 }
  0x6b   : > { %937 = vmatmul.bf16.gmra.mxu2 %v4261_v15  ;;  %947 = vmatmul.bf16.gmra.mxu3 %v4263_v16 }
  0xd7   : > { %v913_v18 = vpop.f32.mrf.mxu0  ;;  %v923_v19 = vpop.f32.mrf.mxu1 }
  0xd8   : > { %v5102_v20 = vadd.f32 %v4420_v17, %v913_v18  ;;  %v5104_v21 = vadd.f32 %v4420_v17, %v923_v19 }
  0xda   : > { %v968_v22 = vsel %vm955_vm0, %v5104_v21, 0.0  ;;  %v956_v23 = vsel %vm955_vm0, %v5102_v20, 0.0 }
  0xdb   : > { %969 = vadd.xlane.f32.xlu2 %v968_v22  ;;  %957 = vadd.xlane.f32.xlu0 %v956_v23 }
  0xde   : > { %v933_v24 = vpop.f32.mrf.mxu2  ;;  %v943_v25 = vpop.f32.mrf.mxu3 }
  0xdf   : > { %v5110_v26 = vadd.f32 %v4420_v17, %v933_v24  ;;  %v5112_v27 = vadd.f32 %v4420_v17, %v943_v25  ;;  %v915_v28 = vpop.f32.mrf.mxu0  ;;  %v925_v31 = vpop.f32.mrf.mxu1 }
  0xe0   : > { %v5118_v32 = vadd.f32 %v4420_v17, %v915_v28  ;;  %v5120_v33 = vadd.f32 %v4420_v17, %v925_v31 }
  0xe1   : > { %v980_v29 = vsel %vm955_vm0, %v5110_v26, 0.0  ;;  %v992_v30 = vsel %vm955_vm0, %v5112_v27, 0.0 }
  0xe2   : > { %v971_v39 = vsel %vm955_vm0, %v5120_v33, 0.0  ;;  %v959_v40 = vsel %vm955_vm0, %v5118_v32, 0.0 }
  0xe3   : > { %981 = vadd.xlane.f32.xlu2 %v980_v29  ;;  %993 = vadd.xlane.f32.xlu0 %v992_v30 }
  0xe6   : > { %v935_v34 = vpop.f32.mrf.mxu2  ;;  %v945_v35 = vpop.f32.mrf.mxu3 }
  0xe7   : > { %v5122_v36 = vadd.f32 %v4420_v17, %v945_v35  ;;  %v918_v38 = vpop.f32.mrf.mxu0  ;;  %v5132_v42 = vadd.f32 %v4420_v17, %v935_v34  ;;  %v928_v48 = vpop.f32.mrf.mxu1 }
  0xe8   : > { %v5130_v41 = vadd.f32 %v4420_v17, %v918_v38  ;;  %v5140_v49 = vadd.f32 %v4420_v17, %v928_v48 }
  0xe9   : > { %7795 = vst [vmem:[#allocation21_spill] sm:$0xff] %v5122_v36  ;;  %v995_v37 = vsel %vm955_vm0, %v5122_v36, 0.0  ;;  %v983_v46 = vsel %vm955_vm0, %v5132_v42, 0.0 }
  0xea   : > { %996 = vadd.xlane.f32.xlu1 %v995_v37  ;;  %v962_v44 = vsel %vm955_vm0, %v5130_v41, 0.0  ;;  %v974_v53 = vsel %vm955_vm0, %v5140_v49, 0.0 }
  0xeb   : > { %972 = vadd.xlane.f32.xlu2 %v971_v39  ;;  %960 = vadd.xlane.f32.xlu0 %v959_v40 }
  0xee   : > { %v938_v43 = vpop.f32.mrf.mxu2  ;;  %v948_v45 = vpop.f32.mrf.mxu3 }
  0xef   : > { %v5138_v47 = vadd.f32 %v4420_v17, %v938_v43  ;;  %v920_v56 = vpop.f32.mrf.mxu0  ;;  %v5150_v57 = vadd.f32 %v4420_v17, %v948_v45  ;;  %v930_v63 = vpop.f32.mrf.mxu1 }
  0xf0   : > { %v5154_v59 = vadd.f32 %v4420_v17, %v920_v56  ;;  %v5162_v0 = vadd.f32 %v4420_v17, %v930_v63 }
  0xf1   : > { %v986_v52 = vsel %vm955_vm0, %v5138_v47, 0.0  ;;  %v998_v60 = vsel %vm955_vm0, %v5150_v57, 0.0 }
  0xf2   : > { %963 = vadd.xlane.f32.xlu1 %v962_v44  ;;  %v965_v62 = vsel %vm955_vm0, %v5154_v59, 0.0  ;;  %v977_v1 = vsel %vm955_vm0, %v5162_v0, 0.0 }
  0xf3   : > { %984 = vadd.xlane.f32.xlu0 %v983_v46 }
  0xf6   : > { %v940_v50 = vpop.f32.mrf.mxu2  ;;  %v950_v55 = vpop.f32.mrf.mxu3 }
  0xf7   : > { %v5142_v51 = vadd.f32 %v4420_v17, %v940_v50  ;;  %v5152_v58 = vadd.f32 %v4420_v17, %v950_v55 }
  0xf9   : > { %v989_v54 = vsel %vm955_vm0, %v5142_v51, 0.0  ;;  %7796 = vst [vmem:[#allocation22_spill] sm:$0xff] %v5152_v58  ;;  %v1001_v61 = vsel %vm955_vm0, %v5152_v58, 0.0 }
  0xfa   : > { %990 = vadd.xlane.f32.xlu2 %v989_v54  ;;  %987 = vadd.xlane.f32.xlu1 %v986_v52 }
  0xfb   : > { %975 = vadd.xlane.f32.xlu0 %v974_v53 }
 0x102   : > { %999 = vadd.xlane.f32.xlu2 %v998_v60  ;;  %966 = vadd.xlane.f32.xlu1 %v965_v62 }
 0x103   : > { %1002 = vadd.xlane.f32.xlu0 %v1001_v61 }
 0x10a   : > { %978 = vadd.xlane.f32.xlu1 %v977_v1 }
 0x14e   : > { %v970_v9 = vpop.xlane.xlu2 %969  ;;  %v958_v10 = vpop.xlane.xlu0 %957 }
 0x14f   : > { %v1015_v11 = vmul.f32 %v5166_v8, %v970_v9  ;;  %v1011_v12 = vmul.f32 %v5166_v8, %v958_v10 }
 0x151   : > { %v5171_v13 = vsub.f32 %v5104_v21, %v1015_v11  ;;  %v5174_v14 = vsub.f32 %v5102_v20, %v1011_v12 }
 0x153   : > { %v1047_v15 = vmul.f32 %v5171_v13, %v5171_v13  ;;  %v1043_v16 = vmul.f32 %v5174_v14, %v5174_v14 }
 0x155   : > { %v1071_v17 = vsel %vm955_vm0, %v1047_v15, 0.0  ;;  %v1059_v18 = vsel %vm955_vm0, %v1043_v16, 0.0 }
 0x156   : > { %1072 = vadd.xlane.f32.xlu2 %v1071_v17  ;;  %v982_v19 = vpop.xlane.xlu2 %981  ;;  %1060 = vadd.xlane.f32.xlu1 %v1059_v18  ;;  %v994_v22 = vpop.xlane.xlu0 %993 }
 0x157   : > { %v1019_v23 = vmul.f32 %v5166_v8, %v982_v19  ;;  %v1023_v24 = vmul.f32 %v5166_v8, %v994_v22 }
 0x159   : > { %v5185_v25 = vsub.f32 %v5110_v26, %v1019_v23  ;;  %v5188_v28 = vsub.f32 %v5112_v27, %v1023_v24 }
 0x15b   : > { %v1051_v29 = vmul.f32 %v5185_v25, %v5185_v25  ;;  %v1055_v30 = vmul.f32 %v5188_v28, %v5188_v28 }
 0x15d   : > { %v5194_v31 = vpop.xlane.xlu1 %996  ;;  %v1083_v34 = vsel %vm955_vm0, %v1051_v29, 0.0  ;;  %v1095_v35 = vsel %vm955_vm0, %v1055_v30, 0.0 }
 0x15e   : > { %v973_v37 = vpop.xlane.xlu2 %972  ;;  %1084 = vadd.xlane.f32.xlu0 %v1083_v34  ;;  %1096 = vadd.xlane.f32.xlu1 %v1095_v35  ;;  %v961_v38 = vpop.xlane.xlu0 %960 }
 0x15f   : > { %v1016_v39 = vmul.f32 %v5166_v8, %v973_v37  ;;  %v1012_v40 = vmul.f32 %v5166_v8, %v961_v38 }
 0x161   : > { %v5201_v43 = vsub.f32 %v5120_v33, %v1016_v39  ;;  %v5204_v44 = vsub.f32 %v5118_v32, %v1012_v40 }
 0x163   : > { %v1048_v45 = vmul.f32 %v5201_v43, %v5201_v43  ;;  %v1044_v46 = vmul.f32 %v5204_v44, %v5204_v44 }
 0x165   : > { %v964_v48 = vpop.xlane.xlu1 %963  ;;  %v1074_v50 = vsel %vm955_vm0, %v1048_v45, 0.0  ;;  %v1062_v52 = vsel %vm955_vm0, %v1044_v46, 0.0 }
 0x166   : > { %v1013_v53 = vmul.f32 %v5166_v8, %v964_v48  ;;  %1075 = vadd.xlane.f32.xlu0 %v1074_v50  ;;  %1063 = vadd.xlane.f32.xlu2 %v1062_v52  ;;  %v985_v54 = vpop.xlane.xlu0 %984  ;;  %v1024_v52 = vmul.f32 %v5166_v8, %v5194_v31 }
 0x167   : > { %v1020_v55 = vmul.f32 %v5166_v8, %v985_v54 }
 0x168   : > { %v5215_v56 = vsub.f32 %v5130_v41, %v1013_v53 }
 0x169   : > { %v5218_v60 = vsub.f32 %v5132_v42, %v1020_v55 }
 0x16a   : > { %v1045_v61 = vmul.f32 %v5215_v56, %v5215_v56 }
 0x16b   : > { %v1052_v62 = vmul.f32 %v5218_v60, %v5218_v60 }
 0x16c   : > { %v1065_v2 = vsel %vm955_vm0, %v1045_v61, 0.0  ;;  %v5276_v61 = vsub.f32 %v5122_v36, %v1024_v52 }
 0x16d   : > { %v991_v63 = vpop.xlane.xlu2 %990  ;;  %v988_v1 = vpop.xlane.xlu1 %987  ;;  %v1086_v3 = vsel %vm955_vm0, %v1052_v62, 0.0 }
 0x16e   : > { %v1022_v4 = vmul.f32 %v5166_v8, %v991_v63  ;;  %v1021_v5 = vmul.f32 %v5166_v8, %v988_v1  ;;  %1066 = vadd.xlane.f32.xlu0 %v1065_v2  ;;  %1087 = vadd.xlane.f32.xlu1 %v1086_v3  ;;  %v976_v6 = vpop.xlane.xlu0 %975  ;;  %v1056_v31 = vmul.f32 %v5276_v61, %v5276_v61 }
 0x16f   : > { %v1017_v7 = vmul.f32 %v5166_v8, %v976_v6 }
 0x170   : > { %v5230_v9 = vsub.f32 %v5142_v51, %v1022_v4  ;;  %v5233_v10 = vsub.f32 %v5138_v47, %v1021_v5  ;;  %v1098_v1 = vsel %vm955_vm0, %v1056_v31, 0.0 }
 0x171   : > { %v5236_v11 = vsub.f32 %v5140_v49, %v1017_v7 }
 0x172   : > { %v1053_v12 = vmul.f32 %v5233_v10, %v5233_v10  ;;  %v1054_v15 = vmul.f32 %v5230_v9, %v5230_v9 }
 0x173   : > { %v1049_v16 = vmul.f32 %v5236_v11, %v5236_v11 }
 0x174   : > { %v1089_v17 = vsel %vm955_vm0, %v1053_v12, 0.0  ;;  %v1092_v22 = vsel %vm955_vm0, %v1054_v15, 0.0 }
 0x175   : > { %v1000_v18 = vpop.xlane.xlu2 %999  ;;  %v967_v19 = vpop.xlane.xlu1 %966  ;;  %1090 = vadd.xlane.f32.xlu2 %v1089_v17  ;;  %v1077_v23 = vsel %vm955_vm0, %v1049_v16, 0.0 }
 0x176   : > { %v1025_v24 = vmul.f32 %v5166_v8, %v1000_v18  ;;  %v1014_v29 = vmul.f32 %v5166_v8, %v967_v19  ;;  %1093 = vadd.xlane.f32.xlu0 %v1092_v22  ;;  %1078 = vadd.xlane.f32.xlu1 %v1077_v23  ;;  %v1003_v30 = vpop.xlane.xlu0 %1002 }
 0x177   : > { %v1026_v37 = vmul.f32 %v5166_v8, %v1003_v30 }
 0x178   : > { %v5250_v34 = vsub.f32 %v5150_v57, %v1025_v24  ;;  %v5253_v35 = vsub.f32 %v5154_v59, %v1014_v29 }
 0x179   : > { %v5261_v40 = vsub.f32 %v5152_v58, %v1026_v37 }
 0x17a   : > { %v1057_v38 = vmul.f32 %v5250_v34, %v5250_v34  ;;  %v1046_v39 = vmul.f32 %v5253_v35, %v5253_v35 }
 0x17b   : > { %v1058_v54 = vmul.f32 %v5261_v40, %v5261_v40 }
 0x17c   : > { %v1101_v46 = vsel %vm955_vm0, %v1057_v38, 0.0  ;;  %v1068_v48 = vsel %vm955_vm0, %v1046_v39, 0.0 }
 0x17d   : > { %v979_v45 = vpop.xlane.xlu1 %978  ;;  %v1104_v63 = vsel %vm955_vm0, %v1058_v54, 0.0 }
 0x17e   : > { %v1018_v50 = vmul.f32 %v5166_v8, %v979_v45  ;;  %1102 = vadd.xlane.f32.xlu0 %v1101_v46  ;;  %1069 = vadd.xlane.f32.xlu1 %v1068_v48 }
 0x180   : > { %v5269_v53 = vsub.f32 %v5162_v0, %v1018_v50 }
 0x182   : > { %v1050_v55 = vmul.f32 %v5269_v53, %v5269_v53 }
 0x184   : > { %v1080_v62 = vsel %vm955_vm0, %v1050_v55, 0.0 }
 0x185   : > { %1081 = vadd.xlane.f32.xlu2 %v1080_v62 }
 0x186   : > { %1105 = vadd.xlane.f32.xlu1 %v1104_v63 }
 0x18d   : > { %1099 = vadd.xlane.f32.xlu2 %v1098_v1 }
 0x1c9   : > { %v1073_v2 = vpop.xlane.xlu2 %1072  ;;  %v1061_v3 = vpop.xlane.xlu1 %1060 }
 0x1ca   : > { %v1111_v4 = vmul.f32 %v1073_v2, %v5166_v8  ;;  %v1107_v5 = vmul.f32 %v1061_v3, %v5166_v8 }
 0x1cc   : > { %v1127_v6 = vadd.f32 1e-06, %v1111_v4  ;;  %v1123_v7 = vadd.f32 1e-06, %v1107_v5 }
 0x1ce   : > { %4425 = vrsqrt.f32 %v1127_v6  ;;  %vm1185_vm3 = vweird.f32 %v1127_v6  ;;  %vm1145_vm6 = vweird.f32 %v1123_v7 }
 0x1cf   : > { %4427 = vrsqrt.f32 %v1123_v7 }
 0x1d1   : > { %v1085_v12 = vpop.xlane.xlu0 %1084  ;;  %v1097_v24 = vpop.xlane.xlu1 %1096 }
 0x1d2   : > { %v1115_v15 = vmul.f32 %v1085_v12, %v5166_v8  ;;  %v1119_v62 = vmul.f32 %v1097_v24, %v5166_v8 }
 0x1d4   : > { %v5286_v16 = vpop.eup %4425  ;;  %v5288_v17 = vadd.f32 1e-06, %v1115_v15 }
 0x1d5   : > { %v5290_v18 = vpop.eup %4427  ;;  %v1180_v19 = vmul.f32 %v5286_v16, %v1127_v6  ;;  %vm1186_vm2 = vweird.f32 %v5286_v16 }
 0x1d6   : > { %v1140_v22 = vmul.f32 %v5290_v18, %v1123_v7  ;;  %4429 = vrsqrt.f32 %v5288_v17  ;;  %vm1146_vm4 = vweird.f32 %v5290_v18  ;;  %vm5329_vm5 = vmor %vm1185_vm3, %vm1186_vm2  ;;  %vm1225_vm8 = vweird.f32 %v5288_v17 }
 0x1d7   : > { %v1181_v23 = vmul.f32 %v5286_v16, %v1180_v19  ;;  %v5317_v19 = vadd.f32 1e-06, %v1119_v62  ;;  %vm5341_vm7 = vmor %vm1145_vm6, %vm1146_vm4 }
 0x1d8   : > { %v1141_v29 = vmul.f32 %v5290_v18, %v1140_v22 }
 0x1d9   : > { %v1064_v30 = vpop.xlane.xlu2 %1063  ;;  %v1076_v37 = vpop.xlane.xlu0 %1075  ;;  %v1182_v45 = vmul.f32 0.5, %v1181_v23 }
 0x1da   : > { %v1108_v38 = vmul.f32 %v1064_v30, %v5166_v8  ;;  %v1112_v39 = vmul.f32 %v1076_v37, %v5166_v8  ;;  %v1142_v52 = vmul.f32 0.5, %v1141_v29 }
 0x1db   : > { %v1183_v55 = vsub.f32 1.5, %v1182_v45 }
 0x1dc   : > { %v5299_v46 = vadd.f32 1e-06, %v1108_v38  ;;  %v5301_v48 = vadd.f32 1e-06, %v1112_v39  ;;  %v5303_v50 = vpop.eup %4429  ;;  %v1143_v31 = vsub.f32 1.5, %v1142_v52 }
 0x1dd   : > { %v1220_v54 = vmul.f32 %v5303_v50, %v5288_v17  ;;  %v1184_v5 = vmul.f32 %v5286_v16, %v1183_v55  ;;  %vm1226_vm9 = vweird.f32 %v5303_v50 }
 0x1de   : > { %4431 = vrsqrt.f32 %v5299_v46  ;;  %v1144_v29 = vmul.f32 %v5290_v18, %v1143_v31  ;;  %vm1155_vm10 = vweird.f32 %v5299_v46  ;;  %vm5373_vm13 = vmor %vm1225_vm8, %vm1226_vm9  ;;  %vm1195_vm14 = vweird.f32 %v5301_v48 }
 0x1df   : > { %4433 = vrsqrt.f32 %v5301_v48  ;;  %v1221_v63 = vmul.f32 %v5303_v50, %v1220_v54  ;;  %v1188_v6 = vsel %vm5329_vm5, %v5286_v16, %v1184_v5 }
 0x1e0   : > { %v1148_v16 = vsel %vm5341_vm7, %v5290_v18, %v1144_v29 }
 0x1e1   : > { %v1088_v1 = vpop.xlane.xlu1 %1087  ;;  %v1067_v2 = vpop.xlane.xlu0 %1066  ;;  %v1222_v12 = vmul.f32 0.5, %v1221_v63  ;;  %v1299_v37 = vmul.f32 %v1148_v16, %v5174_v14 }
 0x1e2   : > { %v1116_v3 = vmul.f32 %v1088_v1, %v5166_v8  ;;  %v1109_v4 = vmul.f32 %v1067_v2, %v5166_v8  ;;  %v5354_v1 = vld [vmem:[#allocation3] ss:$0 sm:$0xff]  ;;  %v1303_v2 = vmul.f32 %v1188_v6, %v5171_v13 }
 0x1e3   : > { %v1223_v39 = vsub.f32 1.5, %v1222_v12 }
 0x1e4   : > { %v5315_v15 = vpop.eup %4431  ;;  %v5319_v22 = vadd.f32 1e-06, %v1116_v3  ;;  %v5321_v23 = vadd.f32 1e-06, %v1109_v4 }
 0x1e5   : > { %v5323_v24 = vpop.eup %4433  ;;  %v1150_v30 = vmul.f32 %v5315_v15, %v5299_v46  ;;  %v1224_v12 = vmul.f32 %v5303_v50, %v1223_v39  ;;  %vm1156_vm11 = vweird.f32 %v5315_v15 }
 0x1e6   : > { %v1190_v38 = vmul.f32 %v5323_v24, %v5301_v48  ;;  %4435 = vrsqrt.f32 %v5319_v22  ;;  %vm1196_vm12 = vweird.f32 %v5323_v24  ;;  %vm1157_vm15 = vmor %vm1155_vm10, %vm1156_vm11  ;;  %v5393_v48 = vld [vmem:[#allocation6] ss:$0 sm:$0xff]  ;;  %vm1235_vm3 = vweird.f32 %v5319_v22 }
 0x1e7   : > { %v1151_v45 = vmul.f32 %v5315_v15, %v1150_v30  ;;  %4437 = vrsqrt.f32 %v5321_v23  ;;  %vm1197_vm1 = vmor %vm1195_vm14, %vm1196_vm12  ;;  %vm1165_vm10 = vweird.f32 %v5321_v23 }
 0x1e8   : > { %4439 = vrsqrt.f32 %v5317_v19  ;;  %v1191_v7 = vmul.f32 %v5323_v24, %v1190_v38  ;;  %v1091_v54 = vpop.xlane.xlu2 %1090 }
 0x1e9   : > { %v1152_v55 = vmul.f32 0.5, %v1151_v45  ;;  %v1117_v62 = vmul.f32 %v1091_v54, %v5166_v8  ;;  %v1079_v63 = vpop.xlane.xlu1 %1078  ;;  %v1094_v31 = vpop.xlane.xlu0 %1093  ;;  %v1322_v54 = vmul.f32 %v5354_v1, %v1303_v2 }
 0x1ea   : > { %v1192_v3 = vmul.f32 0.5, %v1191_v7  ;;  %v1113_v4 = vmul.f32 %v1079_v63, %v5166_v8  ;;  %v1118_v5 = vmul.f32 %v1094_v31, %v5166_v8  ;;  %v1318_v63 = vmul.f32 %v5354_v1, %v1299_v37 }
 0x1eb   : > { %v1153_v30 = vsub.f32 1.5, %v1152_v55  ;;  %v5361_v18 = vadd.f32 1e-06, %v1117_v62  ;;  %v1228_v55 = vsel %vm5373_vm13, %v5303_v50, %v1224_v12 }
 0x1ec   : > { %v4436_v29 = vpop.eup %4435  ;;  %v1193_v38 = vsub.f32 1.5, %v1192_v3  ;;  %v5365_v45 = vadd.f32 1e-06, %v1113_v4  ;;  %v5380_v52 = vadd.f32 1e-06, %v1118_v5 }
 0x1ed   : > { %v5367_v13 = vpop.eup %4437  ;;  %v1154_v39 = vmul.f32 %v5315_v15, %v1153_v30  ;;  %v1230_v14 = vmul.f32 %v4436_v29, %v5319_v22  ;;  %4441 = vrsqrt.f32 %v5361_v18  ;;  %v1307_v30 = vmul.f32 %v1228_v55, %v5185_v25 }
 0x1ee   : > { %v5382_v7 = vpop.eup %4439  ;;  %v1194_v17 = vmul.f32 %v5323_v24, %v1193_v38  ;;  %v1160_v16 = vmul.f32 %v5367_v13, %v5321_v23  ;;  %4443 = vrsqrt.f32 %v5365_v45  ;;  %v5415_v38 = vadd.f32 %v5393_v48, %v1322_v54 }
 0x1ef   : > { %v1158_v62 = vsel %vm1157_vm15, %v5315_v15, %v1154_v39  ;;  %v1231_v46 = vmul.f32 %v4436_v29, %v1230_v14  ;;  %v1260_v4 = vmul.f32 %v5382_v7, %v5317_v19  ;;  %4445 = vrsqrt.f32 %v5380_v52 }
 0x1f0   : > { %v1300_v31 = vmul.f32 %v1158_v62, %v5204_v44  ;;  %v1198_v2 = vsel %vm1197_vm1, %v5323_v24, %v1194_v17  ;;  %v1161_v3 = vmul.f32 %v5367_v13, %v1160_v16  ;;  %vm1236_vm2 = vweird.f32 %v4436_v29 }
 0x1f1   : > { %v1304_v50 = vmul.f32 %v1198_v2, %v5201_v43  ;;  %v1232_v15 = vmul.f32 0.5, %v1231_v46  ;;  %v1070_v5 = vpop.xlane.xlu1 %1069  ;;  %v1103_v12 = vpop.xlane.xlu0 %1102  ;;  %v5419_v14 = vadd.f32 %v5393_v48, %v1318_v63  ;;  %vm1237_vm4 = vmor %vm1235_vm3, %vm1236_vm2  ;;  %vm1166_vm5 = vweird.f32 %v5367_v13 }
 0x1f2   : > { %v1319_v37 = vmul.f32 %v5354_v1, %v1300_v31  ;;  %v1110_v44 = vmul.f32 %v1070_v5, %v5166_v8  ;;  %v1121_v24 = vmul.f32 %v1103_v12, %v5166_v8  ;;  %v1162_v25 = vmul.f32 0.5, %v1161_v3  ;;  %vm5471_vm11 = vmor %vm1165_vm10, %vm1166_vm5 }
 0x1f3   : > { %v1323_v6 = vmul.f32 %v5354_v1, %v1304_v50  ;;  %v1233_v39 = vsub.f32 1.5, %v1232_v15  ;;  %v4442_v43 = vpop.eup %4441  ;;  %v1326_v31 = vmul.f32 %v5354_v1, %v1307_v30  ;;  %vm1245_vm7 = vweird.f32 %v5361_v18 }
 0x1f4   : > { %v5422_v17 = vadd.f32 %v5393_v48, %v1319_v37  ;;  %v5424_v16 = vadd.f32 1e-06, %v1110_v44  ;;  %v5426_v55 = vpop.eup %4443  ;;  %v1240_v46 = vmul.f32 %v4442_v43, %v5361_v18  ;;  %v5438_v3 = vadd.f32 1e-06, %v1121_v24 }
 0x1f5   : > { %v5429_v62 = vadd.f32 %v5393_v48, %v1323_v6  ;;  %v1234_v54 = vmul.f32 %v4436_v29, %v1233_v39  ;;  %v1200_v2 = vmul.f32 %v5426_v55, %v5365_v45  ;;  %v4446_v50 = vpop.eup %4445  ;;  %v1163_v30 = vsub.f32 1.5, %v1162_v25 }
 0x1f6   : > { %v1241_v12 = vmul.f32 %v4442_v43, %v1240_v46  ;;  %4447 = vrsqrt.f32 %v5424_v16  ;;  %v1250_v37 = vmul.f32 %v4446_v50, %v5380_v52  ;;  %v1261_v6 = vmul.f32 %v5382_v7, %v1260_v4 }
 0x1f7   : > { %v1238_v5 = vsel %vm1237_vm4, %v4436_v29, %v1234_v54  ;;  %v1201_v24 = vmul.f32 %v5426_v55, %v1200_v2  ;;  %v5448_v63 = vadd.f32 %v5393_v48, %v1326_v31  ;;  %4449 = vrsqrt.f32 %v5438_v3 }
 0x1f8   : > { %v1308_v22 = vmul.f32 %v1238_v5, %v5218_v60  ;;  %v1082_v44 = vpop.xlane.xlu2 %1081  ;;  %v1242_v39 = vmul.f32 0.5, %v1241_v12  ;;  %v1251_v29 = vmul.f32 %v4446_v50, %v1250_v37  ;;  %vm1246_vm6 = vweird.f32 %v4442_v43 }
 0x1f9   : > { %v1106_v54 = vpop.xlane.xlu1 %1105  ;;  %v1114_v25 = vmul.f32 %v1082_v44, %v5166_v8  ;;  %v1164_v46 = vmul.f32 %v5367_v13, %v1163_v30  ;;  %v1202_v12 = vmul.f32 0.5, %v1201_v24  ;;  %vm1247_vm8 = vmor %vm1245_vm7, %vm1246_vm6  ;;  %vm1256_vm9 = vweird.f32 %v4446_v50 }
 0x1fa   : > { %v1327_v15 = vmul.f32 %v5354_v1, %v1308_v22  ;;  %v1243_v60 = vsub.f32 1.5, %v1242_v39  ;;  %v1252_v31 = vmul.f32 0.5, %v1251_v29  ;;  %v1122_v37 = vmul.f32 %v1106_v54, %v5166_v8 }
 0x1fb   : > { %v5459_v22 = vadd.f32 1e-06, %v1114_v25  ;;  %vm1255_vm12 = vweird.f32 %v5380_v52  ;;  %v1203_v23 = vsub.f32 1.5, %v1202_v12  ;;  %v1168_v39 = vsel %vm5471_vm11, %v5367_v13, %v1164_v46 }
 0x1fc   : > { %v5455_v4 = vadd.f32 %v5393_v48, %v1327_v15  ;;  %v4448_v2 = vpop.eup %4447  ;;  %v1244_v5 = vmul.f32 %v4442_v43, %v1243_v60  ;;  %v1253_v44 = vsub.f32 1.5, %v1252_v31  ;;  %v1262_v31 = vmul.f32 0.5, %v1261_v6  ;;  %vm1257_vm13 = vmor %vm1255_vm12, %vm1256_vm9 }
 0x1fd   : > { %v1170_v15 = vmul.f32 %v4448_v2, %v5424_v16  ;;  %4451 = vrsqrt.f32 %v5459_v22  ;;  %v5467_v18 = vpop.eup %4449  ;;  %vm1206_vm14 = vweird.f32 %v5426_v55  ;;  %vm1176_vm15 = vweird.f32 %v4448_v2 }
 0x1fe   : > { %v1248_v30 = vsel %vm1247_vm8, %v4442_v43, %v1244_v5  ;;  %v1254_v54 = vmul.f32 %v4446_v50, %v1253_v44  ;;  %v1280_v43 = vmul.f32 %v5467_v18, %v5438_v3  ;;  %v5479_v5 = vadd.f32 1e-06, %v1122_v37 }
 0x1ff   : > { %v1309_v29 = vmul.f32 %v1248_v30, %v5233_v10  ;;  %v1171_v60 = vmul.f32 %v4448_v2, %v1170_v15  ;;  %v1301_v13 = vmul.f32 %v1168_v39, %v5215_v56  ;;  %vm1175_vm1 = vweird.f32 %v5424_v16 }
 0x200   : > { %v1100_v25 = vpop.xlane.xlu2 %1099  ;;  %v1258_v58 = vsel %vm1257_vm13, %v4446_v50, %v1254_v54  ;;  %v1281_v6 = vmul.f32 %v5467_v18, %v1280_v43  ;;  %4453 = vrsqrt.f32 %v5479_v5  ;;  %v1204_v50 = vmul.f32 %v5426_v55, %v1203_v23  ;;  %vm1177_vm3 = vmor %vm1175_vm1, %vm1176_vm15 }
 0x201   : > { %v1172_v36 = vmul.f32 0.5, %v1171_v60  ;;  %v1120_v10 = vmul.f32 %v1100_v25, %v5166_v8  ;;  %v1328_v52 = vmul.f32 %v5354_v1, %v1309_v29  ;;  %v1310_v44 = vmul.f32 %v1258_v58, %v5230_v9 }
 0x202   : > { %v1282_v30 = vmul.f32 0.5, %v1281_v6  ;;  %vm1205_vm2 = vweird.f32 %v5365_v45  ;;  %v1263_v39 = vsub.f32 1.5, %v1262_v31  ;;  %v1320_v25 = vmul.f32 %v5354_v1, %v1301_v13 }
 0x203   : > { %v1173_v12 = vsub.f32 1.5, %v1172_v36  ;;  %v5490_v37 = vadd.f32 1e-06, %v1120_v10  ;;  %v4452_v15 = vpop.eup %4451  ;;  %v1329_v46 = vmul.f32 %v5354_v1, %v1310_v44  ;;  %v5499_v36 = vadd.f32 %v5393_v48, %v1328_v52  ;;  %vm5507_vm4 = vmor %vm1205_vm2, %vm1206_vm14 }
 0x204   : > { %v1210_v58 = vmul.f32 %v4452_v15, %v5459_v22  ;;  %v1283_v56 = vsub.f32 1.5, %v1282_v30  ;;  %v1208_v45 = vsel %vm5507_vm4, %v5426_v55, %v1204_v50  ;;  %vm1286_vm5 = vweird.f32 %v5467_v18 }
 0x205   : > { %v1174_v24 = vmul.f32 %v4448_v2, %v1173_v12  ;;  %4455 = vrsqrt.f32 %v5490_v37  ;;  %v5503_v9 = vadd.f32 %v5393_v48, %v1329_v46  ;;  %vm1266_vm6 = vweird.f32 %v5382_v7 }
 0x206   : > { %v1211_v54 = vmul.f32 %v4452_v15, %v1210_v58  ;;  %v4454_v60 = vpop.eup %4453  ;;  %v1284_v43 = vmul.f32 %v5467_v18, %v1283_v56  ;;  %vm1285_vm7 = vweird.f32 %v5438_v3  ;;  %v1305_v55 = vmul.f32 %v1208_v45, %v5236_v11 }
 0x207   : > { %v1178_v16 = vsel %vm1177_vm3, %v4448_v2, %v1174_v24  ;;  %v1358_v23 = vpack.c.bf16 %v5503_v9, %v5499_v36  ;;  %v1290_v2 = vmul.f32 %v4454_v60, %v5479_v5  ;;  %vm1216_vm8 = vweird.f32 %v4452_v15  ;;  %vm5532_vm9 = vmor %vm1285_vm7, %vm1286_vm5 }
 0x208   : > { %v1302_v31 = vmul.f32 %v1178_v16, %v5253_v35  ;;  %v1212_v10 = vmul.f32 0.5, %v1211_v54  ;;  %v1264_v35 = vmul.f32 %v5382_v7, %v1263_v39  ;;  %v5527_v13 = vadd.f32 %v5393_v48, %v1320_v25 }
 0x209   : > { %v1291_v12 = vmul.f32 %v4454_v60, %v1290_v2  ;;  %v1288_v11 = vsel %vm5532_vm9, %v5467_v18, %v1284_v43  ;;  %vm1215_vm10 = vweird.f32 %v5459_v22  ;;  %vm1265_vm11 = vweird.f32 %v5317_v19 }
 0x20a   : > { %v1321_v52 = vmul.f32 %v5354_v1, %v1302_v31  ;;  %v1213_v6 = vsub.f32 1.5, %v1212_v10  ;;  %vm1217_vm12 = vmor %vm1215_vm10, %vm1216_vm8  ;;  %v1324_v39 = vmul.f32 %v5354_v1, %v1305_v55  ;;  %vm1296_vm14 = vweird.f32 %v4454_v60 }
 0x20b   : > { %v4456_v44 = vpop.eup %4455  ;;  %v1292_v24 = vmul.f32 0.5, %v1291_v12  ;;  %vm1267_vm13 = vmor %vm1265_vm11, %vm1266_vm6  ;;  %v1313_v22 = vmul.f32 %v1288_v11, %v5250_v34  ;;  %vm1295_vm15 = vweird.f32 %v5479_v5  ;;  %vm1275_vm3 = vweird.f32 %v5490_v37 }
 0x20c   : > { %v5530_v50 = vadd.f32 %v5393_v48, %v1321_v52  ;;  %v1270_v3 = vmul.f32 %v4456_v44, %v5490_v37  ;;  %v1214_v30 = vmul.f32 %v4452_v15, %v1213_v6  ;;  %v1268_v18 = vsel %vm1267_vm13, %v5382_v7, %v1264_v35  ;;  %vm1297_vm1 = vmor %vm1295_vm15, %vm1296_vm14 }
 0x20d   : > { %v1293_v16 = vsub.f32 1.5, %v1292_v24  ;;  %vm1276_vm2 = vweird.f32 %v4456_v44  ;;  %v1311_v43 = vmul.f32 %v1268_v18, %v5188_v28  ;;  %v1332_v34 = vmul.f32 %v5354_v1, %v1313_v22 }
 0x20e   : > { %v1354_v58 = vpack.c.bf16 %v5530_v50, %v5527_v13  ;;  %v1271_v56 = vmul.f32 %v4456_v44, %v1270_v3  ;;  %v1218_v29 = vsel %vm1217_vm12, %v4452_v15, %v1214_v30  ;;  %v5554_v15 = vadd.f32 %v5393_v48, %v1324_v39  ;;  %vm1277_vm4 = vmor %vm1275_vm3, %vm1276_vm2 }
 0x20f   : > { %v1306_v54 = vmul.f32 %v1218_v29, %v5269_v53  ;;  %v1294_v25 = vmul.f32 %v4454_v60, %v1293_v16  ;;  %v5568_v55 = vadd.f32 %v5393_v48, %v1332_v34 }
 0x210   : > { %v1272_v19 = vmul.f32 0.5, %v1271_v56 }
 0x211   : > { %v1325_v45 = vmul.f32 %v5354_v1, %v1306_v54  ;;  %v1298_v10 = vsel %vm1297_vm1, %v4454_v60, %v1294_v25  ;;  %v1330_v60 = vmul.f32 %v5354_v1, %v1311_v43 }
 0x212   : > { %v1273_v31 = vsub.f32 1.5, %v1272_v19  ;;  %v1314_v7 = vmul.f32 %v1298_v10, %v5261_v40 }
 0x213   : > { %v5559_v53 = vadd.f32 %v5393_v48, %v1325_v45  ;;  %v5577_v35 = vadd.f32 %v5393_v48, %v1330_v60 }
 0x214   : > { %v1274_v5 = vmul.f32 %v4456_v44, %v1273_v31  ;;  %v1333_v28 = vmul.f32 %v5354_v1, %v1314_v7 }
 0x216   : > { %v1278_v52 = vsel %vm1277_vm4, %v4456_v44, %v1274_v5  ;;  %v5571_v6 = vadd.f32 %v5393_v48, %v1333_v28 }
 0x217   : > { %v1312_v37 = vmul.f32 %v1278_v52, %v5276_v61 }
 0x219   : > { %v1331_v40 = vmul.f32 %v5354_v1, %v1312_v37 }
 0x21b   : > { %v5580_v44 = vadd.f32 %v5393_v48, %v1331_v40 }
 0x21d   : > { %v1359_v61 = vpack.c.bf16 %v5580_v44, %v5577_v35 }
 0x21e LB: >> { %s4272_s30 = sshll.u32 %s4815_s22, 4  ;;  %s1390_s3 = scalar_lea.vmem %s7722_s8, %s4815_s22  ;;  %v7809_v46 = vpack.c.bf16 %v5422_v17, %v5419_v14  ;;  %v7810_v3 = vpack.c.bf16 %v5429_v62, %v5415_v38  ;;  %v7811_v2 = vpack.c.bf16 %v5559_v53, %v5554_v15  ;;  %v7812_v11 = vpack.c.bf16 %v5455_v4, %v5448_v63  ;;  %s4815_s22 = sphi %s5585_s22, %s1382_s22  }
 0x21f   : >> { %s1385_s2 = scalar_lea.vmem %s7721_s7, %s4272_s30  ;;  %s5623_s26 = sshll.u32 %s4815_s22, 2  ;;  %vm1516_vm5 = vcmask 1043456   ;;  %v7813_v12 = vpack.c.bf16 %v5571_v6, %v5568_v55  ;;  %v4457_v39 = vld [vmem:[%s1390_s3] ss:$0 sm:$0xff]  ;;  %vm1491_vm6 = vcmask 64512  }
 0x220   : >> { %v4274_v1 = vld [vmem:[%s1385_s2 + $0x8] sm:$0xff]  ;;  %v4273_v48 = vld [vmem:[%s1385_s2] sm:$0xff]  ;;  %s1489_s19 = scalar_lea.vmem %s5054_s28, %s5623_s26  ;;  %s1754_s5 = scalar_lea.vmem %s5063_s29, %s5623_s26 }
 0x221   : >> { %1437 = vmatpush.bf16.msra.mxu0 %v4274_v1  ;;  %v1490_v30 = vld [vmem:[%s1489_s19] sm:$0xf]  ;;  %s1857_s4 = scalar_lea.vmem %s7723_s9, %s5623_s26  ;;  %s1382_s22 = sadd.s32 1, %s4815_s22  }
 0x222   : >> { %v1518_v24 = vsel %vm1516_vm5, %v1490_v30, 0  ;;  %p1379_p1 = scmp.ge.s32.totalorder %s1382_s22, 4  }
 0x223   : >> { %1527 = vmatpush.bf16.msra.mxu1 %v1518_v24  ;;  %s6314_s21 = smov (%p1379_p1), 0  }
 0x225   : >> { %1438 = vmatpush.bf16.msra.mxu0 %v4273_v48 }
 0x228   : >> { %4153 = vmatmul.msk.bf16.vlgmr.msra.gmra.mxu0 %vm955_vm0, %v7809_v46 }
 0x238   : >> { %4154 = vmatmul.msk.bf16.gmra.mxu0 %vm955_vm0, %v1354_v58 }
 0x248   : >> { %4155 = vmatmul.msk.bf16.gmra.mxu0 %vm955_vm0, %v7810_v3 }
 0x258   : >> { %4156 = vmatmul.msk.bf16.gmra.mxu0 %vm955_vm0, %v7811_v2 }
 0x268   : >> { %4157 = vmatmul.msk.bf16.gmra.mxu0 %vm955_vm0, %v7812_v11 }
 0x278   : >> { %4158 = vmatmul.msk.bf16.gmra.mxu0 %vm955_vm0, %v1358_v23 }
 0x288   : >> { %4159 = vmatmul.msk.bf16.gmra.mxu0 %vm955_vm0, %v1359_v61 }
 0x298   : >> { %4160 = vmatmul.msk.bf16.gmra.mxu0 %vm955_vm0, %v7813_v12 }
 0x2a5   : >> { %v1440_v56 = vpop.f32.mrf.mxu0 }
 0x2a6   : >> { %v1441_v16 = vadd.f32 %v4457_v39, %v1440_v56 }
 0x2ad   : >> { %v1442_v29 = vpop.f32.mrf.mxu0 }
 0x2ae   : >> { %v1443_v18 = vadd.f32 %v4457_v39, %v1442_v29 }
 0x2b0   : >> { %v1480_v22 = vpack.c.bf16 %v1443_v18, %v1441_v16 }
 0x2b2   : >> { %4162 = vmatmul.msk.bf16.vlgmr.msra.gmra.mxu1 %vm1491_vm6, %v1480_v22 }
 0x2b5   : >> { %v1445_v54 = vpop.f32.mrf.mxu0 }
 0x2b6   : >> { %v1446_v25 = vadd.f32 %v4457_v39, %v1445_v54 }
 0x2bd   : >> { %v1447_v19 = vpop.f32.mrf.mxu0 }
 0x2be   : >> { %v1448_v45 = vadd.f32 %v4457_v39, %v1447_v19 }
 0x2c0   : >> { %v1481_v31 = vpack.c.bf16 %v1448_v45, %v1446_v25 }
 0x2c2   : >> { %4163 = vmatmul.msk.bf16.gmra.mxu1 %vm1491_vm6, %v1481_v31 }
 0x2c5   : >> { %v1450_v43 = vpop.f32.mrf.mxu0 }
 0x2c6   : >> { %v1451_v34 = vadd.f32 %v4457_v39, %v1450_v43 }
 0x2cd   : >> { %v1452_v10 = vpop.f32.mrf.mxu0 }
 0x2ce   : >> { %v1453_v7 = vadd.f32 %v4457_v39, %v1452_v10 }
 0x2d0   : >> { %v1482_v5 = vpack.c.bf16 %v1453_v7, %v1451_v34 }
 0x2d2   : >> { %4164 = vmatmul.msk.bf16.gmra.mxu1 %vm1491_vm6, %v1482_v5 }
 0x2d5   : >> { %v1455_v28 = vpop.f32.mrf.mxu0 }
 0x2d6   : >> { %v1456_v60 = vadd.f32 %v4457_v39, %v1455_v28 }
 0x2dd   : >> { %v1457_v52 = vpop.f32.mrf.mxu0 }
 0x2de   : >> { %v1458_v37 = vadd.f32 %v4457_v39, %v1457_v52 }
 0x2e0   : >> { %v1483_v40 = vpack.c.bf16 %v1458_v37, %v1456_v60 }
 0x2e2   : >> { %4165 = vmatmul.msk.bf16.gmra.mxu1 %vm1491_vm6, %v1483_v40 }
 0x2e5   : >> { %v1460_v1 = vpop.f32.mrf.mxu0 }
 0x2e6   : >> { %v1461_v48 = vadd.f32 %v4457_v39, %v1460_v1 }
 0x2ed   : >> { %v1462_v46 = vpop.f32.mrf.mxu0 }
 0x2ee   : >> { %v1463_v3 = vadd.f32 %v4457_v39, %v1462_v46 }
 0x2f0   : >> { %v1484_v11 = vpack.c.bf16 %v1463_v3, %v1461_v48 }
 0x2f2   : >> { %4166 = vmatmul.msk.bf16.gmra.mxu1 %vm1491_vm6, %v1484_v11 }
 0x2f5   : >> { %v1465_v30 = vpop.f32.mrf.mxu0 }
 0x2f6   : >> { %v1466_v24 = vadd.f32 %v4457_v39, %v1465_v30 }
 0x2fd   : >> { %v1467_v56 = vpop.f32.mrf.mxu0 }
 0x2fe   : >> { %v1468_v29 = vadd.f32 %v4457_v39, %v1467_v56 }
 0x300   : >> { %v1485_v16 = vpack.c.bf16 %v1468_v29, %v1466_v24 }
 0x302   : >> { %4167 = vmatmul.msk.bf16.gmra.mxu1 %vm1491_vm6, %v1485_v16 }
 0x305   : >> { %v1470_v18 = vpop.f32.mrf.mxu0 }
 0x306   : >> { %v1471_v22 = vadd.f32 %v4457_v39, %v1470_v18 }
 0x30d   : >> { %v1472_v54 = vpop.f32.mrf.mxu0 }
 0x30e   : >> { %v1473_v19 = vadd.f32 %v4457_v39, %v1472_v54 }
 0x310   : >> { %v1486_v25 = vpack.c.bf16 %v1473_v19, %v1471_v22 }
 0x312   : >> { %4168 = vmatmul.msk.bf16.gmra.mxu1 %vm1491_vm6, %v1486_v25 }
 0x315   : >> { %v1475_v45 = vpop.f32.mrf.mxu0 }
 0x316   : >> { %v1476_v31 = vadd.f32 %v4457_v39, %v1475_v45 }
 0x31d   : >> { %v1477_v43 = vpop.f32.mrf.mxu0 }
 0x31e   : >> { %v1478_v10 = vadd.f32 %v4457_v39, %v1477_v43 }
 0x320   : >> { %v1487_v34 = vpack.c.bf16 %v1478_v10, %v1476_v31 }
 0x322   : >> { %4169 = vmatmul.msk.bf16.gmra.mxu1 %vm1491_vm6, %v1487_v34 }
 0x32f   : >> { %v1529_v7 = vpop.f32.mrf.mxu1 }
 0x330   : >> { %v1569_v5 = vsel %vm1491_vm6, %v1529_v7, -inf }
 0x331   : >> { %1570 = vmax.xlane.f32.xlu0 %v1569_v5 }
 0x337   : >> { %v1531_v28 = vpop.f32.mrf.mxu1 }
 0x338   : >> { %v1572_v52 = vsel %vm1491_vm6, %v1531_v28, -inf }
 0x339   : >> { %1573 = vmax.xlane.f32.xlu0 %v1572_v52 }
 0x33f   : >> { %v1534_v60 = vpop.f32.mrf.mxu1 }
 0x340   : >> { %v1575_v37 = vsel %vm1491_vm6, %v1534_v60, -inf }
 0x341   : >> { %1576 = vmax.xlane.f32.xlu1 %v1575_v37 }
 0x347   : >> { %v1536_v40 = vpop.f32.mrf.mxu1 }
 0x348   : >> { %v1578_v1 = vsel %vm1491_vm6, %v1536_v40, -inf }
 0x349   : >> { %1579 = vmax.xlane.f32.xlu1 %v1578_v1 }
 0x34f   : >> { %v1539_v39 = vpop.f32.mrf.mxu1 }
 0x350   : >> { %v1581_v48 = vsel %vm1491_vm6, %v1539_v39, -inf }
 0x351   : >> { %1582 = vmax.xlane.f32.xlu2 %v1581_v48 }
 0x357   : >> { %v1541_v46 = vpop.f32.mrf.mxu1 }
 0x358   : >> { %v1584_v3 = vsel %vm1491_vm6, %v1541_v46, -inf }
 0x359   : >> { %1585 = vmax.xlane.f32.xlu2 %v1584_v3 }
 0x35f   : >> { %v5650_v11 = vpop.f32.mrf.mxu1 }
 0x360   : >> { %v1587_v30 = vsel %vm1491_vm6, %v5650_v11, -inf }
 0x361   : >> { %1588 = vmax.xlane.f32.xlu0 %v1587_v30 }
 0x367   : >> { %v5654_v24 = vpop.f32.mrf.mxu1 }
 0x368   : >> { %v1590_v56 = vsel %vm1491_vm6, %v5654_v24, -inf }
 0x369   : >> { %1591 = vmax.xlane.f32.xlu1 %v1590_v56 }
 0x36f   : >> { %v5658_v29 = vpop.f32.mrf.mxu1 }
 0x370   : >> { %v1593_v16 = vsel %vm1491_vm6, %v5658_v29, -inf }
 0x371   : >> { %1594 = vmax.xlane.f32.xlu1 %v1593_v16 }
 0x377   : >> { %v5662_v19 = vpop.f32.mrf.mxu1 }
 0x37f   : >> { %v5668_v34 = vpop.f32.mrf.mxu1 }
 0x387   : >> { %v5676_v3 = vpop.f32.mrf.mxu1 }
 0x3a4   : >> { %v1571_v18 = vpop.xlane.xlu0 %1570 }
 0x3a5   : >> { %v1617_v22 = vsub.f32 %v1529_v7, %v1571_v18  ;;  %v1599_v18 = vsel %vm1491_vm6, %v5668_v34, -inf }
 0x3a7   : >> { %v1633_v54 = vmul.f32 1.442695, %v1617_v22 }
 0x3a9   : >> { %4458 = vpow2.f32 %v1633_v54 }
 0x3ac   : >> { %v1574_v25 = vpop.xlane.xlu0 %1573 }
 0x3ad   : >> { %v1618_v45 = vsub.f32 %v1531_v28, %v1574_v25  ;;  %v1596_v28 = vsel %vm1491_vm6, %v5662_v19, -inf }
 0x3af   : >> { %v5664_v31 = vpop.eup %4458  ;;  %v1635_v43 = vmul.f32 1.442695, %v1618_v45  ;;  %v5686_v45 = vpop.f32.mrf.mxu1 }
 0x3b0   : >> { %v1665_v10 = vsel %vm1491_vm6, %v5664_v31, 0.0 }
 0x3b1   : >> { %4460 = vpow2.f32 %v1635_v43  ;;  %1666 = vadd.xlane.f32.xlu2 %v1665_v10  ;;  %v1602_v10 = vsel %vm1491_vm6, %v5676_v3, -inf }
 0x3b4   : >> { %v1577_v5 = vpop.xlane.xlu1 %1576 }
 0x3b5   : >> { %v1619_v52 = vsub.f32 %v1534_v60, %v1577_v5 }
 0x3b7   : >> { %v5670_v37 = vpop.eup %4460  ;;  %v1637_v7 = vmul.f32 1.442695, %v1619_v52 }
 0x3b8   : >> { %v1668_v1 = vsel %vm1491_vm6, %v5670_v37, 0.0 }
 0x3b9   : >> { %4462 = vpow2.f32 %v1637_v7  ;;  %1669 = vadd.xlane.f32.xlu0 %v1668_v1  ;;  %1597 = vmax.xlane.f32.xlu2 %v1596_v28  ;;  %v1605_v28 = vsel %vm1491_vm6, %v5686_v45, -inf }
 0x3bc   : >> { %v1580_v48 = vpop.xlane.xlu1 %1579 }
 0x3bd   : >> { %v1620_v30 = vsub.f32 %v1536_v40, %v1580_v48  ;;  %v5698_v48 = vpop.f32.mrf.mxu1 }
 0x3bf   : >> { %v5678_v56 = vpop.eup %4462  ;;  %v1639_v16 = vmul.f32 1.442695, %v1620_v30 }
 0x3c0   : >> { %v1671_v60 = vsel %vm1491_vm6, %v5678_v56, 0.0 }
 0x3c1   : >> { %4464 = vpow2.f32 %v1639_v16  ;;  %1672 = vadd.xlane.f32.xlu0 %v1671_v60  ;;  %1600 = vmax.xlane.f32.xlu2 %v1599_v18 }
 0x3c4   : >> { %v1583_v22 = vpop.xlane.xlu2 %1582 }
 0x3c5   : >> { %v1621_v54 = vsub.f32 %v1539_v39, %v1583_v22  ;;  %v1608_v22 = vsel %vm1491_vm6, %v5698_v48, -inf }
 0x3c7   : >> { %v5684_v25 = vpop.eup %4464  ;;  %v1641_v43 = vmul.f32 1.442695, %v1621_v54  ;;  %v5707_v54 = vpop.f32.mrf.mxu1 }
 0x3c8   : >> { %v1674_v40 = vsel %vm1491_vm6, %v5684_v25, 0.0 }
 0x3c9   : >> { %4466 = vpow2.f32 %v1641_v43  ;;  %1675 = vadd.xlane.f32.xlu1 %v1674_v40  ;;  %1603 = vmax.xlane.f32.xlu0 %v1602_v10 }
 0x3cc   : >> { %v1586_v5 = vpop.xlane.xlu2 %1585 }
 0x3cd   : >> { %v1622_v52 = vsub.f32 %v1541_v46, %v1586_v5 }
 0x3cf   : >> { %v5692_v7 = vpop.eup %4466  ;;  %v1643_v1 = vmul.f32 1.442695, %v1622_v52  ;;  %v1611_v52 = vsel %vm1491_vm6, %v5707_v54, -inf }
 0x3d0   : >> { %v1677_v39 = vsel %vm1491_vm6, %v5692_v7, 0.0 }
 0x3d1   : >> { %4468 = vpow2.f32 %v1643_v1  ;;  %1678 = vadd.xlane.f32.xlu1 %v1677_v39  ;;  %1606 = vmax.xlane.f32.xlu0 %v1605_v28  ;;  %v5716_v39 = vpop.f32.mrf.mxu1 }
 0x3d4   : >> { %v1589_v30 = vpop.xlane.xlu0 %1588 }
 0x3d5   : >> { %v1623_v16 = vsub.f32 %v5650_v11, %v1589_v30 }
 0x3d7   : >> { %v5701_v60 = vpop.eup %4468  ;;  %v1645_v46 = vmul.f32 1.442695, %v1623_v16 }
 0x3d8   : >> { %v1680_v18 = vsel %vm1491_vm6, %v5701_v60, 0.0 }
 0x3d9   : >> { %4470 = vpow2.f32 %v1645_v46  ;;  %1681 = vadd.xlane.f32.xlu2 %v1680_v18  ;;  %1609 = vmax.xlane.f32.xlu1 %v1608_v22  ;;  %v1614_v46 = vsel %vm1491_vm6, %v5716_v39, -inf }
 0x3dc   : >> { %v1592_v43 = vpop.xlane.xlu1 %1591 }
 0x3dd   : >> { %v1624_v40 = vsub.f32 %v5654_v24, %v1592_v43 }
 0x3df   : >> { %v5710_v10 = vpop.eup %4470  ;;  %v1647_v11 = vmul.f32 1.442695, %v1624_v40 }
 0x3e0   : >> { %v1683_v5 = vsel %vm1491_vm6, %v5710_v10, 0.0 }
 0x3e1   : >> { %4472 = vpow2.f32 %v1647_v11  ;;  %1684 = vadd.xlane.f32.xlu2 %v1683_v5  ;;  %1612 = vmax.xlane.f32.xlu1 %v1611_v52 }
 0x3e4   : >> { %v1595_v1 = vpop.xlane.xlu1 %1594 }
 0x3e5   : >> { %v1625_v28 = vsub.f32 %v5658_v29, %v1595_v1  ;;  %v1755_v29 = vld [vmem:[%s1754_s5] sm:$0xf] }
 0x3e6   : >> { %v1781_v43 = vsel %vm1516_vm5, %v1755_v29, 0 }
 0x3e7   : >> { %v5719_v24 = vpop.eup %4472  ;;  %v1649_v30 = vmul.f32 1.442695, %v1625_v28  ;;  %1790 = vmatpush.bf16.msra.mxu2 %v1781_v43 }
 0x3e8   : >> { %v1686_v16 = vsel %vm1491_vm6, %v5719_v24, 0.0 }
 0x3e9   : >> { %4474 = vpow2.f32 %v1649_v30  ;;  %1687 = vadd.xlane.f32.xlu0 %v1686_v16  ;;  %1615 = vmax.xlane.f32.xlu2 %v1614_v46 }
 0x3ef   : >> { %v5725_v18 = vpop.eup %4474 }
 0x3f0   : >> { %v1689_v22 = vsel %vm1491_vm6, %v5725_v18, 0.0 }
 0x3f1   : >> { %1690 = vadd.xlane.f32.xlu0 %v1689_v22 }
 0x424   : >> { %v1667_v40 = vpop.xlane.xlu2 %1666 }
 0x425   : >> { %4476 = vrcp.f32 %v1667_v40 }
 0x42b   : >> { %v4477_v28 = vpop.eup %4476 }
 0x42c   : >> { %v1670_v11 = vpop.xlane.xlu0 %1669  ;;  %v1598_v5 = vpop.xlane.xlu2 %1597  ;;  %v1729_v22 = vmul.f32 %v4477_v28, %v5664_v31 }
 0x42d   : >> { %4478 = vrcp.f32 %v1670_v11  ;;  %v1626_v52 = vsub.f32 %v5662_v19, %v1598_v5 }
 0x42f   : >> { %v1651_v1 = vmul.f32 1.442695, %v1626_v52 }
 0x431   : >> { %4480 = vpow2.f32 %v1651_v1 }
 0x433   : >> { %v4479_v30 = vpop.eup %4478 }
 0x434   : >> { %v1673_v16 = vpop.xlane.xlu0 %1672  ;;  %v1601_v46 = vpop.xlane.xlu2 %1600  ;;  %v1730_v2 = vmul.f32 %v4479_v30, %v5670_v37 }
 0x435   : >> { %v1627_v29 = vsub.f32 %v5668_v34, %v1601_v46 }
 0x436   : >> { %v1745_v43 = vpack.c.bf16 %v1730_v2, %v1729_v22 }
 0x437   : >> { %v5736_v12 = vpop.eup %4480  ;;  %v1653_v40 = vmul.f32 1.442695, %v1627_v29 }
 0x438   : >> { %4171 = vmatmul.msk.bf16.vlgmr.msra.gmra.mxu2 %vm1491_vm6, %v1745_v43  ;;  %v1692_v19 = vsel %vm1491_vm6, %v5736_v12, 0.0 }
 0x439   : >> { %4482 = vpow2.f32 %v1653_v40  ;;  %1693 = vadd.xlane.f32.xlu1 %v1692_v19 }
 0x43a   : >> { %4484 = vrcp.f32 %v1673_v16 }
 0x43c   : >> { %v1676_v11 = vpop.xlane.xlu1 %1675  ;;  %v1604_v5 = vpop.xlane.xlu0 %1603 }
 0x43d   : >> { %4486 = vrcp.f32 %v1676_v11  ;;  %v1628_v31 = vsub.f32 %v5676_v3, %v1604_v5 }
 0x43f   : >> { %v5742_v37 = vpop.eup %4482  ;;  %v1655_v34 = vmul.f32 1.442695, %v1628_v31 }
 0x440   : >> { %v1695_v2 = vsel %vm1491_vm6, %v5742_v37, 0.0  ;;  %v4485_v52 = vpop.eup %4484 }
 0x441   : >> { %4488 = vpow2.f32 %v1655_v34  ;;  %1696 = vadd.xlane.f32.xlu2 %v1695_v2  ;;  %v1731_v46 = vmul.f32 %v4485_v52, %v5678_v56 }
 0x443   : >> { %v4487_v1 = vpop.eup %4486 }
 0x444   : >> { %v1679_v28 = vpop.xlane.xlu1 %1678  ;;  %v1607_v30 = vpop.xlane.xlu0 %1606  ;;  %v1732_v16 = vmul.f32 %v4487_v1, %v5684_v25 }
 0x445   : >> { %v1629_v22 = vsub.f32 %v5686_v45, %v1607_v30 }
 0x446   : >> { %v1746_v29 = vpack.c.bf16 %v1732_v16, %v1731_v46 }
 0x447   : >> { %v5749_v3 = vpop.eup %4488  ;;  %v1657_v43 = vmul.f32 1.442695, %v1629_v22 }
 0x448   : >> { %4172 = vmatmul.msk.bf16.gmra.mxu2 %vm1491_vm6, %v1746_v29  ;;  %v1698_v40 = vsel %vm1491_vm6, %v5749_v3, 0.0 }
 0x449   : >> { %4490 = vpow2.f32 %v1657_v43  ;;  %1699 = vadd.xlane.f32.xlu0 %v1698_v40 }
 0x44a   : >> { %4492 = vrcp.f32 %v1679_v28 }
 0x44c   : >> { %v1682_v19 = vpop.xlane.xlu2 %1681  ;;  %v1610_v11 = vpop.xlane.xlu1 %1609 }
 0x44d   : >> { %4494 = vrcp.f32 %v1682_v19  ;;  %v1630_v56 = vsub.f32 %v5698_v48, %v1610_v11 }
 0x44f   : >> { %v5755_v25 = vpop.eup %4490  ;;  %v1659_v45 = vmul.f32 1.442695, %v1630_v56 }
 0x450   : >> { %v1701_v5 = vsel %vm1491_vm6, %v5755_v25, 0.0  ;;  %v4493_v31 = vpop.eup %4492 }
 0x451   : >> { %4496 = vpow2.f32 %v1659_v45  ;;  %1702 = vadd.xlane.f32.xlu1 %v1701_v5  ;;  %v1733_v1 = vmul.f32 %v4493_v31, %v5692_v7 }
 0x453   : >> { %v4495_v34 = vpop.eup %4494 }
 0x454   : >> { %v1685_v2 = vpop.xlane.xlu2 %1684  ;;  %v1613_v52 = vpop.xlane.xlu1 %1612  ;;  %v1734_v28 = vmul.f32 %v4495_v34, %v5701_v60  ;;  %v1858_v34 = vld [vmem:[%s1857_s4] sm:$0xf] }
 0x455   : >> { %v1631_v30 = vsub.f32 %v5707_v54, %v1613_v52 }
 0x456   : >> { %v1747_v46 = vpack.c.bf16 %v1734_v28, %v1733_v1 }
 0x457   : >> { %v5762_v48 = vpop.eup %4496  ;;  %v1661_v16 = vmul.f32 1.442695, %v1631_v30 }
 0x458   : >> { %4173 = vmatmul.msk.bf16.gmra.mxu2 %vm1491_vm6, %v1747_v46  ;;  %v1704_v22 = vsel %vm1491_vm6, %v5762_v48, 0.0 }
 0x459   : >> { %4498 = vpow2.f32 %v1661_v16  ;;  %1705 = vadd.xlane.f32.xlu2 %v1704_v22 }
 0x45a   : >> { %4500 = vrcp.f32 %v1685_v2  ;;  %v1884_v2 = vsel %vm1516_vm5, %v1858_v34, 0 }
 0x45b   : >> { %1893 = vmatpush.bf16.msra.mxu3 %v1884_v2 }
 0x45c   : >> { %v1688_v29 = vpop.xlane.xlu0 %1687  ;;  %v1616_v43 = vpop.xlane.xlu2 %1615 }
 0x45d   : >> { %4502 = vrcp.f32 %v1688_v29  ;;  %v1632_v7 = vsub.f32 %v5716_v39, %v1616_v43 }
 0x45f   : >> { %v5768_v60 = vpop.eup %4498  ;;  %v1663_v54 = vmul.f32 1.442695, %v1632_v7 }
 0x460   : >> { %v1707_v40 = vsel %vm1491_vm6, %v5768_v60, 0.0  ;;  %v4501_v19 = vpop.eup %4500 }
 0x461   : >> { %4504 = vpow2.f32 %v1663_v54  ;;  %1708 = vadd.xlane.f32.xlu0 %v1707_v40  ;;  %v1735_v56 = vmul.f32 %v4501_v19, %v5710_v10 }
 0x463   : >> { %v4503_v11 = vpop.eup %4502 }
 0x464   : >> { %v1736_v45 = vmul.f32 %v4503_v11, %v5719_v24  ;;  %v1691_v52 = vpop.xlane.xlu0 %1690 }
 0x465   : >> { %4506 = vrcp.f32 %v1691_v52 }
 0x466   : >> { %v1748_v5 = vpack.c.bf16 %v1736_v45, %v1735_v56 }
 0x467   : >> { %v4505_v31 = vpop.eup %4504 }
 0x468   : >> { %4174 = vmatmul.msk.bf16.gmra.mxu2 %vm1491_vm6, %v1748_v5  ;;  %v1710_v39 = vsel %vm1491_vm6, %v4505_v31, 0.0 }
 0x469   : >> { %1711 = vadd.xlane.f32.xlu1 %v1710_v39 }
 0x46b   : >> { %v4507_v24 = vpop.eup %4506 }
 0x46c   : >> { %v1737_v28 = vmul.f32 %v4507_v24, %v5725_v18 }
 0x4ac   : >> { %v1694_v10 = vpop.xlane.xlu1 %1693 }
 0x4ad   : >> { %4508 = vrcp.f32 %v1694_v10 }
 0x4b3   : >> { %v4509_v1 = vpop.eup %4508 }
 0x4b4   : >> { %v1738_v30 = vmul.f32 %v4509_v1, %v5736_v12  ;;  %v1697_v16 = vpop.xlane.xlu2 %1696 }
 0x4b5   : >> { %4510 = vrcp.f32 %v1697_v16 }
 0x4b6   : >> { %v1749_v46 = vpack.c.bf16 %v1738_v30, %v1737_v28 }
 0x4b8   : >> { %4175 = vmatmul.msk.bf16.gmra.mxu2 %vm1491_vm6, %v1749_v46 }
 0x4bb   : >> { %v1792_v22 = vpop.f32.mrf.mxu2  ;;  %v4511_v43 = vpop.eup %4510 }
 0x4bc   : >> { %v1700_v29 = vpop.xlane.xlu0 %1699  ;;  %v1739_v19 = vmul.f32 %v4511_v43, %v5742_v37 }
 0x4bd   : >> { %4512 = vrcp.f32 %v1700_v29 }
 0x4c3   : >> { %v4513_v7 = vpop.eup %4512  ;;  %v1794_v54 = vpop.f32.mrf.mxu2 }
 0x4c4   : >> { %v1848_v40 = vpack.c.bf16 %v1794_v54, %v1792_v22  ;;  %v1740_v11 = vmul.f32 %v4513_v7, %v5749_v3  ;;  %v1703_v12 = vpop.xlane.xlu1 %1702 }
 0x4c5   : >> { %4514 = vrcp.f32 %v1703_v12 }
 0x4c6   : >> { %4180 = vmatmul.msk.bf16.vlgmr.msra.gmra.mxu3 %vm1491_vm6, %v1848_v40  ;;  %v1750_v18 = vpack.c.bf16 %v1740_v11, %v1739_v19  ;;  %v1832_v11 = vld [vmem:[#allocation2] sm:$0xff] }
 0x4c8   : >> { %4176 = vmatmul.msk.bf16.gmra.mxu2 %vm1491_vm6, %v1750_v18 }
 0x4cb   : >> { %v1797_v56 = vpop.f32.mrf.mxu2  ;;  %v4515_v5 = vpop.eup %4514 }
 0x4cc   : >> { %v1706_v45 = vpop.xlane.xlu2 %1705  ;;  %v1741_v52 = vmul.f32 %v4515_v5, %v5755_v25 }
 0x4cd   : >> { %4516 = vrcp.f32 %v1706_v45 }
 0x4d3   : >> { %v4517_v39 = vpop.eup %4516  ;;  %v1799_v34 = vpop.f32.mrf.mxu2 }
 0x4d4   : >> { %v1849_v2 = vpack.c.bf16 %v1799_v34, %v1797_v56  ;;  %v1742_v37 = vmul.f32 %v4517_v39, %v5762_v48  ;;  %v1709_v10 = vpop.xlane.xlu0 %1708  ;;  %v1834_v34 = vld [vmem:[#allocation2 + $0x10] sm:$0xff] }
 0x4d5   : >> { %4518 = vrcp.f32 %v1709_v10 }
 0x4d6   : >> { %4181 = vmatmul.msk.bf16.gmra.mxu3 %vm1491_vm6, %v1849_v2  ;;  %v1751_v3 = vpack.c.bf16 %v1742_v37, %v1741_v52 }
 0x4d8   : >> { %4177 = vmatmul.msk.bf16.gmra.mxu2 %vm1491_vm6, %v1751_v3  ;;  %v1835_v3 = vld [vmem:[#allocation2 + $0x18] sm:$0xff] }
 0x4db   : >> { %v1802_v24 = vpop.f32.mrf.mxu2  ;;  %v4519_v28 = vpop.eup %4518 }
 0x4dc   : >> { %v1712_v1 = vpop.xlane.xlu1 %1711  ;;  %v1743_v22 = vmul.f32 %v4519_v28, %v5768_v60 }
 0x4dd   : >> { %4520 = vrcp.f32 %v1712_v1 }
 0x4e3   : >> { %v4521_v30 = vpop.eup %4520  ;;  %v1804_v46 = vpop.f32.mrf.mxu2 }
 0x4e4   : >> { %v1850_v16 = vpack.c.bf16 %v1804_v46, %v1802_v24  ;;  %v1744_v29 = vmul.f32 %v4521_v30, %v4505_v31  ;;  %v1833_v31 = vld [vmem:[#allocation2 + $0x8] sm:$0xff]  ;;  %v1836_v30 = vld [vmem:[#allocation2 + $0x20] sm:$0xff] }
 0x4e6   : >> { %4182 = vmatmul.msk.bf16.gmra.mxu3 %vm1491_vm6, %v1850_v16  ;;  %v1752_v25 = vpack.c.bf16 %v1744_v29, %v1743_v22  ;;  %v1837_v29 = vld [vmem:[#allocation2 + $0x28] sm:$0xff] }
 0x4e8   : >> { %4178 = vmatmul.msk.bf16.gmra.mxu2 %vm1491_vm6, %v1752_v25 }
 0x4eb   : >> { %v1807_v48 = vpop.f32.mrf.mxu2 }
 0x4f3   : >> { %v1809_v43 = vpop.f32.mrf.mxu2 }
 0x4f4   : >> { %v1851_v7 = vpack.c.bf16 %v1809_v43, %v1807_v48 }
 0x4f6   : >> { %4183 = vmatmul.msk.bf16.gmra.mxu3 %vm1491_vm6, %v1851_v7 }
 0x53b   : >> { %v1812_v54 = vpop.f32.mrf.mxu2 }
 0x543   : >> { %v1814_v40 = vpop.f32.mrf.mxu2 }
 0x544   : >> { %v1852_v19 = vpack.c.bf16 %v1814_v40, %v1812_v54  ;;  %v1838_v54 = vld [vmem:[#allocation2 + $0x30] sm:$0xff] }
 0x546   : >> { %4184 = vmatmul.msk.bf16.gmra.mxu3 %vm1491_vm6, %v1852_v19 }
 0x549   : >> { %v1895_v18 = vpop.f32.mrf.mxu3 }
 0x54a   : >> { %v1935_v12 = vadd.f32 %v1895_v18, %v1832_v11  ;;  %v1839_v11 = vld [vmem:[#allocation2 + $0x38] sm:$0xff] }
 0x54b   : >> { %v1817_v60 = vpop.f32.mrf.mxu2 }
 0x54c   : >> { %1951 = vst.msk [vmem:[#allocation2] sm:$0xff] %vm955_vm0, %v1935_v12 }
 0x551   : >> { %v1897_v56 = vpop.f32.mrf.mxu3 }
 0x552   : >> { %v1936_v45 = vadd.f32 %v1897_v56, %v1833_v31 }
 0x553   : >> { %v1819_v5 = vpop.f32.mrf.mxu2 }
 0x554   : >> { %1952 = vst.msk [vmem:[#allocation2 + $0x8] sm:$0xff] %vm955_vm0, %v1936_v45  ;;  %v1853_v39 = vpack.c.bf16 %v1819_v5, %v1817_v60  ;;  %v1840_v60 = vld [vmem:[#allocation2 + $0x40] sm:$0xff]  ;;  %v1841_v45 = vld [vmem:[#allocation2 + $0x48] sm:$0xff] }
 0x556   : >> { %4185 = vmatmul.msk.bf16.gmra.mxu3 %vm1491_vm6, %v1853_v39 }
 0x559   : >> { %v1900_v2 = vpop.f32.mrf.mxu3 }
 0x55a   : >> { %v1937_v52 = vadd.f32 %v1900_v2, %v1834_v34  ;;  %v1842_v34 = vld [vmem:[#allocation2 + $0x50] sm:$0xff] }
 0x55b   : >> { %v1822_v37 = vpop.f32.mrf.mxu2 }
 0x55c   : >> { %1953 = vst.msk [vmem:[#allocation2 + $0x10] sm:$0xff] %vm955_vm0, %v1937_v52 }
 0x561   : >> { %v1902_v10 = vpop.f32.mrf.mxu3 }
 0x562   : >> { %v1938_v24 = vadd.f32 %v1902_v10, %v1835_v3 }
 0x563   : >> { %v1824_v1 = vpop.f32.mrf.mxu2 }
 0x564   : >> { %1954 = vst.msk [vmem:[#allocation2 + $0x18] sm:$0xff] %vm955_vm0, %v1938_v24  ;;  %v1854_v28 = vpack.c.bf16 %v1824_v1, %v1822_v37  ;;  %v1843_v37 = vld [vmem:[#allocation2 + $0x58] sm:$0xff]  ;;  %v1844_v24 = vld [vmem:[#allocation2 + $0x60] sm:$0xff] }
 0x566   : >> { %4186 = vmatmul.msk.bf16.gmra.mxu3 %vm1491_vm6, %v1854_v28 }
 0x569   : >> { %v1905_v46 = vpop.f32.mrf.mxu3 }
 0x56a   : >> { %v1939_v16 = vadd.f32 %v1905_v46, %v1836_v30  ;;  %v1845_v30 = vld [vmem:[#allocation2 + $0x68] sm:$0xff] }
 0x56b   : >> { %v1827_v22 = vpop.f32.mrf.mxu2 }
 0x56c   : >> { %1955 = vst.msk [vmem:[#allocation2 + $0x20] sm:$0xff] %vm955_vm0, %v1939_v16 }
 0x571   : >> { %v1907_v25 = vpop.f32.mrf.mxu3 }
 0x572   : >> { %v1940_v48 = vadd.f32 %v1907_v25, %v1837_v29 }
 0x573   : >> { %v1829_v43 = vpop.f32.mrf.mxu2 }
 0x574   : >> { %1956 = vst.msk [vmem:[#allocation2 + $0x28] sm:$0xff] %vm955_vm0, %v1940_v48  ;;  %v1855_v7 = vpack.c.bf16 %v1829_v43, %v1827_v22  ;;  %v1846_v22 = vld [vmem:[#allocation2 + $0x70] sm:$0xff]  ;;  %v1847_v48 = vld [vmem:[#allocation2 + $0x78] sm:$0xff] }
 0x576   : >> { %4187 = vmatmul.msk.bf16.gmra.mxu3 %vm1491_vm6, %v1855_v7 }
 0x579   : >> { %v1910_v40 = vpop.f32.mrf.mxu3 }
 0x57a   : >> { %v1941_v19 = vadd.f32 %v1910_v40, %v1838_v54  ;;  %v1971_v54 = vld [vmem:[#allocation2 + $0x20] sm:$0xff] (%p1379_p1) }
 0x57b   : > { %v5822_v40 = vld [vmem:[%s7724_s10] ss:$0 sm:$0xff] (%p1379_p1) }
 0x57c   : >> { %1957 = vst.msk [vmem:[#allocation2 + $0x30] sm:$0xff] %vm955_vm0, %v1941_v19  ;;  %v1987_v19 = vadd.f32 (%p1379_p1), %v1971_v54, %v5104_v21 }
 0x57e   : > { %v5829_v38 = vadd.f32 (%p1379_p1), %v5822_v40, %v1987_v19 }
 0x580   : > { %2423 = vst.msk [vmem:[#allocation2 + $0x20] sm:$0xff] (%p1379_p1), %vm955_vm0, %v5829_v38 }
 0x581   : >> { %v1912_v18 = vpop.f32.mrf.mxu3 }
 0x582   : >> { %v1942_v12 = vadd.f32 %v1912_v18, %v1839_v11  ;;  %v1969_v11 = vld [vmem:[#allocation2 + $0x10] sm:$0xff] (%p1379_p1)  ;;  %v1967_v18 = vld [vmem:[#allocation2] sm:$0xff] (%p1379_p1) }
 0x583   : > { %v1973_v17 = vld [vmem:[#allocation2 + $0x30] sm:$0xff] (%p1379_p1) }
 0x584   : >> { %1958 = vst.msk [vmem:[#allocation2 + $0x38] sm:$0xff] %vm955_vm0, %v1942_v12  ;;  %v1972_v12 = vld [vmem:[#allocation2 + $0x28] sm:$0xff] (%p1379_p1)  ;;  %v1989_v9 = vadd.f32 (%p1379_p1), %v1973_v17, %v5140_v49 }
 0x58b   : > { %v1974_v4 = vld [vmem:[#allocation2 + $0x38] sm:$0xff] (%p1379_p1) }
 0x58c   : > { %v1990_v49 = vadd.f32 (%p1379_p1), %v1974_v4, %v5162_v0 }
 0x5c9   : >> { %v1915_v31 = vpop.f32.mrf.mxu3 }
 0x5ca   : >> { %v1943_v56 = vadd.f32 %v1915_v31, %v1840_v60  ;;  %v1985_v60 = vadd.f32 (%p1379_p1), %v1969_v11, %v5130_v41  ;;  %v1983_v31 = vadd.f32 (%p1379_p1), %v1967_v18, %v5102_v20 }
 0x5cc   : >> { %1959 = vst.msk [vmem:[#allocation2 + $0x40] sm:$0xff] %vm955_vm0, %v1943_v56  ;;  %v1988_v56 = vadd.f32 (%p1379_p1), %v1972_v12, %v5120_v33  ;;  %v5833_v21 = vadd.f32 (%p1379_p1), %v5822_v40, %v1985_v60  ;;  %v5836_v62 = vadd.f32 (%p1379_p1), %v5822_v40, %v1983_v31  ;;  %v2033_v33 = vsel (%p1379_p1), %vm955_vm0, %v5829_v38, 0.0 }
 0x5cd   : > { %2034 = vadd.xlane.f32.xlu2 (%p1379_p1), %v2033_v33 }
 0x5ce   : > { %2421 = vst.msk [vmem:[#allocation2 + $0x10] sm:$0xff] (%p1379_p1), %vm955_vm0, %v5833_v21  ;;  %v5851_v36 = vadd.f32 (%p1379_p1), %v5822_v40, %v1988_v56 }
 0x5cf   : > { %2419 = vst.msk [vmem:[#allocation2] sm:$0xff] (%p1379_p1), %vm955_vm0, %v5836_v62 }
 0x5d0   : > { %2424 = vst.msk [vmem:[#allocation2 + $0x28] sm:$0xff] (%p1379_p1), %vm955_vm0, %v5851_v36  ;;  %v2036_v0 = vsel (%p1379_p1), %vm955_vm0, %v5851_v36, 0.0 }
 0x5d1   : >> { %v1917_v5 = vpop.f32.mrf.mxu3 }
 0x5d2   : >> { %v1944_v39 = vadd.f32 %v1917_v5, %v1841_v45  ;;  %v1970_v45 = vld [vmem:[#allocation2 + $0x18] sm:$0xff] (%p1379_p1)  ;;  %v1968_v5 = vld [vmem:[#allocation2 + $0x8] sm:$0xff] (%p1379_p1) }
 0x5d3   : > { %v1986_v14 = vadd.f32 (%p1379_p1), %v1970_v45, %v5154_v59  ;;  %v1984_v41 = vadd.f32 (%p1379_p1), %v1968_v5, %v5118_v32  ;;  %v2027_v59 = vsel (%p1379_p1), %vm955_vm0, %v5833_v21, 0.0  ;;  %v2021_v32 = vsel (%p1379_p1), %vm955_vm0, %v5836_v62, 0.0 }
 0x5d4   : >> { %1960 = vst.msk [vmem:[#allocation2 + $0x48] sm:$0xff] %vm955_vm0, %v1944_v39  ;;  %v1975_v39 = vld [vmem:[#allocation2 + $0x40] sm:$0xff] (%p1379_p1)  ;;  %2028 = vadd.xlane.f32.xlu1 (%p1379_p1), %v2027_v59  ;;  %2022 = vadd.xlane.f32.xlu0 (%p1379_p1), %v2021_v32 }
 0x5d5   : > { %v1991_v63 = vadd.f32 (%p1379_p1), %v1975_v39, %v5110_v26  ;;  %v5857_v26 = vadd.f32 (%p1379_p1), %v5822_v40, %v1986_v14  ;;  %v5863_v58 = vadd.f32 (%p1379_p1), %v5822_v40, %v1984_v41  ;;  %2037 = vadd.xlane.f32.xlu2 (%p1379_p1), %v2036_v0 }
 0x5d7   : > { %2422 = vst.msk [vmem:[#allocation2 + $0x18] sm:$0xff] (%p1379_p1), %vm955_vm0, %v5857_v26  ;;  %v5869_v53 = vadd.f32 (%p1379_p1), %v5822_v40, %v1991_v63 }
 0x5d8   : > { %2420 = vst.msk [vmem:[#allocation2 + $0x8] sm:$0xff] (%p1379_p1), %vm955_vm0, %v5863_v58 }
 0x5d9   : >> { %v1920_v2 = vpop.f32.mrf.mxu3  ;;  %2427 = vst.msk [vmem:[#allocation2 + $0x40] sm:$0xff] (%p1379_p1), %vm955_vm0, %v5869_v53 }
 0x5da   : >> { %v1945_v52 = vadd.f32 %v1920_v2, %v1842_v34  ;;  %v2030_v2 = vsel (%p1379_p1), %vm955_vm0, %v5857_v26, 0.0 }
 0x5db   : > { %v1976_v23 = vld [vmem:[#allocation2 + $0x48] sm:$0xff] (%p1379_p1) }
 0x5dc   : >> { %1961 = vst.msk [vmem:[#allocation2 + $0x50] sm:$0xff] %vm955_vm0, %v1945_v52  ;;  %v1992_v55 = vadd.f32 (%p1379_p1), %v1976_v23, %v5132_v42  ;;  %v2024_v52 = vsel (%p1379_p1), %vm955_vm0, %v5863_v58, 0.0  ;;  %2031 = vadd.xlane.f32.xlu1 (%p1379_p1), %v2030_v2 }
 0x5dd   : > { %2025 = vadd.xlane.f32.xlu0 (%p1379_p1), %v2024_v52 }
 0x5e1   : >> { %v1922_v3 = vpop.f32.mrf.mxu3 }
 0x5e2   : >> { %v1946_v10 = vadd.f32 %v1922_v3, %v1843_v37  ;;  %v7814_v3 = vld [vmem:[#allocation21_spill] sm:$0xff] (%p1379_p1) }
 0x5e3   : > { %v1977_v15 = vld [vmem:[#allocation2 + $0x50] sm:$0xff] (%p1379_p1) }
 0x5e4   : >> { %1962 = vst.msk [vmem:[#allocation2 + $0x58] sm:$0xff] %vm955_vm0, %v1946_v10  ;;  %v1993_v42 = vadd.f32 (%p1379_p1), %v1977_v15, %v5138_v47  ;;  %v5899_v47 = vadd.f32 (%p1379_p1), %v5822_v40, %v1992_v55 }
 0x5e6   : > { %2428 = vst.msk [vmem:[#allocation2 + $0x48] sm:$0xff] (%p1379_p1), %vm955_vm0, %v5899_v47 }
 0x5e9   : >> { %v1925_v1 = vpop.f32.mrf.mxu3 }
 0x5ea   : >> { %v1947_v28 = vadd.f32 %v1925_v1, %v1844_v24  ;;  %v7815_v1 = vld [vmem:[#allocation22_spill] sm:$0xff] (%p1379_p1) }
 0x5eb   : > { %v1978_v20 = vld [vmem:[#allocation2 + $0x58] sm:$0xff] (%p1379_p1) }
 0x5ec   : >> { %1963 = vst.msk [vmem:[#allocation2 + $0x60] sm:$0xff] %vm955_vm0, %v1947_v28  ;;  %v1994_v13 = vadd.f32 (%p1379_p1), %v1978_v20, %v5142_v51  ;;  %v5875_v51 = vadd.f32 (%p1379_p1), %v5822_v40, %v1989_v9 }
 0x5ee   : > { %v5883_v61 = vadd.f32 (%p1379_p1), %v5822_v40, %v1994_v13  ;;  %2425 = vst.msk [vmem:[#allocation2 + $0x30] sm:$0xff] (%p1379_p1), %vm955_vm0, %v5875_v51 }
 0x5f0   : > { %2430 = vst.msk [vmem:[#allocation2 + $0x58] sm:$0xff] (%p1379_p1), %vm955_vm0, %v5883_v61 }
 0x5f1   : >> { %v1927_v46 = vpop.f32.mrf.mxu3 }
 0x5f2   : >> { %v1948_v16 = vadd.f32 %v1927_v46, %v1845_v30 }
 0x5f3   : > { %v1979_v6 = vld [vmem:[#allocation2 + $0x60] sm:$0xff] (%p1379_p1) }
 0x5f4   : >> { %1964 = vst.msk [vmem:[#allocation2 + $0x68] sm:$0xff] %vm955_vm0, %v1948_v16  ;;  %v1995_v37 = vadd.f32 (%p1379_p1), %v1979_v6, %v5112_v27  ;;  %v5911_v27 = vadd.f32 (%p1379_p1), %v5822_v40, %v1993_v42 }
 0x5f6   : > { %v5916_v30 = vadd.f32 (%p1379_p1), %v5822_v40, %v1995_v37  ;;  %2429 = vst.msk [vmem:[#allocation2 + $0x50] sm:$0xff] (%p1379_p1), %vm955_vm0, %v5911_v27 }
 0x5f8   : > { %2431 = vst.msk [vmem:[#allocation2 + $0x60] sm:$0xff] (%p1379_p1), %vm955_vm0, %v5916_v30 }
 0x5f9   : >> { %v1930_v29 = vpop.f32.mrf.mxu3 }
 0x5fa   : >> { %v1949_v25 = vadd.f32 %v1930_v29, %v1846_v22  ;;  %v2045_v22 = vsel (%p1379_p1), %vm955_vm0, %v5869_v53, 0.0  ;;  %v2039_v29 = vsel (%p1379_p1), %vm955_vm0, %v5875_v51, 0.0 }
 0x5fb   : > { %v1980_v44 = vld [vmem:[#allocation2 + $0x68] sm:$0xff] (%p1379_p1)  ;;  %2046 = vadd.xlane.f32.xlu2 (%p1379_p1), %v2045_v22  ;;  %2040 = vadd.xlane.f32.xlu0 (%p1379_p1), %v2039_v29 }
 0x5fc   : >> { %1965 = vst.msk [vmem:[#allocation2 + $0x70] sm:$0xff] %vm955_vm0, %v1949_v25  ;;  %v1996_v10 = vadd.f32 (%p1379_p1), %v1980_v44, %v7814_v3 }
 0x5fe   : > { %v5921_v46 = vadd.f32 (%p1379_p1), %v5822_v40, %v1996_v10 }
 0x600   : > { %1381 = sbr.rel (!%p1379_p1) target bundleno = 542 (0x21e), region = 180  ;;  %2432 = vst.msk [vmem:[#allocation2 + $0x68] sm:$0xff] (%p1379_p1), %vm955_vm0, %v5921_v46  ;;  %v2060_v19 = vsel (%p1379_p1), %vm955_vm0, %v5921_v46, 0.0 }
 0x601   : >> { %v1932_v43 = vpop.f32.mrf.mxu3 }
 0x602   : >> { %v1950_v7 = vadd.f32 %v1932_v43, %v1847_v48  ;;  %v2054_v48 = vsel (%p1379_p1), %vm955_vm0, %v5883_v61, 0.0  ;;  %v2048_v43 = vsel (%p1379_p1), %vm955_vm0, %v5899_v47, 0.0 }
 0x603   : > { %v1981_v50 = vld [vmem:[#allocation2 + $0x70] sm:$0xff] (%p1379_p1)  ;;  %2055 = vadd.xlane.f32.xlu2 (%p1379_p1), %v2054_v48  ;;  %2049 = vadd.xlane.f32.xlu0 (%p1379_p1), %v2048_v43 }
 0x604   : >> { %1966 = vst.msk [vmem:[#allocation2 + $0x78] sm:$0xff] %vm955_vm0, %v1950_v7  ;;  %v1997_v35 = vadd.f32 (%p1379_p1), %v1981_v50, %v5150_v57  ;;  %v5893_v57 = vadd.f32 (%p1379_p1), %v5822_v40, %v1990_v49  ;;  %v2051_v7 = vsel (%p1379_p1), %vm955_vm0, %v5911_v27, 0.0 }
 0x606   : > { %2426 = vst.msk [vmem:[#allocation2 + $0x38] sm:$0xff] %vm955_vm0, %v5893_v57  ;;  %v5905_v24 = vadd.f32 %v5822_v40, %v1997_v35  ;;  %v2042_v25 = vsel %vm955_vm0, %v5893_v57, 0.0 }
 0x607   : > { %2043 = vadd.xlane.f32.xlu1 %v2042_v25 }
 0x608   : > { %2433 = vst.msk [vmem:[#allocation2 + $0x70] sm:$0xff] %vm955_vm0, %v5905_v24  ;;  %v2063_v54 = vsel %vm955_vm0, %v5905_v24, 0.0 }
 0x60b   : > { %v1982_v34 = vld [vmem:[#allocation2 + $0x78] sm:$0xff]  ;;  %2064 = vadd.xlane.f32.xlu2 %v2063_v54 }
 0x60c   : > { %v1998_v28 = vadd.f32 %v1982_v34, %v7815_v1 }
 0x60e   : > { %v5926_v16 = vadd.f32 %v5822_v40, %v1998_v28  ;;  %v2057_v40 = vsel %vm955_vm0, %v5916_v30, 0.0 }
 0x60f   : > { %2052 = vadd.xlane.f32.xlu1 %v2051_v7  ;;  %2058 = vadd.xlane.f32.xlu0 %v2057_v40 }
 0x610   : > { %2434 = vst.msk [vmem:[#allocation2 + $0x78] sm:$0xff] %vm955_vm0, %v5926_v16  ;;  %v2066_v11 = vsel %vm955_vm0, %v5926_v16, 0.0 }
 0x617   : > { %2061 = vadd.xlane.f32.xlu1 %v2060_v19  ;;  %2067 = vadd.xlane.f32.xlu0 %v2066_v11 }
 0x640   : > { %v2035_v18 = vpop.xlane.xlu2 %2034 }
 0x641   : > { %v2073_v23 = vmul.f32 %v2035_v18, %v5166_v8 }
 0x647   : > { %v2029_v12 = vpop.xlane.xlu1 %2028  ;;  %v2023_v60 = vpop.xlane.xlu0 %2022 }
 0x648   : > { %v2071_v31 = vmul.f32 %v2029_v12, %v5166_v8  ;;  %v2069_v56 = vmul.f32 %v2023_v60, %v5166_v8  ;;  %v2038_v17 = vpop.xlane.xlu2 %2037 }
 0x649   : > { %v2074_v33 = vmul.f32 %v2038_v17, %v5166_v8 }
 0x64a   : > { %v5955_v45 = vsub.f32 %v5833_v21, %v2071_v31  ;;  %v5958_v5 = vsub.f32 %v5836_v62, %v2069_v56 }
 0x64b   : > { %v5970_v59 = vsub.f32 %v5851_v36, %v2074_v33 }
 0x64c   : > { %v2103_v39 = vmul.f32 %v5955_v45, %v5955_v45  ;;  %v2101_v14 = vmul.f32 %v5958_v5, %v5958_v5 }
 0x64d   : > { %v2106_v13 = vmul.f32 %v5970_v59, %v5970_v59 }
 0x64e   : > { %v2123_v41 = vsel %vm955_vm0, %v2103_v39, 0.0  ;;  %v2117_v20 = vsel %vm955_vm0, %v2101_v14, 0.0 }
 0x64f   : > { %v2032_v63 = vpop.xlane.xlu1 %2031  ;;  %2124 = vadd.xlane.f32.xlu0 %v2123_v41  ;;  %2118 = vadd.xlane.f32.xlu1 %v2117_v20  ;;  %v2132_v36 = vsel %vm955_vm0, %v2106_v13, 0.0 }
 0x650   : > { %v2026_v21 = vpop.xlane.xlu0 %2025  ;;  %v2072_v62 = vmul.f32 %v2032_v63, %v5166_v8 }
 0x651   : > { %v2070_v4 = vmul.f32 %v2026_v21, %v5166_v8 }
 0x652   : > { %v5973_v32 = vsub.f32 %v5857_v26, %v2072_v62 }
 0x653   : > { %v5976_v9 = vsub.f32 %v5863_v58, %v2070_v4  ;;  %v5989_v58 = vsub.f32 %v5829_v38, %v2073_v23 }
 0x654   : > { %v2104_v50 = vmul.f32 %v5973_v32, %v5973_v32 }
 0x655   : > { %v2102_v49 = vmul.f32 %v5976_v9, %v5976_v9  ;;  %v2105_v52 = vmul.f32 %v5989_v58, %v5989_v58 }
 0x656   : > { %v2126_v26 = vsel %vm955_vm0, %v2104_v50, 0.0 }
 0x657   : > { %v2120_v55 = vsel %vm955_vm0, %v2102_v49, 0.0  ;;  %2133 = vadd.xlane.f32.xlu0 %v2132_v36  ;;  %2127 = vadd.xlane.f32.xlu1 %v2126_v26  ;;  %v2129_v28 = vsel %vm955_vm0, %v2105_v52, 0.0 }
 0x658   : > { %2121 = vadd.xlane.f32.xlu2 %v2120_v55 }
 0x660   : > { %2130 = vadd.xlane.f32.xlu2 %v2129_v28 }
 0x66e   : > { %v2047_v15 = vpop.xlane.xlu2 %2046  ;;  %v2041_v35 = vpop.xlane.xlu0 %2040 }
 0x66f   : > { %v2077_v6 = vmul.f32 %v2047_v15, %v5166_v8  ;;  %v2075_v0 = vmul.f32 %v2041_v35, %v5166_v8 }
 0x671   : > { %v5994_v42 = vsub.f32 %v5869_v53, %v2077_v6  ;;  %v5998_v2 = vsub.f32 %v5875_v51, %v2075_v0 }
 0x673   : > { %v2109_v38 = vmul.f32 %v5994_v42, %v5994_v42  ;;  %v2107_v37 = vmul.f32 %v5998_v2, %v5998_v2 }
 0x675   : > { %v2141_v53 = vsel %vm955_vm0, %v2109_v38, 0.0  ;;  %v2135_v1 = vsel %vm955_vm0, %v2107_v37, 0.0 }
 0x676   : > { %v2056_v10 = vpop.xlane.xlu2 %2055  ;;  %2142 = vadd.xlane.f32.xlu0 %v2141_v53  ;;  %2136 = vadd.xlane.f32.xlu1 %v2135_v1  ;;  %v2050_v22 = vpop.xlane.xlu0 %2049 }
 0x677   : > { %v2080_v51 = vmul.f32 %v2056_v10, %v5166_v8  ;;  %v2078_v25 = vmul.f32 %v2050_v22, %v5166_v8 }
 0x679   : > { %v6015_v48 = vsub.f32 %v5883_v61, %v2080_v51  ;;  %v6021_v7 = vsub.f32 %v5899_v47, %v2078_v25 }
 0x67a   : > { %v2044_v44 = vpop.xlane.xlu1 %2043 }
 0x67b   : > { %v2076_v34 = vmul.f32 %v2044_v44, %v5166_v8  ;;  %v2112_v54 = vmul.f32 %v6015_v48, %v6015_v48  ;;  %v2110_v40 = vmul.f32 %v6021_v7, %v6021_v7 }
 0x67d   : > { %v6007_v3 = vsub.f32 %v5893_v57, %v2076_v34  ;;  %v2150_v61 = vsel %vm955_vm0, %v2112_v54, 0.0  ;;  %v2144_v12 = vsel %vm955_vm0, %v2110_v40, 0.0 }
 0x67e   : > { %v2065_v18 = vpop.xlane.xlu2 %2064  ;;  %2151 = vadd.xlane.f32.xlu0 %v2150_v61  ;;  %2145 = vadd.xlane.f32.xlu1 %v2144_v12 }
 0x67f   : > { %v2108_v43 = vmul.f32 %v6007_v3, %v6007_v3  ;;  %v2083_v60 = vmul.f32 %v2065_v18, %v5166_v8 }
 0x681   : > { %v2138_v11 = vsel %vm955_vm0, %v2108_v43, 0.0  ;;  %v6036_v39 = vsub.f32 %v5905_v24, %v2083_v60 }
 0x682   : > { %v2053_v29 = vpop.xlane.xlu1 %2052  ;;  %v2059_v47 = vpop.xlane.xlu0 %2058  ;;  %2139 = vadd.xlane.f32.xlu2 %v2138_v11 }
 0x683   : > { %v2079_v57 = vmul.f32 %v2053_v29, %v5166_v8  ;;  %v2081_v56 = vmul.f32 %v2059_v47, %v5166_v8  ;;  %v2115_v41 = vmul.f32 %v6036_v39, %v6036_v39 }
 0x685   : > { %v6028_v19 = vsub.f32 %v5911_v27, %v2079_v57  ;;  %v6042_v17 = vsub.f32 %v5916_v30, %v2081_v56  ;;  %v2159_v24 = vsel %vm955_vm0, %v2115_v41, 0.0 }
 0x686   : > { %2160 = vadd.xlane.f32.xlu0 %v2159_v24 }
 0x687   : > { %v2111_v14 = vmul.f32 %v6028_v19, %v6028_v19  ;;  %v2113_v20 = vmul.f32 %v6042_v17, %v6042_v17 }
 0x689   : > { %v2147_v63 = vsel %vm955_vm0, %v2111_v14, 0.0  ;;  %v2153_v21 = vsel %vm955_vm0, %v2113_v20, 0.0 }
 0x68a   : > { %v2062_v31 = vpop.xlane.xlu1 %2061  ;;  %2154 = vadd.xlane.f32.xlu1 %v2153_v21  ;;  %v2068_v62 = vpop.xlane.xlu0 %2067  ;;  %2148 = vadd.xlane.f32.xlu2 %v2147_v63 }
 0x68b   : > { %v2082_v27 = vmul.f32 %v2062_v31, %v5166_v8  ;;  %v2084_v30 = vmul.f32 %v2068_v62, %v5166_v8 }
 0x68d   : > { %v6049_v33 = vsub.f32 %v5921_v46, %v2082_v27  ;;  %v6058_v23 = vsub.f32 %v5926_v16, %v2084_v30 }
 0x68f   : > { %v2114_v4 = vmul.f32 %v6049_v33, %v6049_v33  ;;  %v2116_v46 = vmul.f32 %v6058_v23, %v6058_v23 }
 0x691   : > { %v2156_v13 = vsel %vm955_vm0, %v2114_v4, 0.0  ;;  %v2162_v50 = vsel %vm955_vm0, %v2116_v46, 0.0 }
 0x692   : > { %2163 = vadd.xlane.f32.xlu1 %v2162_v50  ;;  %2157 = vadd.xlane.f32.xlu2 %v2156_v13  ;;  %v6098_v50 = vld [vmem:[%s7725_s11] ss:$0 sm:$0xff] }
 0x6c2   : > { %v2119_v49 = vpop.xlane.xlu1 %2118  ;;  %v2125_v36 = vpop.xlane.xlu0 %2124 }
 0x6c3   : > { %v2165_v15 = vmul.f32 %v2119_v49, %v5166_v8  ;;  %v2167_v26 = vmul.f32 %v2125_v36, %v5166_v8 }
 0x6c5   : > { %v2181_v55 = vadd.f32 1e-06, %v2165_v15  ;;  %v2183_v6 = vadd.f32 1e-06, %v2167_v26 }
 0x6c7   : > { %4525 = vrsqrt.f32 %v2181_v55  ;;  %vm2203_vm8 = vweird.f32 %v2181_v55  ;;  %vm2223_vm10 = vweird.f32 %v2183_v6 }
 0x6c8   : > { %4527 = vrsqrt.f32 %v2183_v6 }
 0x6ca   : > { %v2128_v16 = vpop.xlane.xlu1 %2127  ;;  %v2134_v35 = vpop.xlane.xlu0 %2133 }
 0x6cb   : > { %v2168_v44 = vmul.f32 %v2128_v16, %v5166_v8  ;;  %v2122_v0 = vpop.xlane.xlu2 %2121  ;;  %v2170_v34 = vmul.f32 %v2134_v35, %v5166_v8 }
 0x6cc   : > { %v2166_v38 = vmul.f32 %v2122_v0, %v5166_v8 }
 0x6cd   : > { %v4526_v52 = vpop.eup %4525  ;;  %v6069_v37 = vadd.f32 1e-06, %v2168_v44  ;;  %v6071_v53 = vadd.f32 1e-06, %v2170_v34 }
 0x6ce   : > { %v4528_v10 = vpop.eup %4527  ;;  %v2198_v1 = vmul.f32 %v4526_v52, %v2181_v55  ;;  %v6073_v51 = vadd.f32 1e-06, %v2166_v38  ;;  %vm2204_vm7 = vweird.f32 %v4526_v52 }
 0x6cf   : > { %v2218_v28 = vmul.f32 %v4528_v10, %v2183_v6  ;;  %4529 = vrsqrt.f32 %v6069_v37  ;;  %vm2224_vm9 = vweird.f32 %v4528_v10  ;;  %vm2205_vm11 = vmor %vm2203_vm8, %vm2204_vm7  ;;  %vm2233_vm13 = vweird.f32 %v6069_v37 }
 0x6d0   : > { %v2199_v22 = vmul.f32 %v4526_v52, %v2198_v1  ;;  %4531 = vrsqrt.f32 %v6073_v51  ;;  %vm2225_vm12 = vmor %vm2223_vm10, %vm2224_vm9  ;;  %vm2213_vm14 = vweird.f32 %v6073_v51  ;;  %vm2253_vm1 = vweird.f32 %v6071_v53 }
 0x6d1   : > { %v2219_v29 = vmul.f32 %v4528_v10, %v2218_v28  ;;  %4533 = vrsqrt.f32 %v6071_v53 }
 0x6d2   : > { %v2200_v25 = vmul.f32 0.5, %v2199_v22 }
 0x6d3   : > { %v2220_v54 = vmul.f32 0.5, %v2219_v29  ;;  %v2131_v40 = vpop.xlane.xlu2 %2130 }
 0x6d4   : > { %v2201_v18 = vsub.f32 1.5, %v2200_v25  ;;  %v2169_v12 = vmul.f32 %v2131_v40, %v5166_v8 }
 0x6d5   : > { %v4530_v60 = vpop.eup %4529  ;;  %v2221_v47 = vsub.f32 1.5, %v2220_v54 }
 0x6d6   : > { %v4532_v56 = vpop.eup %4531  ;;  %v2202_v27 = vmul.f32 %v4526_v52, %v2201_v18  ;;  %v2228_v14 = vmul.f32 %v4530_v60, %v6069_v37  ;;  %v6084_v41 = vadd.f32 1e-06, %v2169_v12  ;;  %vm2234_vm15 = vweird.f32 %v4530_v60 }
 0x6d7   : > { %v6086_v20 = vpop.eup %4533  ;;  %v2222_v24 = vmul.f32 %v4528_v10, %v2221_v47  ;;  %v2208_v63 = vmul.f32 %v4532_v56, %v6073_v51  ;;  %vm2214_vm2 = vweird.f32 %v4532_v56  ;;  %vm2235_vm3 = vmor %vm2233_vm13, %vm2234_vm15 }
 0x6d8   : > { %v2206_v62 = vsel %vm2205_vm11, %v4526_v52, %v2202_v27  ;;  %v2229_v30 = vmul.f32 %v4530_v60, %v2228_v14  ;;  %v2248_v4 = vmul.f32 %v6086_v20, %v6071_v53  ;;  %vm2254_vm4 = vweird.f32 %v6086_v20  ;;  %vm2215_vm5 = vmor %vm2213_vm14, %vm2214_vm2 }
 0x6d9   : > { %v2226_v46 = vsel %vm2225_vm12, %v4528_v10, %v2222_v24  ;;  %v2209_v13 = vmul.f32 %v4532_v56, %v2208_v63  ;;  %v2357_v49 = vmul.f32 %v2206_v62, %v5958_v5  ;;  %vm2243_vm6 = vweird.f32 %v6084_v41  ;;  %vm6147_vm7 = vmor %vm2253_vm1, %vm2254_vm4 }
 0x6da   : > { %v2230_v36 = vmul.f32 0.5, %v2229_v30  ;;  %v2249_v15 = vmul.f32 %v6086_v20, %v2248_v4  ;;  %v2359_v55 = vmul.f32 %v2226_v46, %v5955_v45  ;;  %v6114_v45 = vld [vmem:[%s7726_s12] ss:$0 sm:$0xff] }
 0x6db   : > { %v2210_v6 = vmul.f32 0.5, %v2209_v13  ;;  %v2376_v52 = vmul.f32 %v6098_v50, %v2357_v49 }
 0x6dc   : > { %v2231_v35 = vsub.f32 1.5, %v2230_v36  ;;  %v2250_v44 = vmul.f32 0.5, %v2249_v15  ;;  %v2378_v29 = vmul.f32 %v6098_v50, %v2359_v55 }
 0x6dd   : > { %v2211_v0 = vsub.f32 1.5, %v2210_v6  ;;  %v6140_v51 = vadd.f32 %v6114_v45, %v2376_v52 }
 0x6de   : > { %v2232_v10 = vmul.f32 %v4530_v60, %v2231_v35  ;;  %v2251_v1 = vsub.f32 1.5, %v2250_v44  ;;  %v6154_v14 = vadd.f32 %v6114_v45, %v2378_v29 }
 0x6df   : > { %v2212_v25 = vmul.f32 %v4532_v56, %v2211_v0  ;;  %7816 = vst [vmem:[#allocation21_spill] sm:$0xff] %v6140_v51 }
 0x6e0   : > { %v2252_v54 = vmul.f32 %v6086_v20, %v2251_v1  ;;  %7819 = vst [vmem:[#allocation22_spill] sm:$0xff] %v6154_v14 }
 0x6e1   : > { %v2216_v18 = vsel %vm2215_vm5, %v4532_v56, %v2212_v25 }
 0x6e9   : > { %v2137_v57 = vpop.xlane.xlu1 %2136  ;;  %v2143_v43 = vpop.xlane.xlu0 %2142 }
 0x6ea   : > { %v2171_v61 = vmul.f32 %v2137_v57, %v5166_v8  ;;  %v2173_v11 = vmul.f32 %v2143_v43, %v5166_v8  ;;  %v2236_v43 = vsel %vm2235_vm3, %v4530_v60, %v2232_v10  ;;  %v2358_v60 = vmul.f32 %v2216_v18, %v5976_v9 }
 0x6eb   : > { %v2256_v9 = vsel %vm6147_vm7, %v6086_v20, %v2252_v54 }
 0x6ec   : > { %v6081_v31 = vadd.f32 1e-06, %v2171_v61  ;;  %v6090_v21 = vadd.f32 1e-06, %v2173_v11  ;;  %v2360_v11 = vmul.f32 %v2236_v43, %v5973_v32  ;;  %v2377_v62 = vmul.f32 %v6098_v50, %v2358_v60 }
 0x6ed   : > { %v2362_v20 = vmul.f32 %v2256_v9, %v5970_v59 }
 0x6ee   : > { %4535 = vrsqrt.f32 %v6081_v31  ;;  %v2379_v24 = vmul.f32 %v6098_v50, %v2360_v11  ;;  %v6168_v36 = vadd.f32 %v6114_v45, %v2377_v62  ;;  %vm2263_vm10 = vweird.f32 %v6081_v31 }
 0x6ef   : > { %4537 = vrsqrt.f32 %v6084_v41  ;;  %v2381_v10 = vmul.f32 %v6098_v50, %v2362_v20  ;;  %vm2283_vm13 = vweird.f32 %v6090_v21 }
 0x6f0   : > { %4539 = vrsqrt.f32 %v6090_v21  ;;  %v6164_v13 = vadd.f32 %v6114_v45, %v2379_v24  ;;  %7821 = vst [vmem:[#allocation24_spill] sm:$0xff] %v6168_v36 }
 0x6f1   : > { %v2146_v26 = vpop.xlane.xlu1 %2145  ;;  %v2152_v56 = vpop.xlane.xlu0 %2151 }
 0x6f2   : > { %v2174_v38 = vmul.f32 %v2146_v26, %v5166_v8  ;;  %7820 = vst [vmem:[#allocation23_spill] sm:$0xff] %v6164_v13  ;;  %v2176_v35 = vmul.f32 %v2152_v56, %v5166_v8 }
 0x6f4   : > { %v6107_v5 = vpop.eup %4535  ;;  %v6132_v61 = vadd.f32 1e-06, %v2174_v38  ;;  %v6185_v52 = vadd.f32 1e-06, %v2176_v35 }
 0x6f5   : > { %v2140_v16 = vpop.xlane.xlu2 %2139  ;;  %v2258_v28 = vmul.f32 %v6107_v5, %v6081_v31  ;;  %v4538_v22 = vpop.eup %4537  ;;  %vm2264_vm8 = vweird.f32 %v6107_v5 }
 0x6f6   : > { %v2172_v34 = vmul.f32 %v2140_v16, %v5166_v8  ;;  %v2238_v40 = vmul.f32 %v4538_v22, %v6084_v41  ;;  %v6134_v37 = vpop.eup %4539  ;;  %vm2244_vm9 = vweird.f32 %v4538_v22  ;;  %vm2265_vm11 = vmor %vm2263_vm10, %vm2264_vm8  ;;  %vm2293_vm5 = vweird.f32 %v6132_v61 }
 0x6f7   : > { %v2259_v12 = vmul.f32 %v6107_v5, %v2258_v28  ;;  %v2278_v32 = vmul.f32 %v6134_v37, %v6090_v21  ;;  %vm2245_vm12 = vmor %vm2243_vm6, %vm2244_vm9  ;;  %vm2284_vm14 = vweird.f32 %v6134_v37  ;;  %vm2313_vm6 = vweird.f32 %v6185_v52 }
 0x6f8   : > { %v6124_v57 = vadd.f32 1e-06, %v2172_v34  ;;  %v2239_v27 = vmul.f32 %v4538_v22, %v2238_v40  ;;  %vm6212_vm2 = vmor %vm2283_vm13, %vm2284_vm14 }
 0x6f9   : > { %v2260_v63 = vmul.f32 0.5, %v2259_v12  ;;  %v2279_v4 = vmul.f32 %v6134_v37, %v2278_v32 }
 0x6fa   : > { %4541 = vrsqrt.f32 %v6124_v57  ;;  %v2240_v30 = vmul.f32 0.5, %v2239_v27  ;;  %vm2273_vm15 = vweird.f32 %v6124_v57 }
 0x6fb   : > { %v2261_v49 = vsub.f32 1.5, %v2260_v63  ;;  %4543 = vrsqrt.f32 %v6132_v61  ;;  %v2280_v26 = vmul.f32 0.5, %v2279_v4 }
 0x6fc   : > { %v2241_v15 = vsub.f32 1.5, %v2240_v30  ;;  %4545 = vrsqrt.f32 %v6185_v52 }
 0x6fd   : > { %v2149_v53 = vpop.xlane.xlu2 %2148  ;;  %v2155_v46 = vpop.xlane.xlu1 %2154  ;;  %v2262_v16 = vmul.f32 %v6107_v5, %v2261_v49  ;;  %v2281_v59 = vsub.f32 1.5, %v2280_v26 }
 0x6fe   : > { %v2242_v0 = vmul.f32 %v4538_v22, %v2241_v15  ;;  %v2175_v31 = vmul.f32 %v2149_v53, %v5166_v8  ;;  %v2177_v56 = vmul.f32 %v2155_v46, %v5166_v8 }
 0x6ff   : > { %v2266_v38 = vsel %vm2265_vm11, %v6107_v5, %v2262_v16  ;;  %v2282_v5 = vmul.f32 %v6134_v37, %v2281_v59 }
 0x700   : > { %v4542_v55 = vpop.eup %4541  ;;  %v2246_v1 = vsel %vm2245_vm12, %v4538_v22, %v2242_v0  ;;  %v2363_v43 = vmul.f32 %v2266_v38, %v5998_v2  ;;  %v6193_v41 = vadd.f32 1e-06, %v2175_v31  ;;  %v2161_v22 = vpop.xlane.xlu0 %2160  ;;  %v6202_v2 = vadd.f32 %v6114_v45, %v2381_v10 }
 0x701   : > { %v2268_v34 = vmul.f32 %v4542_v55, %v6124_v57  ;;  %v4544_v29 = vpop.eup %4543  ;;  %v2361_v25 = vmul.f32 %v2246_v1, %v5989_v58  ;;  %vm2274_vm1 = vweird.f32 %v4542_v55  ;;  %v2179_v24 = vmul.f32 %v2161_v22, %v5166_v8 }
 0x702   : > { %v2288_v40 = vmul.f32 %v4544_v29, %v6132_v61  ;;  %4547 = vrsqrt.f32 %v6193_v41  ;;  %7822 = vst [vmem:[#allocation25_spill] sm:$0xff] %v6202_v2  ;;  %v2382_v27 = vmul.f32 %v6098_v50, %v2363_v43  ;;  %v2286_v9 = vsel %vm6212_vm2, %v6134_v37, %v2282_v5  ;;  %v4546_v30 = vpop.eup %4545  ;;  %vm2275_vm3 = vmor %vm2273_vm15, %vm2274_vm1 }
 0x703   : > { %v2269_v28 = vmul.f32 %v4542_v55, %v2268_v34  ;;  %v2380_v11 = vmul.f32 %v6098_v50, %v2361_v25  ;;  %v6226_v4 = vadd.f32 1e-06, %v2177_v56  ;;  %v6228_v46 = vadd.f32 1e-06, %v2179_v24 }
 0x704   : > { %v2289_v12 = vmul.f32 %v4544_v29, %v2288_v40  ;;  %vm2294_vm4 = vweird.f32 %v4544_v29  ;;  %v2308_v37 = vmul.f32 %v4546_v30, %v6185_v52  ;;  %v2365_v16 = vmul.f32 %v2286_v9, %v5994_v42 }
 0x705   : > { %v2270_v54 = vmul.f32 0.5, %v2269_v28  ;;  %v2158_v58 = vpop.xlane.xlu2 %2157  ;;  %v2164_v60 = vpop.xlane.xlu1 %2163  ;;  %v6205_v47 = vadd.f32 %v6114_v45, %v2380_v11  ;;  %4549 = vrsqrt.f32 %v6226_v4  ;;  %vm2295_vm7 = vmor %vm2293_vm5, %vm2294_vm4  ;;  %vm2314_vm8 = vweird.f32 %v4546_v30 }
 0x706   : > { %v2290_v53 = vmul.f32 0.5, %v2289_v12  ;;  %v2178_v62 = vmul.f32 %v2158_v58, %v5166_v8  ;;  %v2180_v49 = vmul.f32 %v2164_v60, %v5166_v8  ;;  %v2309_v0 = vmul.f32 %v4546_v30, %v2308_v37  ;;  %vm2315_vm10 = vmor %vm2313_vm6, %vm2314_vm8 }
 0x707   : > { %v2271_v18 = vsub.f32 1.5, %v2270_v54  ;;  %7823 = vst [vmem:[#allocation26_spill] sm:$0xff] %v6205_v47  ;;  %4551 = vrsqrt.f32 %v6228_v46  ;;  %v2384_v10 = vmul.f32 %v6098_v50, %v2365_v16  ;;  %vm2303_vm11 = vweird.f32 %v6193_v41 }
 0x708   : > { %v2291_v15 = vsub.f32 1.5, %v2290_v53  ;;  %v4548_v26 = vpop.eup %4547  ;;  %v6240_v34 = vadd.f32 1e-06, %v2178_v62  ;;  %v6242_v42 = vadd.f32 1e-06, %v2180_v49  ;;  %v2310_v38 = vmul.f32 0.5, %v2309_v0 }
 0x709   : > { %v2272_v63 = vmul.f32 %v4542_v55, %v2271_v18  ;;  %v2298_v59 = vmul.f32 %v4548_v26, %v6193_v41  ;;  %vm2304_vm9 = vweird.f32 %v4548_v26  ;;  %vm2323_vm14 = vweird.f32 %v6226_v4 }
 0x70a   : > { %v2292_v57 = vmul.f32 %v4544_v29, %v2291_v15  ;;  %4553 = vrsqrt.f32 %v6240_v34  ;;  %v2311_v25 = vsub.f32 1.5, %v2310_v38  ;;  %vm2305_vm12 = vmor %vm2303_vm11, %vm2304_vm9  ;;  %vm2343_vm15 = vweird.f32 %v6228_v46 }
 0x70b   : > { %v2276_v20 = vsel %vm2275_vm3, %v4542_v55, %v2272_v63  ;;  %v2299_v31 = vmul.f32 %v4548_v26, %v2298_v59  ;;  %4555 = vrsqrt.f32 %v6242_v42  ;;  %v4550_v5 = vpop.eup %4549  ;;  %vm2333_vm6 = vweird.f32 %v6240_v34 }
 0x70c   : > { %v2364_v35 = vmul.f32 %v2276_v20, %v6007_v3  ;;  %v6245_v3 = vadd.f32 %v6114_v45, %v2382_v27  ;;  %v2296_v61 = vsel %vm2295_vm7, %v4544_v29, %v2292_v57  ;;  %v2312_v40 = vmul.f32 %v4546_v30, %v2311_v25 }
 0x70d   : > { %v2366_v28 = vmul.f32 %v2296_v61, %v6021_v7  ;;  %v2300_v43 = vmul.f32 0.5, %v2299_v31  ;;  %v2318_v11 = vmul.f32 %v4550_v5, %v6226_v4  ;;  %v4552_v58 = vpop.eup %4551  ;;  %v6259_v7 = vadd.f32 %v6114_v45, %v2384_v10 }
 0x70e   : > { %v2383_v55 = vmul.f32 %v6098_v50, %v2364_v35  ;;  %7826 = vst [vmem:[#allocation27_spill] sm:$0xff] %v6245_v3  ;;  %v2316_v12 = vsel %vm2315_vm10, %v4546_v30, %v2312_v40  ;;  %v2338_v32 = vmul.f32 %v4552_v58, %v6228_v46  ;;  %vm2324_vm13 = vweird.f32 %v4550_v5 }
 0x70f   : > { %v2385_v54 = vmul.f32 %v6098_v50, %v2366_v28  ;;  %v2301_v22 = vsub.f32 1.5, %v2300_v43  ;;  %7828 = vst [vmem:[#allocation29_spill] sm:$0xff] %v6259_v7  ;;  %v2319_v27 = vmul.f32 %v4550_v5, %v2318_v11  ;;  %v2368_v9 = vmul.f32 %v2316_v12, %v6015_v48  ;;  %vm2325_vm2 = vmor %vm2323_vm14, %vm2324_vm13 }
 0x710   : > { %v6249_v1 = vadd.f32 %v6114_v45, %v2383_v55  ;;  %v4554_v56 = vpop.eup %4553  ;;  %v2339_v49 = vmul.f32 %v4552_v58, %v2338_v32  ;;  %vm2344_vm1 = vweird.f32 %v4552_v58  ;;  %vm2353_vm8 = vweird.f32 %v6242_v42 }
 0x711   : > { %v6262_v18 = vadd.f32 %v6114_v45, %v2385_v54  ;;  %v2302_v60 = vmul.f32 %v4548_v26, %v2301_v22  ;;  %v4556_v63 = vpop.eup %4555  ;;  %v2320_v62 = vmul.f32 0.5, %v2319_v27  ;;  %v2328_v52 = vmul.f32 %v4554_v56, %v6240_v34  ;;  %vm2345_vm4 = vmor %vm2343_vm15, %vm2344_vm1 }
 0x712   : > { %7827 = vst [vmem:[#allocation28_spill] sm:$0xff] %v6249_v1  ;;  %v2387_v41 = vmul.f32 %v6098_v50, %v2368_v9  ;;  %v2348_v20 = vmul.f32 %v4556_v63, %v6242_v42  ;;  %v2340_v37 = vmul.f32 0.5, %v2339_v49  ;;  %vm2334_vm3 = vweird.f32 %v4554_v56 }
 0x713   : > { %7829 = vst [vmem:[#allocation30_spill] sm:$0xff] %v6262_v18  ;;  %v2306_v53 = vsel %vm2305_vm12, %v4548_v26, %v2302_v60  ;;  %v2321_v15 = vsub.f32 1.5, %v2320_v62  ;;  %v2329_v16 = vmul.f32 %v4554_v56, %v2328_v52  ;;  %vm2354_vm5 = vweird.f32 %v4556_v63  ;;  %vm2335_vm7 = vmor %vm2333_vm6, %vm2334_vm3 }
 0x714   : > { %v2367_v30 = vmul.f32 %v2306_v53, %v6028_v19  ;;  %v2349_v48 = vmul.f32 %v4556_v63, %v2348_v20  ;;  %v2341_v57 = vsub.f32 1.5, %v2340_v37  ;;  %v6279_v59 = vadd.f32 %v6114_v45, %v2387_v41  ;;  %vm2355_vm9 = vmor %vm2353_vm8, %vm2354_vm5 }
 0x715   : > { %v2322_v26 = vmul.f32 %v4550_v5, %v2321_v15  ;;  %v2330_v0 = vmul.f32 0.5, %v2329_v16 }
 0x716   : > { %v2386_v35 = vmul.f32 %v6098_v50, %v2367_v30  ;;  %7830 = vst [vmem:[#allocation31_spill] sm:$0xff] %v6279_v59  ;;  %v2350_v55 = vmul.f32 0.5, %v2349_v48  ;;  %v2342_v38 = vmul.f32 %v4552_v58, %v2341_v57 }
 0x717   : > { %v2326_v61 = vsel %vm2325_vm2, %v4550_v5, %v2322_v26  ;;  %v2331_v31 = vsub.f32 1.5, %v2330_v0 }
 0x718   : > { %v6282_v19 = vadd.f32 %v6114_v45, %v2386_v35  ;;  %v2369_v10 = vmul.f32 %v2326_v61, %v6042_v17  ;;  %v2351_v28 = vsub.f32 1.5, %v2350_v55  ;;  %v2346_v25 = vsel %vm2345_vm4, %v4552_v58, %v2342_v38 }
 0x719   : > { %v2332_v43 = vmul.f32 %v4554_v56, %v2331_v31  ;;  %v2371_v54 = vmul.f32 %v2346_v25, %v6036_v39 }
 0x71a   : > { %7831 = vst [vmem:[#allocation32_spill] sm:$0xff] %v6282_v19  ;;  %v2352_v5 = vmul.f32 %v4556_v63, %v2351_v28  ;;  %v2388_v22 = vmul.f32 %v6098_v50, %v2369_v10 }
 0x71b   : > { %v2336_v40 = vsel %vm2335_vm7, %v4554_v56, %v2332_v43  ;;  %v2390_v11 = vmul.f32 %v6098_v50, %v2371_v54 }
 0x71c   : > { %v2370_v17 = vmul.f32 %v2336_v40, %v6049_v33  ;;  %v2356_v46 = vsel %vm2355_vm9, %v4556_v63, %v2352_v5  ;;  %v6299_v39 = vadd.f32 %v6114_v45, %v2388_v22 }
 0x71d   : > { %v2372_v58 = vmul.f32 %v2356_v46, %v6058_v23  ;;  %v6305_v60 = vadd.f32 %v6114_v45, %v2390_v11 }
 0x71e   : > { %v2389_v12 = vmul.f32 %v6098_v50, %v2370_v17  ;;  %7832 = vst [vmem:[#allocation33_spill] sm:$0xff] %v6299_v39 }
 0x71f   : > { %v2391_v34 = vmul.f32 %v6098_v50, %v2372_v58 }
 0x720   : > { %v6302_v42 = vadd.f32 %v6114_v45, %v2389_v12 }
 0x721   : > { %v6308_v33 = vadd.f32 %v6114_v45, %v2391_v34 }
 0x722   : > { %7833 = vst [vmem:[#allocation34_spill] sm:$0xff] %v6302_v42 }
 0x723   : > { %7834 = vst [vmem:[#allocation35_spill] sm:$0xff] %v6308_v33 }
 0x724 LB: >> { %s4275_s2 = sshll.u32 %s4819_s21, 4  ;;  %s2448_s5 = scalar_lea.vmem %s7728_s14, %s4819_s21  ;;  %v7835_v36 = vld [vmem:[#allocation24_spill] sm:$0xff]  ;;  %v7836_v51 = vld [vmem:[#allocation21_spill] sm:$0xff]  ;;  %v7838_v59 = vld [vmem:[#allocation31_spill] sm:$0xff]  ;;  %s4819_s21 = sphi %s6314_s21, %s2440_s21  }
 0x725   : >> { %s2443_s23 = scalar_lea.vmem [#allocation8], %s4275_s2  ;;  %v7837_v44 = vpack.c.bf16 %v7835_v36, %v7836_v51  ;;  %v7839_v19 = vld [vmem:[#allocation32_spill] sm:$0xff]  ;;  %v7841_v13 = vld [vmem:[#allocation23_spill] sm:$0xff]  ;;  %v7842_v14 = vld [vmem:[#allocation22_spill] sm:$0xff]  ;;  %s4278_s30 = sshll.u32 %s4819_s21, 5 }
 0x726   : >> { %v4277_v50 = vld [vmem:[%s2443_s23 + $0x8] sm:$0xff]  ;;  %v4276_v45 = vld [vmem:[%s2443_s23] sm:$0xff]  ;;  %v7840_v4 = vpack.c.bf16 %v7838_v59, %v7839_v19  ;;  %v7843_v6 = vpack.c.bf16 %v7841_v13, %v7842_v14  ;;  %v7848_v47 = vld [vmem:[#allocation26_spill] sm:$0xff]  ;;  %s6442_s3 = scalar_lea.vmem %s7729_s15, %s4278_s30  ;;  %s2440_s21 = sadd.s32 1, %s4819_s21  }
 0x727   : >> { %2495 = vmatpush.bf16.msra.mxu0 %v4277_v50  ;;  %4307 = vmatpush.bf16.msra.mxu3 %v4277_v50  ;;  %v7845_v39 = vld [vmem:[#allocation33_spill] sm:$0xff]  ;;  %v7852_v1 = vld [vmem:[#allocation28_spill] sm:$0xff]  ;;  %v7853_v3 = vld [vmem:[#allocation27_spill] sm:$0xff]  ;;  %p2437_p2 = scmp.ge.s32.totalorder %s2440_s21, 2  }
 0x728   : >> { %v7847_v2 = vld [vmem:[#allocation25_spill] sm:$0xff]  ;;  %v7854_v29 = vpack.c.bf16 %v7852_v1, %v7853_v3  ;;  %v7855_v18 = vld [vmem:[#allocation30_spill] sm:$0xff]  ;;  %v6356_v56 = vld [vmem:[%s2448_s5] ss:$0 sm:$0xff]  ;;  %s7904_s26 = sld [smem:[#allocation43_spill]] (%p2437_p2)  ;;  %s4250_s28 = sshll.u32 (%p2437_p2), %s4803_s27, 2 }
 0x729   : >> { %v7844_v42 = vld [vmem:[#allocation34_spill] sm:$0xff]  ;;  %v7849_v21 = vpack.c.bf16 %v7847_v2, %v7848_v47  ;;  %v7856_v7 = vld [vmem:[#allocation29_spill] sm:$0xff]  ;;  %s7921_s23 = sld [smem:[#allocation45_spill]] (%p2437_p2)  ;;  %s3905_s2 = sshll.u32 (%p2437_p2), %s750_s24, 4  ;;  %s3906_s2 = int_to_ptr.vmem [resolvable:$true] %s3905_s2 }
 0x72a   : >> { %v7846_v27 = vpack.c.bf16 %v7844_v42, %v7845_v39  ;;  %v7850_v33 = vld [vmem:[#allocation35_spill] sm:$0xff]  ;;  %v7857_v24 = vpack.c.bf16 %v7855_v18, %v7856_v7  ;;  %v4280_v3 = vld [vmem:[%s6442_s3 + $0x8] sm:$0xff]  ;;  %s7922_s0 = sld [smem:[#allocation44_spill]] (%p2437_p2)  ;;  %s3892_s19 = scalar_lea.sflag (%p2437_p2), [#allocation5], %s748_s6 }
 0x72b   : >> { %2496 = vmatpush.bf16.msra.mxu0 %v4276_v45  ;;  %4308 = vmatpush.bf16.msra.mxu3 %v4276_v45  ;;  %v7851_v23 = vpack.c.bf16 %v7850_v33, %v6305_v60  ;;  %s7924_s20 = sld [smem:[#allocation46_spill]] (%p2437_p2) }
 0x72e   : >> { %4198 = vmatmul.msk.bf16.vlgmr.msra.gmra.mxu0 %vm955_vm0, %v7837_v44  ;;  %4203 = vmatmul.msk.bf16.vlgmr.msra.gmra.mxu3 %vm955_vm0, %v7840_v4 }
 0x731   : > { %s3903_s21 = scalar_lea.hbm (%p2437_p2), %s7924_s20, %s4250_s28  ;;  %s4737_s4 = scalar_lea.hbm (%p2437_p2), %s7924_s20, 8 }
 0x73e   : >> { %4199 = vmatmul.msk.bf16.gmra.mxu0 %vm955_vm0, %v7843_v6  ;;  %4204 = vmatmul.msk.bf16.gmra.mxu3 %vm955_vm0, %v7846_v27 }
 0x74e   : >> { %4200 = vmatmul.msk.bf16.gmra.mxu0 %vm955_vm0, %v7849_v21  ;;  %4205 = vmatmul.msk.bf16.gmra.mxu3 %vm955_vm0, %v7851_v23 }
 0x75e   : >> { %4201 = vmatmul.msk.bf16.gmra.mxu0 %vm955_vm0, %v7854_v29 }
 0x76e   : >> { %4202 = vmatmul.msk.bf16.gmra.mxu0 %vm955_vm0, %v7857_v24 }
 0x7ab   : >> { %v2498_v32 = vpop.f32.mrf.mxu0 }
 0x7ac   : >> { %v6359_v63 = vadd.f32 %v6356_v56, %v2498_v32 }
 0x7ae   : >> { %v6362_v53 = vmul.f32 0.70710677, %v6359_v63 }
 0x7b0   : >> { %v2570_v62 = vmul.f32 %v6362_v53, %v6362_v53 }
 0x7b1   : >> { %v2523_v34 = vpop.f32.mrf.mxu3 }
 0x7b2   : >> { %v6369_v41 = vmin.f32 %v2570_v62, 16.0  ;;  %v6407_v50 = vadd.f32 %v6356_v56, %v2523_v34 }
 0x7b3   : >> { %v2500_v9 = vpop.f32.mrf.mxu0 }
 0x7b4   : >> { %v6367_v49 = vadd.f32 %v6356_v56, %v2500_v9  ;;  %v2583_v20 = vmul.f32 3.8918573e-05, %v6369_v41  ;;  %v2572_v58 = vmul.f32 2.1237322e-06, %v6369_v41 }
 0x7b6   : >> { %v6372_v30 = vmul.f32 0.70710677, %v6367_v49  ;;  %v2584_v35 = vadd.f32 0.001143296, %v2583_v20 }
 0x7b8   : >> { %v2610_v15 = vmul.f32 %v6372_v30, %v6372_v30  ;;  %v2585_v0 = vmul.f32 %v2584_v35, %v6369_v41  ;;  %v6417_v35 = vmul.f32 0.70710677, %v6407_v50 }
 0x7ba   : >> { %v6380_v48 = vmin.f32 %v2610_v15, 16.0  ;;  %v2586_v31 = vadd.f32 0.014752088, %v2585_v0 }
 0x7bb   : >> { %v2503_v52 = vpop.f32.mrf.mxu0 }
 0x7bc   : >> { %v6378_v37 = vadd.f32 %v6356_v56, %v2503_v52  ;;  %v2623_v55 = vmul.f32 3.8918573e-05, %v6380_v48  ;;  %v2587_v43 = vmul.f32 %v2586_v31, %v6369_v41  ;;  %v2573_v52 = vadd.f32 0.00028619796, %v2572_v58 }
 0x7bd   : >> { %v2612_v20 = vmul.f32 2.1237322e-06, %v6380_v48 }
 0x7be   : >> { %v6383_v26 = vmul.f32 0.70710677, %v6378_v37  ;;  %v2624_v10 = vadd.f32 0.001143296, %v2623_v55  ;;  %v2588_v17 = vadd.f32 0.112945676, %v2587_v43 }
 0x7bf   : >> { %v2613_v43 = vadd.f32 0.00028619796, %v2612_v20 }
 0x7c0   : >> { %v2650_v61 = vmul.f32 %v6383_v26, %v6383_v26  ;;  %v2625_v54 = vmul.f32 %v2624_v10, %v6380_v48  ;;  %v2589_v45 = vmul.f32 %v2588_v17, %v6369_v41 }
 0x7c2   : >> { %v6395_v28 = vmin.f32 %v2650_v61, 16.0  ;;  %v2626_v46 = vadd.f32 0.014752088, %v2625_v54  ;;  %v2590_v0 = vadd.f32 0.4994258, %v2589_v45  ;;  %v2614_v45 = vmul.f32 %v2613_v43, %v6380_v48 }
 0x7c3   : >> { %v2505_v16 = vpop.f32.mrf.mxu0 }
 0x7c4   : >> { %v6386_v57 = vadd.f32 %v6356_v56, %v2505_v16  ;;  %v2663_v40 = vmul.f32 3.8918573e-05, %v6395_v28  ;;  %v2627_v32 = vmul.f32 %v2626_v46, %v6380_v48  ;;  %v2652_v46 = vmul.f32 2.1237322e-06, %v6395_v28 }
 0x7c6   : >> { %v6393_v38 = vmul.f32 0.70710677, %v6386_v57  ;;  %v2664_v11 = vadd.f32 0.001143296, %v2663_v40  ;;  %v2628_v55 = vadd.f32 0.112945676, %v2627_v32  ;;  %v2591_v40 = vmul.f32 %v2590_v0, %v6369_v41 }
 0x7c8   : >> { %v2690_v25 = vmul.f32 %v6393_v38, %v6393_v38  ;;  %v2665_v9 = vmul.f32 %v2664_v11, %v6395_v28  ;;  %v2629_v17 = vmul.f32 %v2628_v55, %v6380_v48 }
 0x7ca   : >> { %v6402_v22 = vmin.f32 %v2690_v25, 16.0  ;;  %v2666_v61 = vadd.f32 0.014752088, %v2665_v9  ;;  %v2574_v25 = vmul.f32 %v2573_v52, %v6369_v41  ;;  %v6447_v52 = vadd.f32 1.0, %v2591_v40 }
 0x7cb   : >> { %v2508_v5 = vpop.f32.mrf.mxu0  ;;  %v2630_v20 = vadd.f32 0.4994258, %v2629_v17 }
 0x7cc   : >> { %v2703_v12 = vmul.f32 3.8918573e-05, %v6402_v22  ;;  %v6413_v62 = vadd.f32 %v6356_v56, %v2508_v5  ;;  %v2970_v5 = vmul.f32 %v6417_v35, %v6417_v35  ;;  %v2667_v11 = vmul.f32 %v2666_v61, %v6395_v28  ;;  %v4282_v61 = vld [vmem:[%s6442_s3 + $0x18] sm:$0xff] }
 0x7cd   : >> { %v2575_v34 = vadd.f32 0.0036580483, %v2574_v25  ;;  %v2615_v25 = vadd.f32 0.0036580483, %v2614_v45  ;;  %3330 = vmatpush.bf16.msra.mxu1 %v4282_v61  ;;  %4309 = vmatpush.bf16.msra.mxu2 %v4282_v61  ;;  %4558 = vrcp.f32 %v6447_v52  ;;  %vm2598_vm11 = vweird.f32 %v6447_v52 }
 0x7ce   : >> { %v2704_v15 = vadd.f32 0.001143296, %v2703_v12  ;;  %v6420_v31 = vmul.f32 0.70710677, %v6413_v62  ;;  %v6445_v9 = vmin.f32 %v2970_v5, 16.0  ;;  %v2631_v5 = vmul.f32 %v2630_v20, %v6380_v48 }
 0x7cf   : >> { %v2576_v4 = vmul.f32 %v2575_v34, %v6369_v41  ;;  %v2616_v45 = vmul.f32 %v2615_v25, %v6380_v48 }
 0x7d0   : >> { %v2705_v54 = vmul.f32 %v2704_v15, %v6402_v22  ;;  %v2730_v58 = vmul.f32 %v6420_v31, %v6420_v31  ;;  %v2653_v15 = vadd.f32 0.00028619796, %v2652_v46  ;;  %v6466_v61 = vadd.f32 1.0, %v2631_v5 }
 0x7d1   : >> { %v2577_v34 = vadd.f32 0.05243302, %v2576_v4  ;;  %v2617_v27 = vadd.f32 0.05243302, %v2616_v45  ;;  %v2692_v5 = vmul.f32 2.1237322e-06, %v6402_v22 }
 0x7d2   : >> { %v2706_v32 = vadd.f32 0.014752088, %v2705_v54  ;;  %v6449_v0 = vmin.f32 %v2730_v58, 16.0  ;;  %v2983_v54 = vmul.f32 3.8918573e-05, %v6445_v9  ;;  %v2654_v40 = vmul.f32 %v2653_v15, %v6395_v28  ;;  %v4281_v58 = vld [vmem:[%s6442_s3 + $0x10] sm:$0xff] }
 0x7d3   : >> { %v2510_v16 = vpop.f32.mrf.mxu0  ;;  %3331 = vmatpush.bf16.msra.mxu1 %v4281_v58  ;;  %4310 = vmatpush.bf16.msra.mxu2 %v4281_v58  ;;  %v6469_v24 = vpop.eup %4558  ;;  %4560 = vrcp.f32 %v6466_v61  ;;  %v2693_v29 = vadd.f32 0.00028619796, %v2692_v5  ;;  %v2972_v44 = vmul.f32 2.1237322e-06, %v6445_v9  ;;  %vm2638_vm14 = vweird.f32 %v6466_v61 }
 0x7d4   : >> { %v6423_v10 = vadd.f32 %v6356_v56, %v2510_v16  ;;  %v2668_v16 = vadd.f32 0.112945676, %v2667_v11  ;;  %v2707_v43 = vmul.f32 %v2706_v32, %v6402_v22  ;;  %v2743_v46 = vmul.f32 3.8918573e-05, %v6449_v0 }
 0x7d5   : >> { %v2984_v6 = vadd.f32 0.001143296, %v2983_v54  ;;  %v2655_v21 = vadd.f32 0.0036580483, %v2654_v40  ;;  %vm2599_vm10 = vweird.f32 %v6469_v24 }
 0x7d6   : >> { %v6437_v12 = vmul.f32 0.70710677, %v6423_v10  ;;  %v2669_v17 = vmul.f32 %v2668_v16, %v6395_v28  ;;  %v2708_v32 = vadd.f32 0.112945676, %v2707_v43  ;;  %v2744_v15 = vadd.f32 0.001143296, %v2743_v46  ;;  %vm6546_vm13 = vmor %vm2598_vm11, %vm2599_vm10 }
 0x7d7   : >> { %v2985_v25 = vmul.f32 %v2984_v6, %v6445_v9  ;;  %v2656_v54 = vmul.f32 %v2655_v21, %v6395_v28  ;;  %v2618_v6 = vmul.f32 %v2617_v27, %v6380_v48  ;;  %3332 = vmatpush.bf16.msra.mxu1 %v4280_v3  ;;  %4311 = vmatpush.bf16.msra.mxu2 %v4280_v3 }
 0x7d8   : >> { %v2770_v55 = vmul.f32 %v6437_v12, %v6437_v12  ;;  %v2670_v23 = vadd.f32 0.4994258, %v2669_v17  ;;  %v2709_v4 = vmul.f32 %v2708_v32, %v6402_v22  ;;  %v2594_v17 = vmul.f32 %v6469_v24, %v6447_v52 }
 0x7d9   : >> { %v2745_v58 = vmul.f32 %v2744_v15, %v6449_v0  ;;  %v2986_v32 = vadd.f32 0.014752088, %v2985_v25  ;;  %v6498_v25 = vmul.f32 0.5, %v6359_v63 }
 0x7da   : >> { %v6462_v11 = vmin.f32 %v2770_v55, 16.0  ;;  %v2578_v55 = vmul.f32 %v2577_v34, %v6369_v41  ;;  %v2671_v46 = vmul.f32 %v2670_v23, %v6395_v28  ;;  %v2710_v45 = vadd.f32 0.4994258, %v2709_v4  ;;  %v6495_v4 = vpop.eup %4560 }
 0x7db   : >> { %v2513_v20 = vpop.f32.mrf.mxu0  ;;  %v2595_v1 = vsub.f32 1.0, %v2594_v17  ;;  %v2746_v23 = vadd.f32 0.014752088, %v2745_v58  ;;  %v2987_v58 = vmul.f32 %v2986_v32, %v6445_v9  ;;  %vm2639_vm1 = vweird.f32 %v6495_v4 }
 0x7dc   : >> { %v2783_v16 = vmul.f32 3.8918573e-05, %v6462_v11  ;;  %v6475_v43 = vadd.f32 %v6356_v56, %v2513_v20  ;;  %v2579_v34 = vadd.f32 0.18741608, %v2578_v55  ;;  %v6490_v2 = vadd.f32 1.0, %v2671_v46  ;;  %vm6594_vm2 = vmor %vm2638_vm14, %vm2639_vm1 }
 0x7dd   : >> { %v2619_v55 = vadd.f32 0.18741608, %v2618_v6  ;;  %v2711_v27 = vmul.f32 %v2710_v45, %v6402_v22  ;;  %v2973_v46 = vadd.f32 0.00028619796, %v2972_v44  ;;  %v2596_v63 = vmul.f32 %v6469_v24, %v2595_v1  ;;  %v2525_v6 = vpop.f32.mrf.mxu3  ;;  %v4279_v45 = vld [vmem:[%s6442_s3] sm:$0xff] }
 0x7de   : >> { %v2784_v40 = vadd.f32 0.001143296, %v2783_v16  ;;  %v6487_v20 = vmul.f32 0.70710677, %v6475_v43  ;;  %v2657_v16 = vadd.f32 0.05243302, %v2656_v54  ;;  %v2580_v15 = vmul.f32 %v2579_v34, %v6369_v41  ;;  %3333 = vmatpush.bf16.msra.mxu1 %v4279_v45  ;;  %4312 = vmatpush.bf16.msra.mxu2 %v4279_v45 }
 0x7df   : >> { %v6501_v54 = vmul.f32 0.5, %v6367_v49  ;;  %v6506_v41 = vmul.f32 0.5, %v6378_v37  ;;  %4562 = vrcp.f32 %v6490_v2  ;;  %v2694_v49 = vmul.f32 %v2693_v29, %v6402_v22 }
 0x7e0   : >> { %v2785_v21 = vmul.f32 %v2784_v40, %v6462_v11  ;;  %v2810_v40 = vmul.f32 %v6487_v20, %v6487_v20  ;;  %v2658_v17 = vmul.f32 %v2657_v16, %v6395_v28  ;;  %v2747_v34 = vmul.f32 %v2746_v23, %v6449_v0 }
 0x7e1   : >> { %v2620_v3 = vmul.f32 %v2619_v55, %v6380_v48  ;;  %v2634_v37 = vmul.f32 %v6495_v4, %v6466_v61  ;;  %v6518_v16 = vadd.f32 1.0, %v2711_v27  ;;  %v2602_v44 = vand.u32 2147483647, %v6447_v52 }
 0x7e2   : >> { %v2786_v5 = vadd.f32 0.014752088, %v2785_v21  ;;  %v2581_v21 = vadd.f32 1.1283791, %v2580_v15  ;;  %v2604_v1 = vand.u32 2147483648, %v6447_v52  ;;  %v6523_v7 = vmin.f32 %v2810_v40, 16.0 }
 0x7e3   : >> { %v6527_v29 = vmul.f32 0.5, %v6386_v57  ;;  %v2974_v48 = vmul.f32 %v2973_v46, %v6445_v9  ;;  %v6531_v23 = vadd.f32 %v6356_v56, %v2525_v6  ;;  %v2597_v15 = vadd.f32 %v6469_v24, %v2596_v63  ;;  %v2515_v19 = vpop.f32.mrf.mxu0 }
 0x7e4   : >> { %v2787_v32 = vmul.f32 %v2786_v5, %v6462_v11  ;;  %v2659_v55 = vadd.f32 0.18741608, %v2658_v17  ;;  %v2695_v27 = vadd.f32 0.0036580483, %v2694_v49  ;;  %v2748_v13 = vadd.f32 0.112945676, %v2747_v34 }
 0x7e5   : >> { %v2621_v5 = vadd.f32 1.1283791, %v2620_v3  ;;  %v2635_v40 = vsub.f32 1.0, %v2634_v37  ;;  %4564 = vrcp.f32 %v6518_v16  ;;  %v6536_v45 = vpop.eup %4562  ;;  %vm6538_vm12 = vcmp.eq.f32.partialorder %v2602_v44, 8.507059e+37 }
 0x7e6   : >> { %v2605_v46 = vor.u32 1.1754944e-38, %v2604_v1  ;;  %v2788_v6 = vadd.f32 0.112945676, %v2787_v32  ;;  %v2823_v14 = vmul.f32 3.8918573e-05, %v6523_v7  ;;  %v2582_v17 = vmul.f32 %v2581_v21, %v6362_v53 }
 0x7e7   : >> { %v2642_v63 = vand.u32 2147483647, %v6466_v61  ;;  %v2975_v49 = vadd.f32 0.0036580483, %v2974_v48  ;;  %v2732_v34 = vmul.f32 2.1237322e-06, %v6449_v0  ;;  %v2601_v3 = vsel %vm6546_vm13, %v6469_v24, %v2597_v15 }
 0x7e8   : >> { %v2660_v37 = vmul.f32 %v2659_v55, %v6395_v28  ;;  %v2696_v44 = vmul.f32 %v2695_v27, %v6402_v22  ;;  %v2749_v53 = vmul.f32 %v2748_v13, %v6449_v0  ;;  %v6559_v21 = vmul.f32 %v2621_v5, %v6372_v30 }
 0x7e9   : >> { %v2636_v1 = vmul.f32 %v6495_v4, %v2635_v40  ;;  %v2674_v32 = vmul.f32 %v6536_v45, %v6490_v2  ;;  %v2988_v48 = vadd.f32 0.112945676, %v2987_v58  ;;  %v2644_v52 = vand.u32 2147483648, %v6466_v61 }
 0x7ea   : >> { %v2789_v24 = vmul.f32 %v2788_v6, %v6462_v11  ;;  %v2824_v28 = vadd.f32 0.001143296, %v2823_v14  ;;  %v2606_v13 = vsel %vm6538_vm12, %v2605_v46, %v2601_v3  ;;  %vm6571_vm15 = vcmp.eq.f32.partialorder %v2642_v63, 8.507059e+37 }
 0x7eb   : >> { %v6567_v15 = vpop.eup %4564  ;;  %v2976_v55 = vmul.f32 %v2975_v49, %v6445_v9  ;;  %v2733_v27 = vadd.f32 0.00028619796, %v2732_v34  ;;  %v2661_v58 = vadd.f32 1.1283791, %v2660_v37  ;;  %v2697_v5 = vadd.f32 0.05243302, %v2696_v44 }
 0x7ec   : >> { %v2750_v40 = vadd.f32 0.4994258, %v2749_v53  ;;  %v2637_v6 = vadd.f32 %v6495_v4, %v2636_v1  ;;  %v2675_v14 = vsub.f32 1.0, %v2674_v32  ;;  %v6579_v18 = vmul.f32 0.70710677, %v6531_v23 }
 0x7ed   : >> { %v2772_v57 = vmul.f32 2.1237322e-06, %v6462_v11  ;;  %v2714_v46 = vmul.f32 %v6567_v15, %v6518_v16  ;;  %v2989_v63 = vmul.f32 %v2988_v48, %v6445_v9  ;;  %v2790_v49 = vadd.f32 0.4994258, %v2789_v24 }
 0x7ee   : >> { %v2825_v34 = vmul.f32 %v2824_v28, %v6523_v7  ;;  %v2607_v3 = vmul.f32 %v2606_v13, %v2582_v17  ;;  %v2645_v37 = vor.u32 1.1754944e-38, %v2644_v52  ;;  %v6587_v44 = vmul.f32 0.5, %v6413_v62 }
 0x7ef   : >> { %v2734_v53 = vmul.f32 %v2733_v27, %v6449_v0  ;;  %v6599_v32 = vmul.f32 %v2661_v58, %v6383_v26  ;;  %v2698_v48 = vmul.f32 %v2697_v5, %v6402_v22  ;;  %v2977_v17 = vadd.f32 0.05243302, %v2976_v55 }
 0x7f0   : >> { %v2751_v52 = vmul.f32 %v2750_v40, %v6449_v0  ;;  %v2641_v62 = vsel %vm6594_vm2, %v6495_v4, %v2637_v6  ;;  %v2676_v24 = vmul.f32 %v6536_v45, %v2675_v14  ;;  %v3010_v61 = vmul.f32 %v6579_v18, %v6579_v18 }
 0x7f1   : >> { %v2773_v28 = vadd.f32 0.00028619796, %v2772_v57  ;;  %v2715_v13 = vsub.f32 1.0, %v2714_v46  ;;  %v2990_v27 = vadd.f32 0.4994258, %v2989_v63  ;;  %v2791_v26 = vmul.f32 %v2790_v49, %v6462_v11 }
 0x7f2   : >> { %v2826_v58 = vadd.f32 0.014752088, %v2825_v34  ;;  %v4206_v5 = vclamps-f32 %v2607_v3, 1.0  ;;  %v2682_v55 = vand.u32 2147483647, %v6490_v2  ;;  %v2684_v40 = vand.u32 2147483648, %v6490_v2 }
 0x7f3   : >> { %v2735_v33 = vadd.f32 0.0036580483, %v2734_v53  ;;  %v2646_v4 = vsel %vm6571_vm15, %v2645_v37, %v2641_v62  ;;  %vm2679_vm3 = vweird.f32 %v6536_v45  ;;  %v2699_v6 = vadd.f32 0.18741608, %v2698_v48 }
 0x7f4   : >> { %v6615_v14 = vadd.f32 1.0, %v2751_v52  ;;  %v2677_v57 = vadd.f32 %v6536_v45, %v2676_v24  ;;  %v6618_v46 = vmin.f32 %v3010_v61, 16.0  ;;  %v2774_v63 = vmul.f32 %v2773_v28, %v6462_v11 }
 0x7f5   : >> { %v6622_v49 = vadd.f32 %v6356_v56, %v2515_v19  ;;  %v2716_v34 = vmul.f32 %v6567_v15, %v2715_v13  ;;  %v6626_v3 = vmul.f32 %v2977_v17, %v6445_v9  ;;  %v6628_v30 = vadd.f32 1.0, %v2791_v26 }
 0x7f6   : >> { %v2827_v37 = vmul.f32 %v2826_v58, %v6523_v7  ;;  %v3210_v53 = vadd.f32 1.0, %v4206_v5  ;;  %vm2678_vm4 = vweird.f32 %v6490_v2  ;;  %vm6632_vm5 = vcmp.eq.f32.partialorder %v2682_v55, 8.507059e+37  ;;  %v2528_v55 = vpop.f32.mrf.mxu3 }
 0x7f7   : >> { %v2736_v48 = vmul.f32 %v2735_v33, %v6449_v0  ;;  %v2647_v19 = vmul.f32 %v2646_v4, %v6559_v21  ;;  %vm6640_vm6 = vmor %vm2678_vm4, %vm2679_vm3  ;;  %v2685_v52 = vor.u32 1.1754944e-38, %v2684_v40  ;;  %v2700_v62 = vmul.f32 %v2699_v6, %v6402_v22 }
 0x7f8   : >> { %4566 = vrcp.f32 %v6615_v14  ;;  %v2681_v2 = vsel %vm6640_vm6, %v6536_v45, %v2677_v57  ;;  %v3023_v24 = vmul.f32 3.8918573e-05, %v6618_v46  ;;  %v2775_v33 = vadd.f32 0.0036580483, %v2774_v63 }
 0x7f9   : >> { %v6651_v21 = vmul.f32 0.70710677, %v6622_v49  ;;  %v2717_v61 = vadd.f32 %v6567_v15, %v2716_v34  ;;  %vm2719_vm7 = vweird.f32 %v6567_v15  ;;  %4568 = vrcp.f32 %v6628_v30 }
 0x7fa   : >> { %v2828_v28 = vadd.f32 0.112945676, %v2827_v37  ;;  %v2722_v22 = vand.u32 2147483647, %v6518_v16  ;;  %v2724_v13 = vand.u32 2147483648, %v6518_v16  ;;  %v2686_v58 = vsel %vm6632_vm5, %v2685_v52, %v2681_v2 }
 0x7fb   : >> { %v2737_v26 = vadd.f32 0.05243302, %v2736_v48  ;;  %v2850_v45 = vmul.f32 %v6651_v21, %v6651_v21  ;;  %vm2718_vm8 = vweird.f32 %v6518_v16  ;;  %v2991_v5 = vmul.f32 %v2990_v27, %v6445_v9 }
 0x7fc   : >> { %v2812_v40 = vmul.f32 2.1237322e-06, %v6523_v7  ;;  %v6666_v4 = vmul.f32 %v3210_v53, %v6498_v25  ;;  %vm6668_vm9 = vmor %vm2718_vm8, %vm2719_vm7  ;;  %v3024_v57 = vadd.f32 0.001143296, %v3023_v24  ;;  %v2776_v63 = vmul.f32 %v2775_v33, %v6462_v11 }
 0x7fd   : >> { %v6673_v34 = vmin.f32 %v2850_v45, 16.0  ;;  %v4207_v16 = vclamps-f32 %v2647_v19, 1.0  ;;  %v2701_v1 = vadd.f32 1.1283791, %v2700_v62  ;;  %v2721_v27 = vsel %vm6668_vm9, %v6567_v15, %v2717_v61 }
 0x7fe   : >> { %v6675_v37 = vpop.eup %4566  ;;  %v2829_v25 = vmul.f32 %v2828_v28, %v6523_v7  ;;  %v2687_v53 = vmul.f32 %v2686_v58, %v6599_v32  ;;  %vm2723_vm10 = vcmp.eq.f32.partialorder %v2722_v22, 8.507059e+37  ;;  %v2725_v48 = vor.u32 1.1754944e-38, %v2724_v13 }
 0x7ff   : >> { %v2738_v17 = vmul.f32 %v2737_v26, %v6449_v0  ;;  %v6683_v52 = vpop.eup %4568  ;;  %v3012_v2 = vmul.f32 2.1237322e-06, %v6618_v46  ;;  %v6687_v24 = vadd.f32 %v6356_v56, %v2528_v55  ;;  %v2813_v19 = vadd.f32 0.00028619796, %v2812_v40 }
 0x800   : >> { %v2863_v62 = vmul.f32 3.8918573e-05, %v6673_v34  ;;  %v2726_v33 = vsel %vm2723_vm10, %v2725_v48, %v2721_v27  ;;  %v2754_v15 = vmul.f32 %v6675_v37, %v6615_v14  ;;  %v3025_v32 = vmul.f32 %v3024_v57, %v6618_v46 }
 0x801   : >> { %v2777_v61 = vadd.f32 0.05243302, %v2776_v63  ;;  %v2702_v28 = vmul.f32 %v2701_v1, %v6393_v38  ;;  %v2830_v22 = vadd.f32 0.4994258, %v2829_v25  ;;  %v2852_v13 = vmul.f32 2.1237322e-06, %v6673_v34 }
 0x802   : >> { %v2864_v26 = vadd.f32 0.001143296, %v2863_v62  ;;  %v3211_v45 = vadd.f32 1.0, %v4207_v16  ;;  %v4208_v58 = vclamps-f32 %v2687_v53, 1.0  ;;  %v2739_v55 = vadd.f32 0.18741608, %v2738_v17  ;;  %v2530_v53 = vpop.f32.mrf.mxu3 }
 0x803   : >> { %v2794_v40 = vmul.f32 %v6683_v52, %v6628_v30  ;;  %v2727_v6 = vmul.f32 %v2726_v33, %v2702_v28  ;;  %v3013_v27 = vadd.f32 0.00028619796, %v3012_v2  ;;  %v2814_v48 = vmul.f32 %v2813_v19, %v6523_v7 }
 0x804   : >> { %v2865_v36 = vmul.f32 %v2864_v26, %v6673_v34  ;;  %v6699_v57 = vadd.f32 1.0, %v2991_v5  ;;  %v2755_v63 = vsub.f32 1.0, %v2754_v15  ;;  %v3026_v38 = vadd.f32 0.014752088, %v3025_v32 }
 0x805   : >> { %v6702_v1 = vmul.f32 0.70710677, %v6687_v24  ;;  %v2778_v16 = vmul.f32 %v2777_v61, %v6462_v11  ;;  %v2831_v25 = vmul.f32 %v2830_v22, %v6523_v7  ;;  %v2853_v17 = vadd.f32 0.00028619796, %v2852_v13  ;;  %v2518_v13 = vpop.f32.mrf.mxu0 }
 0x806   : >> { %v2866_v62 = vadd.f32 0.014752088, %v2865_v36  ;;  %v3227_v2 = vmul.f32 %v3211_v45, %v6501_v54  ;;  %v6707_v33 = vadd.f32 1.0, %v4208_v58  ;;  %v2740_v19 = vmul.f32 %v2739_v55, %v6449_v0 }
 0x807   : >> { %v2795_v5 = vsub.f32 1.0, %v2794_v40  ;;  %v4209_v28 = vclamps-f32 %v2727_v6, 1.0  ;;  %v6711_v15 = vmul.f32 %v3013_v27, %v6618_v46  ;;  %v2815_v32 = vadd.f32 0.0036580483, %v2814_v48 }
 0x808   : >> { %v2867_v26 = vmul.f32 %v2866_v62, %v6673_v34  ;;  %v2756_v61 = vmul.f32 %v6675_v37, %v2755_v63  ;;  %v3027_v22 = vmul.f32 %v3026_v38, %v6618_v46  ;;  %v3050_v36 = vmul.f32 %v6702_v1, %v6702_v1 }
 0x809   : >> { %v6719_v54 = vadd.f32 %v6356_v56, %v2530_v53  ;;  %v2779_v0 = vadd.f32 0.18741608, %v2778_v16  ;;  %v6721_v45 = vadd.f32 1.0, %v2831_v25  ;;  %v2854_v58 = vmul.f32 %v2853_v17, %v6673_v34 }
 0x80a   : >> { %v2868_v55 = vadd.f32 0.112945676, %v2867_v26  ;;  %v2741_v40 = vadd.f32 1.1283791, %v2740_v19  ;;  %vm2758_vm11 = vweird.f32 %v6615_v14  ;;  %v2762_v6 = vand.u32 2147483647, %v6615_v14 }
 0x80b   : >> { %v2796_v27 = vmul.f32 %v6683_v52, %v2795_v5  ;;  %v2764_v48 = vand.u32 2147483648, %v6615_v14  ;;  %v2816_v63 = vmul.f32 %v2815_v32, %v6523_v7  ;;  %v6730_v38 = vadd.f32 %v6356_v56, %v2518_v13 }
 0x80c   : >> { %v3242_v16 = vpack.c.bf16 %v3227_v2, %v6666_v4  ;;  %v2757_v25 = vadd.f32 %v6675_v37, %v2756_v61  ;;  %vm2759_vm12 = vweird.f32 %v6675_v37  ;;  %v6735_v53 = vmin.f32 %v3050_v36, 16.0 }
 0x80d   : >> { %v2869_v17 = vmul.f32 %v2868_v55, %v6673_v34  ;;  %v2780_v62 = vmul.f32 %v2779_v0, %v6462_v11  ;;  %4570 = vrcp.f32 %v6721_v45  ;;  %v6741_v19 = vmul.f32 0.70710677, %v6719_v54  ;;  %vm6747_vm15 = vmor %vm2758_vm11, %vm2759_vm12 }
 0x80e   : >> { %v2855_v5 = vadd.f32 0.0036580483, %v2854_v58  ;;  %v2797_v32 = vadd.f32 %v6683_v52, %v2796_v27  ;;  %vm2799_vm13 = vweird.f32 %v6683_v52  ;;  %vm3301_vm14 = vcmask 523264  }
 0x80f   : >> { %v2870_v4 = vadd.f32 0.4994258, %v2869_v17  ;;  %v3213_v2 = vadd.f32 1.0, %v4209_v28  ;;  %v2804_v11 = vand.u32 2147483648, %v6628_v30  ;;  %v2817_v61 = vadd.f32 0.05243302, %v2816_v63  ;;  %4240 = vmatmul.msk.bf16.vlgmr.msra.gmra.mxu1 %vm3301_vm14, %v3242_v16 }
 0x810   : >> { %v6753_v36 = vmul.f32 0.70710677, %v6730_v38  ;;  %v2761_v13 = vsel %vm6747_vm15, %v6675_v37, %v2757_v25  ;;  %vm2798_vm1 = vweird.f32 %v6628_v30  ;;  %v2802_v14 = vand.u32 2147483647, %v6628_v30 }
 0x811   : >> { %v2871_v28 = vmul.f32 %v2870_v4, %v6673_v34  ;;  %vm2763_vm2 = vcmp.eq.f32.partialorder %v2762_v6, 8.507059e+37  ;;  %v2765_v0 = vor.u32 1.1754944e-38, %v2764_v48  ;;  %vm6764_vm3 = vmor %vm2798_vm1, %vm2799_vm13  ;;  %v3063_v55 = vmul.f32 3.8918573e-05, %v6735_v53 }
 0x812   : >> { %v2856_v27 = vmul.f32 %v2855_v5, %v6673_v34  ;;  %v2781_v63 = vadd.f32 1.1283791, %v2780_v62  ;;  %v2801_v37 = vsel %vm6764_vm3, %v6683_v52, %v2797_v32  ;;  %v2890_v6 = vmul.f32 %v6753_v36, %v6753_v36  ;;  %v2533_v5 = vpop.f32.mrf.mxu3 }
 0x813   : >> { %v6773_v30 = vadd.f32 1.0, %v2871_v28  ;;  %v6777_v48 = vpop.eup %4570  ;;  %v2766_v16 = vsel %vm2763_vm2, %v2765_v0, %v2761_v13  ;;  %v2805_v25 = vor.u32 1.1754944e-38, %v2804_v11  ;;  %v2818_v17 = vmul.f32 %v2817_v61, %v6523_v7 }
 0x814   : >> { %v3090_v4 = vmul.f32 %v6741_v19, %v6741_v19  ;;  %v2742_v62 = vmul.f32 %v2741_v40, %v6420_v31  ;;  %v3028_v26 = vadd.f32 0.112945676, %v3027_v22  ;;  %vm2803_vm4 = vcmp.eq.f32.partialorder %v2802_v14, 8.507059e+37  ;;  %v2520_v14 = vpop.f32.mrf.mxu0 }
 0x815   : >> { %4572 = vrcp.f32 %v6773_v30  ;;  %v2806_v52 = vsel %vm2803_vm4, %v2805_v25, %v2801_v37  ;;  %v3064_v32 = vadd.f32 0.001143296, %v3063_v55  ;;  %v2857_v28 = vadd.f32 0.05243302, %v2856_v27 }
 0x816   : >> { %v6784_v58 = vmin.f32 %v2890_v6, 16.0  ;;  %v6787_v13 = vadd.f32 0.18741608, %v6626_v3  ;;  %v2767_v11 = vmul.f32 %v2766_v16, %v2742_v62  ;;  %v2782_v61 = vmul.f32 %v2781_v63, %v6437_v12 }
 0x817   : >> { %v2834_v0 = vmul.f32 %v6777_v48, %v6721_v45  ;;  %v3229_v31 = vmul.f32 %v3213_v2, %v6527_v29  ;;  %4574 = vrcp.f32 %v6699_v57  ;;  %v2819_v22 = vadd.f32 0.18741608, %v2818_v17 }
 0x818   : >> { %v6794_v40 = vmin.f32 %v3090_v4, 16.0  ;;  %v3015_v55 = vadd.f32 0.0036580483, %v6711_v15  ;;  %v3029_v27 = vmul.f32 %v3028_v26, %v6618_v46  ;;  %v2807_v3 = vmul.f32 %v2806_v52, %v2782_v61 }
 0x819   : >> { %v2903_v37 = vmul.f32 3.8918573e-05, %v6784_v58  ;;  %v3228_v12 = vmul.f32 %v6707_v33, %v6506_v41  ;;  %v2543_v63 = vmul.f32 0.5, %v6423_v10  ;;  %v3065_v29 = vmul.f32 %v3064_v32, %v6735_v53 }
 0x81a   : >> { %v2858_v2 = vmul.f32 %v2857_v28, %v6673_v34  ;;  %v4210_v16 = vclamps-f32 %v2767_v11, 1.0  ;;  %v2835_v25 = vsub.f32 1.0, %v2834_v0  ;;  %v6807_v15 = vadd.f32 %v6356_v56, %v2520_v14 }
 0x81b   : >> { %v6804_v6 = vpop.eup %4572  ;;  %v2904_v17 = vadd.f32 0.001143296, %v2903_v37  ;;  %v2820_v4 = vmul.f32 %v2819_v22, %v6523_v7  ;;  %v3103_v62 = vmul.f32 3.8918573e-05, %v6794_v40  ;;  %v3243_v10 = vpack.c.bf16 %v3229_v31, %v3228_v12  ;;  %v2535_v22 = vpop.f32.mrf.mxu3 }
 0x81c   : >> { %v2874_v41 = vmul.f32 %v6804_v6, %v6773_v30  ;;  %v6814_v33 = vmul.f32 %v3015_v55, %v6618_v46  ;;  %v6816_v26 = vadd.f32 0.4994258, %v3029_v27  ;;  %v4211_v52 = vclamps-f32 %v2807_v3, 1.0 }
 0x81d   : >> { %v2905_v32 = vmul.f32 %v2904_v17, %v6784_v58  ;;  %v6819_v28 = vpop.eup %4574  ;;  %v6821_v11 = vadd.f32 0.014752088, %v3065_v29  ;;  %v2859_v61 = vadd.f32 0.18741608, %v2858_v2  ;;  %v6824_v0 = vadd.f32 %v6356_v56, %v2533_v5 }
 0x81e   : >> { %v2875_v7 = vsub.f32 1.0, %v2874_v41  ;;  %v3214_v14 = vadd.f32 1.0, %v4210_v16  ;;  %v2836_v31 = vmul.f32 %v6777_v48, %v2835_v25  ;;  %v6828_v27 = vmul.f32 0.70710677, %v6807_v15 }
 0x81f   : >> { %v2906_v55 = vadd.f32 0.014752088, %v2905_v32  ;;  %v2821_v3 = vadd.f32 1.1283791, %v2820_v4  ;;  %v3104_v37 = vadd.f32 0.001143296, %v3103_v62  ;;  %4241 = vmatmul.msk.bf16.gmra.mxu1 %vm3301_vm14, %v3243_v10  ;;  %v6836_v16 = vadd.f32 %v6356_v56, %v2535_v22 }
 0x820   : >> { %v2876_v12 = vmul.f32 %v6804_v6, %v2875_v7  ;;  %v2892_v29 = vmul.f32 2.1237322e-06, %v6784_v58  ;;  %v3215_v2 = vadd.f32 1.0, %v4211_v52  ;;  %v2844_v5 = vand.u32 2147483648, %v6721_v45 }
 0x821   : >> { %v2907_v17 = vmul.f32 %v2906_v55, %v6784_v58  ;;  %v2860_v25 = vmul.f32 %v2859_v61, %v6673_v34  ;;  %vm2879_vm5 = vweird.f32 %v6804_v6  ;;  %v6842_v4 = vmul.f32 0.70710677, %v6824_v0 }
 0x822   : >> { %v2877_v41 = vadd.f32 %v6804_v6, %v2876_v12  ;;  %v2837_v62 = vadd.f32 %v6777_v48, %v2836_v31  ;;  %vm2839_vm6 = vweird.f32 %v6777_v48  ;;  %v2884_v10 = vand.u32 2147483648, %v6773_v30 }
 0x823   : >> { %v2930_v52 = vmul.f32 %v6828_v27, %v6828_v27  ;;  %vm2878_vm7 = vweird.f32 %v6773_v30  ;;  %v2882_v56 = vand.u32 2147483647, %v6773_v30  ;;  %v2893_v34 = vadd.f32 0.00028619796, %v2892_v29 }
 0x824   : >> { %v2908_v32 = vadd.f32 0.112945676, %v2907_v17  ;;  %vm2838_vm8 = vweird.f32 %v6721_v45  ;;  %v2842_v61 = vand.u32 2147483647, %v6721_v45  ;;  %v3105_v7 = vmul.f32 %v3104_v37, %v6794_v40  ;;  %vm6854_vm9 = vmor %vm2878_vm7, %vm2879_vm5 }
 0x825   : >> { %v6859_v31 = vmul.f32 0.70710677, %v6836_v16  ;;  %v2845_v55 = vor.u32 1.1754944e-38, %v2844_v5  ;;  %v2861_v12 = vadd.f32 1.1283791, %v2860_v25  ;;  %v2881_v30 = vsel %vm6854_vm9, %v6804_v6, %v2877_v41  ;;  %vm6867_vm10 = vmor %vm2838_vm8, %vm2839_vm6 }
 0x826   : >> { %v2909_v29 = vmul.f32 %v2908_v32, %v6784_v58  ;;  %v3231_v17 = vmul.f32 %v3215_v2, %v2543_v63  ;;  %v2885_v37 = vor.u32 1.1754944e-38, %v2884_v10  ;;  %v3130_v39 = vmul.f32 %v6842_v4, %v6842_v4 }
 0x827   : >> { %v6873_v42 = vmin.f32 %v2930_v52, 16.0  ;;  %v2841_v5 = vsel %vm6867_vm10, %v6777_v48, %v2837_v62  ;;  %vm2883_vm11 = vcmp.eq.f32.partialorder %v2882_v56, 8.507059e+37  ;;  %v2894_v6 = vmul.f32 %v2893_v34, %v6784_v58 }
 0x828   : >> { %v2910_v63 = vadd.f32 0.4994258, %v2909_v29  ;;  %v2886_v2 = vsel %vm2883_vm11, %v2885_v37, %v2881_v30  ;;  %v3170_v25 = vmul.f32 %v6859_v31, %v6859_v31  ;;  %v3230_v32 = vmul.f32 %v3214_v14, %v6587_v44 }
 0x829   : >> { %v2932_v41 = vmul.f32 2.1237322e-06, %v6873_v42  ;;  %v2943_v10 = vmul.f32 3.8918573e-05, %v6873_v42  ;;  %v2822_v52 = vmul.f32 %v2821_v3, %v6487_v20  ;;  %vm2843_vm12 = vcmp.eq.f32.partialorder %v2842_v61, 8.507059e+37 }
 0x82a   : >> { %v2862_v22 = vmul.f32 %v2861_v12, %v6651_v21  ;;  %v2846_v48 = vsel %vm2843_vm12, %v2845_v55, %v2841_v5  ;;  %v6886_v62 = vmin.f32 %v3130_v39, 16.0  ;;  %v2911_v56 = vmul.f32 %v2910_v63, %v6784_v58 }
 0x82b   : >> { %v2933_v34 = vadd.f32 0.00028619796, %v2932_v41  ;;  %v2895_v29 = vadd.f32 0.0036580483, %v2894_v6  ;;  %v2944_v45 = vadd.f32 0.001143296, %v2943_v10  ;;  %v3244_v37 = vpack.c.bf16 %v3231_v17, %v3230_v32 }
 0x82c   : >> { %v2887_v30 = vmul.f32 %v2886_v2, %v2862_v22  ;;  %v3106_v47 = vadd.f32 0.014752088, %v3105_v7  ;;  %v6889_v51 = vadd.f32 1.0, %v2911_v56  ;;  %v6891_v59 = vmin.f32 %v3170_v25, 16.0 }
 0x82d   : >> { %v2934_v20 = vmul.f32 %v2933_v34, %v6873_v42  ;;  %v2980_v44 = vmul.f32 %v6787_v13, %v6445_v9  ;;  %v3031_v39 = vmul.f32 %v6816_v26, %v6618_v46  ;;  %v2847_v21 = vmul.f32 %v2846_v48, %v2822_v52 }
 0x82e   : >> { %v2945_v14 = vmul.f32 %v2944_v45, %v6873_v42  ;;  %v2994_v3 = vmul.f32 %v6819_v28, %v6699_v57  ;;  %v3002_v61 = vand.u32 2147483647, %v6699_v57  ;;  %v3067_v7 = vmul.f32 %v6821_v11, %v6735_v53 }
 0x82f   : >> { %4576 = vrcp.f32 %v6889_v51  ;;  %v3017_v55 = vadd.f32 0.05243302, %v6814_v33  ;;  %v4213_v12 = vclamps-f32 %v2887_v30, 1.0  ;;  %v3143_v9 = vmul.f32 3.8918573e-05, %v6886_v62  ;;  %4242 = vmatmul.msk.bf16.gmra.mxu1 %vm3301_vm14, %v3244_v37 }
 0x830   : >> { %v2896_v13 = vmul.f32 %v2895_v29, %v6784_v58  ;;  %v3107_v26 = vmul.f32 %v3106_v47, %v6794_v40  ;;  %v3183_v17 = vmul.f32 3.8918573e-05, %v6891_v59  ;;  %v2935_v5 = vadd.f32 0.0036580483, %v2934_v20 }
 0x831   : >> { %v2946_v6 = vadd.f32 0.014752088, %v2945_v14  ;;  %v2981_v63 = vadd.f32 1.1283791, %v2980_v44  ;;  %v3004_v11 = vand.u32 2147483648, %v6699_v57  ;;  %v6912_v2 = vadd.f32 1.0, %v3031_v39 }
 0x832   : >> { %v4212_v25 = vclamps-f32 %v2847_v21, 1.0  ;;  %v2995_v33 = vsub.f32 1.0, %v2994_v3  ;;  %v3052_v41 = vmul.f32 2.1237322e-06, %v6735_v53  ;;  %v3068_v10 = vadd.f32 0.112945676, %v3067_v7 }
 0x833   : >> { %v2947_v32 = vmul.f32 %v2946_v6, %v6873_v42  ;;  %vm2998_vm13 = vweird.f32 %v6699_v57  ;;  %v3018_v47 = vmul.f32 %v3017_v55, %v6618_v46  ;;  %v3217_v52 = vadd.f32 1.0, %v4213_v12 }
 0x834   : >> { %v3144_v22 = vadd.f32 0.001143296, %v3143_v9  ;;  %v2897_v48 = vadd.f32 0.05243302, %v2896_v13  ;;  %v3108_v34 = vadd.f32 0.112945676, %v3107_v26  ;;  %v2936_v29 = vmul.f32 %v2935_v5, %v6873_v42 }
 0x835   : >> { %v6918_v56 = vpop.eup %4576  ;;  %v3184_v30 = vadd.f32 0.001143296, %v3183_v17  ;;  %v2948_v45 = vadd.f32 0.112945676, %v2947_v32  ;;  %4578 = vrcp.f32 %v6912_v2  ;;  %v3216_v37 = vadd.f32 1.0, %v4212_v25 }
 0x836   : >> { %v2545_v20 = vmul.f32 0.5, %v6622_v49  ;;  %v2914_v44 = vmul.f32 %v6918_v56, %v6889_v51  ;;  %v6926_v39 = vmul.f32 %v2981_v63, %v6417_v35  ;;  %v3069_v21 = vmul.f32 %v3068_v10, %v6735_v53 }
 0x837   : >> { %v2544_v14 = vmul.f32 0.5, %v6475_v43  ;;  %v2949_v3 = vmul.f32 %v2948_v45, %v6873_v42  ;;  %v3145_v55 = vmul.f32 %v3144_v22, %v6886_v62  ;;  %v2898_v12 = vmul.f32 %v2897_v48, %v6784_v58 }
 0x838   : >> { %v3233_v7 = vmul.f32 %v3217_v52, %v2545_v20  ;;  %v2915_v9 = vsub.f32 1.0, %v2914_v44  ;;  %v3109_v49 = vmul.f32 %v3108_v34, %v6794_v40  ;;  %v3185_v13 = vmul.f32 %v3184_v30, %v6891_v59 }
 0x839   : >> { %v2937_v26 = vadd.f32 0.05243302, %v2936_v29  ;;  %v2950_v17 = vadd.f32 0.4994258, %v2949_v3  ;;  %v2996_v35 = vmul.f32 %v6819_v28, %v2995_v33  ;;  %v3019_v5 = vadd.f32 0.18741608, %v3018_v47 }
 0x83a   : >> { %v3053_v6 = vadd.f32 0.00028619796, %v3052_v41  ;;  %v3232_v63 = vmul.f32 %v3216_v37, %v2544_v14  ;;  %vm2999_vm15 = vweird.f32 %v6819_v28  ;;  %v3070_v43 = vadd.f32 0.4994258, %v3069_v21 }
 0x83b   : >> { %v3092_v25 = vmul.f32 2.1237322e-06, %v6794_v40  ;;  %v2951_v10 = vmul.f32 %v2950_v17, %v6873_v42  ;;  %v6939_v32 = vpop.eup %4578  ;;  %v3146_v52 = vadd.f32 0.014752088, %v3145_v55  ;;  %v2899_v22 = vadd.f32 0.18741608, %v2898_v12  ;;  %vm6956_vm1 = vmor %vm2998_vm13, %vm2999_vm15 }
 0x83c   : >> { %v2916_v48 = vmul.f32 %v6918_v56, %v2915_v9  ;;  %v3245_v34 = vpack.c.bf16 %v3233_v7, %v3232_v63  ;;  %v3110_v30 = vadd.f32 0.4994258, %v3109_v49  ;;  %v3186_v29 = vadd.f32 0.014752088, %v3185_v13 }
 0x83d   : >> { %v2938_v33 = vmul.f32 %v2937_v26, %v6873_v42  ;;  %v6943_v41 = vadd.f32 1.0, %v2951_v10  ;;  %v6946_v47 = vadd.f32 %v6819_v28, %v2996_v35  ;;  %v6948_v45 = vor.u32 1.1754944e-38, %v3004_v11 }
 0x83e   : >> { %v3020_v37 = vmul.f32 %v3019_v5, %v6618_v46  ;;  %v3054_v20 = vmul.f32 %v3053_v6, %v6735_v53  ;;  %v3034_v21 = vmul.f32 %v6939_v32, %v6912_v2  ;;  %v3071_v14 = vmul.f32 %v3070_v43, %v6735_v53 }
 0x83f   : >> { %v3093_v3 = vadd.f32 0.00028619796, %v3092_v25  ;;  %4580 = vrcp.f32 %v6943_v41  ;;  %v3147_v46 = vmul.f32 %v3146_v52, %v6886_v62  ;;  %v2900_v11 = vmul.f32 %v2899_v22, %v6784_v58  ;;  %4243 = vmatmul.msk.bf16.gmra.mxu1 %vm3301_vm14, %v3245_v34 }
 0x840   : >> { %v2917_v7 = vadd.f32 %v6918_v56, %v2916_v48  ;;  %vm2919_vm2 = vweird.f32 %v6918_v56  ;;  %v3111_v55 = vmul.f32 %v3110_v30, %v6794_v40  ;;  %v2924_v12 = vand.u32 2147483648, %v6889_v51 }
 0x841   : >> { %v3187_v9 = vmul.f32 %v3186_v29, %v6891_v59  ;;  %v2939_v49 = vadd.f32 0.18741608, %v2938_v33  ;;  %v3001_v13 = vsel %vm6956_vm1, %v6819_v28, %v6946_v47  ;;  %v6976_v26 = vadd.f32 1.1283791, %v3020_v37 }
 0x842   : >> { %vm2918_vm3 = vweird.f32 %v6889_v51  ;;  %v2922_v58 = vand.u32 2147483647, %v6889_v51  ;;  %v3035_v17 = vsub.f32 1.0, %v3034_v21  ;;  %vm3038_vm4 = vweird.f32 %v6912_v2 }
 0x843   : >> { %v3055_v35 = vadd.f32 0.0036580483, %v3054_v20  ;;  %v3094_v5 = vmul.f32 %v3093_v3, %v6794_v40  ;;  %vm6982_vm5 = vmor %vm2918_vm3, %vm2919_vm2  ;;  %v6986_v63 = vadd.f32 1.0, %v3071_v14  ;;  %v3148_v43 = vadd.f32 0.112945676, %v3147_v46 }
 0x844   : >> { %v2901_v25 = vadd.f32 1.1283791, %v2900_v11  ;;  %v2921_v10 = vsel %vm6982_vm5, %v6918_v56, %v2917_v7  ;;  %v6991_v51 = vadd.f32 1.0, %v3111_v55  ;;  %v2925_v22 = vor.u32 1.1754944e-38, %v2924_v12 }
 0x845   : >> { %v4581_v52 = vpop.eup %4580  ;;  %v3188_v48 = vadd.f32 0.112945676, %v3187_v9  ;;  %v2940_v34 = vmul.f32 %v2939_v49, %v6873_v42  ;;  %vm6996_vm6 = vcmp.eq.f32.partialorder %v3002_v61, 8.507059e+37  ;;  %vm3039_vm7 = vweird.f32 %v6939_v32 }
 0x846   : >> { %v3042_v29 = vand.u32 2147483647, %v6912_v2  ;;  %vm2923_vm8 = vcmp.eq.f32.partialorder %v2922_v58, 8.507059e+37  ;;  %v2954_v56 = vmul.f32 %v4581_v52, %v6943_v41  ;;  %v3036_v33 = vmul.f32 %v6939_v32, %v3035_v17  ;;  %vm7020_vm10 = vmor %vm3038_vm4, %vm3039_vm7 }
 0x847   : >> { %v3056_v37 = vmul.f32 %v3055_v35, %v6735_v53  ;;  %v3095_v20 = vadd.f32 0.0036580483, %v3094_v5  ;;  %v2926_v21 = vsel %vm2923_vm8, %v2925_v22, %v2921_v10  ;;  %4582 = vrcp.f32 %v6986_v63 }
 0x848   : >> { %v3149_v42 = vmul.f32 %v3148_v43, %v6886_v62  ;;  %v2902_v57 = vmul.f32 %v2901_v25, %v6753_v36  ;;  %v2955_v61 = vsub.f32 1.0, %v2954_v56  ;;  %4584 = vrcp.f32 %v6991_v51 }
 0x849   : >> { %v3189_v14 = vmul.f32 %v3188_v48, %v6891_v59  ;;  %v2941_v3 = vadd.f32 1.1283791, %v2940_v34  ;;  %v2964_v46 = vand.u32 2147483648, %v6943_v41  ;;  %vm2959_vm9 = vweird.f32 %v4581_v52 }
 0x84a   : >> { %v2927_v11 = vmul.f32 %v2926_v21, %v2902_v57  ;;  %v2956_v7 = vmul.f32 %v4581_v52, %v2955_v61  ;;  %v2962_v55 = vand.u32 2147483647, %v6943_v41  ;;  %v3037_v12 = vadd.f32 %v6939_v32, %v3036_v33 }
 0x84b   : >> { %v3044_v9 = vand.u32 2147483648, %v6912_v2  ;;  %v3096_v49 = vmul.f32 %v3095_v20, %v6794_v40  ;;  %v3132_v36 = vmul.f32 2.1237322e-06, %v6886_v62  ;;  %v3150_v17 = vadd.f32 0.4994258, %v3149_v42 }
 0x84c   : >> { %v3172_v35 = vmul.f32 2.1237322e-06, %v6891_v59  ;;  %v2957_v5 = vadd.f32 %v4581_v52, %v2956_v7  ;;  %vm2958_vm11 = vweird.f32 %v6943_v41  ;;  %vm7026_vm12 = vcmp.eq.f32.partialorder %v3042_v29, 8.507059e+37 }
 0x84d   : >> { %v3057_v43 = vadd.f32 0.05243302, %v3056_v37  ;;  %v3190_v25 = vadd.f32 0.4994258, %v3189_v14  ;;  %vm2960_vm13 = vmor %vm2958_vm11, %vm2959_vm9  ;;  %v2965_v10 = vor.u32 1.1754944e-38, %v2964_v46  ;;  %v7030_v22 = vpop.eup %4582  ;;  %v4214_v2 = vclamps-f32 %v2927_v11, 1.0 }
 0x84e   : >> { %v2942_v48 = vmul.f32 %v2941_v3, %v6828_v27  ;;  %v2961_v34 = vsel %vm2960_vm13, %v4581_v52, %v2957_v5  ;;  %vm2963_vm15 = vcmp.eq.f32.partialorder %v2962_v55, 8.507059e+37  ;;  %v7033_v56 = vpop.eup %4584  ;;  %v3045_v33 = vor.u32 1.1754944e-38, %v3044_v9 }
 0x84f   : >> { %v3097_v20 = vadd.f32 0.05243302, %v3096_v49  ;;  %v3133_v41 = vadd.f32 0.00028619796, %v3132_v36  ;;  %v2966_v29 = vsel %vm2963_vm15, %v2965_v10, %v2961_v34  ;;  %v3041_v37 = vsel %vm7020_vm10, %v6939_v32, %v3037_v12 }
 0x850   : >> { %v3151_v21 = vmul.f32 %v3150_v17, %v6886_v62  ;;  %v3173_v42 = vadd.f32 0.00028619796, %v3172_v35  ;;  %v2967_v57 = vmul.f32 %v2966_v29, %v2942_v48  ;;  %v3006_v27 = vsel %vm6996_vm6, %v6948_v45, %v3001_v13 }
 0x851   : >> { %v3058_v52 = vmul.f32 %v3057_v43, %v6735_v53  ;;  %v3074_v61 = vmul.f32 %v7030_v22, %v6986_v63  ;;  %v3191_v32 = vmul.f32 %v3190_v25, %v6891_v59  ;;  %v3022_v14 = vmul.f32 %v6976_v26, %v6579_v18 }
 0x852   : >> { %v3114_v44 = vmul.f32 %v7033_v56, %v6991_v51  ;;  %v3218_v3 = vadd.f32 1.0, %v4214_v2  ;;  %v4215_v46 = vclamps-f32 %v2967_v57, 1.0  ;;  %v3046_v28 = vsel %vm7026_vm12, %v3045_v33, %v3041_v37 }
 0x853   : >> { %v3098_v47 = vmul.f32 %v3097_v20, %v6794_v40  ;;  %v3134_v45 = vmul.f32 %v3133_v41, %v6886_v62  ;;  %v2546_v13 = vmul.f32 0.5, %v6730_v38  ;;  %v7060_v30 = vadd.f32 1.0, %v3151_v21 }
 0x854   : >> { %v3174_v11 = vmul.f32 %v3173_v42, %v6891_v59  ;;  %v2547_v18 = vmul.f32 0.5, %v6807_v15  ;;  %v3219_v26 = vadd.f32 1.0, %v4215_v46  ;;  %v3007_v7 = vmul.f32 %v3006_v27, %v6926_v39 }
 0x855   : >> { %v3059_v55 = vadd.f32 0.18741608, %v3058_v52  ;;  %v3075_v12 = vsub.f32 1.0, %v3074_v61  ;;  %v7065_v9 = vadd.f32 1.0, %v3191_v32  ;;  %v3047_v49 = vmul.f32 %v3046_v28, %v3022_v14 }
 0x856   : >> { %v3115_v36 = vsub.f32 1.0, %v3114_v44  ;;  %v3234_v58 = vmul.f32 %v3218_v3, %v2546_v13  ;;  %v3235_v17 = vmul.f32 %v3219_v26, %v2547_v18  ;;  %v3135_v35 = vadd.f32 0.0036580483, %v3134_v45 }
 0x857   : >> { %v3099_v5 = vadd.f32 0.18741608, %v3098_v47  ;;  %4586 = vrcp.f32 %v7060_v30  ;;  %v3175_v38 = vadd.f32 0.0036580483, %v3174_v11  ;;  %v3076_v43 = vmul.f32 %v7030_v22, %v3075_v12 }
 0x858   : >> { %v3246_v6 = vpack.c.bf16 %v3235_v17, %v3234_v58  ;;  %4588 = vrcp.f32 %v7065_v9  ;;  %v4216_v15 = vclamps-f32 %v3007_v7, 1.0  ;;  %v4217_v39 = vclamps-f32 %v3047_v49, 1.0 }
 0x859   : >> { %v3060_v25 = vmul.f32 %v3059_v55, %v6735_v53  ;;  %v3116_v10 = vmul.f32 %v7033_v56, %v3115_v36  ;;  %vm3078_vm1 = vweird.f32 %v6986_v63  ;;  %vm3079_vm2 = vweird.f32 %v7030_v22 }
 0x85a   : >> { %4244 = vmatmul.msk.bf16.vlgmr.msra.gmra.mxu2 %vm3301_vm14, %v3246_v6  ;;  %v3084_v2 = vand.u32 2147483648, %v6986_v63  ;;  %v3136_v48 = vmul.f32 %v3135_v35, %v6886_v62  ;;  %v3100_v34 = vmul.f32 %v3099_v5, %v6794_v40  ;;  %vm3118_vm3 = vweird.f32 %v6991_v51  ;;  %vm7087_vm5 = vmor %vm3078_vm1, %vm3079_vm2 }
 0x85b   : >> { %vm3119_vm4 = vweird.f32 %v7033_v56  ;;  %v3176_v53 = vmul.f32 %v3175_v38, %v6891_v59  ;;  %v3077_v33 = vadd.f32 %v7030_v22, %v3076_v43  ;;  %v3082_v20 = vand.u32 2147483647, %v6986_v63 }
 0x85c   : >> { %v3124_v41 = vand.u32 2147483648, %v6991_v51  ;;  %v2548_v37 = vmul.f32 0.5, %v6407_v50  ;;  %v3117_v40 = vadd.f32 %v7033_v56, %v3116_v10  ;;  %v3122_v42 = vand.u32 2147483647, %v6991_v51  ;;  %vm7098_vm6 = vmor %vm3118_vm3, %vm3119_vm4 }
 0x85d   : >> { %v7084_v29 = vpop.eup %4586  ;;  %v3220_v27 = vadd.f32 1.0, %v4216_v15  ;;  %v2549_v52 = vmul.f32 0.5, %v6531_v23  ;;  %v3061_v63 = vadd.f32 1.1283791, %v3060_v25  ;;  %v3137_v50 = vadd.f32 0.05243302, %v3136_v48 }
 0x85e   : >> { %v7093_v57 = vpop.eup %4588  ;;  %v3221_v32 = vadd.f32 1.0, %v4217_v39  ;;  %v3085_v14 = vor.u32 1.1754944e-38, %v3084_v2  ;;  %v3101_v44 = vadd.f32 1.1283791, %v3100_v34  ;;  %v3177_v3 = vadd.f32 0.05243302, %v3176_v53 }
 0x85f   : >> { %v3081_v46 = vsel %vm7087_vm5, %v7030_v22, %v3077_v33  ;;  %vm3083_vm7 = vcmp.eq.f32.partialorder %v3082_v20, 8.507059e+37  ;;  %v3125_v28 = vor.u32 1.1754944e-38, %v3124_v41  ;;  %v3121_v23 = vsel %vm7098_vm6, %v7033_v56, %v3117_v40 }
 0x860   : >> { %vm3123_vm8 = vcmp.eq.f32.partialorder %v3122_v42, 8.507059e+37  ;;  %v3154_v51 = vmul.f32 %v7084_v29, %v7060_v30  ;;  %v3194_v47 = vmul.f32 %v7093_v57, %v7065_v9  ;;  %v3236_v45 = vmul.f32 %v3220_v27, %v2548_v37 }
 0x861   : >> { %v3062_v13 = vmul.f32 %v3061_v63, %v6702_v1  ;;  %v3138_v11 = vmul.f32 %v3137_v50, %v6886_v62  ;;  %v3237_v18 = vmul.f32 %v3221_v32, %v2549_v52  ;;  %v3086_v22 = vsel %vm3083_vm7, %v3085_v14, %v3081_v46 }
 0x862   : >> { %v3102_v26 = vmul.f32 %v3101_v44, %v6741_v19  ;;  %v3178_v7 = vmul.f32 %v3177_v3, %v6891_v59  ;;  %v3126_v55 = vsel %vm3123_vm8, %v3125_v28, %v3121_v23  ;;  %v3155_v56 = vsub.f32 1.0, %v3154_v51 }
 0x863   : >> { %v3195_v12 = vsub.f32 1.0, %v3194_v47  ;;  %v3087_v49 = vmul.f32 %v3086_v22, %v3062_v13  ;;  %v3139_v36 = vadd.f32 0.18741608, %v3138_v11  ;;  %v3247_v35 = vpack.c.bf16 %v3237_v18, %v3236_v45  ;;  %v3251_v45 = vld [vmem:[#allocation2 + $0x8] sm:$0xff] }
 0x864   : >> { %v3127_v58 = vmul.f32 %v3126_v55, %v3102_v26  ;;  %v3179_v17 = vadd.f32 0.18741608, %v3178_v7  ;;  %v3156_v5 = vmul.f32 %v7084_v29, %v3155_v56  ;;  %vm3158_vm9 = vweird.f32 %v7060_v30  ;;  %v3254_v55 = vld [vmem:[#allocation2 + $0x20] sm:$0xff] }
 0x865   : >> { %v3196_v1 = vmul.f32 %v7093_v57, %v3195_v12  ;;  %v4218_v38 = vclamps-f32 %v3087_v49, 1.0  ;;  %v3140_v6 = vmul.f32 %v3139_v36, %v6886_v62  ;;  %vm3159_vm10 = vweird.f32 %v7084_v29  ;;  %v3255_v49 = vld [vmem:[#allocation2 + $0x28] sm:$0xff] }
 0x866   : >> { %v4219_v19 = vclamps-f32 %v3127_v58, 1.0  ;;  %v3180_v43 = vmul.f32 %v3179_v17, %v6891_v59  ;;  %vm3198_vm11 = vweird.f32 %v7065_v9  ;;  %vm3199_vm12 = vweird.f32 %v7093_v57  ;;  %vm7128_vm13 = vmor %vm3158_vm9, %vm3159_vm10  ;;  %v3256_v17 = vld [vmem:[#allocation2 + $0x30] sm:$0xff] }
 0x867   : >> { %v3164_v15 = vand.u32 2147483648, %v7060_v30  ;;  %v3204_v39 = vand.u32 2147483648, %v7065_v9  ;;  %v3157_v25 = vadd.f32 %v7084_v29, %v3156_v5  ;;  %v3162_v62 = vand.u32 2147483647, %v7060_v30  ;;  %vm7137_vm15 = vmor %vm3198_vm11, %vm3199_vm12 }
 0x868   : >> { %v3197_v2 = vadd.f32 %v7093_v57, %v3196_v1  ;;  %v3202_v59 = vand.u32 2147483647, %v7065_v9  ;;  %v2550_v48 = vmul.f32 0.5, %v6687_v24  ;;  %v2551_v34 = vmul.f32 0.5, %v6719_v54  ;;  %v3257_v1 = vld [vmem:[#allocation2 + $0x38] sm:$0xff] }
 0x869   : >> { %v3222_v33 = vadd.f32 1.0, %v4218_v38  ;;  %v3223_v20 = vadd.f32 1.0, %v4219_v19  ;;  %v3141_v41 = vadd.f32 1.1283791, %v3140_v6  ;;  %v3181_v37 = vadd.f32 1.1283791, %v3180_v43 }
 0x86a   : >> { %4245 = vmatmul.msk.bf16.gmra.mxu2 %vm3301_vm14, %v3247_v35  ;;  %v3165_v21 = vor.u32 1.1754944e-38, %v3164_v15  ;;  %v3205_v40 = vor.u32 1.1754944e-38, %v3204_v39  ;;  %v3161_v30 = vsel %vm7128_vm13, %v7084_v29, %v3157_v25  ;;  %vm3163_vm1 = vcmp.eq.f32.partialorder %v3162_v62, 8.507059e+37  ;;  %v3258_v19 = vld [vmem:[#allocation2 + $0x40] sm:$0xff]  ;;  %v3259_v39 = vld [vmem:[#allocation2 + $0x48] sm:$0xff]  ;;  %v3260_v62 = vld [vmem:[#allocation2 + $0x50] sm:$0xff] }
 0x86b   : >> { %v3201_v24 = vsel %vm7137_vm15, %v7093_v57, %v3197_v2  ;;  %vm3203_vm2 = vcmp.eq.f32.partialorder %v3202_v59, 8.507059e+37  ;;  %v3238_v54 = vmul.f32 %v3222_v33, %v2550_v48  ;;  %v3239_v9 = vmul.f32 %v3223_v20, %v2551_v34  ;;  %v3261_v48 = vld [vmem:[#allocation2 + $0x58] sm:$0xff]  ;;  %v3262_v33 = vld [vmem:[#allocation2 + $0x60] sm:$0xff] }
 0x86c   : >> { %v3142_v42 = vmul.f32 %v3141_v41, %v6842_v4  ;;  %v3182_v27 = vmul.f32 %v3181_v37, %v6859_v31  ;;  %v3166_v52 = vsel %vm3163_vm1, %v3165_v21, %v3161_v30  ;;  %v3206_v63 = vsel %vm3203_vm2, %v3205_v40, %v3201_v24  ;;  %v3250_v31 = vld [vmem:[#allocation2] sm:$0xff]  ;;  %v3263_v37 = vld [vmem:[#allocation2 + $0x68] sm:$0xff]  ;;  %v3264_v30 = vld [vmem:[#allocation2 + $0x70] sm:$0xff] }
 0x86d   : >> { %v3248_v32 = vpack.c.bf16 %v3239_v9, %v3238_v54  ;;  %v2552_v44 = vmul.f32 0.5, %v6824_v0  ;;  %v2553_v57 = vmul.f32 0.5, %v6836_v16  ;;  %v3252_v0 = vld [vmem:[#allocation2 + $0x10] sm:$0xff]  ;;  %v3253_v16 = vld [vmem:[#allocation2 + $0x18] sm:$0xff] }
 0x86e   : >> { %v3167_v61 = vmul.f32 %v3166_v52, %v3142_v42  ;;  %v3207_v50 = vmul.f32 %v3206_v63, %v3182_v27  ;;  %v3265_v9 = vld [vmem:[#allocation2 + $0x78] sm:$0xff]  ;;  %v7175_v63 = vld [vmem:[%s7730_s16] ss:$0 sm:$0xff] (%p2437_p2) }
 0x870   : >> { %v4220_v29 = vclamps-f32 %v3167_v61, 1.0  ;;  %v4221_v14 = vclamps-f32 %v3207_v50, 1.0 }
 0x872   : >> { %v3224_v3 = vadd.f32 1.0, %v4220_v29  ;;  %v3225_v46 = vadd.f32 1.0, %v4221_v14 }
 0x874   : >> { %v3240_v28 = vmul.f32 %v3224_v3, %v2552_v44  ;;  %v3241_v23 = vmul.f32 %v3225_v46, %v2553_v57 }
 0x876   : >> { %v3249_v4 = vpack.c.bf16 %v3241_v23, %v3240_v28 }
 0x87a   : >> { %4246 = vmatmul.msk.bf16.gmra.mxu2 %vm3301_vm14, %v3248_v32 }
 0x88a   : >> { %4247 = vmatmul.msk.bf16.gmra.mxu2 %vm3301_vm14, %v3249_v4 }
 0x88c   : >> { %v3335_v51 = vpop.f32.mrf.mxu1 }
 0x88d   : >> { %v3375_v47 = vadd.f32 %v3335_v51, %v3250_v31 }
 0x88f   : >> { %3391 = vst.msk [vmem:[#allocation2] sm:$0xff] %vm955_vm0, %v3375_v47 }
 0x894   : >> { %v3337_v13 = vpop.f32.mrf.mxu1 }
 0x895   : >> { %v3376_v11 = vadd.f32 %v3337_v13, %v3251_v45 }
 0x897   : >> { %3392 = vst.msk [vmem:[#allocation2 + $0x8] sm:$0xff] %vm955_vm0, %v3376_v11 }
 0x89c   : >> { %v3340_v18 = vpop.f32.mrf.mxu1 }
 0x89d   : >> { %v3377_v22 = vadd.f32 %v3340_v18, %v3252_v0 }
 0x89f   : >> { %3393 = vst.msk [vmem:[#allocation2 + $0x10] sm:$0xff] %vm955_vm0, %v3377_v22 }
 0x8a4   : >> { %v3342_v26 = vpop.f32.mrf.mxu1 }
 0x8a5   : >> { %v3378_v7 = vadd.f32 %v3342_v26, %v3253_v16 }
 0x8a7   : >> { %3394 = vst.msk [vmem:[#allocation2 + $0x18] sm:$0xff] %vm955_vm0, %v3378_v7 }
 0x8ac   : >> { %v3345_v56 = vpop.f32.mrf.mxu1 }
 0x8ad   : >> { %v3379_v12 = vadd.f32 %v3345_v56, %v3254_v55 }
 0x8af   : >> { %3395 = vst.msk [vmem:[#allocation2 + $0x20] sm:$0xff] %vm955_vm0, %v3379_v12 }
 0x8b4   : >> { %v3347_v36 = vpop.f32.mrf.mxu1 }
 0x8b5   : >> { %v3380_v58 = vadd.f32 %v3347_v36, %v3255_v49 }
 0x8b6   : > { %v3411_v12 = vld [vmem:[#allocation2 + $0x20] sm:$0xff] (%p2437_p2) }
 0x8b7   : >> { %3396 = vst.msk [vmem:[#allocation2 + $0x28] sm:$0xff] %vm955_vm0, %v3380_v58  ;;  %v7217_v58 = vadd.f32 (%p2437_p2), %v7175_v63, %v3411_v12 }
 0x8bc   : >> { %v3350_v35 = vpop.f32.mrf.mxu1 }
 0x8bd   : >> { %v3381_v5 = vadd.f32 %v3350_v35, %v3256_v17 }
 0x8be   : > { %v3412_v49 = vld [vmem:[#allocation2 + $0x28] sm:$0xff] (%p2437_p2) }
 0x8bf   : >> { %3397 = vst.msk [vmem:[#allocation2 + $0x30] sm:$0xff] %vm955_vm0, %v3381_v5  ;;  %v7220_v17 = vadd.f32 (%p2437_p2), %v7175_v63, %v3412_v49  ;;  %v3457_v5 = vsel (%p2437_p2), %vm955_vm0, %v7217_v58, 0.0 }
 0x8c4   : >> { %v3352_v38 = vpop.f32.mrf.mxu1 }
 0x8c5   : >> { %v3382_v6 = vadd.f32 %v3352_v38, %v3257_v1  ;;  %v3460_v1 = vsel (%p2437_p2), %vm955_vm0, %v7220_v17, 0.0  ;;  %v3410_v38 = vld [vmem:[#allocation2 + $0x18] sm:$0xff] (%p2437_p2) }
 0x8c6   : > { %v3413_v0 = vld [vmem:[#allocation2 + $0x30] sm:$0xff] (%p2437_p2) }
 0x8c7   : >> { %3398 = vst.msk [vmem:[#allocation2 + $0x38] sm:$0xff] %vm955_vm0, %v3382_v6  ;;  %v7205_v16 = vadd.f32 (%p2437_p2), %v7175_v63, %v3413_v0  ;;  %v3409_v6 = vld [vmem:[#allocation2 + $0x10] sm:$0xff] (%p2437_p2)  ;;  %v3408_v0 = vld [vmem:[#allocation2 + $0x8] sm:$0xff] (%p2437_p2) }
 0x8c8   : > { %v7295_v49 = vadd.f32 (%p2437_p2), %v7175_v63, %v3408_v0 }
 0x8c9   : > { %v3463_v55 = vsel (%p2437_p2), %vm955_vm0, %v7205_v16, 0.0 }
 0x8ce   : > { %v3414_v56 = vld [vmem:[#allocation2 + $0x38] sm:$0xff] (%p2437_p2) }
 0x8cf   : > { %v7214_v36 = vadd.f32 (%p2437_p2), %v7175_v63, %v3414_v56 }
 0x8d1   : > { %v3466_v35 = vsel (%p2437_p2), %vm955_vm0, %v7214_v36, 0.0 }
 0x8dd   : >> { %v3355_v43 = vpop.f32.mrf.mxu2 }
 0x8de   : >> { %v3383_v15 = vadd.f32 %v3355_v43, %v3258_v19  ;;  %v7229_v19 = vadd.f32 (%p2437_p2), %v7175_v63, %v3410_v38  ;;  %v7232_v43 = vadd.f32 (%p2437_p2), %v7175_v63, %v3409_v6  ;;  %v3448_v6 = vsel (%p2437_p2), %vm955_vm0, %v7295_v49, 0.0 }
 0x8e0   : >> { %3399 = vst.msk [vmem:[#allocation2 + $0x40] sm:$0xff] %vm955_vm0, %v3383_v15  ;;  %v3454_v15 = vsel (%p2437_p2), %vm955_vm0, %v7229_v19, 0.0 }
 0x8e5   : >> { %v3357_v25 = vpop.f32.mrf.mxu2 }
 0x8e6   : >> { %v3384_v10 = vadd.f32 %v3357_v25, %v3259_v39  ;;  %v3451_v39 = vsel (%p2437_p2), %vm955_vm0, %v7232_v43, 0.0 }
 0x8e7   : > { %v3415_v11 = vld [vmem:[#allocation2 + $0x40] sm:$0xff] (%p2437_p2) }
 0x8e8   : >> { %3400 = vst.msk [vmem:[#allocation2 + $0x48] sm:$0xff] %vm955_vm0, %v3384_v10  ;;  %v7202_v22 = vadd.f32 (%p2437_p2), %v7175_v63, %v3415_v11 }
 0x8ea   : > { %v3469_v7 = vsel (%p2437_p2), %vm955_vm0, %v7202_v22, 0.0 }
 0x8ed   : >> { %v3360_v2 = vpop.f32.mrf.mxu2 }
 0x8ee   : >> { %v3385_v59 = vadd.f32 %v3360_v2, %v3260_v62 }
 0x8ef   : > { %v3416_v13 = vld [vmem:[#allocation2 + $0x48] sm:$0xff] (%p2437_p2) }
 0x8f0   : >> { %3401 = vst.msk [vmem:[#allocation2 + $0x50] sm:$0xff] %vm955_vm0, %v3385_v59  ;;  %v7199_v18 = vadd.f32 (%p2437_p2), %v7175_v63, %v3416_v13 }
 0x8f2   : > { %v3472_v26 = vsel (%p2437_p2), %vm955_vm0, %v7199_v18, 0.0 }
 0x8f5   : >> { %v3362_v34 = vpop.f32.mrf.mxu2 }
 0x8f6   : >> { %v3386_v53 = vadd.f32 %v3362_v34, %v3261_v48 }
 0x8f7   : > { %v3417_v29 = vld [vmem:[#allocation2 + $0x50] sm:$0xff] (%p2437_p2) }
 0x8f8   : >> { %3402 = vst.msk [vmem:[#allocation2 + $0x58] sm:$0xff] %vm955_vm0, %v3386_v53  ;;  %v7182_v3 = vadd.f32 (%p2437_p2), %v7175_v63, %v3417_v29  ;;  %v3407_v53 = vld [vmem:[#allocation2] sm:$0xff] (%p2437_p2) }
 0x8fa   : > { %v3475_v28 = vsel (%p2437_p2), %vm955_vm0, %v7182_v3, 0.0 }
 0x8fb   : > { %3476 = vadd.xlane.f32.xlu2 (%p2437_p2), %v3475_v28 }
 0x8fd   : >> { %v3365_v20 = vpop.f32.mrf.mxu2 }
 0x8fe   : >> { %v3387_v41 = vadd.f32 %v3365_v20, %v3262_v33 }
 0x8ff   : > { %v3418_v46 = vld [vmem:[#allocation2 + $0x58] sm:$0xff] (%p2437_p2) }
 0x900   : >> { %3403 = vst.msk [vmem:[#allocation2 + $0x60] sm:$0xff] %vm955_vm0, %v3387_v41  ;;  %v7192_v31 = vadd.f32 (%p2437_p2), %v7175_v63, %v3418_v46 }
 0x902   : > { %v3478_v45 = vsel (%p2437_p2), %vm955_vm0, %v7192_v31, 0.0 }
 0x903   : > { %3479 = vadd.xlane.f32.xlu2 (%p2437_p2), %v3478_v45 }
 0x905   : >> { %v3367_v21 = vpop.f32.mrf.mxu2 }
 0x906   : >> { %v3388_v40 = vadd.f32 %v3367_v21, %v3263_v37 }
 0x907   : > { %v3419_v61 = vld [vmem:[#allocation2 + $0x60] sm:$0xff] (%p2437_p2) }
 0x908   : >> { %3404 = vst.msk [vmem:[#allocation2 + $0x68] sm:$0xff] %vm955_vm0, %v3388_v40  ;;  %v7179_v32 = vadd.f32 (%p2437_p2), %v7175_v63, %v3419_v61 }
 0x90a   : > { %v3481_v60 = vsel (%p2437_p2), %vm955_vm0, %v7179_v32, 0.0 }
 0x90b   : > { %3482 = vadd.xlane.f32.xlu1 (%p2437_p2), %v3481_v60  ;;  %3464 = vadd.xlane.f32.xlu2 (%p2437_p2), %v3463_v55 }
 0x90d   : >> { %v3370_v24 = vpop.f32.mrf.mxu2 }
 0x90e   : >> { %v3389_v54 = vadd.f32 %v3370_v24, %v3264_v30 }
 0x90f   : > { %v3420_v44 = vld [vmem:[#allocation2 + $0x68] sm:$0xff] (%p2437_p2) }
 0x910   : >> { %3405 = vst.msk [vmem:[#allocation2 + $0x70] sm:$0xff] %vm955_vm0, %v3389_v54  ;;  %v3440_v4 = vadd.f32 (%p2437_p2), %v7175_v63, %v3420_v44  ;;  %v7250_v54 = vadd.f32 (%p2437_p2), %v7175_v63, %v3407_v53 }
 0x912   : > { %v3484_v47 = vsel (%p2437_p2), %vm955_vm0, %v3440_v4, 0.0 }
 0x913   : > { %3485 = vadd.xlane.f32.xlu1 (%p2437_p2), %v3484_v47  ;;  %3461 = vadd.xlane.f32.xlu2 (%p2437_p2), %v3460_v1 }
 0x914   : > { %2439 = sbr.rel (!%p2437_p2) target bundleno = 1828 (0x724), region = 191 }
 0x915   : >> { %v3372_v42 = vpop.f32.mrf.mxu2 }
 0x916   : >> { %v3390_v27 = vadd.f32 %v3372_v42, %v3265_v9 }
 0x917   : > { %v3421_v52 = vld [vmem:[#allocation2 + $0x70] sm:$0xff] (%p2437_p2) }
 0x918   : >> { %3406 = vst.msk [vmem:[#allocation2 + $0x78] sm:$0xff] %vm955_vm0, %v3390_v27  ;;  %v3441_v50 = vadd.f32 (%p2437_p2), %v7175_v63, %v3421_v52 }
 0x91a   : > { %v3487_v57 = vsel %vm955_vm0, %v3441_v50, 0.0 }
 0x91b   : > { %3488 = vadd.xlane.f32.xlu0 %v3487_v57  ;;  %3473 = vadd.xlane.f32.xlu1 %v3472_v26 }
 0x91c   : > { %3452 = vadd.xlane.f32.xlu2 %v3451_v39 }
 0x91f   : > { %v3422_v14 = vld [vmem:[#allocation2 + $0x78] sm:$0xff] }
 0x920   : > { %v3442_v23 = vadd.f32 %v7175_v63, %v3422_v14  ;;  %v3445_v14 = vsel %vm955_vm0, %v7250_v54, 0.0 }
 0x922   : > { %v3490_v51 = vsel %vm955_vm0, %v3442_v23, 0.0 }
 0x923   : > { %3491 = vadd.xlane.f32.xlu0 %v3490_v51  ;;  %3458 = vadd.xlane.f32.xlu1 %v3457_v5 }
 0x92b   : > { %3470 = vadd.xlane.f32.xlu0 %v3469_v7 }
 0x933   : > { %3467 = vadd.xlane.f32.xlu0 %v3466_v35 }
 0x93b   : > { %3455 = vadd.xlane.f32.xlu0 %v3454_v15 }
 0x96e   : > { %v3477_v2 = vpop.xlane.xlu2 %3476 }
 0x96f   : > { %v3503_v40 = vmul.f32 %v3477_v2, %v5166_v8 }
 0x971   : > { %v7260_v52 = vsub.f32 %v7182_v3, %v3503_v40 }
 0x976   : > { %v3480_v30 = vpop.xlane.xlu2 %3479 }
 0x977   : > { %v3504_v24 = vmul.f32 %v3480_v30, %v5166_v8 }
 0x979   : > { %v7267_v29 = vsub.f32 %v7192_v31, %v3504_v24 }
 0x97b   : > { %v3536_v31 = vmul.f32 %v7267_v29, %v7267_v29 }
 0x97d   : > { %v3574_v11 = vsel %vm955_vm0, %v3536_v31, 0.0 }
 0x97e   : > { %v3483_v10 = vpop.xlane.xlu1 %3482  ;;  %v3465_v46 = vpop.xlane.xlu2 %3464 }
 0x97f   : > { %v3505_v41 = vmul.f32 %v3483_v10, %v5166_v8 }
 0x981   : > { %v7257_v27 = vsub.f32 %v7179_v32, %v3505_v41 }
 0x983   : > { %v3537_v28 = vmul.f32 %v7257_v27, %v7257_v27 }
 0x985   : > { %v3577_v47 = vsel %vm955_vm0, %v3537_v28, 0.0 }
 0x986   : > { %v3486_v20 = vpop.xlane.xlu1 %3485  ;;  %v3462_v56 = vpop.xlane.xlu2 %3461 }
 0x987   : > { %v3506_v21 = vmul.f32 %v3486_v20, %v5166_v8 }
 0x989   : > { %v7254_v42 = vsub.f32 %v3440_v4, %v3506_v21  ;;  %v3499_v4 = vmul.f32 %v3465_v46, %v5166_v8 }
 0x98b   : > { %v7287_v13 = vsub.f32 %v7205_v16, %v3499_v4  ;;  %v3498_v16 = vmul.f32 %v3462_v56, %v5166_v8 }
 0x98d   : > { %v3531_v35 = vmul.f32 %v7287_v13, %v7287_v13  ;;  %v7310_v15 = vsub.f32 %v7220_v17, %v3498_v16 }
 0x98e   : > { %v3489_v25 = vpop.xlane.xlu0 %3488  ;;  %v3474_v3 = vpop.xlane.xlu1 %3473 }
 0x98f   : > { %v3507_v62 = vmul.f32 %v3489_v25, %v5166_v8  ;;  %v3502_v60 = vmul.f32 %v3474_v3, %v5166_v8  ;;  %v3559_v63 = vsel %vm955_vm0, %v3531_v35, 0.0  ;;  %v3530_v17 = vmul.f32 %v7310_v15, %v7310_v15 }
 0x991   : > { %v7239_v59 = vsub.f32 %v3441_v50, %v3507_v62  ;;  %v3538_v50 = vmul.f32 %v7254_v42, %v7254_v42  ;;  %v7282_v51 = vsub.f32 %v7199_v18, %v3502_v60  ;;  %v3556_v53 = vsel %vm955_vm0, %v3530_v17, 0.0 }
 0x993   : > { %v3539_v48 = vmul.f32 %v7239_v59, %v7239_v59  ;;  %v3580_v32 = vsel %vm955_vm0, %v3538_v50, 0.0  ;;  %v3534_v12 = vmul.f32 %v7282_v51, %v7282_v51 }
 0x994   : > { %3581 = vadd.xlane.f32.xlu2 %v3580_v32 }
 0x995   : > { %v3583_v34 = vsel %vm955_vm0, %v3539_v48, 0.0  ;;  %v3568_v38 = vsel %vm955_vm0, %v3534_v12, 0.0 }
 0x996   : > { %v3492_v33 = vpop.xlane.xlu0 %3491  ;;  %3584 = vadd.xlane.f32.xlu0 %v3583_v34  ;;  %v3459_v7 = vpop.xlane.xlu1 %3458 }
 0x997   : > { %v3508_v37 = vmul.f32 %v3492_v33, %v5166_v8  ;;  %v3497_v18 = vmul.f32 %v3459_v7, %v5166_v8  ;;  %v3453_v33 = vpop.xlane.xlu2 %3452 }
 0x998   : > { %v3495_v41 = vmul.f32 %v3453_v33, %v5166_v8 }
 0x999   : > { %v7252_v9 = vsub.f32 %v3442_v23, %v3508_v37  ;;  %v3535_v23 = vmul.f32 %v7260_v52, %v7260_v52  ;;  %v7304_v1 = vsub.f32 %v7217_v58, %v3497_v18 }
 0x99a   : > { %v7337_v37 = vsub.f32 %v7232_v43, %v3495_v41 }
 0x99b   : > { %v3540_v61 = vmul.f32 %v7252_v9, %v7252_v9  ;;  %v3571_v45 = vsel %vm955_vm0, %v3535_v23, 0.0  ;;  %v3529_v58 = vmul.f32 %v7304_v1, %v7304_v1 }
 0x99c   : > { %3572 = vadd.xlane.f32.xlu2 %v3571_v45  ;;  %v3527_v40 = vmul.f32 %v7337_v37, %v7337_v37 }
 0x99d   : > { %v3586_v44 = vsel %vm955_vm0, %v3540_v61, 0.0  ;;  %v3553_v48 = vsel %vm955_vm0, %v3529_v58, 0.0 }
 0x99e   : > { %3587 = vadd.xlane.f32.xlu1 %v3586_v44  ;;  %v3471_v57 = vpop.xlane.xlu0 %3470  ;;  %3446 = vadd.xlane.f32.xlu0 %v3445_v14  ;;  %v3547_v30 = vsel %vm955_vm0, %v3527_v40, 0.0 }
 0x99f   : > { %v3501_v55 = vmul.f32 %v3471_v57, %v5166_v8 }
 0x9a1   : > { %v7301_v5 = vsub.f32 %v7202_v22, %v3501_v55 }
 0x9a3   : > { %v3533_v10 = vmul.f32 %v7301_v5, %v7301_v5 }
 0x9a4   : > { %3569 = vadd.xlane.f32.xlu2 %v3568_v38 }
 0x9a5   : > { %v3565_v34 = vsel %vm955_vm0, %v3533_v10, 0.0 }
 0x9a6   : > { %3578 = vadd.xlane.f32.xlu1 %v3577_v47  ;;  %v3468_v26 = vpop.xlane.xlu0 %3467  ;;  %3575 = vadd.xlane.f32.xlu0 %v3574_v11 }
 0x9a7   : > { %v3500_v25 = vmul.f32 %v3468_v26, %v5166_v8 }
 0x9a9   : > { %v7322_v62 = vsub.f32 %v7214_v36, %v3500_v25 }
 0x9ab   : > { %v3532_v36 = vmul.f32 %v7322_v62, %v7322_v62 }
 0x9ac   : > { %3554 = vadd.xlane.f32.xlu2 %v3553_v48 }
 0x9ad   : > { %v3562_v21 = vsel %vm955_vm0, %v3532_v36, 0.0 }
 0x9ae   : > { %3449 = vadd.xlane.f32.xlu1 %v3448_v6  ;;  %v3456_v39 = vpop.xlane.xlu0 %3455  ;;  %3560 = vadd.xlane.f32.xlu0 %v3559_v63 }
 0x9af   : > { %v3496_v22 = vmul.f32 %v3456_v39, %v5166_v8 }
 0x9b1   : > { %v7325_v2 = vsub.f32 %v7229_v19, %v3496_v22 }
 0x9b3   : > { %v3528_v20 = vmul.f32 %v7325_v2, %v7325_v2 }
 0x9b5   : > { %v3550_v19 = vsel %vm955_vm0, %v3528_v20, 0.0 }
 0x9b6   : > { %3566 = vadd.xlane.f32.xlu1 %v3565_v34  ;;  %3557 = vadd.xlane.f32.xlu0 %v3556_v53 }
 0x9b7   : > { %3551 = vadd.xlane.f32.xlu2 %v3550_v19 }
 0x9be   : > { %3563 = vadd.xlane.f32.xlu1 %v3562_v21 }
 0x9c6   : > { %3548 = vadd.xlane.f32.xlu1 %v3547_v30 }
 0xa07   : > { %v3582_v44 = vpop.xlane.xlu2 %3581 }
 0xa08   : > { %v3602_v32 = vmul.f32 %v3582_v44, %v5166_v8 }
 0xa09   : > { %v3585_v24 = vpop.xlane.xlu0 %3584 }
 0xa0a   : > { %v3603_v61 = vmul.f32 %v3585_v24, %v5166_v8  ;;  %v7347_v28 = vadd.f32 1e-05, %v3602_v32 }
 0xa0c   : > { %v3619_v50 = vadd.f32 1e-05, %v3603_v61  ;;  %vm3757_vm7 = vweird.f32 %v7347_v28 }
 0xa0e   : > { %4595 = vrsqrt.f32 %v3619_v50  ;;  %vm3767_vm3 = vweird.f32 %v3619_v50 }
 0xa0f   : > { %v3573_v0 = vpop.xlane.xlu2 %3572 }
 0xa10   : > { %v3599_v55 = vmul.f32 %v3573_v0, %v5166_v8 }
 0xa11   : > { %v3588_v14 = vpop.xlane.xlu1 %3587  ;;  %v3447_v3 = vpop.xlane.xlu0 %3446 }
 0xa12   : > { %v3604_v43 = vmul.f32 %v3588_v14, %v5166_v8  ;;  %v3493_v57 = vmul.f32 %v3447_v3, %v5166_v8  ;;  %v7363_v35 = vadd.f32 1e-05, %v3599_v55 }
 0xa14   : > { %v4596_v60 = vpop.eup %4595  ;;  %v3620_v46 = vadd.f32 1e-05, %v3604_v43  ;;  %v7350_v4 = vsub.f32 %v7250_v54, %v3493_v57  ;;  %vm3727_vm13 = vweird.f32 %v7363_v35 }
 0xa15   : > { %v3762_v23 = vmul.f32 %v4596_v60, %v3619_v50  ;;  %vm3768_vm14 = vweird.f32 %v4596_v60 }
 0xa16   : > { %4597 = vrsqrt.f32 %v3620_v46  ;;  %v3525_v47 = vmul.f32 %v7350_v4, %v7350_v4  ;;  %vm7379_vm4 = vmor %vm3767_vm3, %vm3768_vm14  ;;  %vm3777_vm6 = vweird.f32 %v3620_v46 }
 0xa17   : > { %v3763_v31 = vmul.f32 %v4596_v60, %v3762_v23  ;;  %4599 = vrsqrt.f32 %v7347_v28  ;;  %v3570_v17 = vpop.xlane.xlu2 %3569  ;;  %v7414_v23 = vld [vmem:[%s7731_s17] ss:$0 sm:$0xff] }
 0xa18   : > { %v3541_v26 = vsel %vm955_vm0, %v3525_v47, 0.0  ;;  %v3598_v53 = vmul.f32 %v3570_v17, %v5166_v8 }
 0xa19   : > { %v3764_v45 = vmul.f32 0.5, %v3763_v31  ;;  %v3579_v11 = vpop.xlane.xlu1 %3578  ;;  %3542 = vadd.xlane.f32.xlu0 %v3541_v26  ;;  %v3576_v56 = vpop.xlane.xlu0 %3575 }
 0xa1a   : > { %v3601_v7 = vmul.f32 %v3579_v11, %v5166_v8  ;;  %v3600_v54 = vmul.f32 %v3576_v56, %v5166_v8  ;;  %v7387_v40 = vadd.f32 1e-05, %v3598_v53 }
 0xa1b   : > { %v3765_v12 = vsub.f32 1.5, %v3764_v45 }
 0xa1c   : > { %v7359_v18 = vpop.eup %4597  ;;  %v7361_v16 = vadd.f32 1e-05, %v3601_v7  ;;  %v7368_v63 = vadd.f32 1e-05, %v3600_v54 }
 0xa1d   : > { %v7365_v38 = vpop.eup %4599  ;;  %v3772_v6 = vmul.f32 %v7359_v18, %v3620_v46  ;;  %v3766_v22 = vmul.f32 %v4596_v60, %v3765_v12  ;;  %vm3778_vm5 = vweird.f32 %v7359_v18 }
 0xa1e   : > { %v3752_v39 = vmul.f32 %v7365_v38, %v7347_v28  ;;  %4601 = vrsqrt.f32 %v7361_v16  ;;  %vm7418_vm8 = vmor %vm3777_vm6, %vm3778_vm5  ;;  %vm3758_vm9 = vweird.f32 %v7365_v38  ;;  %vm3747_vm10 = vweird.f32 %v7361_v16 }
 0xa1f   : > { %v3773_v25 = vmul.f32 %v7359_v18, %v3772_v6  ;;  %4603 = vrsqrt.f32 %v7363_v35  ;;  %v3770_v24 = vsel %vm7379_vm4, %v4596_v60, %v3766_v22  ;;  %v3555_v11 = vpop.xlane.xlu2 %3554  ;;  %vm7440_vm11 = vmor %vm3757_vm7, %vm3758_vm9  ;;  %v7449_v22 = vld [vmem:[%s7904_s26] ss:$0 sm:$0xff]  ;;  %vm3737_vm15 = vweird.f32 %v7368_v63  ;;  %s3907_s26 = sshll.u32 %s3903_s21, 4  ;;  %s3908_s26 = int_to_ptr.hbm [resolvable:$true] %s3907_s26 }
 0xa20   : > { %v3753_v58 = vmul.f32 %v7365_v38, %v3752_v39  ;;  %4605 = vrsqrt.f32 %v7368_v63  ;;  %v3795_v60 = vmul.f32 %v3770_v24, %v7239_v59  ;;  %v3593_v55 = vmul.f32 %v3555_v11, %v5166_v8  ;;  %s4731_s5 = sshra.s32 %s3908_s26, 4  ;;  %s4732_s5 = int_to_ptr.hbm [resolvable:$true] %s4731_s5 }
 0xa21   : > { %v3774_v10 = vmul.f32 0.5, %v3773_v25  ;;  %v3450_v48 = vpop.xlane.xlu1 %3449  ;;  %v3561_v20 = vpop.xlane.xlu0 %3560  ;;  %4607 = vrsqrt.f32 %v7387_v40  ;;  %vm3717_vm4 = vweird.f32 %v7387_v40  ;;  %p4738_p7 = scmp.lt.s32.totalorder %s4732_s5, %s7924_s20 }
 0xa22   : > { %v3754_v34 = vmul.f32 0.5, %v3753_v58  ;;  %v3494_v33 = vmul.f32 %v3450_v48, %v5166_v8  ;;  %v3595_v19 = vmul.f32 %v3561_v20, %v5166_v8  ;;  %v3814_v25 = vmul.f32 %v7414_v23, %v3795_v60 }
 0xa23   : > { %v3775_v36 = vsub.f32 1.5, %v3774_v10  ;;  %v7453_v10 = vadd.f32 1e-05, %v3593_v55 }
 0xa24   : > { %v7384_v21 = vpop.eup %4601  ;;  %v7390_v30 = vsub.f32 %v7295_v49, %v3494_v33  ;;  %v3755_v14 = vsub.f32 1.5, %v3754_v34  ;;  %v7399_v43 = vadd.f32 1e-05, %v3595_v19  ;;  %v3833_v24 = vadd.f32 %v7449_v22, %v3814_v25 }
 0xa25   : > { %v7394_v61 = vpop.eup %4603  ;;  %v3776_v50 = vmul.f32 %v7359_v18, %v3775_v36  ;;  %v3742_v44 = vmul.f32 %v7384_v21, %v7361_v16  ;;  %vm3748_vm12 = vweird.f32 %v7384_v21 }
 0xa26   : > { %v7401_v32 = vpop.eup %4605  ;;  %v3722_v49 = vmul.f32 %v7394_v61, %v7363_v35  ;;  %4609 = vrsqrt.f32 %v7399_v43  ;;  %v3526_v59 = vmul.f32 %v7390_v30, %v7390_v30  ;;  %v3756_v47 = vmul.f32 %v7365_v38, %v3755_v14  ;;  %vm3749_vm2 = vmor %vm3747_vm10, %vm3748_vm12 }
 0xa27   : > { %v3743_v3 = vmul.f32 %v7384_v21, %v3742_v44  ;;  %v3732_v57 = vmul.f32 %v7401_v32, %v7368_v63  ;;  %v3780_v26 = vsel %vm7418_vm8, %v7359_v18, %v3776_v50  ;;  %v7451_v58 = vpop.eup %4607  ;;  %vm3728_vm1 = vweird.f32 %v7394_v61 }
 0xa28   : > { %v3723_v31 = vmul.f32 %v7394_v61, %v3722_v49  ;;  %v3544_v56 = vsel %vm955_vm0, %v3526_v59, 0.0  ;;  %v3796_v48 = vmul.f32 %v3780_v26, %v7252_v9  ;;  %v3712_v53 = vmul.f32 %v7451_v58, %v7387_v40  ;;  %vm7499_vm3 = vmor %vm3727_vm13, %vm3728_vm1 }
 0xa29   : > { %v3744_v45 = vmul.f32 0.5, %v3743_v3  ;;  %v3567_v0 = vpop.xlane.xlu1 %3566  ;;  %v3733_v7 = vmul.f32 %v7401_v32, %v3732_v57  ;;  %v3558_v12 = vpop.xlane.xlu0 %3557  ;;  %3545 = vadd.xlane.f32.xlu1 %v3544_v56  ;;  %4611 = vrsqrt.f32 %v7453_v10  ;;  %v3760_v9 = vsel %vm7440_vm11, %v7365_v38, %v3756_v47 }
 0xa2a   : > { %v3597_v54 = vmul.f32 %v3567_v0, %v5166_v8  ;;  %v3724_v18 = vmul.f32 0.5, %v3723_v31  ;;  %v3594_v17 = vmul.f32 %v3558_v12, %v5166_v8  ;;  %v3713_v36 = vmul.f32 %v7451_v58, %v3712_v53  ;;  %v3552_v49 = vpop.xlane.xlu2 %3551 }
 0xa2b   : > { %v3745_v39 = vsub.f32 1.5, %v3744_v45  ;;  %v3734_v20 = vmul.f32 0.5, %v3733_v7  ;;  %v3815_v14 = vmul.f32 %v7414_v23, %v3796_v48  ;;  %v3794_v60 = vmul.f32 %v3760_v9, %v7254_v42 }
 0xa2c   : > { %v7455_v28 = vadd.f32 1e-05, %v3597_v54  ;;  %v7464_v33 = vpop.eup %4609  ;;  %v3725_v41 = vsub.f32 1.5, %v3724_v18  ;;  %v7480_v50 = vadd.f32 1e-05, %v3594_v17  ;;  %v3714_v44 = vmul.f32 0.5, %v3713_v36 }
 0xa2d   : > { %v3746_v34 = vmul.f32 %v7384_v21, %v3745_v39  ;;  %v3682_v19 = vmul.f32 %v7464_v33, %v7399_v43  ;;  %v3735_v46 = vsub.f32 1.5, %v3734_v20  ;;  %v3834_v31 = vadd.f32 %v7449_v22, %v3815_v14 }
 0xa2e   : > { %4613 = vrsqrt.f32 %v7455_v28  ;;  %v3592_v59 = vmul.f32 %v3552_v49, %v5166_v8  ;;  %v3726_v47 = vmul.f32 %v7394_v61, %v3725_v41  ;;  %vm3738_vm14 = vweird.f32 %v7401_v32 }
 0xa2f   : > { %v3750_v38 = vsel %vm3749_vm2, %v7384_v21, %v3746_v34  ;;  %v3683_v16 = vmul.f32 %v7464_v33, %v3682_v19  ;;  %4615 = vrsqrt.f32 %v7480_v50  ;;  %v3715_v21 = vsub.f32 1.5, %v3714_v44  ;;  %v7493_v11 = vpop.eup %4611  ;;  %vm7519_vm6 = vmor %vm3737_vm15, %vm3738_vm14 }
 0xa30   : > { %v3793_v57 = vmul.f32 %v3750_v38, %v7257_v27  ;;  %v3842_v27 = vpack.c.bf16 %v3834_v31, %v3833_v24  ;;  %v7503_v0 = vadd.f32 1e-05, %v3592_v59  ;;  %v3813_v7 = vmul.f32 %v7414_v23, %v3794_v60 }
 0xa31   : > { %v3564_v3 = vpop.xlane.xlu1 %3563  ;;  %v3684_v55 = vmul.f32 0.5, %v3683_v16  ;;  %v3662_v56 = vmul.f32 %v7493_v11, %v7453_v10  ;;  %v3736_v35 = vmul.f32 %v7401_v32, %v3735_v46  ;;  %vm3718_vm5 = vweird.f32 %v7451_v58 }
 0xa32   : > { %v3596_v45 = vmul.f32 %v3564_v3, %v5166_v8  ;;  %v3812_v26 = vmul.f32 %v7414_v23, %v3793_v57  ;;  %v3875_v12 = vsel %vm955_vm0, %v3842_v27, 0  ;;  %vm3707_vm7 = vweird.f32 %v7455_v28  ;;  %vm7542_vm8 = vmor %vm3717_vm4, %vm3718_vm5 }
 0xa33   : > { %3877 = vmatpush.bf16.xpose.msra.mxu0 %v3875_v12  ;;  %4617 = vrsqrt.f32 %v7503_v0  ;;  %v3730_v25 = vsel %vm7499_vm3, %v7394_v61, %v3726_v47  ;;  %v3716_v48 = vmul.f32 %v7451_v58, %v3715_v21  ;;  %v3832_v34 = vadd.f32 %v7449_v22, %v3813_v7 }
 0xa34   : > { %v4614_v54 = vpop.eup %4613  ;;  %v7513_v6 = vadd.f32 1e-05, %v3596_v45  ;;  %v3831_v63 = vadd.f32 %v7449_v22, %v3812_v26  ;;  %v3685_v53 = vsub.f32 1.5, %v3684_v55  ;;  %v3663_v20 = vmul.f32 %v7493_v11, %v3662_v56 }
 0xa35   : > { %v3702_v18 = vmul.f32 %v4614_v54, %v7455_v28  ;;  %v7529_v17 = vpop.eup %4615  ;;  %v3740_v14 = vsel %vm7519_vm6, %v7401_v32, %v3736_v35  ;;  %v3791_v38 = vmul.f32 %v3730_v25, %v7260_v52  ;;  %vm3708_vm9 = vweird.f32 %v4614_v54 }
 0xa36   : > { %4619 = vrsqrt.f32 %v7513_v6  ;;  %v3672_v41 = vmul.f32 %v7529_v17, %v7480_v50  ;;  %v3841_v19 = vpack.c.bf16 %v3832_v34, %v3831_v63  ;;  %v3792_v49 = vmul.f32 %v3740_v14, %v7267_v29  ;;  %vm7566_vm12 = vmor %vm3707_vm7, %vm3708_vm9 }
 0xa37   : > { %v3703_v9 = vmul.f32 %v4614_v54, %v3702_v18  ;;  %v3810_v57 = vmul.f32 %v7414_v23, %v3791_v38  ;;  %vm3687_vm10 = vweird.f32 %v7399_v43  ;;  %vm3688_vm11 = vweird.f32 %v7464_v33 }
 0xa38   : > { %v3673_v16 = vmul.f32 %v7529_v17, %v3672_v41  ;;  %v3872_v40 = vsel %vm955_vm0, %v3841_v19, 0  ;;  %v3720_v52 = vsel %vm7542_vm8, %v7451_v58, %v3716_v48  ;;  %v3664_v31 = vmul.f32 0.5, %v3663_v20  ;;  %vm7574_vm13 = vmor %vm3687_vm10, %vm3688_vm11 }
 0xa39   : > { %v3549_v36 = vpop.xlane.xlu1 %3548  ;;  %v3704_v44 = vmul.f32 0.5, %v3703_v9  ;;  %v7557_v60 = vpop.eup %4617  ;;  %v3811_v59 = vmul.f32 %v7414_v23, %v3792_v49  ;;  %v3686_v43 = vmul.f32 %v7464_v33, %v3685_v53  ;;  %v3829_v28 = vadd.f32 %v7449_v22, %v3810_v57 }
 0xa3a   : > { %v3591_v24 = vmul.f32 %v3549_v36, %v5166_v8  ;;  %v3674_v21 = vmul.f32 0.5, %v3673_v16  ;;  %v3790_v27 = vmul.f32 %v3720_v52, %v7282_v51  ;;  %v3652_v26 = vmul.f32 %v7557_v60, %v7503_v0 }
 0xa3b   : > { %v3705_v32 = vsub.f32 1.5, %v3704_v44  ;;  %3878 = vmatpush.bf16.xpose.msra.mxu0 %v3872_v40  ;;  %v3830_v42 = vadd.f32 %v7449_v22, %v3811_v59  ;;  %vm3697_vm15 = vweird.f32 %v7513_v6  ;;  %v3665_v56 = vsub.f32 1.5, %v3664_v31 }
 0xa3c   : > { %v7554_v3 = vadd.f32 1e-05, %v3591_v24  ;;  %v4620_v46 = vpop.eup %4619  ;;  %v3809_v39 = vmul.f32 %v7414_v23, %v3790_v27  ;;  %v3675_v18 = vsub.f32 1.5, %v3674_v21  ;;  %v3690_v51 = vsel %vm7574_vm13, %v7464_v33, %v3686_v43 }
 0xa3d   : > { %v3706_v47 = vmul.f32 %v4614_v54, %v3705_v32  ;;  %v3692_v45 = vmul.f32 %v4620_v46, %v7513_v6  ;;  %v3840_v35 = vpack.c.bf16 %v3830_v42, %v3829_v28  ;;  %vm3698_vm1 = vweird.f32 %v4620_v46 }
 0xa3e   : > { %4621 = vrsqrt.f32 %v7554_v3  ;;  %vm3667_vm2 = vweird.f32 %v7453_v10  ;;  %vm3668_vm14 = vweird.f32 %v7493_v11  ;;  %vm3677_vm3 = vweird.f32 %v7480_v50  ;;  %vm7600_vm5 = vmor %vm3697_vm15, %vm3698_vm1 }
 0xa3f   : > { %v3693_v7 = vmul.f32 %v4620_v46, %v3692_v45  ;;  %v3710_v55 = vsel %vm7566_vm12, %v4614_v54, %v3706_v47  ;;  %vm3678_vm4 = vweird.f32 %v7529_v17  ;;  %v3869_v10 = vsel %vm955_vm0, %v3840_v35, 0  ;;  %vm7609_vm6 = vmor %vm3667_vm2, %vm3668_vm14 }
 0xa40   : > { %v3789_v12 = vmul.f32 %v3710_v55, %v7301_v5  ;;  %v3653_v5 = vmul.f32 %v7557_v60, %v3652_v26  ;;  %v3828_v20 = vadd.f32 %v7449_v22, %v3809_v39  ;;  %v3787_v9 = vmul.f32 %v3690_v51, %v7287_v13  ;;  %vm7618_vm7 = vmor %vm3677_vm3, %vm3678_vm4 }
 0xa41   : > { %v3694_v25 = vmul.f32 0.5, %v3693_v7  ;;  %v3666_v41 = vmul.f32 %v7493_v11, %v3665_v56  ;;  %v3676_v6 = vmul.f32 %v7529_v17, %v3675_v18  ;;  %vm3647_vm8 = vweird.f32 %v7554_v3 }
 0xa42   : > { %v3808_v54 = vmul.f32 %v7414_v23, %v3789_v12  ;;  %v3654_v14 = vmul.f32 0.5, %v3653_v5  ;;  %v3806_v49 = vmul.f32 %v7414_v23, %v3787_v9  ;;  %vm3657_vm10 = vweird.f32 %v7503_v0 }
 0xa43   : > { %v3695_v63 = vsub.f32 1.5, %v3694_v25  ;;  %3879 = vmatpush.bf16.xpose.msra.mxu0 %v3869_v10  ;;  %v3670_v57 = vsel %vm7609_vm6, %v7493_v11, %v3666_v41  ;;  %v3680_v50 = vsel %vm7618_vm7, %v7529_v17, %v3676_v6  ;;  %vm3658_vm11 = vweird.f32 %v7557_v60 }
 0xa44   : > { %v4622_v48 = vpop.eup %4621  ;;  %v3827_v53 = vadd.f32 %v7449_v22, %v3808_v54  ;;  %v3655_v31 = vsub.f32 1.5, %v3654_v14  ;;  %v3785_v29 = vmul.f32 %v3670_v57, %v7304_v1  ;;  %v3786_v11 = vmul.f32 %v3680_v50, %v7310_v15  ;;  %vm3659_vm13 = vmor %vm3657_vm10, %vm3658_vm11 }
 0xa45   : > { %v3642_v34 = vmul.f32 %v4622_v48, %v7554_v3  ;;  %v3696_v61 = vmul.f32 %v4620_v46, %v3695_v63  ;;  %vm3648_vm9 = vweird.f32 %v4622_v48  ;;  %v3844_v63 = vld [vmem:[%s7921_s23] sm:$0xf]  ;;  %v4828_v33 = vmov 0   ;;  %s4733_s23 = scalar_lea.hbm %s4732_s5, 4 }
 0xa46   : > { %v3839_v13 = vpack.c.bf16 %v3828_v20, %v3827_v53  ;;  %vm3649_vm12 = vmor %vm3647_vm8, %vm3648_vm9  ;;  %v3656_v43 = vmul.f32 %v7557_v60, %v3655_v31  ;;  %v3804_v3 = vmul.f32 %v7414_v23, %v3785_v29  ;;  %v3805_v47 = vmul.f32 %v7414_v23, %v3786_v11  ;;  %4590 = vset.pattern.permute.xlu2 %v4828_v33  ;;  %p4734_p3 = scmp.ne.s32.totalorder %s4732_s5, %s4733_s23  ;;  %p4739_p9 = scmp.lt.s32.totalorder %s4737_s4, %s4733_s23 }
 0xa47   : > { %v3643_v19 = vmul.f32 %v4622_v48, %v3642_v34  ;;  %v3700_v44 = vsel %vm7600_vm5, %v4620_v46, %v3696_v61  ;;  %4591 = vset.pattern.permute.xlu0 %v4828_v33  ;;  %3847 = vperm.xlu2 %4590, %v3844_v63  }
 0xa48   : > { %v3788_v16 = vmul.f32 %v3700_v44, %v7322_v62  ;;  %v3866_v32 = vsel %vm955_vm0, %v3839_v13, 0  ;;  %v3825_v62 = vadd.f32 %v7449_v22, %v3806_v49  ;;  %v3660_v15 = vsel %vm3659_vm13, %v7557_v60, %v3656_v43  ;;  %v3843_v49 = vld [vmem:[%s7922_s0] sm:$0x3]  ;;  %p4735_p5 = pnand %p4734_p3, %p4979_p4  ;;  %p4740_p10 = por %p4739_p9, %p4738_p7 }
 0xa49   : > { %v3644_v38 = vmul.f32 0.5, %v3643_v19  ;;  %v3823_v0 = vadd.f32 %v7449_v22, %v3804_v3  ;;  %v3824_v45 = vadd.f32 %v7449_v22, %v3805_v47  ;;  %v3784_v28 = vmul.f32 %v3660_v15, %v7325_v2 }
 0xa4a   : > { %v3807_v52 = vmul.f32 %v7414_v23, %v3788_v16  ;;  %p4736_p6 = pneg %p4735_p5 }
 0xa4b   : > { %v3645_v40 = vsub.f32 1.5, %v3644_v38  ;;  %3880 = vmatpush.bf16.xpose.msra.mxu0 %v3866_v32  ;;  %v3837_v42 = vpack.c.bf16 %v3824_v45, %v3823_v0  ;;  %v3803_v26 = vmul.f32 %v7414_v23, %v3784_v28 }
 0xa4c   : > { %v3826_v46 = vadd.f32 %v7449_v22, %v3807_v52  ;;  %p4741_p11 = pnand %p4740_p10, %p4736_p6 }
 0xa4d   : > { %v3646_v17 = vmul.f32 %v4622_v48, %v3645_v40  ;;  %v3860_v7 = vsel %vm955_vm0, %v3837_v42, 0  ;;  %v3822_v60 = vadd.f32 %v7449_v22, %v3803_v26 }
 0xa4e   : > { %v3838_v59 = vpack.c.bf16 %v3826_v46, %v3825_v62 }
 0xa4f   : > { %v3650_v21 = vsel %vm3649_vm12, %v4622_v48, %v3646_v17 }
 0xa50   : > { %v3863_v1 = vsel %vm955_vm0, %v3838_v59, 0  ;;  %v3783_v58 = vmul.f32 %v3650_v21, %v7337_v37 }
 0xa52   : > { %v3802_v27 = vmul.f32 %v7414_v23, %v3783_v58 }
 0xa53   : > { %3881 = vmatpush.bf16.xpose.msra.mxu0 %v3863_v1 }
 0xa54   : > { %v3821_v55 = vadd.f32 %v7449_v22, %v3802_v27 }
 0xa56   : > { %v3836_v56 = vpack.c.bf16 %v3822_v60, %v3821_v55 }
 0xa58   : > { %v3857_v35 = vsel %vm955_vm0, %v3836_v56, 0 }
 0xa5b   : > { %3882 = vmatpush.bf16.xpose.msra.mxu0 %v3860_v7 }
 0xa63   : > { %3883 = vmatpush.bf16.xpose.msra.mxu0 %v3857_v35 }
 0xa8c   : > { %v3543_v37 = vpop.xlane.xlu0 %3542 }
 0xa8d   : > { %v3589_v12 = vmul.f32 %v3543_v37, %v5166_v8 }
 0xa8f   : > { %v3605_v2 = vadd.f32 1e-05, %v3589_v12 }
 0xa91   : > { %4623 = vrsqrt.f32 %v3605_v2  ;;  %vm3627_vm15 = vweird.f32 %v3605_v2 }
 0xa97   : > { %v4624_v39 = vpop.eup %4623 }
 0xa98   : > { %v3622_v18 = vmul.f32 %v4624_v39, %v3605_v2  ;;  %vm3628_vm1 = vweird.f32 %v4624_v39 }
 0xa99   : > { %vm3629_vm2 = vmor %vm3627_vm15, %vm3628_vm1 }
 0xa9a   : > { %v3623_v25 = vmul.f32 %v4624_v39, %v3622_v18 }
 0xa9c   : > { %v3546_v51 = vpop.xlane.xlu1 %3545  ;;  %v3624_v5 = vmul.f32 0.5, %v3623_v25 }
 0xa9d   : > { %v3590_v48 = vmul.f32 %v3546_v51, %v5166_v8 }
 0xa9e   : > { %v3625_v34 = vsub.f32 1.5, %v3624_v5 }
 0xa9f   : > { %v3606_v54 = vadd.f32 1e-05, %v3590_v48 }
 0xaa0   : > { %v3626_v53 = vmul.f32 %v4624_v39, %v3625_v34 }
 0xaa1   : > { %4625 = vrsqrt.f32 %v3606_v54  ;;  %vm3637_vm3 = vweird.f32 %v3606_v54 }
 0xaa2   : > { %v3630_v41 = vsel %vm3629_vm2, %v4624_v39, %v3626_v53 }
 0xaa3   : > { %v3781_v6 = vmul.f32 %v3630_v41, %v7350_v4 }
 0xaa5   : > { %v3800_v13 = vmul.f32 %v7414_v23, %v3781_v6 }
 0xaa7   : > { %v4626_v10 = vpop.eup %4625  ;;  %v3819_v38 = vadd.f32 %v7449_v22, %v3800_v13 }
 0xaa8   : > { %v3632_v20 = vmul.f32 %v4626_v10, %v3606_v54  ;;  %vm3638_vm14 = vweird.f32 %v4626_v10 }
 0xaa9   : > { %vm3639_vm4 = vmor %vm3637_vm3, %vm3638_vm14 }
 0xaaa   : > { %v3633_v9 = vmul.f32 %v4626_v10, %v3632_v20 }
 0xaac   : > { %v3634_v8 = vmul.f32 0.5, %v3633_v9 }
 0xaae   : > { %v3635_v36 = vsub.f32 1.5, %v3634_v8 }
 0xab0   : > { %v3636_v61 = vmul.f32 %v4626_v10, %v3635_v36 }
 0xab2   : > { %v3640_v19 = vsel %vm3639_vm4, %v4626_v10, %v3636_v61 }
 0xab3   : > { %v3782_v24 = vmul.f32 %v3640_v19, %v7390_v30  ;;  %v3848_v30 = vpop.permute.xlu2 %3847 }
 0xab5   : > { %v3801_v14 = vmul.f32 %v7414_v23, %v3782_v24 }
 0xab7   : > { %v3820_v44 = vadd.f32 %v7449_v22, %v3801_v14 }
 0xab9   : > { %v3835_v16 = vpack.c.bf16 %v3820_v44, %v3819_v38 }
 0xabb   : > { %v3854_v4 = vsel %vm955_vm0, %v3835_v16, 0 }
 0xabc   : > { %3884 = vmatpush.bf16.xpose.msra.mxu0 %v3854_v4 }
 0xac3   : > { %4248 = vmatmul.msk.bf16.vlgmr.msra.gmra.mxu0 %vm955_vm0, %v3843_v49 }
 0xb40   : > { %v3886_v23 = vpop.f32.mrf.mxu0 }
 0xb41   : > { %v3887_v22 = vadd.f32 %v3886_v23, %v3848_v30 }
 0xb43   : > { %3890 = vst [vmem:[%s750_s24] sm:$0xf] %v3887_v22 }
 0xb44   : > { %4744 = shalt.err (!%p4741_p11)
}
 0xb45   : > { %4325 = dma.vmem_to_hbm [thread:$0]  (%p4979_p4), %s3906_s2, 64, %s3908_s26, %s3892_s19  }
 0xb48   : > { %v3888_v40 = vpop.f32.mrf.mxu0 }
 0xb49 PF: > { %s7925_s6 = sld [smem:[#allocation16_spill]] }
 0xb4a   : > { %s7926_s18 = sld [smem:[#allocation13_spill]] }
 0xb4f   : > { %p4347_p12 = scmp.ge.s32.totalorder %s7925_s6, 2 }
 0xb50   : > { %s3919_s29 = sand.u32 1, %s7926_s18  }
 0xb51   : > { %p4338_p13 = pnand %p4347_p12, %p4986_p8  ;;  %s3920_s22 = scalar_lea.sflag [#allocation5], %s3919_s29 }
 0xb53   : > { %p4339_p0 = pneg %p4338_p13 }
 0xb55   : > { %4786 = dma.done.wait (%p4339_p0), %s3920_s22, 64  }
 0xb56   : > { %4788 = vsyncadd (%p4339_p0), %s3920_s22, 4294967232  ;;  %s36_s28 = sadd.s32 1, %s7925_s6   ;;  %s7928_s21 = sld [smem:[#allocation14_spill]] }
 0xb57   : > { %p33_p1 = scmp.ge.s32.totalorder %s36_s28, 4   ;;  %s7929_s26 = sld [smem:[#allocation20_spill]] }
 0xb58   : > { %s7930_s27 = sld [smem:[#allocation15_spill]]  ;;  %s7932_s2 = smov %s4795_s25 }
 0xb59   : > { %s7931_s3 = sld [smem:[#allocation17_spill]]  ;;  %35 = sbr.rel (!%p33_p1) target bundleno = 18 (0x12), region = 202 }
 0xb5c   : > { %s7933_s25 = smov %s7928_s21 }
 0xb5e   :  { %3926 = vsyncpa [#allocation4], 1 }
 0xb5f   :  { %3928 = vsyncpa [#allocation4 + $0x1], 1 }
 0xb60   :  { %3929 = vsyncpa [#allocation7], 1 }
 0xb61   :  { %3930 = vsyncpa [#allocation5], 1 }
 0xb62   :  { %3932 = vsyncpa [#allocation5 + $0x1], 1 }

</bundles_post_ra>
